<compile_context>
chip_gen: v7x
topology: tpu7x:2x2x1
jax: 0.10.0
libtpu: 0.0.40
codegen_flags: <defaults>
</compile_context>

<pallas_src>
import functools

import jax
import jax.numpy as jnp
from jax.experimental import pallas as pl
from jax.experimental.pallas import tpu as pltpu

NEG_SLOPE = 0.01            # nn.LeakyReLU default negative_slope
BN_EPS = 1e-5               # nn.BatchNorm2d default eps


def _leaky(y):
    return jnp.where(y > 0, y, NEG_SLOPE * y)


def _round_up(x, m):
    return ((x + m - 1) // m) * m


@functools.lru_cache(maxsize=None)
def _vmem_limit_bytes():
    """Generation-aware VMEM budget: ~85% of physical, capped at 100 MiB."""
    cap = 64 * 1024 * 1024                      # conservative fallback (v7x size)
    try:
        cap = int(pltpu.get_tpu_info().vmem_capacity_bytes)
    except Exception:
        pass
    return int(min(cap * 0.85, 100 * 1024 * 1024))


def _pick_row_tile(m, c, n, x_bytes, out_bytes, vmem_limit):
    """Row tile for 1x1 convs: multiple of 8 (128/256-aligned when possible),
    sized from the VMEM budget, and >= 2 grid blocks whenever m > 16."""
    if m <= 16:
        return m
    per_row = 2 * (c * x_bytes + n * out_bytes)          # double-buffered act+out
    budget = int(vmem_limit * 0.6) - 2 * c * n - 8 * n   # weights (2-buf) + bias
    cap = max(64, budget // max(per_row, 1))
    cap = min(cap, 2048)
    half = -(-m // 2)                                     # ceil(m/2): >= 2 blocks
    tm = min(cap, half)
    for a in (512, 256, 128):
        if tm >= a:
            return (tm // a) * a
    return max(8, (tm // 8) * 8)


def _pick_n_tile(n, max_tile=256):
    """Output-channel tile: multiple of 128 (lane-dense) or full extent."""
    if n <= max_tile:
        return n
    if n % max_tile == 0:
        return max_tile
    if n % 128 == 0:
        return 128
    return n


# ----------------------------------------------------------------------------
# Fused 1x1 conv: bf16 (tm, C) @ (C, N) matmul + bias + LeakyReLU
# ----------------------------------------------------------------------------
def _conv1x1_kernel(x_ref, w_ref, b_ref, o_ref):
    x = x_ref[...].astype(jnp.bfloat16)                  # cast fused in-kernel
    acc = jnp.dot(x, w_ref[...], preferred_element_type=jnp.float32)
    o_ref[...] = _leaky(acc + b_ref[...]).astype(o_ref.dtype)


def conv1x1_block(x_nhwc, w2d, bias, out_dtype):
    """x_nhwc: [B,H,W,C] (f32 or bf16); w2d: [C,N] bf16 (BN folded); bias:[1,N]."""
    B, H, W, C = x_nhwc.shape
    N = w2d.shape[1]
    M = B * H * W
    x2d = x_nhwc.reshape(M, C)                           # free, contiguous
    vmem = _vmem_limit_bytes()
    tm = _pick_row_tile(M, C, N,
                        jnp.dtype(x2d.dtype).itemsize,
                        jnp.dtype(out_dtype).itemsize,
                        vmem)
    grid = (pl.cdiv(M, tm),)
    y = pl.pallas_call(
        _conv1x1_kernel,
        out_shape=jax.ShapeDtypeStruct((M, N), out_dtype),
        grid_spec=pltpu.PrefetchScalarGridSpec(
            num_scalar_prefetch=0,
            grid=grid,
            in_specs=[
                pl.BlockSpec((tm, C), lambda i: (i, 0)),   # activation rows
                pl.BlockSpec((C, N), lambda i: (0, 0)),    # bf16 weights (resident)
                pl.BlockSpec((1, N), lambda i: (0, 0)),    # folded BN bias (f32)
            ],
            out_specs=pl.BlockSpec((tm, N), lambda i: (i, 0)),
        ),
        compiler_params=pltpu.CompilerParams(
            dimension_semantics=("parallel",),
            vmem_limit_bytes=vmem),
    )(x2d, w2d, bias)
    return y.reshape(B, H, W, N)


# ----------------------------------------------------------------------------
# Fused 3x3 conv (stride 1, pad 1) without im2col and without XLA-side pad:
# grid = (B, N-tiles).  When the N-tile index is 0, the unpadded (H, W, C)
# activation block is copied into a zero-initialised flat padded VMEM buffer
# (row width Wp = round_up(W+2, 8)); that buffer persists across the N tiles.
# Each of the 9 taps is a flat shift of the buffer -> 9 accumulated matmuls
# into a VMEM accumulator; the epilogue stores only the W valid columns per
# output row, so the kernel output is (B, H, W, N) directly.
# ----------------------------------------------------------------------------
def _conv3x3_kernel(x_ref, w_ref, b_ref, o_ref, xpad_ref, acc_ref, *, H, W, Wp):
    nt = pl.program_id(1)
    M_v = H * Wp

    @pl.when(nt == 0)
    def _():
        # Build the zero-padded, bf16, flat activation buffer once per image.
        xpad_ref[...] = jnp.zeros_like(xpad_ref)
        for h in range(H):
            xpad_ref[pl.ds((h + 1) * Wp + 1, W), :] = (
                x_ref[h].astype(xpad_ref.dtype))

    # 9-tap shift-and-add conv, accumulated in a VMEM scratch.
    for t in range(9):
        kh, kw = divmod(t, 3)
        xs = xpad_ref[pl.ds(kh * Wp + kw, M_v), :]        # (M_v, C) bf16
        d = jnp.dot(xs, w_ref[t], preferred_element_type=jnp.float32)
        if t == 0:
            acc_ref[...] = d
        else:
            acc_ref[...] += d

    # Epilogue: bias + LeakyReLU, store only the W valid columns per row.
    bias_v = b_ref[...]
    for h in range(H):
        yrow = acc_ref[pl.ds(h * Wp, W), :] + bias_v
        o_ref[h] = _leaky(yrow).astype(o_ref.dtype)


def conv3x3_block(x_nhwc, w9, bias, out_dtype):
    """x_nhwc: [B,H,W,C]; w9: [9,C,N] bf16 (tap-major, BN folded); bias:[1,N]."""
    B, H, W, C = x_nhwc.shape
    N = w9.shape[-1]
    Wp = _round_up(W + 2, 8)          # >= W+2, sublane-aligned tap shifts
    Hp = H + 3                        # 1 top / 2 bottom pad rows keep shifts in-bounds
    M_v = H * Wp
    tn = _pick_n_tile(N)
    grid = (B, pl.cdiv(N, tn))
    vmem = _vmem_limit_bytes()
    kern = functools.partial(_conv3x3_kernel, H=H, W=W, Wp=Wp)
    return pl.pallas_call(
        kern,
        out_shape=jax.ShapeDtypeStruct((B, H, W, N), out_dtype),
        grid_spec=pltpu.PrefetchScalarGridSpec(
            num_scalar_prefetch=0,
            grid=grid,
            in_specs=[
                pl.BlockSpec((None, H, W, C), lambda b, nt: (b, 0, 0, 0)),  # acts
                pl.BlockSpec((9, C, tn), lambda b, nt: (0, 0, nt)),         # taps
                pl.BlockSpec((1, tn), lambda b, nt: (0, nt)),               # bias
            ],
            out_specs=pl.BlockSpec((None, H, W, tn), lambda b, nt: (b, 0, 0, nt)),
            scratch_shapes=[
                pltpu.VMEM((Hp * Wp, C), jnp.bfloat16),   # padded flat acts
                pltpu.VMEM((M_v, tn), jnp.float32),       # f32 accumulator
            ],
        ),
        compiler_params=pltpu.CompilerParams(
            dimension_semantics=("parallel", "arbitrary"),
            vmem_limit_bytes=vmem),
    )(x_nhwc, w9, bias)


# ----------------------------------------------------------------------------
# Parameter construction (deterministic, synthetic).
# BN is folded: scale -> weight columns (then cast bf16), bias stays f32.
# Weight reshapes/transposes are done ONCE here, not in the traced forward.
# ----------------------------------------------------------------------------
def make_block_params(key, cin, cout, k):
    kw_, kg, kb, km, kv = jax.random.split(key, 5)
    w = jax.random.normal(kw_, (cout, cin, k, k), jnp.float32) / jnp.sqrt(
        float(cin * k * k))
    gamma = 1.0 + 0.1 * jax.random.normal(kg, (cout,), jnp.float32)
    beta = 0.1 * jax.random.normal(kb, (cout,), jnp.float32)
    run_mean = 0.1 * jax.random.normal(km, (cout,), jnp.float32)
    run_var = 1.0 + 0.1 * jax.random.uniform(kv, (cout,), jnp.float32)
    scale = gamma / jnp.sqrt(run_var + BN_EPS)
    bias = (beta - run_mean * scale).reshape(1, cout)
    if k == 1:
        w_fold = (jnp.transpose(w[:, :, 0, 0], (1, 0))          # [Cin, Cout]
                  * scale[None, :]).astype(jnp.bfloat16)
    else:
        w_fold = (jnp.transpose(w, (2, 3, 1, 0))                 # [kh,kw,Cin,Cout]
                  .reshape(k * k, cin, cout)
                  * scale[None, None, :]).astype(jnp.bfloat16)   # [9, Cin, Cout]
    return dict(w=w_fold, bias=bias)


def make_yolov3_layer_params(key, in_channels, out_channels, end=False):
    mid1, mid2 = out_channels * 2, out_channels * 4
    cfg = [(in_channels, mid1, 1), (mid1, mid2, 3), (mid2, mid1, 1),
           (mid1, mid2, 3), (mid2, mid1, 1)]
    keys = jax.random.split(key, len(cfg) + 1)
    extract = [make_block_params(keys[i], ci, co, k)
               for i, (ci, co, k) in enumerate(cfg)]
    smooth = None if end else make_block_params(keys[-1], mid1, out_channels, 1)
    return {"extract": extract, "smooth": smooth}


# ----------------------------------------------------------------------------
# Forward: mirrors YOLOV3Layer.forward (NCHW interface)
# ----------------------------------------------------------------------------
def yolov3_layer_forward(x_nchw, params, end=False):
    x = jnp.transpose(x_nchw, (0, 2, 3, 1))        # NCHW -> NHWC (once)
    for p in params["extract"]:
        # all intermediates (incl. the last extract block) stay bf16;
        # the f32 cast of the returned feature is fused into the transpose.
        if p["w"].ndim == 2:
            x = conv1x1_block(x, p["w"], p["bias"], jnp.bfloat16)
        else:
            x = conv3x3_block(x, p["w"], p["bias"], jnp.bfloat16)
    feature_nchw = jnp.transpose(x, (0, 3, 1, 2)).astype(jnp.float32)
    if end or params["smooth"] is None:
        return feature_nchw, None
    sp = params["smooth"]
    fs = conv1x1_block(x, sp["w"], sp["bias"], jnp.float32)
    fs_nchw = jnp.transpose(fs, (0, 3, 1, 2))
    # F.interpolate(scale_factor=2) default mode='nearest': pure replication,
    # no arithmetic -> left to XLA.
    fu = jnp.repeat(jnp.repeat(fs_nchw, 2, axis=2), 2, axis=3)
    return feature_nchw, fu


if __name__ == "__main__":
    key = jax.random.PRNGKey(0)
    k_param, k_x = jax.random.split(key)

    in_channels, out_channels = 4, 8
    B, H, W = 2, 16, 16
    mid1 = out_channels * 2

    params = make_yolov3_layer_params(k_param, in_channels, out_channels,
                                      end=False)
    x = jax.random.normal(k_x, (B, in_channels, H, W), jnp.float32)

    fwd = jax.jit(functools.partial(yolov3_layer_forward, end=False))
    feature, feature_upsample = fwd(x, params)
    jax.block_until_ready((feature, feature_upsample))

    assert feature.shape == (B, mid1, H, W)
    assert feature_upsample.shape == (B, out_channels, 2 * H, 2 * W)
    assert bool(jnp.isfinite(feature).all())
    assert bool(jnp.isfinite(feature_upsample).all())
    print("KERNEL_OK")
</pallas_src>

<mosaic_0001>
module attributes {stable_mosaic.version = 11 : i64} {
  func.func @_conv1x1_kernel(%arg0: i32, %arg1: memref<256x4xf32, #tpu.memory_space<vmem>>, %arg2: memref<4x16xbf16, #tpu.memory_space<vmem>>, %arg3: memref<1x16xf32, #tpu.memory_space<vmem>>, %arg4: memref<256x16xbf16, #tpu.memory_space<vmem>>) attributes {dimension_semantics = [#tpu.dimension_semantics<parallel>], iteration_bounds = array<i64: 2>, scalar_prefetch = 0 : i64, scratch_operands = 0 : i64, tpu.core_type = #tpu.core_type<tc>, window_params = [{transform_indices = @transform_0, window_bounds = array<i64: 256, 4>}, {pipeline_mode = #tpu.pipeline_mode<synchronous>, transform_indices = @transform_1, window_bounds = array<i64: 4, 16>}, {pipeline_mode = #tpu.pipeline_mode<synchronous>, transform_indices = @transform_2, window_bounds = array<i64: 1, 16>}, {transform_indices = @transform_3, window_bounds = array<i64: 256, 16>}]} {
    %c0 = arith.constant 0 : index
    %c0_0 = arith.constant 0 : index
    %0 = vector.load %arg1[%c0, %c0_0] : memref<256x4xf32, #tpu.memory_space<vmem>>, vector<256x4xf32>
    %1 = arith.truncf %0 : vector<256x4xf32> to vector<256x4xbf16>
    %c0_1 = arith.constant 0 : index
    %c0_2 = arith.constant 0 : index
    %2 = vector.load %arg2[%c0_1, %c0_2] : memref<4x16xbf16, #tpu.memory_space<vmem>>, vector<4x16xbf16>
    %cst = arith.constant dense<0.000000e+00> : vector<256x16xf32>
    %3 = tpu.matmul %1, %2, %cst {dimension_numbers = #tpu.dot_dimension_numbers<[1], [0], [0], [1], [0, 0, 1, 1], [], []>} : vector<256x4xbf16>, vector<4x16xbf16>, vector<256x16xf32> -> vector<256x16xf32>
    %c0_3 = arith.constant 0 : index
    %c0_4 = arith.constant 0 : index
    %4 = vector.load %arg3[%c0_3, %c0_4] : memref<1x16xf32, #tpu.memory_space<vmem>>, vector<1x16xf32>
    %5 = vector.broadcast %4 : vector<1x16xf32> to vector<256x16xf32>
    %6 = arith.addf %3, %5 : vector<256x16xf32>
    %cst_5 = arith.constant 0.000000e+00 : f32
    %7 = vector.broadcast %cst_5 : f32 to vector<256x16xf32>
    %8 = arith.cmpf ogt, %6, %7 : vector<256x16xf32>
    %cst_6 = arith.constant 0.00999999977 : f32
    %9 = vector.broadcast %cst_6 : f32 to vector<256x16xf32>
    %10 = arith.mulf %9, %6 : vector<256x16xf32>
    %11 = arith.select %8, %6, %10 : vector<256x16xi1>, vector<256x16xf32>
    %12 = arith.truncf %11 : vector<256x16xf32> to vector<256x16xbf16>
    %c0_7 = arith.constant 0 : index
    %c0_8 = arith.constant 0 : index
    %13 = vector.load %arg4[%c0_7, %c0_8] : memref<256x16xbf16, #tpu.memory_space<vmem>>, vector<256x16xbf16>
    tpu.vector_store %arg4[%c0_7, %c0_8], %12 {strides = array<i32>} : memref<256x16xbf16, #tpu.memory_space<vmem>>, vector<256x16xbf16>,
    return
  }
  func.func @transform_0(%arg0: i32) -> (i32, i32) {
    %c0_i32 = arith.constant 0 : i32
    %c0_i32_0 = arith.constant 0 : i32
    return %arg0, %c0_i32 : i32, i32
  }
  func.func @transform_1(%arg0: i32) -> (i32, i32) {
    %c0_i32 = arith.constant 0 : i32
    %c0_i32_0 = arith.constant 0 : i32
    %c0_i32_1 = arith.constant 0 : i32
    return %c0_i32, %c0_i32_0 : i32, i32
  }
  func.func @transform_2(%arg0: i32) -> (i32, i32) {
    %c0_i32 = arith.constant 0 : i32
    %c0_i32_0 = arith.constant 0 : i32
    %c0_i32_1 = arith.constant 0 : i32
    return %c0_i32, %c0_i32_0 : i32, i32
  }
  func.func @transform_3(%arg0: i32) -> (i32, i32) {
    %c0_i32 = arith.constant 0 : i32
    %c0_i32_0 = arith.constant 0 : i32
    return %arg0, %c0_i32 : i32, i32
  }
}

module attributes {stable_mosaic.version = 11 : i64} {
  func.func @_conv1x1_kernel(%arg0: i32, %arg1: memref<256x32xbf16, #tpu.memory_space<vmem>>, %arg2: memref<32x16xbf16, #tpu.memory_space<vmem>>, %arg3: memref<1x16xf32, #tpu.memory_space<vmem>>, %arg4: memref<256x16xbf16, #tpu.memory_space<vmem>>) attributes {dimension_semantics = [#tpu.dimension_semantics<parallel>], iteration_bounds = array<i64: 2>, scalar_prefetch = 0 : i64, scratch_operands = 0 : i64, tpu.core_type = #tpu.core_type<tc>, window_params = [{transform_indices = @transform_0, window_bounds = array<i64: 256, 32>}, {pipeline_mode = #tpu.pipeline_mode<synchronous>, transform_indices = @transform_1, window_bounds = array<i64: 32, 16>}, {pipeline_mode = #tpu.pipeline_mode<synchronous>, transform_indices = @transform_2, window_bounds = array<i64: 1, 16>}, {transform_indices = @transform_3, window_bounds = array<i64: 256, 16>}]} {
    %c0 = arith.constant 0 : index
    %c0_0 = arith.constant 0 : index
    %0 = vector.load %arg1[%c0, %c0_0] : memref<256x32xbf16, #tpu.memory_space<vmem>>, vector<256x32xbf16>
    %c0_1 = arith.constant 0 : index
    %c0_2 = arith.constant 0 : index
    %1 = vector.load %arg2[%c0_1, %c0_2] : memref<32x16xbf16, #tpu.memory_space<vmem>>, vector<32x16xbf16>
    %cst = arith.constant dense<0.000000e+00> : vector<256x16xf32>
    %2 = tpu.matmul %0, %1, %cst {dimension_numbers = #tpu.dot_dimension_numbers<[1], [0], [0], [1], [0, 0, 1, 1], [], []>} : vector<256x32xbf16>, vector<32x16xbf16>, vector<256x16xf32> -> vector<256x16xf32>
    %c0_3 = arith.constant 0 : index
    %c0_4 = arith.constant 0 : index
    %3 = vector.load %arg3[%c0_3, %c0_4] : memref<1x16xf32, #tpu.memory_space<vmem>>, vector<1x16xf32>
    %4 = vector.broadcast %3 : vector<1x16xf32> to vector<256x16xf32>
    %5 = arith.addf %2, %4 : vector<256x16xf32>
    %cst_5 = arith.constant 0.000000e+00 : f32
    %6 = vector.broadcast %cst_5 : f32 to vector<256x16xf32>
    %7 = arith.cmpf ogt, %5, %6 : vector<256x16xf32>
    %cst_6 = arith.constant 0.00999999977 : f32
    %8 = vector.broadcast %cst_6 : f32 to vector<256x16xf32>
    %9 = arith.mulf %8, %5 : vector<256x16xf32>
    %10 = arith.select %7, %5, %9 : vector<256x16xi1>, vector<256x16xf32>
    %11 = arith.truncf %10 : vector<256x16xf32> to vector<256x16xbf16>
    %c0_7 = arith.constant 0 : index
    %c0_8 = arith.constant 0 : index
    %12 = vector.load %arg4[%c0_7, %c0_8] : memref<256x16xbf16, #tpu.memory_space<vmem>>, vector<256x16xbf16>
    tpu.vector_store %arg4[%c0_7, %c0_8], %11 {strides = array<i32>} : memref<256x16xbf16, #tpu.memory_space<vmem>>, vector<256x16xbf16>,
    return
  }
  func.func @transform_0(%arg0: i32) -> (i32, i32) {
    %c0_i32 = arith.constant 0 : i32
    %c0_i32_0 = arith.constant 0 : i32
    return %arg0, %c0_i32 : i32, i32
  }
  func.func @transform_1(%arg0: i32) -> (i32, i32) {
    %c0_i32 = arith.constant 0 : i32
    %c0_i32_0 = arith.constant 0 : i32
    %c0_i32_1 = arith.constant 0 : i32
    return %c0_i32, %c0_i32_0 : i32, i32
  }
  func.func @transform_2(%arg0: i32) -> (i32, i32) {
    %c0_i32 = arith.constant 0 : i32
    %c0_i32_0 = arith.constant 0 : i32
    %c0_i32_1 = arith.constant 0 : i32
    return %c0_i32, %c0_i32_0 : i32, i32
  }
  func.func @transform_3(%arg0: i32) -> (i32, i32) {
    %c0_i32 = arith.constant 0 : i32
    %c0_i32_0 = arith.constant 0 : i32
    return %arg0, %c0_i32 : i32, i32
  }
}

module attributes {stable_mosaic.version = 11 : i64} {
  func.func @_conv3x3_kernel(%arg0: i32, %arg1: i32, %arg2: memref<1x16x16x16xbf16, #tpu.memory_space<vmem>>, %arg3: memref<9x16x32xbf16, #tpu.memory_space<vmem>>, %arg4: memref<1x32xf32, #tpu.memory_space<vmem>>, %arg5: memref<1x16x16x32xbf16, #tpu.memory_space<vmem>>, %arg6: memref<456x16xbf16, #tpu.memory_space<vmem>>, %arg7: memref<384x32xf32, #tpu.memory_space<vmem>>) attributes {dimension_semantics = [#tpu.dimension_semantics<parallel>, #tpu.dimension_semantics<arbitrary>], iteration_bounds = array<i64: 2, 1>, scalar_prefetch = 0 : i64, scratch_operands = 2 : i64, tpu.core_type = #tpu.core_type<tc>, window_params = [{transform_indices = @transform_0, window_bounds = array<i64: 1, 16, 16, 16>}, {transform_indices = @transform_1, window_bounds = array<i64: 9, 16, 32>}, {transform_indices = @transform_2, window_bounds = array<i64: 1, 32>}, {transform_indices = @transform_3, window_bounds = array<i64: 1, 16, 16, 32>}]} {
    %c0_i32 = arith.constant 0 : i32
    %0 = arith.cmpi eq, %arg1, %c0_i32 : i32
    %1 = arith.extui %0 : i1 to i32
    %c0_i32_0 = arith.constant 0 : i32
    %2 = arith.cmpi ne, %1, %c0_i32_0 : i32
    scf.if %2 {
      %cst_183 = arith.constant 0.000000e+00 : bf16
      %257 = vector.broadcast %cst_183 : bf16 to vector<456x16xbf16>
      %c0_184 = arith.constant 0 : index
      %c0_185 = arith.constant 0 : index
      %258 = vector.load %arg6[%c0_184, %c0_185] : memref<456x16xbf16, #tpu.memory_space<vmem>>, vector<456x16xbf16>
      tpu.vector_store %arg6[%c0_184, %c0_185], %257 {strides = array<i32>} : memref<456x16xbf16, #tpu.memory_space<vmem>>, vector<456x16xbf16>,
      %c0_186 = arith.constant 0 : index
      %c0_187 = arith.constant 0 : index
      %c0_188 = arith.constant 0 : index
      %c0_189 = arith.constant 0 : index
      %259 = vector.load %arg2[%c0_186, %c0_187, %c0_188, %c0_189] : memref<1x16x16x16xbf16, #tpu.memory_space<vmem>>, vector<1x1x16x16xbf16>
      %260 = vector.shape_cast %259 : vector<1x1x16x16xbf16> to vector<16x16xbf16>
      %c25_190 = arith.constant 25 : index
      %c0_191 = arith.constant 0 : index
      %261 = vector.load %arg6[%c25_190, %c0_191] : memref<456x16xbf16, #tpu.memory_space<vmem>>, vector<16x16xbf16>
      tpu.vector_store %arg6[%c25_190, %c0_191], %260 {strides = array<i32>} : memref<456x16xbf16, #tpu.memory_space<vmem>>, vector<16x16xbf16>,
      %c0_192 = arith.constant 0 : index
      %c1_193 = arith.constant 1 : index
      %c0_194 = arith.constant 0 : index
      %c0_195 = arith.constant 0 : index
      %262 = vector.load %arg2[%c0_192, %c1_193, %c0_194, %c0_195] : memref<1x16x16x16xbf16, #tpu.memory_space<vmem>>, vector<1x1x16x16xbf16>
      %263 = vector.shape_cast %262 : vector<1x1x16x16xbf16> to vector<16x16xbf16>
      %c49_196 = arith.constant 49 : index
      %c0_197 = arith.constant 0 : index
      %264 = vector.load %arg6[%c49_196, %c0_197] : memref<456x16xbf16, #tpu.memory_space<vmem>>, vector<16x16xbf16>
      tpu.vector_store %arg6[%c49_196, %c0_197], %263 {strides = array<i32>} : memref<456x16xbf16, #tpu.memory_space<vmem>>, vector<16x16xbf16>,
      %c0_198 = arith.constant 0 : index
      %c2_199 = arith.constant 2 : index
      %c0_200 = arith.constant 0 : index
      %c0_201 = arith.constant 0 : index
      %265 = vector.load %arg2[%c0_198, %c2_199, %c0_200, %c0_201] : memref<1x16x16x16xbf16, #tpu.memory_space<vmem>>, vector<1x1x16x16xbf16>
      %266 = vector.shape_cast %265 : vector<1x1x16x16xbf16> to vector<16x16xbf16>
      %c73 = arith.constant 73 : index
      %c0_202 = arith.constant 0 : index
      %267 = vector.load %arg6[%c73, %c0_202] : memref<456x16xbf16, #tpu.memory_space<vmem>>, vector<16x16xbf16>
      tpu.vector_store %arg6[%c73, %c0_202], %266 {strides = array<i32>} : memref<456x16xbf16, #tpu.memory_space<vmem>>, vector<16x16xbf16>,
      %c0_203 = arith.constant 0 : index
      %c3_204 = arith.constant 3 : index
      %c0_205 = arith.constant 0 : index
      %c0_206 = arith.constant 0 : index
      %268 = vector.load %arg2[%c0_203, %c3_204, %c0_205, %c0_206] : memref<1x16x16x16xbf16, #tpu.memory_space<vmem>>, vector<1x1x16x16xbf16>
      %269 = vector.shape_cast %268 : vector<1x1x16x16xbf16> to vector<16x16xbf16>
      %c97 = arith.constant 97 : index
      %c0_207 = arith.constant 0 : index
      %270 = vector.load %arg6[%c97, %c0_207] : memref<456x16xbf16, #tpu.memory_space<vmem>>, vector<16x16xbf16>
      tpu.vector_store %arg6[%c97, %c0_207], %269 {strides = array<i32>} : memref<456x16xbf16, #tpu.memory_space<vmem>>, vector<16x16xbf16>,
      %c0_208 = arith.constant 0 : index
      %c4_209 = arith.constant 4 : index
      %c0_210 = arith.constant 0 : index
      %c0_211 = arith.constant 0 : index
      %271 = vector.load %arg2[%c0_208, %c4_209, %c0_210, %c0_211] : memref<1x16x16x16xbf16, #tpu.memory_space<vmem>>, vector<1x1x16x16xbf16>
      %272 = vector.shape_cast %271 : vector<1x1x16x16xbf16> to vector<16x16xbf16>
      %c121 = arith.constant 121 : index
      %c0_212 = arith.constant 0 : index
      %273 = vector.load %arg6[%c121, %c0_212] : memref<456x16xbf16, #tpu.memory_space<vmem>>, vector<16x16xbf16>
      tpu.vector_store %arg6[%c121, %c0_212], %272 {strides = array<i32>} : memref<456x16xbf16, #tpu.memory_space<vmem>>, vector<16x16xbf16>,
      %c0_213 = arith.constant 0 : index
      %c5_214 = arith.constant 5 : index
      %c0_215 = arith.constant 0 : index
      %c0_216 = arith.constant 0 : index
      %274 = vector.load %arg2[%c0_213, %c5_214, %c0_215, %c0_216] : memref<1x16x16x16xbf16, #tpu.memory_space<vmem>>, vector<1x1x16x16xbf16>
      %275 = vector.shape_cast %274 : vector<1x1x16x16xbf16> to vector<16x16xbf16>
      %c145 = arith.constant 145 : index
      %c0_217 = arith.constant 0 : index
      %276 = vector.load %arg6[%c145, %c0_217] : memref<456x16xbf16, #tpu.memory_space<vmem>>, vector<16x16xbf16>
      tpu.vector_store %arg6[%c145, %c0_217], %275 {strides = array<i32>} : memref<456x16xbf16, #tpu.memory_space<vmem>>, vector<16x16xbf16>,
      %c0_218 = arith.constant 0 : index
      %c6_219 = arith.constant 6 : index
      %c0_220 = arith.constant 0 : index
      %c0_221 = arith.constant 0 : index
      %277 = vector.load %arg2[%c0_218, %c6_219, %c0_220, %c0_221] : memref<1x16x16x16xbf16, #tpu.memory_space<vmem>>, vector<1x1x16x16xbf16>
      %278 = vector.shape_cast %277 : vector<1x1x16x16xbf16> to vector<16x16xbf16>
      %c169 = arith.constant 169 : index
      %c0_222 = arith.constant 0 : index
      %279 = vector.load %arg6[%c169, %c0_222] : memref<456x16xbf16, #tpu.memory_space<vmem>>, vector<16x16xbf16>
      tpu.vector_store %arg6[%c169, %c0_222], %278 {strides = array<i32>} : memref<456x16xbf16, #tpu.memory_space<vmem>>, vector<16x16xbf16>,
      %c0_223 = arith.constant 0 : index
      %c7_224 = arith.constant 7 : index
      %c0_225 = arith.constant 0 : index
      %c0_226 = arith.constant 0 : index
      %280 = vector.load %arg2[%c0_223, %c7_224, %c0_225, %c0_226] : memref<1x16x16x16xbf16, #tpu.memory_space<vmem>>, vector<1x1x16x16xbf16>
      %281 = vector.shape_cast %280 : vector<1x1x16x16xbf16> to vector<16x16xbf16>
      %c193 = arith.constant 193 : index
      %c0_227 = arith.constant 0 : index
      %282 = vector.load %arg6[%c193, %c0_227] : memref<456x16xbf16, #tpu.memory_space<vmem>>, vector<16x16xbf16>
      tpu.vector_store %arg6[%c193, %c0_227], %281 {strides = array<i32>} : memref<456x16xbf16, #tpu.memory_space<vmem>>, vector<16x16xbf16>,
      %c0_228 = arith.constant 0 : index
      %c8_229 = arith.constant 8 : index
      %c0_230 = arith.constant 0 : index
      %c0_231 = arith.constant 0 : index
      %283 = vector.load %arg2[%c0_228, %c8_229, %c0_230, %c0_231] : memref<1x16x16x16xbf16, #tpu.memory_space<vmem>>, vector<1x1x16x16xbf16>
      %284 = vector.shape_cast %283 : vector<1x1x16x16xbf16> to vector<16x16xbf16>
      %c217 = arith.constant 217 : index
      %c0_232 = arith.constant 0 : index
      %285 = vector.load %arg6[%c217, %c0_232] : memref<456x16xbf16, #tpu.memory_space<vmem>>, vector<16x16xbf16>
      tpu.vector_store %arg6[%c217, %c0_232], %284 {strides = array<i32>} : memref<456x16xbf16, #tpu.memory_space<vmem>>, vector<16x16xbf16>,
      %c0_233 = arith.constant 0 : index
      %c9_234 = arith.constant 9 : index
      %c0_235 = arith.constant 0 : index
      %c0_236 = arith.constant 0 : index
      %286 = vector.load %arg2[%c0_233, %c9_234, %c0_235, %c0_236] : memref<1x16x16x16xbf16, #tpu.memory_space<vmem>>, vector<1x1x16x16xbf16>
      %287 = vector.shape_cast %286 : vector<1x1x16x16xbf16> to vector<16x16xbf16>
      %c241 = arith.constant 241 : index
      %c0_237 = arith.constant 0 : index
      %288 = vector.load %arg6[%c241, %c0_237] : memref<456x16xbf16, #tpu.memory_space<vmem>>, vector<16x16xbf16>
      tpu.vector_store %arg6[%c241, %c0_237], %287 {strides = array<i32>} : memref<456x16xbf16, #tpu.memory_space<vmem>>, vector<16x16xbf16>,
      %c0_238 = arith.constant 0 : index
      %c10_239 = arith.constant 10 : index
      %c0_240 = arith.constant 0 : index
      %c0_241 = arith.constant 0 : index
      %289 = vector.load %arg2[%c0_238, %c10_239, %c0_240, %c0_241] : memref<1x16x16x16xbf16, #tpu.memory_space<vmem>>, vector<1x1x16x16xbf16>
      %290 = vector.shape_cast %289 : vector<1x1x16x16xbf16> to vector<16x16xbf16>
      %c265 = arith.constant 265 : index
      %c0_242 = arith.constant 0 : index
      %291 = vector.load %arg6[%c265, %c0_242] : memref<456x16xbf16, #tpu.memory_space<vmem>>, vector<16x16xbf16>
      tpu.vector_store %arg6[%c265, %c0_242], %290 {strides = array<i32>} : memref<456x16xbf16, #tpu.memory_space<vmem>>, vector<16x16xbf16>,
      %c0_243 = arith.constant 0 : index
      %c11_244 = arith.constant 11 : index
      %c0_245 = arith.constant 0 : index
      %c0_246 = arith.constant 0 : index
      %292 = vector.load %arg2[%c0_243, %c11_244, %c0_245, %c0_246] : memref<1x16x16x16xbf16, #tpu.memory_space<vmem>>, vector<1x1x16x16xbf16>
      %293 = vector.shape_cast %292 : vector<1x1x16x16xbf16> to vector<16x16xbf16>
      %c289 = arith.constant 289 : index
      %c0_247 = arith.constant 0 : index
      %294 = vector.load %arg6[%c289, %c0_247] : memref<456x16xbf16, #tpu.memory_space<vmem>>, vector<16x16xbf16>
      tpu.vector_store %arg6[%c289, %c0_247], %293 {strides = array<i32>} : memref<456x16xbf16, #tpu.memory_space<vmem>>, vector<16x16xbf16>,
      %c0_248 = arith.constant 0 : index
      %c12_249 = arith.constant 12 : index
      %c0_250 = arith.constant 0 : index
      %c0_251 = arith.constant 0 : index
      %295 = vector.load %arg2[%c0_248, %c12_249, %c0_250, %c0_251] : memref<1x16x16x16xbf16, #tpu.memory_space<vmem>>, vector<1x1x16x16xbf16>
      %296 = vector.shape_cast %295 : vector<1x1x16x16xbf16> to vector<16x16xbf16>
      %c313 = arith.constant 313 : index
      %c0_252 = arith.constant 0 : index
      %297 = vector.load %arg6[%c313, %c0_252] : memref<456x16xbf16, #tpu.memory_space<vmem>>, vector<16x16xbf16>
      tpu.vector_store %arg6[%c313, %c0_252], %296 {strides = array<i32>} : memref<456x16xbf16, #tpu.memory_space<vmem>>, vector<16x16xbf16>,
      %c0_253 = arith.constant 0 : index
      %c13_254 = arith.constant 13 : index
      %c0_255 = arith.constant 0 : index
      %c0_256 = arith.constant 0 : index
      %298 = vector.load %arg2[%c0_253, %c13_254, %c0_255, %c0_256] : memref<1x16x16x16xbf16, #tpu.memory_space<vmem>>, vector<1x1x16x16xbf16>
      %299 = vector.shape_cast %298 : vector<1x1x16x16xbf16> to vector<16x16xbf16>
      %c337 = arith.constant 337 : index
      %c0_257 = arith.constant 0 : index
      %300 = vector.load %arg6[%c337, %c0_257] : memref<456x16xbf16, #tpu.memory_space<vmem>>, vector<16x16xbf16>
      tpu.vector_store %arg6[%c337, %c0_257], %299 {strides = array<i32>} : memref<456x16xbf16, #tpu.memory_space<vmem>>, vector<16x16xbf16>,
      %c0_258 = arith.constant 0 : index
      %c14_259 = arith.constant 14 : index
      %c0_260 = arith.constant 0 : index
      %c0_261 = arith.constant 0 : index
      %301 = vector.load %arg2[%c0_258, %c14_259, %c0_260, %c0_261] : memref<1x16x16x16xbf16, #tpu.memory_space<vmem>>, vector<1x1x16x16xbf16>
      %302 = vector.shape_cast %301 : vector<1x1x16x16xbf16> to vector<16x16xbf16>
      %c361 = arith.constant 361 : index
      %c0_262 = arith.constant 0 : index
      %303 = vector.load %arg6[%c361, %c0_262] : memref<456x16xbf16, #tpu.memory_space<vmem>>, vector<16x16xbf16>
      tpu.vector_store %arg6[%c361, %c0_262], %302 {strides = array<i32>} : memref<456x16xbf16, #tpu.memory_space<vmem>>, vector<16x16xbf16>,
      %c0_263 = arith.constant 0 : index
      %c15_264 = arith.constant 15 : index
      %c0_265 = arith.constant 0 : index
      %c0_266 = arith.constant 0 : index
      %304 = vector.load %arg2[%c0_263, %c15_264, %c0_265, %c0_266] : memref<1x16x16x16xbf16, #tpu.memory_space<vmem>>, vector<1x1x16x16xbf16>
      %305 = vector.shape_cast %304 : vector<1x1x16x16xbf16> to vector<16x16xbf16>
      %c385 = arith.constant 385 : index
      %c0_267 = arith.constant 0 : index
      %306 = vector.load %arg6[%c385, %c0_267] : memref<456x16xbf16, #tpu.memory_space<vmem>>, vector<16x16xbf16>
      tpu.vector_store %arg6[%c385, %c0_267], %305 {strides = array<i32>} : memref<456x16xbf16, #tpu.memory_space<vmem>>, vector<16x16xbf16>,
    } else {
    }
    %c0 = arith.constant 0 : index
    %c0_1 = arith.constant 0 : index
    %3 = vector.load %arg6[%c0, %c0_1] : memref<456x16xbf16, #tpu.memory_space<vmem>>, vector<384x16xbf16>
    %c0_2 = arith.constant 0 : index
    %c0_3 = arith.constant 0 : index
    %c0_4 = arith.constant 0 : index
    %4 = vector.load %arg3[%c0_2, %c0_3, %c0_4] : memref<9x16x32xbf16, #tpu.memory_space<vmem>>, vector<1x16x32xbf16>
    %5 = vector.shape_cast %4 : vector<1x16x32xbf16> to vector<16x32xbf16>
    %cst = arith.constant dense<0.000000e+00> : vector<384x32xf32>
    %6 = tpu.matmul %3, %5, %cst {dimension_numbers = #tpu.dot_dimension_numbers<[1], [0], [0], [1], [0, 0, 1, 1], [], []>} : vector<384x16xbf16>, vector<16x32xbf16>, vector<384x32xf32> -> vector<384x32xf32>
    %c0_5 = arith.constant 0 : index
    %c0_6 = arith.constant 0 : index
    %7 = vector.load %arg7[%c0_5, %c0_6] : memref<384x32xf32, #tpu.memory_space<vmem>>, vector<384x32xf32>
    tpu.vector_store %arg7[%c0_5, %c0_6], %6 {strides = array<i32>} : memref<384x32xf32, #tpu.memory_space<vmem>>, vector<384x32xf32>,
    %c1 = arith.constant 1 : index
    %c0_7 = arith.constant 0 : index
    %8 = vector.load %arg6[%c1, %c0_7] : memref<456x16xbf16, #tpu.memory_space<vmem>>, vector<384x16xbf16>
    %c1_8 = arith.constant 1 : index
    %c0_9 = arith.constant 0 : index
    %c0_10 = arith.constant 0 : index
    %9 = vector.load %arg3[%c1_8, %c0_9, %c0_10] : memref<9x16x32xbf16, #tpu.memory_space<vmem>>, vector<1x16x32xbf16>
    %10 = vector.shape_cast %9 : vector<1x16x32xbf16> to vector<16x32xbf16>
    %cst_11 = arith.constant dense<0.000000e+00> : vector<384x32xf32>
    %11 = tpu.matmul %8, %10, %cst_11 {dimension_numbers = #tpu.dot_dimension_numbers<[1], [0], [0], [1], [0, 0, 1, 1], [], []>} : vector<384x16xbf16>, vector<16x32xbf16>, vector<384x32xf32> -> vector<384x32xf32>
    %c0_12 = arith.constant 0 : index
    %c0_13 = arith.constant 0 : index
    %12 = vector.load %arg7[%c0_12, %c0_13] : memref<384x32xf32, #tpu.memory_space<vmem>>, vector<384x32xf32>
    %13 = arith.addf %12, %11 : vector<384x32xf32>
    %c0_14 = arith.constant 0 : index
    %c0_15 = arith.constant 0 : index
    %14 = vector.load %arg7[%c0_14, %c0_15] : memref<384x32xf32, #tpu.memory_space<vmem>>, vector<384x32xf32>
    tpu.vector_store %arg7[%c0_14, %c0_15], %13 {strides = array<i32>} : memref<384x32xf32, #tpu.memory_space<vmem>>, vector<384x32xf32>,
    %c2 = arith.constant 2 : index
    %c0_16 = arith.constant 0 : index
    %15 = vector.load %arg6[%c2, %c0_16] : memref<456x16xbf16, #tpu.memory_space<vmem>>, vector<384x16xbf16>
    %c2_17 = arith.constant 2 : index
    %c0_18 = arith.constant 0 : index
    %c0_19 = arith.constant 0 : index
    %16 = vector.load %arg3[%c2_17, %c0_18, %c0_19] : memref<9x16x32xbf16, #tpu.memory_space<vmem>>, vector<1x16x32xbf16>
    %17 = vector.shape_cast %16 : vector<1x16x32xbf16> to vector<16x32xbf16>
    %cst_20 = arith.constant dense<0.000000e+00> : vector<384x32xf32>
    %18 = tpu.matmul %15, %17, %cst_20 {dimension_numbers = #tpu.dot_dimension_numbers<[1], [0], [0], [1], [0, 0, 1, 1], [], []>} : vector<384x16xbf16>, vector<16x32xbf16>, vector<384x32xf32> -> vector<384x32xf32>
    %c0_21 = arith.constant 0 : index
    %c0_22 = arith.constant 0 : index
    %19 = vector.load %arg7[%c0_21, %c0_22] : memref<384x32xf32, #tpu.memory_space<vmem>>, vector<384x32xf32>
    %20 = arith.addf %19, %18 : vector<384x32xf32>
    %c0_23 = arith.constant 0 : index
    %c0_24 = arith.constant 0 : index
    %21 = vector.load %arg7[%c0_23, %c0_24] : memref<384x32xf32, #tpu.memory_space<vmem>>, vector<384x32xf32>
    tpu.vector_store %arg7[%c0_23, %c0_24], %20 {strides = array<i32>} : memref<384x32xf32, #tpu.memory_space<vmem>>, vector<384x32xf32>,
    %c24 = arith.constant 24 : index
    %c0_25 = arith.constant 0 : index
    %22 = vector.load %arg6[%c24, %c0_25] : memref<456x16xbf16, #tpu.memory_space<vmem>>, vector<384x16xbf16>
    %c3 = arith.constant 3 : index
    %c0_26 = arith.constant 0 : index
    %c0_27 = arith.constant 0 : index
    %23 = vector.load %arg3[%c3, %c0_26, %c0_27] : memref<9x16x32xbf16, #tpu.memory_space<vmem>>, vector<1x16x32xbf16>
    %24 = vector.shape_cast %23 : vector<1x16x32xbf16> to vector<16x32xbf16>
    %cst_28 = arith.constant dense<0.000000e+00> : vector<384x32xf32>
    %25 = tpu.matmul %22, %24, %cst_28 {dimension_numbers = #tpu.dot_dimension_numbers<[1], [0], [0], [1], [0, 0, 1, 1], [], []>} : vector<384x16xbf16>, vector<16x32xbf16>, vector<384x32xf32> -> vector<384x32xf32>
    %c0_29 = arith.constant 0 : index
    %c0_30 = arith.constant 0 : index
    %26 = vector.load %arg7[%c0_29, %c0_30] : memref<384x32xf32, #tpu.memory_space<vmem>>, vector<384x32xf32>
    %27 = arith.addf %26, %25 : vector<384x32xf32>
    %c0_31 = arith.constant 0 : index
    %c0_32 = arith.constant 0 : index
    %28 = vector.load %arg7[%c0_31, %c0_32] : memref<384x32xf32, #tpu.memory_space<vmem>>, vector<384x32xf32>
    tpu.vector_store %arg7[%c0_31, %c0_32], %27 {strides = array<i32>} : memref<384x32xf32, #tpu.memory_space<vmem>>, vector<384x32xf32>,
    %c25 = arith.constant 25 : index
    %c0_33 = arith.constant 0 : index
    %29 = vector.load %arg6[%c25, %c0_33] : memref<456x16xbf16, #tpu.memory_space<vmem>>, vector<384x16xbf16>
    %c4 = arith.constant 4 : index
    %c0_34 = arith.constant 0 : index
    %c0_35 = arith.constant 0 : index
    %30 = vector.load %arg3[%c4, %c0_34, %c0_35] : memref<9x16x32xbf16, #tpu.memory_space<vmem>>, vector<1x16x32xbf16>
    %31 = vector.shape_cast %30 : vector<1x16x32xbf16> to vector<16x32xbf16>
    %cst_36 = arith.constant dense<0.000000e+00> : vector<384x32xf32>
    %32 = tpu.matmul %29, %31, %cst_36 {dimension_numbers = #tpu.dot_dimension_numbers<[1], [0], [0], [1], [0, 0, 1, 1], [], []>} : vector<384x16xbf16>, vector<16x32xbf16>, vector<384x32xf32> -> vector<384x32xf32>
    %c0_37 = arith.constant 0 : index
    %c0_38 = arith.constant 0 : index
    %33 = vector.load %arg7[%c0_37, %c0_38] : memref<384x32xf32, #tpu.memory_space<vmem>>, vector<384x32xf32>
    %34 = arith.addf %33, %32 : vector<384x32xf32>
    %c0_39 = arith.constant 0 : index
    %c0_40 = arith.constant 0 : index
    %35 = vector.load %arg7[%c0_39, %c0_40] : memref<384x32xf32, #tpu.memory_space<vmem>>, vector<384x32xf32>
    tpu.vector_store %arg7[%c0_39, %c0_40], %34 {strides = array<i32>} : memref<384x32xf32, #tpu.memory_space<vmem>>, vector<384x32xf32>,
    %c26 = arith.constant 26 : index
    %c0_41 = arith.constant 0 : index
    %36 = vector.load %arg6[%c26, %c0_41] : memref<456x16xbf16, #tpu.memory_space<vmem>>, vector<384x16xbf16>
    %c5 = arith.constant 5 : index
    %c0_42 = arith.constant 0 : index
    %c0_43 = arith.constant 0 : index
    %37 = vector.load %arg3[%c5, %c0_42, %c0_43] : memref<9x16x32xbf16, #tpu.memory_space<vmem>>, vector<1x16x32xbf16>
    %38 = vector.shape_cast %37 : vector<1x16x32xbf16> to vector<16x32xbf16>
    %cst_44 = arith.constant dense<0.000000e+00> : vector<384x32xf32>
    %39 = tpu.matmul %36, %38, %cst_44 {dimension_numbers = #tpu.dot_dimension_numbers<[1], [0], [0], [1], [0, 0, 1, 1], [], []>} : vector<384x16xbf16>, vector<16x32xbf16>, vector<384x32xf32> -> vector<384x32xf32>
    %c0_45 = arith.constant 0 : index
    %c0_46 = arith.constant 0 : index
    %40 = vector.load %arg7[%c0_45, %c0_46] : memref<384x32xf32, #tpu.memory_space<vmem>>, vector<384x32xf32>
    %41 = arith.addf %40, %39 : vector<384x32xf32>
    %c0_47 = arith.constant 0 : index
    %c0_48 = arith.constant 0 : index
    %42 = vector.load %arg7[%c0_47, %c0_48] : memref<384x32xf32, #tpu.memory_space<vmem>>, vector<384x32xf32>
    tpu.vector_store %arg7[%c0_47, %c0_48], %41 {strides = array<i32>} : memref<384x32xf32, #tpu.memory_space<vmem>>, vector<384x32xf32>,
    %c48 = arith.constant 48 : index
    %c0_49 = arith.constant 0 : index
    %43 = vector.load %arg6[%c48, %c0_49] : memref<456x16xbf16, #tpu.memory_space<vmem>>, vector<384x16xbf16>
    %c6 = arith.constant 6 : index
    %c0_50 = arith.constant 0 : index
    %c0_51 = arith.constant 0 : index
    %44 = vector.load %arg3[%c6, %c0_50, %c0_51] : memref<9x16x32xbf16, #tpu.memory_space<vmem>>, vector<1x16x32xbf16>
    %45 = vector.shape_cast %44 : vector<1x16x32xbf16> to vector<16x32xbf16>
    %cst_52 = arith.constant dense<0.000000e+00> : vector<384x32xf32>
    %46 = tpu.matmul %43, %45, %cst_52 {dimension_numbers = #tpu.dot_dimension_numbers<[1], [0], [0], [1], [0, 0, 1, 1], [], []>} : vector<384x16xbf16>, vector<16x32xbf16>, vector<384x32xf32> -> vector<384x32xf32>
    %c0_53 = arith.constant 0 : index
    %c0_54 = arith.constant 0 : index
    %47 = vector.load %arg7[%c0_53, %c0_54] : memref<384x32xf32, #tpu.memory_space<vmem>>, vector<384x32xf32>
    %48 = arith.addf %47, %46 : vector<384x32xf32>
    %c0_55 = arith.constant 0 : index
    %c0_56 = arith.constant 0 : index
    %49 = vector.load %arg7[%c0_55, %c0_56] : memref<384x32xf32, #tpu.memory_space<vmem>>, vector<384x32xf32>
    tpu.vector_store %arg7[%c0_55, %c0_56], %48 {strides = array<i32>} : memref<384x32xf32, #tpu.memory_space<vmem>>, vector<384x32xf32>,
    %c49 = arith.constant 49 : index
    %c0_57 = arith.constant 0 : index
    %50 = vector.load %arg6[%c49, %c0_57] : memref<456x16xbf16, #tpu.memory_space<vmem>>, vector<384x16xbf16>
    %c7 = arith.constant 7 : index
    %c0_58 = arith.constant 0 : index
    %c0_59 = arith.constant 0 : index
    %51 = vector.load %arg3[%c7, %c0_58, %c0_59] : memref<9x16x32xbf16, #tpu.memory_space<vmem>>, vector<1x16x32xbf16>
    %52 = vector.shape_cast %51 : vector<1x16x32xbf16> to vector<16x32xbf16>
    %cst_60 = arith.constant dense<0.000000e+00> : vector<384x32xf32>
    %53 = tpu.matmul %50, %52, %cst_60 {dimension_numbers = #tpu.dot_dimension_numbers<[1], [0], [0], [1], [0, 0, 1, 1], [], []>} : vector<384x16xbf16>, vector<16x32xbf16>, vector<384x32xf32> -> vector<384x32xf32>
    %c0_61 = arith.constant 0 : index
    %c0_62 = arith.constant 0 : index
    %54 = vector.load %arg7[%c0_61, %c0_62] : memref<384x32xf32, #tpu.memory_space<vmem>>, vector<384x32xf32>
    %55 = arith.addf %54, %53 : vector<384x32xf32>
    %c0_63 = arith.constant 0 : index
    %c0_64 = arith.constant 0 : index
    %56 = vector.load %arg7[%c0_63, %c0_64] : memref<384x32xf32, #tpu.memory_space<vmem>>, vector<384x32xf32>
    tpu.vector_store %arg7[%c0_63, %c0_64], %55 {strides = array<i32>} : memref<384x32xf32, #tpu.memory_space<vmem>>, vector<384x32xf32>,
    %c50 = arith.constant 50 : index
    %c0_65 = arith.constant 0 : index
    %57 = vector.load %arg6[%c50, %c0_65] : memref<456x16xbf16, #tpu.memory_space<vmem>>, vector<384x16xbf16>
    %c8 = arith.constant 8 : index
    %c0_66 = arith.constant 0 : index
    %c0_67 = arith.constant 0 : index
    %58 = vector.load %arg3[%c8, %c0_66, %c0_67] : memref<9x16x32xbf16, #tpu.memory_space<vmem>>, vector<1x16x32xbf16>
    %59 = vector.shape_cast %58 : vector<1x16x32xbf16> to vector<16x32xbf16>
    %cst_68 = arith.constant dense<0.000000e+00> : vector<384x32xf32>
    %60 = tpu.matmul %57, %59, %cst_68 {dimension_numbers = #tpu.dot_dimension_numbers<[1], [0], [0], [1], [0, 0, 1, 1], [], []>} : vector<384x16xbf16>, vector<16x32xbf16>, vector<384x32xf32> -> vector<384x32xf32>
    %c0_69 = arith.constant 0 : index
    %c0_70 = arith.constant 0 : index
    %61 = vector.load %arg7[%c0_69, %c0_70] : memref<384x32xf32, #tpu.memory_space<vmem>>, vector<384x32xf32>
    %62 = arith.addf %61, %60 : vector<384x32xf32>
    %c0_71 = arith.constant 0 : index
    %c0_72 = arith.constant 0 : index
    %63 = vector.load %arg7[%c0_71, %c0_72] : memref<384x32xf32, #tpu.memory_space<vmem>>, vector<384x32xf32>
    tpu.vector_store %arg7[%c0_71, %c0_72], %62 {strides = array<i32>} : memref<384x32xf32, #tpu.memory_space<vmem>>, vector<384x32xf32>,
    %c0_73 = arith.constant 0 : index
    %c0_74 = arith.constant 0 : index
    %64 = vector.load %arg4[%c0_73, %c0_74] : memref<1x32xf32, #tpu.memory_space<vmem>>, vector<1x32xf32>
    %c0_75 = arith.constant 0 : index
    %c0_76 = arith.constant 0 : index
    %65 = vector.load %arg7[%c0_75, %c0_76] : memref<384x32xf32, #tpu.memory_space<vmem>>, vector<16x32xf32>
    %66 = vector.broadcast %64 : vector<1x32xf32> to vector<16x32xf32>
    %67 = arith.addf %65, %66 : vector<16x32xf32>
    %cst_77 = arith.constant 0.000000e+00 : f32
    %68 = vector.broadcast %cst_77 : f32 to vector<16x32xf32>
    %69 = arith.cmpf ogt, %67, %68 : vector<16x32xf32>
    %cst_78 = arith.constant 0.00999999977 : f32
    %70 = vector.broadcast %cst_78 : f32 to vector<16x32xf32>
    %71 = arith.mulf %70, %67 : vector<16x32xf32>
    %72 = arith.select %69, %67, %71 : vector<16x32xi1>, vector<16x32xf32>
    %73 = arith.truncf %72 : vector<16x32xf32> to vector<16x32xbf16>
    %c0_79 = arith.constant 0 : index
    %c0_80 = arith.constant 0 : index
    %c0_81 = arith.constant 0 : index
    %c0_82 = arith.constant 0 : index
    %74 = vector.load %arg5[%c0_79, %c0_80, %c0_81, %c0_82] : memref<1x16x16x32xbf16, #tpu.memory_space<vmem>>, vector<1x1x16x32xbf16>
    %75 = vector.shape_cast %74 : vector<1x1x16x32xbf16> to vector<16x32xbf16>
    %76 = vector.shape_cast %73 : vector<16x32xbf16> to vector<1x1x16x32xbf16>
    tpu.vector_store %arg5[%c0_79, %c0_80, %c0_81, %c0_82], %76 {strides = array<i32>} : memref<1x16x16x32xbf16, #tpu.memory_space<vmem>>, vector<1x1x16x32xbf16>,
    %c24_83 = arith.constant 24 : index
    %c0_84 = arith.constant 0 : index
    %77 = vector.load %arg7[%c24_83, %c0_84] : memref<384x32xf32, #tpu.memory_space<vmem>>, vector<16x32xf32>
    %78 = vector.broadcast %64 : vector<1x32xf32> to vector<16x32xf32>
    %79 = arith.addf %77, %78 : vector<16x32xf32>
    %cst_85 = arith.constant 0.000000e+00 : f32
    %80 = vector.broadcast %cst_85 : f32 to vector<16x32xf32>
    %81 = arith.cmpf ogt, %79, %80 : vector<16x32xf32>
    %cst_86 = arith.constant 0.00999999977 : f32
    %82 = vector.broadcast %cst_86 : f32 to vector<16x32xf32>
    %83 = arith.mulf %82, %79 : vector<16x32xf32>
    %84 = arith.select %81, %79, %83 : vector<16x32xi1>, vector<16x32xf32>
    %85 = arith.truncf %84 : vector<16x32xf32> to vector<16x32xbf16>
    %c0_87 = arith.constant 0 : index
    %c1_88 = arith.constant 1 : index
    %c0_89 = arith.constant 0 : index
    %c0_90 = arith.constant 0 : index
    %86 = vector.load %arg5[%c0_87, %c1_88, %c0_89, %c0_90] : memref<1x16x16x32xbf16, #tpu.memory_space<vmem>>, vector<1x1x16x32xbf16>
    %87 = vector.shape_cast %86 : vector<1x1x16x32xbf16> to vector<16x32xbf16>
    %88 = vector.shape_cast %85 : vector<16x32xbf16> to vector<1x1x16x32xbf16>
    tpu.vector_store %arg5[%c0_87, %c1_88, %c0_89, %c0_90], %88 {strides = array<i32>} : memref<1x16x16x32xbf16, #tpu.memory_space<vmem>>, vector<1x1x16x32xbf16>,
    %c48_91 = arith.constant 48 : index
    %c0_92 = arith.constant 0 : index
    %89 = vector.load %arg7[%c48_91, %c0_92] : memref<384x32xf32, #tpu.memory_space<vmem>>, vector<16x32xf32>
    %90 = vector.broadcast %64 : vector<1x32xf32> to vector<16x32xf32>
    %91 = arith.addf %89, %90 : vector<16x32xf32>
    %cst_93 = arith.constant 0.000000e+00 : f32
    %92 = vector.broadcast %cst_93 : f32 to vector<16x32xf32>
    %93 = arith.cmpf ogt, %91, %92 : vector<16x32xf32>
    %cst_94 = arith.constant 0.00999999977 : f32
    %94 = vector.broadcast %cst_94 : f32 to vector<16x32xf32>
    %95 = arith.mulf %94, %91 : vector<16x32xf32>
    %96 = arith.select %93, %91, %95 : vector<16x32xi1>, vector<16x32xf32>
    %97 = arith.truncf %96 : vector<16x32xf32> to vector<16x32xbf16>
    %c0_95 = arith.constant 0 : index
    %c2_96 = arith.constant 2 : index
    %c0_97 = arith.constant 0 : index
    %c0_98 = arith.constant 0 : index
    %98 = vector.load %arg5[%c0_95, %c2_96, %c0_97, %c0_98] : memref<1x16x16x32xbf16, #tpu.memory_space<vmem>>, vector<1x1x16x32xbf16>
    %99 = vector.shape_cast %98 : vector<1x1x16x32xbf16> to vector<16x32xbf16>
    %100 = vector.shape_cast %97 : vector<16x32xbf16> to vector<1x1x16x32xbf16>
    tpu.vector_store %arg5[%c0_95, %c2_96, %c0_97, %c0_98], %100 {strides = array<i32>} : memref<1x16x16x32xbf16, #tpu.memory_space<vmem>>, vector<1x1x16x32xbf16>,
    %c72 = arith.constant 72 : index
    %c0_99 = arith.constant 0 : index
    %101 = vector.load %arg7[%c72, %c0_99] : memref<384x32xf32, #tpu.memory_space<vmem>>, vector<16x32xf32>
    %102 = vector.broadcast %64 : vector<1x32xf32> to vector<16x32xf32>
    %103 = arith.addf %101, %102 : vector<16x32xf32>
    %cst_100 = arith.constant 0.000000e+00 : f32
    %104 = vector.broadcast %cst_100 : f32 to vector<16x32xf32>
    %105 = arith.cmpf ogt, %103, %104 : vector<16x32xf32>
    %cst_101 = arith.constant 0.00999999977 : f32
    %106 = vector.broadcast %cst_101 : f32 to vector<16x32xf32>
    %107 = arith.mulf %106, %103 : vector<16x32xf32>
    %108 = arith.select %105, %103, %107 : vector<16x32xi1>, vector<16x32xf32>
    %109 = arith.truncf %108 : vector<16x32xf32> to vector<16x32xbf16>
    %c0_102 = arith.constant 0 : index
    %c3_103 = arith.constant 3 : index
    %c0_104 = arith.constant 0 : index
    %c0_105 = arith.constant 0 : index
    %110 = vector.load %arg5[%c0_102, %c3_103, %c0_104, %c0_105] : memref<1x16x16x32xbf16, #tpu.memory_space<vmem>>, vector<1x1x16x32xbf16>
    %111 = vector.shape_cast %110 : vector<1x1x16x32xbf16> to vector<16x32xbf16>
    %112 = vector.shape_cast %109 : vector<16x32xbf16> to vector<1x1x16x32xbf16>
    tpu.vector_store %arg5[%c0_102, %c3_103, %c0_104, %c0_105], %112 {strides = array<i32>} : memref<1x16x16x32xbf16, #tpu.memory_space<vmem>>, vector<1x1x16x32xbf16>,
    %c96 = arith.constant 96 : index
    %c0_106 = arith.constant 0 : index
    %113 = vector.load %arg7[%c96, %c0_106] : memref<384x32xf32, #tpu.memory_space<vmem>>, vector<16x32xf32>
    %114 = vector.broadcast %64 : vector<1x32xf32> to vector<16x32xf32>
    %115 = arith.addf %113, %114 : vector<16x32xf32>
    %cst_107 = arith.constant 0.000000e+00 : f32
    %116 = vector.broadcast %cst_107 : f32 to vector<16x32xf32>
    %117 = arith.cmpf ogt, %115, %116 : vector<16x32xf32>
    %cst_108 = arith.constant 0.00999999977 : f32
    %118 = vector.broadcast %cst_108 : f32 to vector<16x32xf32>
    %119 = arith.mulf %118, %115 : vector<16x32xf32>
    %120 = arith.select %117, %115, %119 : vector<16x32xi1>, vector<16x32xf32>
    %121 = arith.truncf %120 : vector<16x32xf32> to vector<16x32xbf16>
    %c0_109 = arith.constant 0 : index
    %c4_110 = arith.constant 4 : index
    %c0_111 = arith.constant 0 : index
    %c0_112 = arith.constant 0 : index
    %122 = vector.load %arg5[%c0_109, %c4_110, %c0_111, %c0_112] : memref<1x16x16x32xbf16, #tpu.memory_space<vmem>>, vector<1x1x16x32xbf16>
    %123 = vector.shape_cast %122 : vector<1x1x16x32xbf16> to vector<16x32xbf16>
    %124 = vector.shape_cast %121 : vector<16x32xbf16> to vector<1x1x16x32xbf16>
    tpu.vector_store %arg5[%c0_109, %c4_110, %c0_111, %c0_112], %124 {strides = array<i32>} : memref<1x16x16x32xbf16, #tpu.memory_space<vmem>>, vector<1x1x16x32xbf16>,
    %c120 = arith.constant 120 : index
    %c0_113 = arith.constant 0 : index
    %125 = vector.load %arg7[%c120, %c0_113] : memref<384x32xf32, #tpu.memory_space<vmem>>, vector<16x32xf32>
    %126 = vector.broadcast %64 : vector<1x32xf32> to vector<16x32xf32>
    %127 = arith.addf %125, %126 : vector<16x32xf32>
    %cst_114 = arith.constant 0.000000e+00 : f32
    %128 = vector.broadcast %cst_114 : f32 to vector<16x32xf32>
    %129 = arith.cmpf ogt, %127, %128 : vector<16x32xf32>
    %cst_115 = arith.constant 0.00999999977 : f32
    %130 = vector.broadcast %cst_115 : f32 to vector<16x32xf32>
    %131 = arith.mulf %130, %127 : vector<16x32xf32>
    %132 = arith.select %129, %127, %131 : vector<16x32xi1>, vector<16x32xf32>
    %133 = arith.truncf %132 : vector<16x32xf32> to vector<16x32xbf16>
    %c0_116 = arith.constant 0 : index
    %c5_117 = arith.constant 5 : index
    %c0_118 = arith.constant 0 : index
    %c0_119 = arith.constant 0 : index
    %134 = vector.load %arg5[%c0_116, %c5_117, %c0_118, %c0_119] : memref<1x16x16x32xbf16, #tpu.memory_space<vmem>>, vector<1x1x16x32xbf16>
    %135 = vector.shape_cast %134 : vector<1x1x16x32xbf16> to vector<16x32xbf16>
    %136 = vector.shape_cast %133 : vector<16x32xbf16> to vector<1x1x16x32xbf16>
    tpu.vector_store %arg5[%c0_116, %c5_117, %c0_118, %c0_119], %136 {strides = array<i32>} : memref<1x16x16x32xbf16, #tpu.memory_space<vmem>>, vector<1x1x16x32xbf16>,
    %c144 = arith.constant 144 : index
    %c0_120 = arith.constant 0 : index
    %137 = vector.load %arg7[%c144, %c0_120] : memref<384x32xf32, #tpu.memory_space<vmem>>, vector<16x32xf32>
    %138 = vector.broadcast %64 : vector<1x32xf32> to vector<16x32xf32>
    %139 = arith.addf %137, %138 : vector<16x32xf32>
    %cst_121 = arith.constant 0.000000e+00 : f32
    %140 = vector.broadcast %cst_121 : f32 to vector<16x32xf32>
    %141 = arith.cmpf ogt, %139, %140 : vector<16x32xf32>
    %cst_122 = arith.constant 0.00999999977 : f32
    %142 = vector.broadcast %cst_122 : f32 to vector<16x32xf32>
    %143 = arith.mulf %142, %139 : vector<16x32xf32>
    %144 = arith.select %141, %139, %143 : vector<16x32xi1>, vector<16x32xf32>
    %145 = arith.truncf %144 : vector<16x32xf32> to vector<16x32xbf16>
    %c0_123 = arith.constant 0 : index
    %c6_124 = arith.constant 6 : index
    %c0_125 = arith.constant 0 : index
    %c0_126 = arith.constant 0 : index
    %146 = vector.load %arg5[%c0_123, %c6_124, %c0_125, %c0_126] : memref<1x16x16x32xbf16, #tpu.memory_space<vmem>>, vector<1x1x16x32xbf16>
    %147 = vector.shape_cast %146 : vector<1x1x16x32xbf16> to vector<16x32xbf16>
    %148 = vector.shape_cast %145 : vector<16x32xbf16> to vector<1x1x16x32xbf16>
    tpu.vector_store %arg5[%c0_123, %c6_124, %c0_125, %c0_126], %148 {strides = array<i32>} : memref<1x16x16x32xbf16, #tpu.memory_space<vmem>>, vector<1x1x16x32xbf16>,
    %c168 = arith.constant 168 : index
    %c0_127 = arith.constant 0 : index
    %149 = vector.load %arg7[%c168, %c0_127] : memref<384x32xf32, #tpu.memory_space<vmem>>, vector<16x32xf32>
    %150 = vector.broadcast %64 : vector<1x32xf32> to vector<16x32xf32>
    %151 = arith.addf %149, %150 : vector<16x32xf32>
    %cst_128 = arith.constant 0.000000e+00 : f32
    %152 = vector.broadcast %cst_128 : f32 to vector<16x32xf32>
    %153 = arith.cmpf ogt, %151, %152 : vector<16x32xf32>
    %cst_129 = arith.constant 0.00999999977 : f32
    %154 = vector.broadcast %cst_129 : f32 to vector<16x32xf32>
    %155 = arith.mulf %154, %151 : vector<16x32xf32>
    %156 = arith.select %153, %151, %155 : vector<16x32xi1>, vector<16x32xf32>
    %157 = arith.truncf %156 : vector<16x32xf32> to vector<16x32xbf16>
    %c0_130 = arith.constant 0 : index
    %c7_131 = arith.constant 7 : index
    %c0_132 = arith.constant 0 : index
    %c0_133 = arith.constant 0 : index
    %158 = vector.load %arg5[%c0_130, %c7_131, %c0_132, %c0_133] : memref<1x16x16x32xbf16, #tpu.memory_space<vmem>>, vector<1x1x16x32xbf16>
    %159 = vector.shape_cast %158 : vector<1x1x16x32xbf16> to vector<16x32xbf16>
    %160 = vector.shape_cast %157 : vector<16x32xbf16> to vector<1x1x16x32xbf16>
    tpu.vector_store %arg5[%c0_130, %c7_131, %c0_132, %c0_133], %160 {strides = array<i32>} : memref<1x16x16x32xbf16, #tpu.memory_space<vmem>>, vector<1x1x16x32xbf16>,
    %c192 = arith.constant 192 : index
    %c0_134 = arith.constant 0 : index
    %161 = vector.load %arg7[%c192, %c0_134] : memref<384x32xf32, #tpu.memory_space<vmem>>, vector<16x32xf32>
    %162 = vector.broadcast %64 : vector<1x32xf32> to vector<16x32xf32>
    %163 = arith.addf %161, %162 : vector<16x32xf32>
    %cst_135 = arith.constant 0.000000e+00 : f32
    %164 = vector.broadcast %cst_135 : f32 to vector<16x32xf32>
    %165 = arith.cmpf ogt, %163, %164 : vector<16x32xf32>
    %cst_136 = arith.constant 0.00999999977 : f32
    %166 = vector.broadcast %cst_136 : f32 to vector<16x32xf32>
    %167 = arith.mulf %166, %163 : vector<16x32xf32>
    %168 = arith.select %165, %163, %167 : vector<16x32xi1>, vector<16x32xf32>
    %169 = arith.truncf %168 : vector<16x32xf32> to vector<16x32xbf16>
    %c0_137 = arith.constant 0 : index
    %c8_138 = arith.constant 8 : index
    %c0_139 = arith.constant 0 : index
    %c0_140 = arith.constant 0 : index
    %170 = vector.load %arg5[%c0_137, %c8_138, %c0_139, %c0_140] : memref<1x16x16x32xbf16, #tpu.memory_space<vmem>>, vector<1x1x16x32xbf16>
    %171 = vector.shape_cast %170 : vector<1x1x16x32xbf16> to vector<16x32xbf16>
    %172 = vector.shape_cast %169 : vector<16x32xbf16> to vector<1x1x16x32xbf16>
    tpu.vector_store %arg5[%c0_137, %c8_138, %c0_139, %c0_140], %172 {strides = array<i32>} : memref<1x16x16x32xbf16, #tpu.memory_space<vmem>>, vector<1x1x16x32xbf16>,
    %c216 = arith.constant 216 : index
    %c0_141 = arith.constant 0 : index
    %173 = vector.load %arg7[%c216, %c0_141] : memref<384x32xf32, #tpu.memory_space<vmem>>, vector<16x32xf32>
    %174 = vector.broadcast %64 : vector<1x32xf32> to vector<16x32xf32>
    %175 = arith.addf %173, %174 : vector<16x32xf32>
    %cst_142 = arith.constant 0.000000e+00 : f32
    %176 = vector.broadcast %cst_142 : f32 to vector<16x32xf32>
    %177 = arith.cmpf ogt, %175, %176 : vector<16x32xf32>
    %cst_143 = arith.constant 0.00999999977 : f32
    %178 = vector.broadcast %cst_143 : f32 to vector<16x32xf32>
    %179 = arith.mulf %178, %175 : vector<16x32xf32>
    %180 = arith.select %177, %175, %179 : vector<16x32xi1>, vector<16x32xf32>
    %181 = arith.truncf %180 : vector<16x32xf32> to vector<16x32xbf16>
    %c0_144 = arith.constant 0 : index
    %c9 = arith.constant 9 : index
    %c0_145 = arith.constant 0 : index
    %c0_146 = arith.constant 0 : index
    %182 = vector.load %arg5[%c0_144, %c9, %c0_145, %c0_146] : memref<1x16x16x32xbf16, #tpu.memory_space<vmem>>, vector<1x1x16x32xbf16>
    %183 = vector.shape_cast %182 : vector<1x1x16x32xbf16> to vector<16x32xbf16>
    %184 = vector.shape_cast %181 : vector<16x32xbf16> to vector<1x1x16x32xbf16>
    tpu.vector_store %arg5[%c0_144, %c9, %c0_145, %c0_146], %184 {strides = array<i32>} : memref<1x16x16x32xbf16, #tpu.memory_space<vmem>>, vector<1x1x16x32xbf16>,
    %c240 = arith.constant 240 : index
    %c0_147 = arith.constant 0 : index
    %185 = vector.load %arg7[%c240, %c0_147] : memref<384x32xf32, #tpu.memory_space<vmem>>, vector<16x32xf32>
    %186 = vector.broadcast %64 : vector<1x32xf32> to vector<16x32xf32>
    %187 = arith.addf %185, %186 : vector<16x32xf32>
    %cst_148 = arith.constant 0.000000e+00 : f32
    %188 = vector.broadcast %cst_148 : f32 to vector<16x32xf32>
    %189 = arith.cmpf ogt, %187, %188 : vector<16x32xf32>
    %cst_149 = arith.constant 0.00999999977 : f32
    %190 = vector.broadcast %cst_149 : f32 to vector<16x32xf32>
    %191 = arith.mulf %190, %187 : vector<16x32xf32>
    %192 = arith.select %189, %187, %191 : vector<16x32xi1>, vector<16x32xf32>
    %193 = arith.truncf %192 : vector<16x32xf32> to vector<16x32xbf16>
    %c0_150 = arith.constant 0 : index
    %c10 = arith.constant 10 : index
    %c0_151 = arith.constant 0 : index
    %c0_152 = arith.constant 0 : index
    %194 = vector.load %arg5[%c0_150, %c10, %c0_151, %c0_152] : memref<1x16x16x32xbf16, #tpu.memory_space<vmem>>, vector<1x1x16x32xbf16>
    %195 = vector.shape_cast %194 : vector<1x1x16x32xbf16> to vector<16x32xbf16>
    %196 = vector.shape_cast %193 : vector<16x32xbf16> to vector<1x1x16x32xbf16>
    tpu.vector_store %arg5[%c0_150, %c10, %c0_151, %c0_152], %196 {strides = array<i32>} : memref<1x16x16x32xbf16, #tpu.memory_space<vmem>>, vector<1x1x16x32xbf16>,
    %c264 = arith.constant 264 : index
    %c0_153 = arith.constant 0 : index
    %197 = vector.load %arg7[%c264, %c0_153] : memref<384x32xf32, #tpu.memory_space<vmem>>, vector<16x32xf32>
    %198 = vector.broadcast %64 : vector<1x32xf32> to vector<16x32xf32>
    %199 = arith.addf %197, %198 : vector<16x32xf32>
    %cst_154 = arith.constant 0.000000e+00 : f32
    %200 = vector.broadcast %cst_154 : f32 to vector<16x32xf32>
    %201 = arith.cmpf ogt, %199, %200 : vector<16x32xf32>
    %cst_155 = arith.constant 0.00999999977 : f32
    %202 = vector.broadcast %cst_155 : f32 to vector<16x32xf32>
    %203 = arith.mulf %202, %199 : vector<16x32xf32>
    %204 = arith.select %201, %199, %203 : vector<16x32xi1>, vector<16x32xf32>
    %205 = arith.truncf %204 : vector<16x32xf32> to vector<16x32xbf16>
    %c0_156 = arith.constant 0 : index
    %c11 = arith.constant 11 : index
    %c0_157 = arith.constant 0 : index
    %c0_158 = arith.constant 0 : index
    %206 = vector.load %arg5[%c0_156, %c11, %c0_157, %c0_158] : memref<1x16x16x32xbf16, #tpu.memory_space<vmem>>, vector<1x1x16x32xbf16>
    %207 = vector.shape_cast %206 : vector<1x1x16x32xbf16> to vector<16x32xbf16>
    %208 = vector.shape_cast %205 : vector<16x32xbf16> to vector<1x1x16x32xbf16>
    tpu.vector_store %arg5[%c0_156, %c11, %c0_157, %c0_158], %208 {strides = array<i32>} : memref<1x16x16x32xbf16, #tpu.memory_space<vmem>>, vector<1x1x16x32xbf16>,
    %c288 = arith.constant 288 : index
    %c0_159 = arith.constant 0 : index
    %209 = vector.load %arg7[%c288, %c0_159] : memref<384x32xf32, #tpu.memory_space<vmem>>, vector<16x32xf32>
    %210 = vector.broadcast %64 : vector<1x32xf32> to vector<16x32xf32>
    %211 = arith.addf %209, %210 : vector<16x32xf32>
    %cst_160 = arith.constant 0.000000e+00 : f32
    %212 = vector.broadcast %cst_160 : f32 to vector<16x32xf32>
    %213 = arith.cmpf ogt, %211, %212 : vector<16x32xf32>
    %cst_161 = arith.constant 0.00999999977 : f32
    %214 = vector.broadcast %cst_161 : f32 to vector<16x32xf32>
    %215 = arith.mulf %214, %211 : vector<16x32xf32>
    %216 = arith.select %213, %211, %215 : vector<16x32xi1>, vector<16x32xf32>
    %217 = arith.truncf %216 : vector<16x32xf32> to vector<16x32xbf16>
    %c0_162 = arith.constant 0 : index
    %c12 = arith.constant 12 : index
    %c0_163 = arith.constant 0 : index
    %c0_164 = arith.constant 0 : index
    %218 = vector.load %arg5[%c0_162, %c12, %c0_163, %c0_164] : memref<1x16x16x32xbf16, #tpu.memory_space<vmem>>, vector<1x1x16x32xbf16>
    %219 = vector.shape_cast %218 : vector<1x1x16x32xbf16> to vector<16x32xbf16>
    %220 = vector.shape_cast %217 : vector<16x32xbf16> to vector<1x1x16x32xbf16>
    tpu.vector_store %arg5[%c0_162, %c12, %c0_163, %c0_164], %220 {strides = array<i32>} : memref<1x16x16x32xbf16, #tpu.memory_space<vmem>>, vector<1x1x16x32xbf16>,
    %c312 = arith.constant 312 : index
    %c0_165 = arith.constant 0 : index
    %221 = vector.load %arg7[%c312, %c0_165] : memref<384x32xf32, #tpu.memory_space<vmem>>, vector<16x32xf32>
    %222 = vector.broadcast %64 : vector<1x32xf32> to vector<16x32xf32>
    %223 = arith.addf %221, %222 : vector<16x32xf32>
    %cst_166 = arith.constant 0.000000e+00 : f32
    %224 = vector.broadcast %cst_166 : f32 to vector<16x32xf32>
    %225 = arith.cmpf ogt, %223, %224 : vector<16x32xf32>
    %cst_167 = arith.constant 0.00999999977 : f32
    %226 = vector.broadcast %cst_167 : f32 to vector<16x32xf32>
    %227 = arith.mulf %226, %223 : vector<16x32xf32>
    %228 = arith.select %225, %223, %227 : vector<16x32xi1>, vector<16x32xf32>
    %229 = arith.truncf %228 : vector<16x32xf32> to vector<16x32xbf16>
    %c0_168 = arith.constant 0 : index
    %c13 = arith.constant 13 : index
    %c0_169 = arith.constant 0 : index
    %c0_170 = arith.constant 0 : index
    %230 = vector.load %arg5[%c0_168, %c13, %c0_169, %c0_170] : memref<1x16x16x32xbf16, #tpu.memory_space<vmem>>, vector<1x1x16x32xbf16>
    %231 = vector.shape_cast %230 : vector<1x1x16x32xbf16> to vector<16x32xbf16>
    %232 = vector.shape_cast %229 : vector<16x32xbf16> to vector<1x1x16x32xbf16>
    tpu.vector_store %arg5[%c0_168, %c13, %c0_169, %c0_170], %232 {strides = array<i32>} : memref<1x16x16x32xbf16, #tpu.memory_space<vmem>>, vector<1x1x16x32xbf16>,
    %c336 = arith.constant 336 : index
    %c0_171 = arith.constant 0 : index
    %233 = vector.load %arg7[%c336, %c0_171] : memref<384x32xf32, #tpu.memory_space<vmem>>, vector<16x32xf32>
    %234 = vector.broadcast %64 : vector<1x32xf32> to vector<16x32xf32>
    %235 = arith.addf %233, %234 : vector<16x32xf32>
    %cst_172 = arith.constant 0.000000e+00 : f32
    %236 = vector.broadcast %cst_172 : f32 to vector<16x32xf32>
    %237 = arith.cmpf ogt, %235, %236 : vector<16x32xf32>
    %cst_173 = arith.constant 0.00999999977 : f32
    %238 = vector.broadcast %cst_173 : f32 to vector<16x32xf32>
    %239 = arith.mulf %238, %235 : vector<16x32xf32>
    %240 = arith.select %237, %235, %239 : vector<16x32xi1>, vector<16x32xf32>
    %241 = arith.truncf %240 : vector<16x32xf32> to vector<16x32xbf16>
    %c0_174 = arith.constant 0 : index
    %c14 = arith.constant 14 : index
    %c0_175 = arith.constant 0 : index
    %c0_176 = arith.constant 0 : index
    %242 = vector.load %arg5[%c0_174, %c14, %c0_175, %c0_176] : memref<1x16x16x32xbf16, #tpu.memory_space<vmem>>, vector<1x1x16x32xbf16>
    %243 = vector.shape_cast %242 : vector<1x1x16x32xbf16> to vector<16x32xbf16>
    %244 = vector.shape_cast %241 : vector<16x32xbf16> to vector<1x1x16x32xbf16>
    tpu.vector_store %arg5[%c0_174, %c14, %c0_175, %c0_176], %244 {strides = array<i32>} : memref<1x16x16x32xbf16, #tpu.memory_space<vmem>>, vector<1x1x16x32xbf16>,
    %c360 = arith.constant 360 : index
    %c0_177 = arith.constant 0 : index
    %245 = vector.load %arg7[%c360, %c0_177] : memref<384x32xf32, #tpu.memory_space<vmem>>, vector<16x32xf32>
    %246 = vector.broadcast %64 : vector<1x32xf32> to vector<16x32xf32>
    %247 = arith.addf %245, %246 : vector<16x32xf32>
    %cst_178 = arith.constant 0.000000e+00 : f32
    %248 = vector.broadcast %cst_178 : f32 to vector<16x32xf32>
    %249 = arith.cmpf ogt, %247, %248 : vector<16x32xf32>
    %cst_179 = arith.constant 0.00999999977 : f32
    %250 = vector.broadcast %cst_179 : f32 to vector<16x32xf32>
    %251 = arith.mulf %250, %247 : vector<16x32xf32>
    %252 = arith.select %249, %247, %251 : vector<16x32xi1>, vector<16x32xf32>
    %253 = arith.truncf %252 : vector<16x32xf32> to vector<16x32xbf16>
    %c0_180 = arith.constant 0 : index
    %c15 = arith.constant 15 : index
    %c0_181 = arith.constant 0 : index
    %c0_182 = arith.constant 0 : index
    %254 = vector.load %arg5[%c0_180, %c15, %c0_181, %c0_182] : memref<1x16x16x32xbf16, #tpu.memory_space<vmem>>, vector<1x1x16x32xbf16>
    %255 = vector.shape_cast %254 : vector<1x1x16x32xbf16> to vector<16x32xbf16>
    %256 = vector.shape_cast %253 : vector<16x32xbf16> to vector<1x1x16x32xbf16>
    tpu.vector_store %arg5[%c0_180, %c15, %c0_181, %c0_182], %256 {strides = array<i32>} : memref<1x16x16x32xbf16, #tpu.memory_space<vmem>>, vector<1x1x16x32xbf16>,
    return
  }
  func.func @transform_0(%arg0: i32, %arg1: i32) -> (i32, i32, i32, i32) {
    %c0_i32 = arith.constant 0 : i32
    %c0_i32_0 = arith.constant 0 : i32
    %c0_i32_1 = arith.constant 0 : i32
    %c0_i32_2 = arith.constant 0 : i32
    return %arg0, %c0_i32, %c0_i32_0, %c0_i32_1 : i32, i32, i32, i32
  }
  func.func @transform_1(%arg0: i32, %arg1: i32) -> (i32, i32, i32) {
    %c0_i32 = arith.constant 0 : i32
    %c0_i32_0 = arith.constant 0 : i32
    %c0_i32_1 = arith.constant 0 : i32
    return %c0_i32, %c0_i32_0, %arg1 : i32, i32, i32
  }
  func.func @transform_2(%arg0: i32, %arg1: i32) -> (i32, i32) {
    %c0_i32 = arith.constant 0 : i32
    %c0_i32_0 = arith.constant 0 : i32
    return %c0_i32, %arg1 : i32, i32
  }
  func.func @transform_3(%arg0: i32, %arg1: i32) -> (i32, i32, i32, i32) {
    %c0_i32 = arith.constant 0 : i32
    %c0_i32_0 = arith.constant 0 : i32
    %c0_i32_1 = arith.constant 0 : i32
    return %arg0, %c0_i32, %c0_i32_0, %arg1 : i32, i32, i32, i32
  }
}

module attributes {stable_mosaic.version = 11 : i64} {
  func.func @_conv1x1_kernel(%arg0: i32, %arg1: memref<256x16xbf16, #tpu.memory_space<vmem>>, %arg2: memref<16x8xbf16, #tpu.memory_space<vmem>>, %arg3: memref<1x8xf32, #tpu.memory_space<vmem>>, %arg4: memref<256x8xf32, #tpu.memory_space<vmem>>) attributes {dimension_semantics = [#tpu.dimension_semantics<parallel>], iteration_bounds = array<i64: 2>, scalar_prefetch = 0 : i64, scratch_operands = 0 : i64, tpu.core_type = #tpu.core_type<tc>, window_params = [{transform_indices = @transform_0, window_bounds = array<i64: 256, 16>}, {pipeline_mode = #tpu.pipeline_mode<synchronous>, transform_indices = @transform_1, window_bounds = array<i64: 16, 8>}, {pipeline_mode = #tpu.pipeline_mode<synchronous>, transform_indices = @transform_2, window_bounds = array<i64: 1, 8>}, {transform_indices = @transform_3, window_bounds = array<i64: 256, 8>}]} {
    %c0 = arith.constant 0 : index
    %c0_0 = arith.constant 0 : index
    %0 = vector.load %arg1[%c0, %c0_0] : memref<256x16xbf16, #tpu.memory_space<vmem>>, vector<256x16xbf16>
    %c0_1 = arith.constant 0 : index
    %c0_2 = arith.constant 0 : index
    %1 = vector.load %arg2[%c0_1, %c0_2] : memref<16x8xbf16, #tpu.memory_space<vmem>>, vector<16x8xbf16>
    %cst = arith.constant dense<0.000000e+00> : vector<256x8xf32>
    %2 = tpu.matmul %0, %1, %cst {dimension_numbers = #tpu.dot_dimension_numbers<[1], [0], [0], [1], [0, 0, 1, 1], [], []>} : vector<256x16xbf16>, vector<16x8xbf16>, vector<256x8xf32> -> vector<256x8xf32>
    %c0_3 = arith.constant 0 : index
    %c0_4 = arith.constant 0 : index
    %3 = vector.load %arg3[%c0_3, %c0_4] : memref<1x8xf32, #tpu.memory_space<vmem>>, vector<1x8xf32>
    %4 = vector.broadcast %3 : vector<1x8xf32> to vector<256x8xf32>
    %5 = arith.addf %2, %4 : vector<256x8xf32>
    %cst_5 = arith.constant 0.000000e+00 : f32
    %6 = vector.broadcast %cst_5 : f32 to vector<256x8xf32>
    %7 = arith.cmpf ogt, %5, %6 : vector<256x8xf32>
    %cst_6 = arith.constant 0.00999999977 : f32
    %8 = vector.broadcast %cst_6 : f32 to vector<256x8xf32>
    %9 = arith.mulf %8, %5 : vector<256x8xf32>
    %10 = arith.select %7, %5, %9 : vector<256x8xi1>, vector<256x8xf32>
    %c0_7 = arith.constant 0 : index
    %c0_8 = arith.constant 0 : index
    %11 = vector.load %arg4[%c0_7, %c0_8] : memref<256x8xf32, #tpu.memory_space<vmem>>, vector<256x8xf32>
    tpu.vector_store %arg4[%c0_7, %c0_8], %10 {strides = array<i32>} : memref<256x8xf32, #tpu.memory_space<vmem>>, vector<256x8xf32>,
    return
  }
  func.func @transform_0(%arg0: i32) -> (i32, i32) {
    %c0_i32 = arith.constant 0 : i32
    %c0_i32_0 = arith.constant 0 : i32
    return %arg0, %c0_i32 : i32, i32
  }
  func.func @transform_1(%arg0: i32) -> (i32, i32) {
    %c0_i32 = arith.constant 0 : i32
    %c0_i32_0 = arith.constant 0 : i32
    %c0_i32_1 = arith.constant 0 : i32
    return %c0_i32, %c0_i32_0 : i32, i32
  }
  func.func @transform_2(%arg0: i32) -> (i32, i32) {
    %c0_i32 = arith.constant 0 : i32
    %c0_i32_0 = arith.constant 0 : i32
    %c0_i32_1 = arith.constant 0 : i32
    return %c0_i32, %c0_i32_0 : i32, i32
  }
  func.func @transform_3(%arg0: i32) -> (i32, i32) {
    %c0_i32 = arith.constant 0 : i32
    %c0_i32_0 = arith.constant 0 : i32
    return %arg0, %c0_i32 : i32, i32
  }
}

</mosaic_0001>

<bundles_post_ra>
// kernel: yolov3_layer_forward.6
= control target key start
LH: loop header
LB: loop body
LE: loop exit
PB: predicated region body
PF: predicated region fallthrough
CT: control target
= control target key end

     0   :  { %s941_s12 = smov 0   ;;  %s1120_s0 = inlined_call_operand.vmem [shape: f32[512,4], index: 0, kind: input, shape index: {}]   ;;  %s1121_s1 = inlined_call_operand.vmem [shape: bf16[4,16], index: 1, kind: input, shape index: {}]   ;;  %s1122_s2 = inlined_call_operand.vmem [shape: f32[1,16], index: 2, kind: input, shape index: {}]   ;;  %s1123_s3 = inlined_call_operand.vmem [shape: bf16[512,16], index: 3, kind: output, shape index: {}]  }
   0x1 LB: > { %s758_s13 = sadd.s32 4294967295, %s919_s12   ;;  %p762_p0 = scmp.ge.s32.totalorder %s919_s12, 1  ;;  %s919_s12 = sphi %s941_s12, %s13_s12  }
   0x2   : > { %p138_p1 = scmp.lt.s32.totalorder %s919_s12, 3 }
   0x4   : > { %p139_p2 = pnand %p762_p0, %p138_p1 }
   0x5   : > { %v223_v0 = vld [vmem:[%s1121_s1] sm:$0x3] (!%p139_p2)  ;;  %vm280_vm0 = vcmask (!%p139_p2), 1041408   ;;  %s763_s16 = sshll.u32 (!%p139_p2), %s758_s13, 5  ;;  %vm231_vm1 = vcmask (!%p139_p2), 31744   ;;  %vm669_vm2 = vcmask (!%p139_p2), 125952  }
   0x6   : > { %142 = sbr.rel (%p139_p2) target bundleno = 278 (0x116), region = 32  ;;  %903 = vmatprep.subr.msk.bf16.mxu0 (!%p139_p2), %vm280_vm0, %v223_v0  ;;  %904 = vmatprep.subr.msk.bf16.mxu1 (!%p139_p2), %vm280_vm0, %v223_v0  ;;  %v282_v1 = vsel (!%p139_p2), %vm280_vm0, %v223_v0, 0  ;;  %p163_p3 = scmp.lt.s32.totalorder (!%p139_p2), %s763_s16, 63  ;;  %v1011_v50 = vld [vmem:[%s1122_s2] ss:$0 sm:$0xff] (!%p139_p2) }
   0x7   : > { %868 = vmatpush3.bf16.msra.mxu0 (!%p139_p2), %v282_v1  ;;  %902 = vmatpush3.bf16.msra.mxu1 (!%p139_p2), %v282_v1 }
   0xd   : > { %s1125_s16 = smov (!%p163_p3, %s763_s16), 63 }
   0xe   : > { %s764_s17 = sshll.u32 %s1125_s16, 3  ;;  %s766_s23 = sshll.u32 %s1125_s16, 2 }
   0xf   : > { %s958_s20 = scalar_lea.vmem %s1120_s0, %s764_s17  ;;  %s1022_s26 = scalar_lea.vmem %s1123_s3, %s766_s23 }
  0x10   : > { %v175_v2 = vld [vmem:[%s958_s20] sm:$0xff]  ;;  %v176_v3 = vld [vmem:[%s958_s20 + $0x8] sm:$0xff]  ;;  %v177_v7 = vld [vmem:[%s958_s20 + $0x10] sm:$0xff] }
  0x11   : > { %v191_v4 = vld [vmem:[%s958_s20 + $0x80] sm:$0xff]  ;;  %v207_v5 = vpack.c.bf16 %v176_v3, %v175_v2  ;;  %v192_v6 = vld [vmem:[%s958_s20 + $0x88] sm:$0xff]  ;;  %v178_v8 = vld [vmem:[%s958_s20 + $0x18] sm:$0xff] }
  0x12   : > { %v215_v9 = vpack.c.bf16 %v192_v6, %v191_v4  ;;  %v208_v10 = vpack.c.bf16 %v178_v8, %v177_v7  ;;  %v193_v11 = vld [vmem:[%s958_s20 + $0x90] sm:$0xff]  ;;  %v194_v12 = vld [vmem:[%s958_s20 + $0x98] sm:$0xff]  ;;  %v179_v13 = vld [vmem:[%s958_s20 + $0x20] sm:$0xff] }
  0x13   : > { %869 = vmatprep.mubr.msk.bf16.mxu0 %vm231_vm1, %v207_v5  ;;  %v216_v14 = vpack.c.bf16 %v194_v12, %v193_v11  ;;  %v180_v15 = vld [vmem:[%s958_s20 + $0x28] sm:$0xff]  ;;  %v195_v16 = vld [vmem:[%s958_s20 + $0xa0] sm:$0xff]  ;;  %v181_v20 = vld [vmem:[%s958_s20 + $0x30] sm:$0xff] }
  0x14   : > { %v196_v17 = vld [vmem:[%s958_s20 + $0xa8] sm:$0xff]  ;;  %885 = vmatprep.mubr.msk.bf16.mxu1 %vm231_vm1, %v215_v9  ;;  %870 = vmatmul.mubr.msk.bf16.vlgmr.msra.gmra.mrb[0].mxu0 %vm231_vm1, %v208_v10  ;;  %v209_v18 = vpack.c.bf16 %v180_v15, %v179_v13  ;;  %v182_v21 = vld [vmem:[%s958_s20 + $0x38] sm:$0xff]  ;;  %v197_v22 = vld [vmem:[%s958_s20 + $0xb0] sm:$0xff] }
  0x15   : > { %v217_v19 = vpack.c.bf16 %v196_v17, %v195_v16  ;;  %886 = vmatmul.mubr.msk.bf16.vlgmr.msra.gmra.mrb[0].mxu1 %vm231_vm1, %v216_v14  ;;  %v198_v23 = vld [vmem:[%s958_s20 + $0xb8] sm:$0xff]  ;;  %v183_v24 = vld [vmem:[%s958_s20 + $0x40] sm:$0xff]  ;;  %v184_v25 = vld [vmem:[%s958_s20 + $0x48] sm:$0xff]  ;;  %v210_v28 = vpack.c.bf16 %v182_v21, %v181_v20 }
  0x16   : > { %873 = vmatprep.mubr.msk.bf16.mxu0 %vm231_vm1, %v209_v18  ;;  %v199_v26 = vld [vmem:[%s958_s20 + $0xc0] sm:$0xff]  ;;  %v200_v27 = vld [vmem:[%s958_s20 + $0xc8] sm:$0xff]  ;;  %v218_v29 = vpack.c.bf16 %v198_v23, %v197_v22  ;;  %v211_v30 = vpack.c.bf16 %v184_v25, %v183_v24  ;;  %v185_v32 = vld [vmem:[%s958_s20 + $0x50] sm:$0xff] }
  0x17   : > { %889 = vmatprep.mubr.msk.bf16.mxu1 %vm231_vm1, %v217_v19  ;;  %v219_v31 = vpack.c.bf16 %v200_v27, %v199_v26  ;;  %v186_v33 = vld [vmem:[%s958_s20 + $0x58] sm:$0xff]  ;;  %v201_v34 = vld [vmem:[%s958_s20 + $0xd0] sm:$0xff]  ;;  %v187_v36 = vld [vmem:[%s958_s20 + $0x60] sm:$0xff] }
  0x18   : > { %v202_v35 = vld [vmem:[%s958_s20 + $0xd8] sm:$0xff]  ;;  %v188_v37 = vld [vmem:[%s958_s20 + $0x68] sm:$0xff]  ;;  %v203_v38 = vld [vmem:[%s958_s20 + $0xe0] sm:$0xff]  ;;  %v212_v40 = vpack.c.bf16 %v186_v33, %v185_v32 }
  0x19   : > { %v204_v39 = vld [vmem:[%s958_s20 + $0xe8] sm:$0xff]  ;;  %v220_v41 = vpack.c.bf16 %v202_v35, %v201_v34  ;;  %v213_v42 = vpack.c.bf16 %v188_v37, %v187_v36  ;;  %v189_v44 = vld [vmem:[%s958_s20 + $0x70] sm:$0xff]  ;;  %v190_v45 = vld [vmem:[%s958_s20 + $0x78] sm:$0xff] }
  0x1a   : > { %v221_v43 = vpack.c.bf16 %v204_v39, %v203_v38  ;;  %v205_v46 = vld [vmem:[%s958_s20 + $0xf0] sm:$0xff]  ;;  %v206_v47 = vld [vmem:[%s958_s20 + $0xf8] sm:$0xff]  ;;  %v214_v48 = vpack.c.bf16 %v190_v45, %v189_v44 }
  0x1b   : > { %v222_v49 = vpack.c.bf16 %v206_v47, %v205_v46 }
  0x1c   : > { %874 = vmatmul.mubr.msk.bf16.gmra.mrb[4].mxu0 %vm231_vm1, %v210_v28 }
  0x1d   : > { %890 = vmatmul.mubr.msk.bf16.gmra.mrb[4].mxu1 %vm231_vm1, %v218_v29  ;;  %877 = vmatprep.mubr.msk.bf16.mxu0 %vm231_vm1, %v211_v30 }
  0x1e   : > { %893 = vmatprep.mubr.msk.bf16.mxu1 %vm231_vm1, %v219_v31 }
  0x24   : > { %878 = vmatmul.mubr.msk.bf16.gmra.mrb[8].mxu0 %vm231_vm1, %v212_v40 }
  0x25   : > { %894 = vmatmul.mubr.msk.bf16.gmra.mrb[8].mxu1 %vm231_vm1, %v220_v41  ;;  %881 = vmatprep.mubr.msk.bf16.mxu0 %vm231_vm1, %v213_v42 }
  0x26   : > { %897 = vmatprep.mubr.msk.bf16.mxu1 %vm231_vm1, %v221_v43 }
  0x2c   : > { %882 = vmatmul.mubr.msk.bf16.gmra.mrb[12].mxu0 %vm231_vm1, %v214_v48 }
  0x2d   : > { %898 = vmatmul.mubr.msk.bf16.gmra.mrb[12].mxu1 %vm231_vm1, %v222_v49 }
  0xe7   : > { %v871_v51 = vpop.f32.mrb[0].mxu0 }
  0xe8   : > { %v327_v52 = vadd.f32 %v871_v51, %v1011_v50  ;;  %v887_v53 = vpop.f32.mrb[0].mxu1  ;;  %v318_v54 = vpop.f32.mrb[1].mxu0 }
  0xe9   : > { %v391_v55 = vadd.f32 %v887_v53, %v1011_v50  ;;  %v319_v56 = vadd.f32 %v1011_v50, %v318_v54  ;;  %v382_v57 = vpop.f32.mrb[1].mxu1  ;;  %v872_v58 = vpop.f32.mrb[2].mxu0 }
  0xea   : > { %vm447_vm3 = vcmp.gt.f32.partialorder %v327_v52, 0.0  ;;  %v479_v59 = vmul.f32 0.01, %v327_v52  ;;  %v383_v60 = vadd.f32 %v1011_v50, %v382_v57  ;;  %v330_v61 = vadd.f32 %v872_v58, %v1011_v50  ;;  %v888_v62 = vpop.f32.mrb[2].mxu1  ;;  %v321_v63 = vpop.f32.mrb[3].mxu0 }
  0xeb   : > { %vm463_vm4 = vcmp.gt.f32.partialorder %v391_v55, 0.0  ;;  %v495_v0 = vmul.f32 0.01, %v391_v55  ;;  %vm445_vm5 = vcmp.gt.f32.partialorder %v319_v56, 0.0  ;;  %v477_v1 = vmul.f32 0.01, %v319_v56 }
  0xec   : > { %v511_v2 = vsel %vm447_vm3, %v327_v52, %v479_v59  ;;  %vm461_vm6 = vcmp.gt.f32.partialorder %v383_v60, 0.0  ;;  %v493_v3 = vmul.f32 0.01, %v383_v60  ;;  %vm448_vm7 = vcmp.gt.f32.partialorder %v330_v61, 0.0  ;;  %v385_v4 = vpop.f32.mrb[3].mxu1 }
  0xed   : > { %v820_v5 = vpack.c.bf16 %v511_v2, %v511_v2  ;;  %v527_v6 = vsel %vm463_vm4, %v391_v55, %v495_v0  ;;  %v509_v7 = vsel %vm445_vm5, %v319_v56, %v477_v1  ;;  %v480_v8 = vmul.f32 0.01, %v330_v61 }
  0xee   : > { %v836_v9 = vpack.c.bf16 %v527_v6, %v527_v6  ;;  %v818_v10 = vpack.c.bf16 %v509_v7, %v509_v7  ;;  %v525_v11 = vsel %vm461_vm6, %v383_v60, %v493_v3  ;;  %v394_v12 = vadd.f32 %v888_v62, %v1011_v50 }
  0xef   : > { %672 = vst.msk [vmem:[%s1022_s26 + $0x8] sm:$0xf] %vm669_vm2, %v820_v5  ;;  %v834_v13 = vpack.c.bf16 %v525_v11, %v525_v11  ;;  %v512_v14 = vsel %vm448_vm7, %v330_v61, %v480_v8  ;;  %v322_v15 = vadd.f32 %v1011_v50, %v321_v63  ;;  %v386_v16 = vadd.f32 %v1011_v50, %v385_v4  ;;  %v875_v17 = vpop.f32.mrb[4].mxu0 }
  0xf0   : > { %688 = vst.msk [vmem:[%s1022_s26 + $0x48] sm:$0xf] %vm669_vm2, %v836_v9  ;;  %670 = vst.msk [vmem:[%s1022_s26] sm:$0xf] %vm669_vm2, %v818_v10  ;;  %v821_v18 = vpack.c.bf16 %v512_v14, %v512_v14  ;;  %vm464_vm8 = vcmp.gt.f32.partialorder %v394_v12, 0.0  ;;  %v343_v20 = vadd.f32 %v875_v17, %v1011_v50  ;;  %v891_v21 = vpop.f32.mrb[4].mxu1 }
  0xf1   : > { %v496_v19 = vmul.f32 0.01, %v394_v12  ;;  %v334_v22 = vpop.f32.mrb[5].mxu0  ;;  %686 = vst.msk [vmem:[%s1022_s26 + $0x40] sm:$0xf] %vm669_vm2, %v834_v13  ;;  %vm446_vm9 = vcmp.gt.f32.partialorder %v322_v15, 0.0  ;;  %v407_v27 = vadd.f32 %v891_v21, %v1011_v50 }
  0xf2   : > { %v478_v23 = vmul.f32 0.01, %v322_v15  ;;  %vm462_vm10 = vcmp.gt.f32.partialorder %v386_v16, 0.0  ;;  %v494_v24 = vmul.f32 0.01, %v386_v16  ;;  %vm451_vm11 = vcmp.gt.f32.partialorder %v343_v20, 0.0 }
  0xf3   : > { %673 = vst.msk [vmem:[%s1022_s26 + $0xc] sm:$0xf] %vm669_vm2, %v821_v18  ;;  %v528_v25 = vsel %vm464_vm8, %v394_v12, %v496_v19  ;;  %v483_v26 = vmul.f32 0.01, %v343_v20  ;;  %v398_v28 = vpop.f32.mrb[5].mxu1  ;;  %v876_v29 = vpop.f32.mrb[6].mxu0  ;;  %v335_v33 = vadd.f32 %v1011_v50, %v334_v22 }
  0xf4   : > { %v837_v30 = vpack.c.bf16 %v528_v25, %v528_v25  ;;  %v510_v31 = vsel %vm446_vm9, %v322_v15, %v478_v23  ;;  %v526_v32 = vsel %vm462_vm10, %v386_v16, %v494_v24  ;;  %v892_v34 = vpop.f32.mrb[6].mxu1  ;;  %v337_v35 = vpop.f32.mrb[7].mxu0  ;;  %vm467_vm12 = vcmp.gt.f32.partialorder %v407_v27, 0.0 }
  0xf5   : > { %v819_v36 = vpack.c.bf16 %v510_v31, %v510_v31  ;;  %v835_v37 = vpack.c.bf16 %v526_v32, %v526_v32  ;;  %v515_v38 = vsel %vm451_vm11, %v343_v20, %v483_v26  ;;  %v401_v39 = vpop.f32.mrb[7].mxu1  ;;  %v499_v41 = vmul.f32 0.01, %v407_v27 }
  0xf6   : > { %689 = vst.msk [vmem:[%s1022_s26 + $0x4c] sm:$0xf] %vm669_vm2, %v837_v30  ;;  %v824_v40 = vpack.c.bf16 %v515_v38, %v515_v38  ;;  %vm449_vm13 = vcmp.gt.f32.partialorder %v335_v33, 0.0  ;;  %v481_v42 = vmul.f32 0.01, %v335_v33  ;;  %v399_v43 = vadd.f32 %v1011_v50, %v398_v28 }
  0xf7   : > { %671 = vst.msk [vmem:[%s1022_s26 + $0x4] sm:$0xf] %vm669_vm2, %v819_v36  ;;  %687 = vst.msk [vmem:[%s1022_s26 + $0x44] sm:$0xf] %vm669_vm2, %v835_v37  ;;  %v346_v44 = vadd.f32 %v876_v29, %v1011_v50  ;;  %v410_v45 = vadd.f32 %v892_v34, %v1011_v50  ;;  %v338_v46 = vadd.f32 %v1011_v50, %v337_v35  ;;  %v879_v51 = vpop.f32.mrb[8].mxu0 }
  0xf8   : > { %676 = vst.msk [vmem:[%s1022_s26 + $0x18] sm:$0xf] %vm669_vm2, %v824_v40  ;;  %v531_v47 = vsel %vm467_vm12, %v407_v27, %v499_v41  ;;  %v513_v48 = vsel %vm449_vm13, %v335_v33, %v481_v42  ;;  %v402_v49 = vadd.f32 %v1011_v50, %v401_v39  ;;  %vm465_vm14 = vcmp.gt.f32.partialorder %v399_v43, 0.0  ;;  %v895_v55 = vpop.f32.mrb[8].mxu1  ;;  %v350_v56 = vpop.f32.mrb[9].mxu0 }
  0xf9   : > { %v840_v52 = vpack.c.bf16 %v531_v47, %v531_v47  ;;  %v822_v53 = vpack.c.bf16 %v513_v48, %v513_v48  ;;  %v497_v54 = vmul.f32 0.01, %v399_v43  ;;  %vm452_vm15 = vcmp.gt.f32.partialorder %v346_v44, 0.0  ;;  %v414_v61 = vpop.f32.mrb[9].mxu1  ;;  %v880_v62 = vpop.f32.mrb[10].mxu0 }
  0xfa   : > { %v484_v57 = vmul.f32 0.01, %v346_v44  ;;  %vm468_vm0 = vcmp.gt.f32.partialorder %v410_v45, 0.0  ;;  %v500_v58 = vmul.f32 0.01, %v410_v45  ;;  %vm450_vm1 = vcmp.gt.f32.partialorder %v338_v46, 0.0 }
  0xfb   : > { %692 = vst.msk [vmem:[%s1022_s26 + $0x58] sm:$0xf] %vm669_vm2, %v840_v52  ;;  %674 = vst.msk [vmem:[%s1022_s26 + $0x10] sm:$0xf] %vm669_vm2, %v822_v53  ;;  %v529_v59 = vsel %vm465_vm14, %v399_v43, %v497_v54  ;;  %v482_v60 = vmul.f32 0.01, %v338_v46  ;;  %v359_v8 = vadd.f32 %v879_v51, %v1011_v50  ;;  %v423_v12 = vadd.f32 %v895_v55, %v1011_v50 }
  0xfc   : > { %vm466_vm3 = vcmp.gt.f32.partialorder %v402_v49, 0.0  ;;  %v838_v63 = vpack.c.bf16 %v529_v59, %v529_v59  ;;  %v516_v0 = vsel %vm452_vm15, %v346_v44, %v484_v57  ;;  %v532_v1 = vsel %vm468_vm0, %v410_v45, %v500_v58  ;;  %v896_v3 = vpop.f32.mrb[10].mxu1  ;;  %v353_v4 = vpop.f32.mrb[11].mxu0 }
  0xfd   : > { %v498_v2 = vmul.f32 0.01, %v402_v49  ;;  %v825_v5 = vpack.c.bf16 %v516_v0, %v516_v0  ;;  %v841_v6 = vpack.c.bf16 %v532_v1, %v532_v1  ;;  %v514_v7 = vsel %vm450_vm1, %v338_v46, %v482_v60  ;;  %v417_v9 = vpop.f32.mrb[11].mxu1 }
  0xfe   : > { %690 = vst.msk [vmem:[%s1022_s26 + $0x50] sm:$0xf] %vm669_vm2, %v838_v63  ;;  %v823_v10 = vpack.c.bf16 %v514_v7, %v514_v7  ;;  %v351_v13 = vadd.f32 %v1011_v50, %v350_v56  ;;  %vm455_vm4 = vcmp.gt.f32.partialorder %v359_v8, 0.0  ;;  %v487_v15 = vmul.f32 0.01, %v359_v8 }
  0xff   : > { %v530_v11 = vsel %vm466_vm3, %v402_v49, %v498_v2  ;;  %677 = vst.msk [vmem:[%s1022_s26 + $0x1c] sm:$0xf] %vm669_vm2, %v825_v5  ;;  %693 = vst.msk [vmem:[%s1022_s26 + $0x5c] sm:$0xf] %vm669_vm2, %v841_v6  ;;  %v415_v16 = vadd.f32 %v1011_v50, %v414_v61  ;;  %vm471_vm5 = vcmp.gt.f32.partialorder %v423_v12, 0.0  ;;  %v362_v21 = vadd.f32 %v880_v62, %v1011_v50  ;;  %v883_v22 = vpop.f32.mrb[12].mxu0 }
 0x100   : > { %v839_v14 = vpack.c.bf16 %v530_v11, %v530_v11  ;;  %675 = vst.msk [vmem:[%s1022_s26 + $0x14] sm:$0xf] %vm669_vm2, %v823_v10  ;;  %v503_v17 = vmul.f32 0.01, %v423_v12  ;;  %vm453_vm6 = vcmp.gt.f32.partialorder %v351_v13, 0.0  ;;  %v519_v19 = vsel %vm455_vm4, %v359_v8, %v487_v15  ;;  %v899_v23 = vpop.f32.mrb[12].mxu1 }
 0x101   : > { %v485_v18 = vmul.f32 0.01, %v351_v13  ;;  %vm469_vm7 = vcmp.gt.f32.partialorder %v415_v16, 0.0  ;;  %v501_v20 = vmul.f32 0.01, %v415_v16  ;;  %v828_v24 = vpack.c.bf16 %v519_v19, %v519_v19  ;;  %v366_v28 = vpop.f32.mrb[13].mxu0 }
 0x102   : > { %691 = vst.msk [vmem:[%s1022_s26 + $0x54] sm:$0xf] %vm669_vm2, %v839_v14  ;;  %v535_v25 = vsel %vm471_vm5, %v423_v12, %v503_v17  ;;  %v426_v27 = vadd.f32 %v896_v3, %v1011_v50  ;;  %v430_v29 = vpop.f32.mrb[13].mxu1  ;;  %vm456_vm8 = vcmp.gt.f32.partialorder %v362_v21, 0.0  ;;  %v884_v33 = vpop.f32.mrb[14].mxu0  ;;  %v354_v39 = vadd.f32 %v1011_v50, %v353_v4 }
 0x103   : > { %v517_v26 = vsel %vm453_vm6, %v351_v13, %v485_v18  ;;  %v844_v30 = vpack.c.bf16 %v535_v25, %v535_v25  ;;  %v533_v32 = vsel %vm469_vm7, %v415_v16, %v501_v20  ;;  %v900_v34 = vpop.f32.mrb[14].mxu1  ;;  %680 = vst.msk [vmem:[%s1022_s26 + $0x28] sm:$0xf] %vm669_vm2, %v828_v24  ;;  %v488_v36 = vmul.f32 0.01, %v362_v21  ;;  %v369_v38 = vpop.f32.mrb[15].mxu0 }
 0x104   : > { %v826_v31 = vpack.c.bf16 %v517_v26, %v517_v26  ;;  %v842_v35 = vpack.c.bf16 %v533_v32, %v533_v32  ;;  %vm472_vm9 = vcmp.gt.f32.partialorder %v426_v27, 0.0  ;;  %v504_v37 = vmul.f32 0.01, %v426_v27  ;;  %v433_v43 = vpop.f32.mrb[15].mxu1 }
 0x105   : > { %696 = vst.msk [vmem:[%s1022_s26 + $0x68] sm:$0xf] %vm669_vm2, %v844_v30  ;;  %v418_v40 = vadd.f32 %v1011_v50, %v417_v9  ;;  %v375_v41 = vadd.f32 %v883_v22, %v1011_v50  ;;  %v439_v42 = vadd.f32 %v899_v23, %v1011_v50  ;;  %v520_v44 = vsel %vm456_vm8, %v362_v21, %v488_v36 }
 0x106   : > { %678 = vst.msk [vmem:[%s1022_s26 + $0x20] sm:$0xf] %vm669_vm2, %v826_v31  ;;  %694 = vst.msk [vmem:[%s1022_s26 + $0x60] sm:$0xf] %vm669_vm2, %v842_v35  ;;  %v536_v45 = vsel %vm472_vm9, %v426_v27, %v504_v37  ;;  %v367_v46 = vadd.f32 %v1011_v50, %v366_v28  ;;  %v431_v47 = vadd.f32 %v1011_v50, %v430_v29  ;;  %vm454_vm10 = vcmp.gt.f32.partialorder %v354_v39, 0.0 }
 0x107   : > { %v829_v48 = vpack.c.bf16 %v520_v44, %v520_v44  ;;  %v845_v49 = vpack.c.bf16 %v536_v45, %v536_v45  ;;  %v486_v51 = vmul.f32 0.01, %v354_v39  ;;  %vm470_vm11 = vcmp.gt.f32.partialorder %v418_v40, 0.0 }
 0x108   : > { %v502_v52 = vmul.f32 0.01, %v418_v40  ;;  %vm459_vm12 = vcmp.gt.f32.partialorder %v375_v41, 0.0  ;;  %v491_v53 = vmul.f32 0.01, %v375_v41  ;;  %vm475_vm13 = vcmp.gt.f32.partialorder %v439_v42, 0.0 }
 0x109   : > { %681 = vst.msk [vmem:[%s1022_s26 + $0x2c] sm:$0xf] %vm669_vm2, %v829_v48  ;;  %697 = vst.msk [vmem:[%s1022_s26 + $0x6c] sm:$0xf] %vm669_vm2, %v845_v49  ;;  %v518_v54 = vsel %vm454_vm10, %v354_v39, %v486_v51  ;;  %v507_v55 = vmul.f32 0.01, %v439_v42  ;;  %v378_v2 = vadd.f32 %v884_v33, %v1011_v50  ;;  %v442_v4 = vadd.f32 %v900_v34, %v1011_v50 }
 0x10a   : > { %vm457_vm14 = vcmp.gt.f32.partialorder %v367_v46, 0.0  ;;  %v827_v56 = vpack.c.bf16 %v518_v54, %v518_v54  ;;  %v534_v57 = vsel %vm470_vm11, %v418_v40, %v502_v52  ;;  %v523_v58 = vsel %vm459_vm12, %v375_v41, %v491_v53 }
 0x10b   : > { %v489_v59 = vmul.f32 0.01, %v367_v46  ;;  %v843_v60 = vpack.c.bf16 %v534_v57, %v534_v57  ;;  %v832_v61 = vpack.c.bf16 %v523_v58, %v523_v58  ;;  %v539_v62 = vsel %vm475_vm13, %v439_v42, %v507_v55 }
 0x10c   : > { %vm473_vm15 = vcmp.gt.f32.partialorder %v431_v47, 0.0  ;;  %679 = vst.msk [vmem:[%s1022_s26 + $0x24] sm:$0xf] %vm669_vm2, %v827_v56  ;;  %v848_v63 = vpack.c.bf16 %v539_v62, %v539_v62  ;;  %v505_v1 = vmul.f32 0.01, %v431_v47  ;;  %v370_v5 = vadd.f32 %v1011_v50, %v369_v38 }
 0x10d   : > { %v521_v0 = vsel %vm457_vm14, %v367_v46, %v489_v59  ;;  %695 = vst.msk [vmem:[%s1022_s26 + $0x64] sm:$0xf] %vm669_vm2, %v843_v60  ;;  %684 = vst.msk [vmem:[%s1022_s26 + $0x38] sm:$0xf] %vm669_vm2, %v832_v61  ;;  %v434_v6 = vadd.f32 %v1011_v50, %v433_v43  ;;  %vm460_vm0 = vcmp.gt.f32.partialorder %v378_v2, 0.0  ;;  %vm476_vm1 = vcmp.gt.f32.partialorder %v442_v4, 0.0 }
 0x10e   : > { %v830_v3 = vpack.c.bf16 %v521_v0, %v521_v0  ;;  %700 = vst.msk [vmem:[%s1022_s26 + $0x78] sm:$0xf] %vm669_vm2, %v848_v63  ;;  %v537_v7 = vsel %vm473_vm15, %v431_v47, %v505_v1  ;;  %v492_v8 = vmul.f32 0.01, %v378_v2  ;;  %v508_v10 = vmul.f32 0.01, %v442_v4 }
 0x10f   : > { %v846_v9 = vpack.c.bf16 %v537_v7, %v537_v7  ;;  %vm458_vm3 = vcmp.gt.f32.partialorder %v370_v5, 0.0  ;;  %v490_v12 = vmul.f32 0.01, %v370_v5  ;;  %vm474_vm4 = vcmp.gt.f32.partialorder %v434_v6, 0.0 }
 0x110   : > { %682 = vst.msk [vmem:[%s1022_s26 + $0x30] sm:$0xf] %vm669_vm2, %v830_v3  ;;  %v524_v11 = vsel %vm460_vm0, %v378_v2, %v492_v8  ;;  %v506_v13 = vmul.f32 0.01, %v434_v6  ;;  %v540_v14 = vsel %vm476_vm1, %v442_v4, %v508_v10 }
 0x111   : > { %698 = vst.msk [vmem:[%s1022_s26 + $0x70] sm:$0xf] %vm669_vm2, %v846_v9  ;;  %v833_v50 = vpack.c.bf16 %v524_v11, %v524_v11  ;;  %v849_v15 = vpack.c.bf16 %v540_v14, %v540_v14  ;;  %v522_v16 = vsel %vm458_vm3, %v370_v5, %v490_v12 }
 0x112   : > { %v538_v17 = vsel %vm474_vm4, %v434_v6, %v506_v13  ;;  %v831_v18 = vpack.c.bf16 %v522_v16, %v522_v16 }
 0x113   : > { %685 = vst.msk [vmem:[%s1022_s26 + $0x3c] sm:$0xf] %vm669_vm2, %v833_v50  ;;  %v847_v19 = vpack.c.bf16 %v538_v17, %v538_v17  ;;  %701 = vst.msk [vmem:[%s1022_s26 + $0x7c] sm:$0xf] %vm669_vm2, %v849_v15 }
 0x114   : > { %683 = vst.msk [vmem:[%s1022_s26 + $0x34] sm:$0xf] %vm669_vm2, %v831_v18 }
 0x115   : > { %699 = vst.msk [vmem:[%s1022_s26 + $0x74] sm:$0xf] %vm669_vm2, %v847_v19 }
 0x116 PF: > { %s13_s12 = sadd.s32 1, %s919_s12  }
 0x117   : > { %p10_p4 = scmp.ge.s32.totalorder %s13_s12, 4  }
 0x119   :  { %12 = sbr.rel (!%p10_p4) target bundleno = 1 (0x1), region = 62 }

// kernel: yolov3_layer_forward.8
= control target key start
LH: loop header
LB: loop body
LE: loop exit
PB: predicated region body
PF: predicated region fallthrough
CT: control target
= control target key end

     0   :  { %s1055_s12 = smov 0   ;;  %s1224_s0 = inlined_call_operand.vmem [shape: bf16[512,32], index: 0, kind: input, shape index: {}]   ;;  %s1225_s1 = inlined_call_operand.vmem [shape: bf16[32,16], index: 1, kind: input, shape index: {}]   ;;  %s1226_s2 = inlined_call_operand.vmem [shape: f32[1,16], index: 2, kind: input, shape index: {}]   ;;  %s1227_s3 = inlined_call_operand.vmem [shape: bf16[512,16], index: 3, kind: output, shape index: {}]  }
   0x1 LB: > { %s833_s13 = sadd.s32 4294967295, %s1033_s12   ;;  %p837_p0 = scmp.ge.s32.totalorder %s1033_s12, 1  ;;  %s1033_s12 = sphi %s1055_s12, %s13_s12  }
   0x2   : > { %p138_p1 = scmp.lt.s32.totalorder %s1033_s12, 3 }
   0x4   : > { %p139_p2 = pnand %p837_p0, %p138_p1 }
   0x5   : > { %v1009_v0 = vld [vmem:[%s1225_s1] sm:$0xff] (!%p139_p2)   ;;  %s838_s16 = sshll.u32 (!%p139_p2), %s833_s13, 5  ;;  %v1010_v1 = vld [vmem:[%s1225_s1 + $0x8] sm:$0xff] (!%p139_p2)   ;;  %vm310_vm0 = vcmask (!%p139_p2), 261120   ;;  %vm744_vm1 = vcmask (!%p139_p2), 125952  }
   0x6   : > { %142 = sbr.rel (%p139_p2) target bundleno = 276 (0x114), region = 32  ;;  %p163_p3 = scmp.lt.s32.totalorder (!%p139_p2), %s838_s16, 63  ;;  %961 = vmatprep.subr.bf16.mxu0 (!%p139_p2), %v1009_v0  ;;  %997 = vmatprep.subr.bf16.mxu1 (!%p139_p2), %v1009_v0  ;;  %v1114_v18 = vld [vmem:[%s1226_s2] ss:$0 sm:$0xff] (!%p139_p2) }
   0x7   : > { %962 = vmatpush3.bf16.msra.mxu0 (!%p139_p2), %v1009_v0  ;;  %999 = vmatpush3.bf16.msra.mxu1 (!%p139_p2), %v1009_v0 }
   0x8   : > { %963 = vmatprep.subr.bf16.mxu0 (!%p139_p2), %v1010_v1  ;;  %998 = vmatprep.subr.bf16.mxu1 (!%p139_p2), %v1010_v1 }
   0xb   : > { %964 = vmatpush3.bf16.msra.mxu0 (!%p139_p2), %v1010_v1  ;;  %1000 = vmatpush3.bf16.msra.mxu1 (!%p139_p2), %v1010_v1 }
   0xd   : > { %s1229_s16 = smov (!%p163_p3, %s838_s16), 63 }
   0xe   : > { %s839_s19 = sshll.u32 %s1229_s16, 2 }
   0xf   : > { %s1077_s22 = scalar_lea.vmem %s1224_s0, %s839_s19  ;;  %s1126_s27 = scalar_lea.vmem %s1227_s3, %s839_s19 }
  0x10   : > { %v1011_v2 = vld [vmem:[%s1077_s22] sm:$0xff]   ;;  %v1013_v4 = vld [vmem:[%s1077_s22 + $0x8] sm:$0xff]   ;;  %v1015_v6 = vld [vmem:[%s1077_s22 + $0x10] sm:$0xff]  }
  0x11   : > { %v1012_v3 = vld [vmem:[%s1077_s22 + $0x40] sm:$0xff]   ;;  %965 = vmatprep.mubr.msk.bf16.mxu0 %vm310_vm0, %v1011_v2  ;;  %v1014_v5 = vld [vmem:[%s1077_s22 + $0x48] sm:$0xff]   ;;  %v1016_v7 = vld [vmem:[%s1077_s22 + $0x50] sm:$0xff]  }
  0x12   : > { %981 = vmatprep.mubr.msk.bf16.mxu1 %vm310_vm0, %v1012_v3  ;;  %966 = vmatmul.mubr.msk.bf16.vlgmr.msra.gmra.mrb[0].mxu0 %vm310_vm0, %v1013_v4  ;;  %v1017_v8 = vld [vmem:[%s1077_s22 + $0x18] sm:$0xff]   ;;  %v1019_v10 = vld [vmem:[%s1077_s22 + $0x20] sm:$0xff]   ;;  %v1021_v12 = vld [vmem:[%s1077_s22 + $0x28] sm:$0xff]  }
  0x13   : > { %982 = vmatmul.mubr.msk.bf16.vlgmr.msra.gmra.mrb[0].mxu1 %vm310_vm0, %v1014_v5  ;;  %969 = vmatprep.mubr.msk.bf16.mxu0 %vm310_vm0, %v1015_v6  ;;  %v1018_v9 = vld [vmem:[%s1077_s22 + $0x58] sm:$0xff]   ;;  %v1020_v11 = vld [vmem:[%s1077_s22 + $0x60] sm:$0xff]   ;;  %v1022_v13 = vld [vmem:[%s1077_s22 + $0x68] sm:$0xff]  }
  0x14   : > { %985 = vmatprep.mubr.msk.bf16.mxu1 %vm310_vm0, %v1016_v7  ;;  %v1023_v14 = vld [vmem:[%s1077_s22 + $0x30] sm:$0xff]   ;;  %v1025_v16 = vld [vmem:[%s1077_s22 + $0x38] sm:$0xff]  }
  0x15   : > { %v1024_v15 = vld [vmem:[%s1077_s22 + $0x70] sm:$0xff]   ;;  %v1026_v17 = vld [vmem:[%s1077_s22 + $0x78] sm:$0xff]  }
  0x1a   : > { %970 = vmatmul.mubr.msk.bf16.gmra.mrb[4].mxu0 %vm310_vm0, %v1017_v8 }
  0x1b   : > { %986 = vmatmul.mubr.msk.bf16.gmra.mrb[4].mxu1 %vm310_vm0, %v1018_v9  ;;  %973 = vmatprep.mubr.msk.bf16.mxu0 %vm310_vm0, %v1019_v10 }
  0x1c   : > { %989 = vmatprep.mubr.msk.bf16.mxu1 %vm310_vm0, %v1020_v11 }
  0x22   : > { %974 = vmatmul.mubr.msk.bf16.gmra.mrb[8].mxu0 %vm310_vm0, %v1021_v12 }
  0x23   : > { %990 = vmatmul.mubr.msk.bf16.gmra.mrb[8].mxu1 %vm310_vm0, %v1022_v13  ;;  %977 = vmatprep.mubr.msk.bf16.mxu0 %vm310_vm0, %v1023_v14 }
  0x24   : > { %993 = vmatprep.mubr.msk.bf16.mxu1 %vm310_vm0, %v1024_v15 }
  0x2a   : > { %978 = vmatmul.mubr.msk.bf16.gmra.mrb[12].mxu0 %vm310_vm0, %v1025_v16 }
  0x2b   : > { %994 = vmatmul.mubr.msk.bf16.gmra.mrb[12].mxu1 %vm310_vm0, %v1026_v17 }
  0xe5   : > { %v967_v19 = vpop.f32.mrb[0].mxu0 }
  0xe6   : > { %v402_v20 = vadd.f32 %v967_v19, %v1114_v18  ;;  %v983_v21 = vpop.f32.mrb[0].mxu1  ;;  %v393_v22 = vpop.f32.mrb[1].mxu0 }
  0xe7   : > { %v466_v23 = vadd.f32 %v983_v21, %v1114_v18  ;;  %v394_v24 = vadd.f32 %v1114_v18, %v393_v22  ;;  %v457_v25 = vpop.f32.mrb[1].mxu1  ;;  %v968_v26 = vpop.f32.mrb[2].mxu0 }
  0xe8   : > { %vm522_vm2 = vcmp.gt.f32.partialorder %v402_v20, 0.0  ;;  %v554_v27 = vmul.f32 0.01, %v402_v20  ;;  %v458_v28 = vadd.f32 %v1114_v18, %v457_v25  ;;  %v405_v29 = vadd.f32 %v968_v26, %v1114_v18  ;;  %v984_v30 = vpop.f32.mrb[2].mxu1  ;;  %v396_v31 = vpop.f32.mrb[3].mxu0 }
  0xe9   : > { %vm538_vm3 = vcmp.gt.f32.partialorder %v466_v23, 0.0  ;;  %v570_v32 = vmul.f32 0.01, %v466_v23  ;;  %vm520_vm4 = vcmp.gt.f32.partialorder %v394_v24, 0.0  ;;  %v552_v33 = vmul.f32 0.01, %v394_v24 }
  0xea   : > { %v586_v34 = vsel %vm522_vm2, %v402_v20, %v554_v27  ;;  %vm536_vm5 = vcmp.gt.f32.partialorder %v458_v28, 0.0  ;;  %v568_v35 = vmul.f32 0.01, %v458_v28  ;;  %vm523_vm6 = vcmp.gt.f32.partialorder %v405_v29, 0.0  ;;  %v460_v36 = vpop.f32.mrb[3].mxu1 }
  0xeb   : > { %v913_v37 = vpack.c.bf16 %v586_v34, %v586_v34  ;;  %v602_v38 = vsel %vm538_vm3, %v466_v23, %v570_v32  ;;  %v584_v39 = vsel %vm520_vm4, %v394_v24, %v552_v33  ;;  %v555_v40 = vmul.f32 0.01, %v405_v29 }
  0xec   : > { %v929_v41 = vpack.c.bf16 %v602_v38, %v602_v38  ;;  %v911_v42 = vpack.c.bf16 %v584_v39, %v584_v39  ;;  %v600_v43 = vsel %vm536_vm5, %v458_v28, %v568_v35  ;;  %v469_v44 = vadd.f32 %v984_v30, %v1114_v18 }
  0xed   : > { %747 = vst.msk [vmem:[%s1126_s27 + $0x8] sm:$0xf] %vm744_vm1, %v913_v37  ;;  %v927_v45 = vpack.c.bf16 %v600_v43, %v600_v43  ;;  %v587_v46 = vsel %vm523_vm6, %v405_v29, %v555_v40  ;;  %v397_v47 = vadd.f32 %v1114_v18, %v396_v31  ;;  %v461_v48 = vadd.f32 %v1114_v18, %v460_v36  ;;  %v971_v49 = vpop.f32.mrb[4].mxu0 }
  0xee   : > { %763 = vst.msk [vmem:[%s1126_s27 + $0x48] sm:$0xf] %vm744_vm1, %v929_v41  ;;  %745 = vst.msk [vmem:[%s1126_s27] sm:$0xf] %vm744_vm1, %v911_v42  ;;  %v914_v50 = vpack.c.bf16 %v587_v46, %v587_v46  ;;  %vm539_vm7 = vcmp.gt.f32.partialorder %v469_v44, 0.0  ;;  %v418_v52 = vadd.f32 %v971_v49, %v1114_v18  ;;  %v987_v53 = vpop.f32.mrb[4].mxu1 }
  0xef   : > { %v571_v51 = vmul.f32 0.01, %v469_v44  ;;  %v409_v54 = vpop.f32.mrb[5].mxu0  ;;  %761 = vst.msk [vmem:[%s1126_s27 + $0x40] sm:$0xf] %vm744_vm1, %v927_v45  ;;  %vm521_vm8 = vcmp.gt.f32.partialorder %v397_v47, 0.0  ;;  %v482_v59 = vadd.f32 %v987_v53, %v1114_v18 }
  0xf0   : > { %v553_v55 = vmul.f32 0.01, %v397_v47  ;;  %vm537_vm9 = vcmp.gt.f32.partialorder %v461_v48, 0.0  ;;  %v569_v56 = vmul.f32 0.01, %v461_v48  ;;  %vm526_vm10 = vcmp.gt.f32.partialorder %v418_v52, 0.0 }
  0xf1   : > { %748 = vst.msk [vmem:[%s1126_s27 + $0xc] sm:$0xf] %vm744_vm1, %v914_v50  ;;  %v603_v57 = vsel %vm539_vm7, %v469_v44, %v571_v51  ;;  %v558_v58 = vmul.f32 0.01, %v418_v52  ;;  %v473_v60 = vpop.f32.mrb[5].mxu1  ;;  %v972_v61 = vpop.f32.mrb[6].mxu0  ;;  %v410_v1 = vadd.f32 %v1114_v18, %v409_v54 }
  0xf2   : > { %v930_v62 = vpack.c.bf16 %v603_v57, %v603_v57  ;;  %v585_v63 = vsel %vm521_vm8, %v397_v47, %v553_v55  ;;  %v601_v0 = vsel %vm537_vm9, %v461_v48, %v569_v56  ;;  %v988_v2 = vpop.f32.mrb[6].mxu1  ;;  %v412_v3 = vpop.f32.mrb[7].mxu0  ;;  %vm542_vm11 = vcmp.gt.f32.partialorder %v482_v59, 0.0 }
  0xf3   : > { %v912_v4 = vpack.c.bf16 %v585_v63, %v585_v63  ;;  %v928_v5 = vpack.c.bf16 %v601_v0, %v601_v0  ;;  %v590_v6 = vsel %vm526_vm10, %v418_v52, %v558_v58  ;;  %v476_v7 = vpop.f32.mrb[7].mxu1  ;;  %v574_v9 = vmul.f32 0.01, %v482_v59 }
  0xf4   : > { %764 = vst.msk [vmem:[%s1126_s27 + $0x4c] sm:$0xf] %vm744_vm1, %v930_v62  ;;  %v917_v8 = vpack.c.bf16 %v590_v6, %v590_v6  ;;  %vm524_vm12 = vcmp.gt.f32.partialorder %v410_v1, 0.0  ;;  %v556_v10 = vmul.f32 0.01, %v410_v1  ;;  %v474_v11 = vadd.f32 %v1114_v18, %v473_v60 }
  0xf5   : > { %746 = vst.msk [vmem:[%s1126_s27 + $0x4] sm:$0xf] %vm744_vm1, %v912_v4  ;;  %762 = vst.msk [vmem:[%s1126_s27 + $0x44] sm:$0xf] %vm744_vm1, %v928_v5  ;;  %v421_v12 = vadd.f32 %v972_v61, %v1114_v18  ;;  %v485_v13 = vadd.f32 %v988_v2, %v1114_v18  ;;  %v413_v14 = vadd.f32 %v1114_v18, %v412_v3  ;;  %v975_v19 = vpop.f32.mrb[8].mxu0 }
  0xf6   : > { %751 = vst.msk [vmem:[%s1126_s27 + $0x18] sm:$0xf] %vm744_vm1, %v917_v8  ;;  %v606_v15 = vsel %vm542_vm11, %v482_v59, %v574_v9  ;;  %v588_v16 = vsel %vm524_vm12, %v410_v1, %v556_v10  ;;  %v477_v17 = vadd.f32 %v1114_v18, %v476_v7  ;;  %vm540_vm13 = vcmp.gt.f32.partialorder %v474_v11, 0.0  ;;  %v991_v23 = vpop.f32.mrb[8].mxu1  ;;  %v425_v24 = vpop.f32.mrb[9].mxu0 }
  0xf7   : > { %v933_v20 = vpack.c.bf16 %v606_v15, %v606_v15  ;;  %v915_v21 = vpack.c.bf16 %v588_v16, %v588_v16  ;;  %v572_v22 = vmul.f32 0.01, %v474_v11  ;;  %vm527_vm14 = vcmp.gt.f32.partialorder %v421_v12, 0.0  ;;  %v489_v29 = vpop.f32.mrb[9].mxu1  ;;  %v976_v30 = vpop.f32.mrb[10].mxu0 }
  0xf8   : > { %v559_v25 = vmul.f32 0.01, %v421_v12  ;;  %vm543_vm15 = vcmp.gt.f32.partialorder %v485_v13, 0.0  ;;  %v575_v26 = vmul.f32 0.01, %v485_v13  ;;  %vm525_vm0 = vcmp.gt.f32.partialorder %v413_v14, 0.0 }
  0xf9   : > { %767 = vst.msk [vmem:[%s1126_s27 + $0x58] sm:$0xf] %vm744_vm1, %v933_v20  ;;  %749 = vst.msk [vmem:[%s1126_s27 + $0x10] sm:$0xf] %vm744_vm1, %v915_v21  ;;  %v604_v27 = vsel %vm540_vm13, %v474_v11, %v572_v22  ;;  %v557_v28 = vmul.f32 0.01, %v413_v14  ;;  %v434_v40 = vadd.f32 %v975_v19, %v1114_v18  ;;  %v498_v44 = vadd.f32 %v991_v23, %v1114_v18 }
  0xfa   : > { %vm541_vm2 = vcmp.gt.f32.partialorder %v477_v17, 0.0  ;;  %v931_v31 = vpack.c.bf16 %v604_v27, %v604_v27  ;;  %v591_v32 = vsel %vm527_vm14, %v421_v12, %v559_v25  ;;  %v607_v33 = vsel %vm543_vm15, %v485_v13, %v575_v26  ;;  %v992_v35 = vpop.f32.mrb[10].mxu1  ;;  %v428_v36 = vpop.f32.mrb[11].mxu0 }
  0xfb   : > { %v573_v34 = vmul.f32 0.01, %v477_v17  ;;  %v918_v37 = vpack.c.bf16 %v591_v32, %v591_v32  ;;  %v934_v38 = vpack.c.bf16 %v607_v33, %v607_v33  ;;  %v589_v39 = vsel %vm525_vm0, %v413_v14, %v557_v28  ;;  %v492_v41 = vpop.f32.mrb[11].mxu1 }
  0xfc   : > { %765 = vst.msk [vmem:[%s1126_s27 + $0x50] sm:$0xf] %vm744_vm1, %v931_v31  ;;  %v916_v42 = vpack.c.bf16 %v589_v39, %v589_v39  ;;  %v426_v45 = vadd.f32 %v1114_v18, %v425_v24  ;;  %vm530_vm3 = vcmp.gt.f32.partialorder %v434_v40, 0.0  ;;  %v562_v47 = vmul.f32 0.01, %v434_v40 }
  0xfd   : > { %v605_v43 = vsel %vm541_vm2, %v477_v17, %v573_v34  ;;  %752 = vst.msk [vmem:[%s1126_s27 + $0x1c] sm:$0xf] %vm744_vm1, %v918_v37  ;;  %768 = vst.msk [vmem:[%s1126_s27 + $0x5c] sm:$0xf] %vm744_vm1, %v934_v38  ;;  %v490_v48 = vadd.f32 %v1114_v18, %v489_v29  ;;  %vm546_vm4 = vcmp.gt.f32.partialorder %v498_v44, 0.0  ;;  %v437_v53 = vadd.f32 %v976_v30, %v1114_v18  ;;  %v979_v54 = vpop.f32.mrb[12].mxu0 }
  0xfe   : > { %v932_v46 = vpack.c.bf16 %v605_v43, %v605_v43  ;;  %750 = vst.msk [vmem:[%s1126_s27 + $0x14] sm:$0xf] %vm744_vm1, %v916_v42  ;;  %v578_v49 = vmul.f32 0.01, %v498_v44  ;;  %vm528_vm5 = vcmp.gt.f32.partialorder %v426_v45, 0.0  ;;  %v594_v51 = vsel %vm530_vm3, %v434_v40, %v562_v47  ;;  %v995_v55 = vpop.f32.mrb[12].mxu1 }
  0xff   : > { %v560_v50 = vmul.f32 0.01, %v426_v45  ;;  %vm544_vm6 = vcmp.gt.f32.partialorder %v490_v48, 0.0  ;;  %v576_v52 = vmul.f32 0.01, %v490_v48  ;;  %v921_v56 = vpack.c.bf16 %v594_v51, %v594_v51  ;;  %v441_v60 = vpop.f32.mrb[13].mxu0 }
 0x100   : > { %766 = vst.msk [vmem:[%s1126_s27 + $0x54] sm:$0xf] %vm744_vm1, %v932_v46  ;;  %v610_v57 = vsel %vm546_vm4, %v498_v44, %v578_v49  ;;  %v501_v59 = vadd.f32 %v992_v35, %v1114_v18  ;;  %v505_v61 = vpop.f32.mrb[13].mxu1  ;;  %vm531_vm7 = vcmp.gt.f32.partialorder %v437_v53, 0.0  ;;  %v980_v1 = vpop.f32.mrb[14].mxu0  ;;  %v429_v7 = vadd.f32 %v1114_v18, %v428_v36 }
 0x101   : > { %v592_v58 = vsel %vm528_vm5, %v426_v45, %v560_v50  ;;  %v937_v62 = vpack.c.bf16 %v610_v57, %v610_v57  ;;  %v608_v0 = vsel %vm544_vm6, %v490_v48, %v576_v52  ;;  %v996_v2 = vpop.f32.mrb[14].mxu1  ;;  %755 = vst.msk [vmem:[%s1126_s27 + $0x28] sm:$0xf] %vm744_vm1, %v921_v56  ;;  %v563_v4 = vmul.f32 0.01, %v437_v53  ;;  %v444_v6 = vpop.f32.mrb[15].mxu0 }
 0x102   : > { %v919_v63 = vpack.c.bf16 %v592_v58, %v592_v58  ;;  %v935_v3 = vpack.c.bf16 %v608_v0, %v608_v0  ;;  %vm547_vm8 = vcmp.gt.f32.partialorder %v501_v59, 0.0  ;;  %v579_v5 = vmul.f32 0.01, %v501_v59  ;;  %v508_v11 = vpop.f32.mrb[15].mxu1 }
 0x103   : > { %771 = vst.msk [vmem:[%s1126_s27 + $0x68] sm:$0xf] %vm744_vm1, %v937_v62  ;;  %v493_v8 = vadd.f32 %v1114_v18, %v492_v41  ;;  %v450_v9 = vadd.f32 %v979_v54, %v1114_v18  ;;  %v514_v10 = vadd.f32 %v995_v55, %v1114_v18  ;;  %v595_v12 = vsel %vm531_vm7, %v437_v53, %v563_v4 }
 0x104   : > { %753 = vst.msk [vmem:[%s1126_s27 + $0x20] sm:$0xf] %vm744_vm1, %v919_v63  ;;  %769 = vst.msk [vmem:[%s1126_s27 + $0x60] sm:$0xf] %vm744_vm1, %v935_v3  ;;  %v611_v13 = vsel %vm547_vm8, %v501_v59, %v579_v5  ;;  %v442_v14 = vadd.f32 %v1114_v18, %v441_v60  ;;  %v506_v15 = vadd.f32 %v1114_v18, %v505_v61  ;;  %vm529_vm9 = vcmp.gt.f32.partialorder %v429_v7, 0.0 }
 0x105   : > { %v922_v16 = vpack.c.bf16 %v595_v12, %v595_v12  ;;  %v938_v17 = vpack.c.bf16 %v611_v13, %v611_v13  ;;  %v561_v19 = vmul.f32 0.01, %v429_v7  ;;  %vm545_vm10 = vcmp.gt.f32.partialorder %v493_v8, 0.0 }
 0x106   : > { %v577_v20 = vmul.f32 0.01, %v493_v8  ;;  %vm534_vm11 = vcmp.gt.f32.partialorder %v450_v9, 0.0  ;;  %v566_v21 = vmul.f32 0.01, %v450_v9  ;;  %vm550_vm12 = vcmp.gt.f32.partialorder %v514_v10, 0.0 }
 0x107   : > { %756 = vst.msk [vmem:[%s1126_s27 + $0x2c] sm:$0xf] %vm744_vm1, %v922_v16  ;;  %772 = vst.msk [vmem:[%s1126_s27 + $0x6c] sm:$0xf] %vm744_vm1, %v938_v17  ;;  %v593_v22 = vsel %vm529_vm9, %v429_v7, %v561_v19  ;;  %v582_v23 = vmul.f32 0.01, %v514_v10  ;;  %v453_v34 = vadd.f32 %v980_v1, %v1114_v18  ;;  %v517_v36 = vadd.f32 %v996_v2, %v1114_v18 }
 0x108   : > { %vm532_vm13 = vcmp.gt.f32.partialorder %v442_v14, 0.0  ;;  %v920_v24 = vpack.c.bf16 %v593_v22, %v593_v22  ;;  %v609_v25 = vsel %vm545_vm10, %v493_v8, %v577_v20  ;;  %v598_v26 = vsel %vm534_vm11, %v450_v9, %v566_v21 }
 0x109   : > { %v564_v27 = vmul.f32 0.01, %v442_v14  ;;  %v936_v28 = vpack.c.bf16 %v609_v25, %v609_v25  ;;  %v925_v29 = vpack.c.bf16 %v598_v26, %v598_v26  ;;  %v614_v30 = vsel %vm550_vm12, %v514_v10, %v582_v23 }
 0x10a   : > { %vm548_vm14 = vcmp.gt.f32.partialorder %v506_v15, 0.0  ;;  %754 = vst.msk [vmem:[%s1126_s27 + $0x24] sm:$0xf] %vm744_vm1, %v920_v24  ;;  %v941_v31 = vpack.c.bf16 %v614_v30, %v614_v30  ;;  %v580_v33 = vmul.f32 0.01, %v506_v15  ;;  %v445_v37 = vadd.f32 %v1114_v18, %v444_v6 }
 0x10b   : > { %v596_v32 = vsel %vm532_vm13, %v442_v14, %v564_v27  ;;  %770 = vst.msk [vmem:[%s1126_s27 + $0x64] sm:$0xf] %vm744_vm1, %v936_v28  ;;  %759 = vst.msk [vmem:[%s1126_s27 + $0x38] sm:$0xf] %vm744_vm1, %v925_v29  ;;  %v509_v38 = vadd.f32 %v1114_v18, %v508_v11  ;;  %vm535_vm15 = vcmp.gt.f32.partialorder %v453_v34, 0.0  ;;  %vm551_vm0 = vcmp.gt.f32.partialorder %v517_v36, 0.0 }
 0x10c   : > { %v923_v35 = vpack.c.bf16 %v596_v32, %v596_v32  ;;  %775 = vst.msk [vmem:[%s1126_s27 + $0x78] sm:$0xf] %vm744_vm1, %v941_v31  ;;  %v612_v39 = vsel %vm548_vm14, %v506_v15, %v580_v33  ;;  %v567_v40 = vmul.f32 0.01, %v453_v34  ;;  %v583_v42 = vmul.f32 0.01, %v517_v36 }
 0x10d   : > { %v939_v41 = vpack.c.bf16 %v612_v39, %v612_v39  ;;  %vm533_vm2 = vcmp.gt.f32.partialorder %v445_v37, 0.0  ;;  %v565_v44 = vmul.f32 0.01, %v445_v37  ;;  %vm549_vm3 = vcmp.gt.f32.partialorder %v509_v38, 0.0 }
 0x10e   : > { %757 = vst.msk [vmem:[%s1126_s27 + $0x30] sm:$0xf] %vm744_vm1, %v923_v35  ;;  %v599_v43 = vsel %vm535_vm15, %v453_v34, %v567_v40  ;;  %v581_v45 = vmul.f32 0.01, %v509_v38  ;;  %v615_v46 = vsel %vm551_vm0, %v517_v36, %v583_v42 }
 0x10f   : > { %773 = vst.msk [vmem:[%s1126_s27 + $0x70] sm:$0xf] %vm744_vm1, %v939_v41  ;;  %v926_v18 = vpack.c.bf16 %v599_v43, %v599_v43  ;;  %v942_v47 = vpack.c.bf16 %v615_v46, %v615_v46  ;;  %v597_v48 = vsel %vm533_vm2, %v445_v37, %v565_v44 }
 0x110   : > { %v613_v49 = vsel %vm549_vm3, %v509_v38, %v581_v45  ;;  %v924_v50 = vpack.c.bf16 %v597_v48, %v597_v48 }
 0x111   : > { %760 = vst.msk [vmem:[%s1126_s27 + $0x3c] sm:$0xf] %vm744_vm1, %v926_v18  ;;  %v940_v51 = vpack.c.bf16 %v613_v49, %v613_v49  ;;  %776 = vst.msk [vmem:[%s1126_s27 + $0x7c] sm:$0xf] %vm744_vm1, %v942_v47 }
 0x112   : > { %758 = vst.msk [vmem:[%s1126_s27 + $0x34] sm:$0xf] %vm744_vm1, %v924_v50 }
 0x113   : > { %774 = vst.msk [vmem:[%s1126_s27 + $0x74] sm:$0xf] %vm744_vm1, %v940_v51 }
 0x114 PF: > { %s13_s12 = sadd.s32 1, %s1033_s12  }
 0x115   : > { %p10_p4 = scmp.ge.s32.totalorder %s13_s12, 4  }
 0x117   :  { %12 = sbr.rel (!%p10_p4) target bundleno = 1 (0x1), region = 62 }

// kernel: yolov3_layer_forward.11
= control target key start
LH: loop header
LB: loop body
LE: loop exit
PB: predicated region body
PF: predicated region fallthrough
CT: control target
= control target key end

     0   :  { %s848_s12 = smov 0   ;;  %s1009_s0 = inlined_call_operand.vmem [shape: bf16[512,16], index: 0, kind: input, shape index: {}]   ;;  %s1010_s1 = inlined_call_operand.vmem [shape: bf16[16,8], index: 1, kind: input, shape index: {}]   ;;  %s1011_s2 = inlined_call_operand.vmem [shape: f32[1,8], index: 2, kind: input, shape index: {}]   ;;  %s1012_s3 = inlined_call_operand.vmem [shape: f32[512,8], index: 3, kind: output, shape index: {}]  }
   0x1 LB: > { %s697_s13 = sadd.s32 4294967295, %s826_s12   ;;  %p701_p0 = scmp.ge.s32.totalorder %s826_s12, 1  ;;  %s826_s12 = sphi %s848_s12, %s13_s12  }
   0x2   : > { %p138_p1 = scmp.lt.s32.totalorder %s826_s12, 3 }
   0x4   : > { %p139_p2 = pnand %p701_p0, %p138_p1 }
   0x5   : > { %v803_v0 = vld [vmem:[%s1010_s1] sm:$0xff] (!%p139_p2)   ;;  %s702_s16 = sshll.u32 (!%p139_p2), %s697_s13, 5  ;;  %vm302_vm0 = vcmask (!%p139_p2), 130048   ;;  %vm608_vm1 = vcmask (!%p139_p2), 64512  }
   0x6   : > { %142 = sbr.rel (%p139_p2) target bundleno = 267 (0x10b), region = 32  ;;  %p163_p3 = scmp.lt.s32.totalorder (!%p139_p2), %s702_s16, 63  ;;  %759 = vmatprep.subr.bf16.mxu0 (!%p139_p2), %v803_v0  ;;  %793 = vmatprep.subr.bf16.mxu1 (!%p139_p2), %v803_v0  ;;  %v902_v17 = vld [vmem:[%s1011_s2] ss:$0 sm:$0xff] (!%p139_p2) }
   0x7   : > { %760 = vmatpush3.bf16.msra.mxu0 (!%p139_p2), %v803_v0  ;;  %794 = vmatpush3.bf16.msra.mxu1 (!%p139_p2), %v803_v0 }
   0xd   : > { %s1014_s16 = smov (!%p163_p3, %s702_s16), 63 }
   0xe   : > { %s703_s17 = sshll.u32 %s1014_s16, 2  ;;  %s705_s23 = sshll.u32 %s1014_s16, 3 }
   0xf   : > { %s865_s20 = scalar_lea.vmem %s1009_s0, %s703_s17  ;;  %s911_s26 = scalar_lea.vmem %s1012_s3, %s705_s23 }
  0x10   : > { %v804_v1 = vld [vmem:[%s865_s20] sm:$0xff]   ;;  %v806_v3 = vld [vmem:[%s865_s20 + $0x8] sm:$0xff]   ;;  %v808_v5 = vld [vmem:[%s865_s20 + $0x10] sm:$0xff]  }
  0x11   : > { %v805_v2 = vld [vmem:[%s865_s20 + $0x40] sm:$0xff]   ;;  %761 = vmatprep.mubr.msk.bf16.mxu0 %vm302_vm0, %v804_v1  ;;  %v807_v4 = vld [vmem:[%s865_s20 + $0x48] sm:$0xff]   ;;  %v809_v6 = vld [vmem:[%s865_s20 + $0x50] sm:$0xff]  }
  0x12   : > { %777 = vmatprep.mubr.msk.bf16.mxu1 %vm302_vm0, %v805_v2  ;;  %762 = vmatmul.mubr.msk.bf16.vlgmr.msra.gmra.mrb[0].mxu0 %vm302_vm0, %v806_v3  ;;  %v810_v7 = vld [vmem:[%s865_s20 + $0x18] sm:$0xff]   ;;  %v812_v9 = vld [vmem:[%s865_s20 + $0x20] sm:$0xff]   ;;  %v814_v11 = vld [vmem:[%s865_s20 + $0x28] sm:$0xff]  }
  0x13   : > { %778 = vmatmul.mubr.msk.bf16.vlgmr.msra.gmra.mrb[0].mxu1 %vm302_vm0, %v807_v4  ;;  %765 = vmatprep.mubr.msk.bf16.mxu0 %vm302_vm0, %v808_v5  ;;  %v811_v8 = vld [vmem:[%s865_s20 + $0x58] sm:$0xff]   ;;  %v813_v10 = vld [vmem:[%s865_s20 + $0x60] sm:$0xff]   ;;  %v815_v12 = vld [vmem:[%s865_s20 + $0x68] sm:$0xff]  }
  0x14   : > { %781 = vmatprep.mubr.msk.bf16.mxu1 %vm302_vm0, %v809_v6  ;;  %v816_v13 = vld [vmem:[%s865_s20 + $0x30] sm:$0xff]   ;;  %v818_v15 = vld [vmem:[%s865_s20 + $0x38] sm:$0xff]  }
  0x15   : > { %v817_v14 = vld [vmem:[%s865_s20 + $0x70] sm:$0xff]   ;;  %v819_v16 = vld [vmem:[%s865_s20 + $0x78] sm:$0xff]  }
  0x1a   : > { %766 = vmatmul.mubr.msk.bf16.gmra.mrb[4].mxu0 %vm302_vm0, %v810_v7 }
  0x1b   : > { %782 = vmatmul.mubr.msk.bf16.gmra.mrb[4].mxu1 %vm302_vm0, %v811_v8  ;;  %769 = vmatprep.mubr.msk.bf16.mxu0 %vm302_vm0, %v812_v9 }
  0x1c   : > { %785 = vmatprep.mubr.msk.bf16.mxu1 %vm302_vm0, %v813_v10 }
  0x22   : > { %770 = vmatmul.mubr.msk.bf16.gmra.mrb[8].mxu0 %vm302_vm0, %v814_v11 }
  0x23   : > { %786 = vmatmul.mubr.msk.bf16.gmra.mrb[8].mxu1 %vm302_vm0, %v815_v12  ;;  %773 = vmatprep.mubr.msk.bf16.mxu0 %vm302_vm0, %v816_v13 }
  0x24   : > { %789 = vmatprep.mubr.msk.bf16.mxu1 %vm302_vm0, %v817_v14 }
  0x2a   : > { %774 = vmatmul.mubr.msk.bf16.gmra.mrb[12].mxu0 %vm302_vm0, %v818_v15 }
  0x2b   : > { %790 = vmatmul.mubr.msk.bf16.gmra.mrb[12].mxu1 %vm302_vm0, %v819_v16 }
  0xe5   : > { %v763_v18 = vpop.f32.mrb[0].mxu0 }
  0xe6   : > { %v394_v19 = vadd.f32 %v763_v18, %v902_v17  ;;  %v779_v20 = vpop.f32.mrb[0].mxu1  ;;  %v385_v21 = vpop.f32.mrb[1].mxu0 }
  0xe7   : > { %v458_v22 = vadd.f32 %v779_v20, %v902_v17  ;;  %v386_v23 = vadd.f32 %v902_v17, %v385_v21  ;;  %v449_v24 = vpop.f32.mrb[1].mxu1  ;;  %v764_v25 = vpop.f32.mrb[2].mxu0 }
  0xe8   : > { %vm514_vm2 = vcmp.gt.f32.partialorder %v394_v19, 0.0  ;;  %v546_v26 = vmul.f32 0.01, %v394_v19  ;;  %v450_v27 = vadd.f32 %v902_v17, %v449_v24  ;;  %v397_v28 = vadd.f32 %v764_v25, %v902_v17  ;;  %v780_v29 = vpop.f32.mrb[2].mxu1  ;;  %v388_v30 = vpop.f32.mrb[3].mxu0 }
  0xe9   : > { %vm530_vm3 = vcmp.gt.f32.partialorder %v458_v22, 0.0  ;;  %v562_v31 = vmul.f32 0.01, %v458_v22  ;;  %vm512_vm4 = vcmp.gt.f32.partialorder %v386_v23, 0.0  ;;  %v544_v32 = vmul.f32 0.01, %v386_v23 }
  0xea   : > { %v578_v33 = vsel %vm514_vm2, %v394_v19, %v546_v26  ;;  %vm528_vm5 = vcmp.gt.f32.partialorder %v450_v27, 0.0  ;;  %v560_v34 = vmul.f32 0.01, %v450_v27  ;;  %vm515_vm6 = vcmp.gt.f32.partialorder %v397_v28, 0.0  ;;  %v452_v35 = vpop.f32.mrb[3].mxu1 }
  0xeb   : > { %611 = vst.msk [vmem:[%s911_s26 + $0x10] sm:$0xff] %vm608_vm1, %v578_v33  ;;  %v594_v36 = vsel %vm530_vm3, %v458_v22, %v562_v31  ;;  %v576_v37 = vsel %vm512_vm4, %v386_v23, %v544_v32  ;;  %v547_v38 = vmul.f32 0.01, %v397_v28  ;;  %v461_v39 = vadd.f32 %v780_v29, %v902_v17 }
  0xec   : > { %627 = vst.msk [vmem:[%s911_s26 + $0x90] sm:$0xff] %vm608_vm1, %v594_v36  ;;  %609 = vst.msk [vmem:[%s911_s26] sm:$0xff] %vm608_vm1, %v576_v37  ;;  %v592_v40 = vsel %vm528_vm5, %v450_v27, %v560_v34  ;;  %v389_v41 = vadd.f32 %v902_v17, %v388_v30  ;;  %v453_v42 = vadd.f32 %v902_v17, %v452_v35 }
  0xed   : > { %625 = vst.msk [vmem:[%s911_s26 + $0x80] sm:$0xff] %vm608_vm1, %v592_v40  ;;  %v579_v43 = vsel %vm515_vm6, %v397_v28, %v547_v38  ;;  %vm531_vm7 = vcmp.gt.f32.partialorder %v461_v39, 0.0  ;;  %v563_v44 = vmul.f32 0.01, %v461_v39  ;;  %v767_v45 = vpop.f32.mrb[4].mxu0 }
  0xee   : > { %612 = vst.msk [vmem:[%s911_s26 + $0x18] sm:$0xff] %vm608_vm1, %v579_v43  ;;  %vm513_vm8 = vcmp.gt.f32.partialorder %v389_v41, 0.0  ;;  %v545_v46 = vmul.f32 0.01, %v389_v41  ;;  %vm529_vm9 = vcmp.gt.f32.partialorder %v453_v42, 0.0  ;;  %v410_v49 = vadd.f32 %v767_v45, %v902_v17  ;;  %v783_v50 = vpop.f32.mrb[4].mxu1 }
  0xef   : > { %v561_v47 = vmul.f32 0.01, %v453_v42  ;;  %v595_v48 = vsel %vm531_vm7, %v461_v39, %v563_v44  ;;  %v401_v51 = vpop.f32.mrb[5].mxu0  ;;  %v474_v54 = vadd.f32 %v783_v50, %v902_v17  ;;  %v465_v56 = vpop.f32.mrb[5].mxu1 }
  0xf0   : > { %628 = vst.msk [vmem:[%s911_s26 + $0x98] sm:$0xff] %vm608_vm1, %v595_v48  ;;  %v577_v52 = vsel %vm513_vm8, %v389_v41, %v545_v46  ;;  %v402_v55 = vadd.f32 %v902_v17, %v401_v51  ;;  %v768_v57 = vpop.f32.mrb[6].mxu0  ;;  %vm518_vm10 = vcmp.gt.f32.partialorder %v410_v49, 0.0  ;;  %v550_v58 = vmul.f32 0.01, %v410_v49  ;;  %v784_v61 = vpop.f32.mrb[6].mxu1 }
  0xf1   : > { %v593_v53 = vsel %vm529_vm9, %v453_v42, %v561_v47  ;;  %610 = vst.msk [vmem:[%s911_s26 + $0x8] sm:$0xff] %vm608_vm1, %v577_v52  ;;  %v466_v59 = vadd.f32 %v902_v17, %v465_v56  ;;  %v413_v60 = vadd.f32 %v768_v57, %v902_v17  ;;  %v404_v62 = vpop.f32.mrb[7].mxu0  ;;  %vm534_vm11 = vcmp.gt.f32.partialorder %v474_v54, 0.0  ;;  %v468_v3 = vpop.f32.mrb[7].mxu1 }
  0xf2   : > { %626 = vst.msk [vmem:[%s911_s26 + $0x88] sm:$0xff] %vm608_vm1, %v593_v53  ;;  %v566_v63 = vmul.f32 0.01, %v474_v54  ;;  %vm516_vm12 = vcmp.gt.f32.partialorder %v402_v55, 0.0  ;;  %v548_v0 = vmul.f32 0.01, %v402_v55  ;;  %v582_v1 = vsel %vm518_vm10, %v410_v49, %v550_v58 }
  0xf3   : > { %vm532_vm13 = vcmp.gt.f32.partialorder %v466_v59, 0.0  ;;  %v564_v2 = vmul.f32 0.01, %v466_v59  ;;  %vm519_vm14 = vcmp.gt.f32.partialorder %v413_v60, 0.0  ;;  %615 = vst.msk [vmem:[%s911_s26 + $0x30] sm:$0xff] %vm608_vm1, %v582_v1  ;;  %v477_v7 = vadd.f32 %v784_v61, %v902_v17 }
  0xf4   : > { %v598_v4 = vsel %vm534_vm11, %v474_v54, %v566_v63  ;;  %v580_v5 = vsel %vm516_vm12, %v402_v55, %v548_v0  ;;  %v551_v6 = vmul.f32 0.01, %v413_v60  ;;  %v405_v9 = vadd.f32 %v902_v17, %v404_v62 }
  0xf5   : > { %631 = vst.msk [vmem:[%s911_s26 + $0xb0] sm:$0xff] %vm608_vm1, %v598_v4  ;;  %613 = vst.msk [vmem:[%s911_s26 + $0x20] sm:$0xff] %vm608_vm1, %v580_v5  ;;  %v596_v8 = vsel %vm532_vm13, %v466_v59, %v564_v2  ;;  %v469_v10 = vadd.f32 %v902_v17, %v468_v3  ;;  %v771_v11 = vpop.f32.mrb[8].mxu0  ;;  %vm535_vm15 = vcmp.gt.f32.partialorder %v477_v7, 0.0  ;;  %v567_v13 = vmul.f32 0.01, %v477_v7 }
  0xf6   : > { %629 = vst.msk [vmem:[%s911_s26 + $0xa0] sm:$0xff] %vm608_vm1, %v596_v8  ;;  %v583_v12 = vsel %vm519_vm14, %v413_v60, %v551_v6  ;;  %v426_v14 = vadd.f32 %v771_v11, %v902_v17  ;;  %v787_v15 = vpop.f32.mrb[8].mxu1  ;;  %v417_v16 = vpop.f32.mrb[9].mxu0  ;;  %vm517_vm0 = vcmp.gt.f32.partialorder %v405_v9, 0.0  ;;  %v549_v18 = vmul.f32 0.01, %v405_v9 }
  0xf7   : > { %616 = vst.msk [vmem:[%s911_s26 + $0x38] sm:$0xff] %vm608_vm1, %v583_v12  ;;  %vm533_vm2 = vcmp.gt.f32.partialorder %v469_v10, 0.0  ;;  %v565_v19 = vmul.f32 0.01, %v469_v10  ;;  %v599_v20 = vsel %vm535_vm15, %v477_v7, %v567_v13  ;;  %v490_v22 = vadd.f32 %v787_v15, %v902_v17  ;;  %v481_v23 = vpop.f32.mrb[9].mxu1  ;;  %v772_v24 = vpop.f32.mrb[10].mxu0 }
  0xf8   : > { %vm522_vm3 = vcmp.gt.f32.partialorder %v426_v14, 0.0  ;;  %v554_v21 = vmul.f32 0.01, %v426_v14  ;;  %632 = vst.msk [vmem:[%s911_s26 + $0xb8] sm:$0xff] %vm608_vm1, %v599_v20  ;;  %v581_v25 = vsel %vm517_vm0, %v405_v9, %v549_v18  ;;  %v418_v27 = vadd.f32 %v902_v17, %v417_v16  ;;  %v788_v29 = vpop.f32.mrb[10].mxu1  ;;  %v420_v30 = vpop.f32.mrb[11].mxu0 }
  0xf9   : > { %v597_v26 = vsel %vm533_vm2, %v469_v10, %v565_v19  ;;  %v482_v28 = vadd.f32 %v902_v17, %v481_v23  ;;  %614 = vst.msk [vmem:[%s911_s26 + $0x28] sm:$0xff] %vm608_vm1, %v581_v25  ;;  %vm538_vm4 = vcmp.gt.f32.partialorder %v490_v22, 0.0  ;;  %v570_v32 = vmul.f32 0.01, %v490_v22  ;;  %v484_v34 = vpop.f32.mrb[11].mxu1 }
  0xfa   : > { %630 = vst.msk [vmem:[%s911_s26 + $0xa8] sm:$0xff] %vm608_vm1, %v597_v26  ;;  %v586_v31 = vsel %vm522_vm3, %v426_v14, %v554_v21  ;;  %v429_v33 = vadd.f32 %v772_v24, %v902_v17  ;;  %vm520_vm5 = vcmp.gt.f32.partialorder %v418_v27, 0.0  ;;  %v552_v35 = vmul.f32 0.01, %v418_v27 }
  0xfb   : > { %619 = vst.msk [vmem:[%s911_s26 + $0x50] sm:$0xff] %vm608_vm1, %v586_v31  ;;  %vm536_vm6 = vcmp.gt.f32.partialorder %v482_v28, 0.0  ;;  %v568_v36 = vmul.f32 0.01, %v482_v28  ;;  %v602_v37 = vsel %vm538_vm4, %v490_v22, %v570_v32  ;;  %v493_v39 = vadd.f32 %v788_v29, %v902_v17 }
  0xfc   : > { %vm523_vm7 = vcmp.gt.f32.partialorder %v429_v33, 0.0  ;;  %v555_v38 = vmul.f32 0.01, %v429_v33  ;;  %635 = vst.msk [vmem:[%s911_s26 + $0xd0] sm:$0xff] %vm608_vm1, %v602_v37  ;;  %v584_v40 = vsel %vm520_vm5, %v418_v27, %v552_v35  ;;  %v421_v42 = vadd.f32 %v902_v17, %v420_v30 }
  0xfd   : > { %v600_v41 = vsel %vm536_vm6, %v482_v28, %v568_v36  ;;  %v485_v43 = vadd.f32 %v902_v17, %v484_v34  ;;  %v775_v44 = vpop.f32.mrb[12].mxu0  ;;  %617 = vst.msk [vmem:[%s911_s26 + $0x40] sm:$0xff] %vm608_vm1, %v584_v40  ;;  %vm539_vm8 = vcmp.gt.f32.partialorder %v493_v39, 0.0  ;;  %v571_v46 = vmul.f32 0.01, %v493_v39 }
  0xfe   : > { %633 = vst.msk [vmem:[%s911_s26 + $0xc0] sm:$0xff] %vm608_vm1, %v600_v41  ;;  %v587_v45 = vsel %vm523_vm7, %v429_v33, %v555_v38  ;;  %v442_v47 = vadd.f32 %v775_v44, %v902_v17  ;;  %v791_v48 = vpop.f32.mrb[12].mxu1  ;;  %v433_v49 = vpop.f32.mrb[13].mxu0  ;;  %vm521_vm9 = vcmp.gt.f32.partialorder %v421_v42, 0.0  ;;  %v553_v50 = vmul.f32 0.01, %v421_v42 }
  0xff   : > { %620 = vst.msk [vmem:[%s911_s26 + $0x58] sm:$0xff] %vm608_vm1, %v587_v45  ;;  %vm537_vm10 = vcmp.gt.f32.partialorder %v485_v43, 0.0  ;;  %v569_v51 = vmul.f32 0.01, %v485_v43  ;;  %v603_v52 = vsel %vm539_vm8, %v493_v39, %v571_v46  ;;  %v506_v54 = vadd.f32 %v791_v48, %v902_v17  ;;  %v497_v55 = vpop.f32.mrb[13].mxu1  ;;  %v776_v56 = vpop.f32.mrb[14].mxu0 }
 0x100   : > { %vm526_vm11 = vcmp.gt.f32.partialorder %v442_v47, 0.0  ;;  %v558_v53 = vmul.f32 0.01, %v442_v47  ;;  %636 = vst.msk [vmem:[%s911_s26 + $0xd8] sm:$0xff] %vm608_vm1, %v603_v52  ;;  %v585_v57 = vsel %vm521_vm9, %v421_v42, %v553_v50  ;;  %v434_v59 = vadd.f32 %v902_v17, %v433_v49  ;;  %v792_v61 = vpop.f32.mrb[14].mxu1  ;;  %v436_v62 = vpop.f32.mrb[15].mxu0 }
 0x101   : > { %v601_v58 = vsel %vm537_vm10, %v485_v43, %v569_v51  ;;  %v498_v60 = vadd.f32 %v902_v17, %v497_v55  ;;  %618 = vst.msk [vmem:[%s911_s26 + $0x48] sm:$0xff] %vm608_vm1, %v585_v57  ;;  %vm542_vm12 = vcmp.gt.f32.partialorder %v506_v54, 0.0  ;;  %v574_v0 = vmul.f32 0.01, %v506_v54  ;;  %v500_v2 = vpop.f32.mrb[15].mxu1 }
 0x102   : > { %634 = vst.msk [vmem:[%s911_s26 + $0xc8] sm:$0xff] %vm608_vm1, %v601_v58  ;;  %v590_v63 = vsel %vm526_vm11, %v442_v47, %v558_v53  ;;  %v445_v1 = vadd.f32 %v776_v56, %v902_v17  ;;  %vm524_vm13 = vcmp.gt.f32.partialorder %v434_v59, 0.0  ;;  %v556_v3 = vmul.f32 0.01, %v434_v59 }
 0x103   : > { %623 = vst.msk [vmem:[%s911_s26 + $0x70] sm:$0xff] %vm608_vm1, %v590_v63  ;;  %vm540_vm14 = vcmp.gt.f32.partialorder %v498_v60, 0.0  ;;  %v572_v4 = vmul.f32 0.01, %v498_v60  ;;  %v606_v5 = vsel %vm542_vm12, %v506_v54, %v574_v0  ;;  %v509_v7 = vadd.f32 %v792_v61, %v902_v17 }
 0x104   : > { %vm527_vm15 = vcmp.gt.f32.partialorder %v445_v1, 0.0  ;;  %v559_v6 = vmul.f32 0.01, %v445_v1  ;;  %639 = vst.msk [vmem:[%s911_s26 + $0xf0] sm:$0xff] %vm608_vm1, %v606_v5  ;;  %v588_v8 = vsel %vm524_vm13, %v434_v59, %v556_v3  ;;  %v437_v10 = vadd.f32 %v902_v17, %v436_v62 }
 0x105   : > { %v604_v9 = vsel %vm540_vm14, %v498_v60, %v572_v4  ;;  %v501_v11 = vadd.f32 %v902_v17, %v500_v2  ;;  %621 = vst.msk [vmem:[%s911_s26 + $0x60] sm:$0xff] %vm608_vm1, %v588_v8  ;;  %vm543_vm0 = vcmp.gt.f32.partialorder %v509_v7, 0.0  ;;  %v575_v13 = vmul.f32 0.01, %v509_v7 }
 0x106   : > { %637 = vst.msk [vmem:[%s911_s26 + $0xe0] sm:$0xff] %vm608_vm1, %v604_v9  ;;  %v591_v12 = vsel %vm527_vm15, %v445_v1, %v559_v6  ;;  %vm525_vm2 = vcmp.gt.f32.partialorder %v437_v10, 0.0  ;;  %v557_v14 = vmul.f32 0.01, %v437_v10 }
 0x107   : > { %624 = vst.msk [vmem:[%s911_s26 + $0x78] sm:$0xff] %vm608_vm1, %v591_v12  ;;  %vm541_vm3 = vcmp.gt.f32.partialorder %v501_v11, 0.0  ;;  %v573_v15 = vmul.f32 0.01, %v501_v11  ;;  %v607_v16 = vsel %vm543_vm0, %v509_v7, %v575_v13 }
 0x108   : > { %640 = vst.msk [vmem:[%s911_s26 + $0xf8] sm:$0xff] %vm608_vm1, %v607_v16  ;;  %v589_v18 = vsel %vm525_vm2, %v437_v10, %v557_v14 }
 0x109   : > { %v605_v19 = vsel %vm541_vm3, %v501_v11, %v573_v15  ;;  %622 = vst.msk [vmem:[%s911_s26 + $0x68] sm:$0xff] %vm608_vm1, %v589_v18 }
 0x10a   : > { %638 = vst.msk [vmem:[%s911_s26 + $0xe8] sm:$0xff] %vm608_vm1, %v605_v19 }
 0x10b PF: > { %s13_s12 = sadd.s32 1, %s826_s12  }
 0x10c   : > { %p10_p4 = scmp.ge.s32.totalorder %s13_s12, 4  }
 0x10e   :  { %12 = sbr.rel (!%p10_p4) target bundleno = 1 (0x1), region = 62 }

// kernel: yolov3_layer_forward.7
= control target key start
LH: loop header
LB: loop body
LE: loop exit
PB: predicated region body
PF: predicated region fallthrough
CT: control target
= control target key end

     0   :  { %s9030_s12 = smov 0   ;;  %s9032_s13 = smov 0   ;;  %s10516_s0 = inlined_call_operand.vmem [shape: bf16[2,16,16,16], index: 0, kind: input, shape index: {}]   ;;  %s10517_s1 = inlined_call_operand.vmem [shape: bf16[9,16,32], index: 1, kind: input, shape index: {}]   ;;  %s10518_s2 = inlined_call_operand.vmem [shape: f32[1,32], index: 2, kind: input, shape index: {}]   ;;  %s10519_s3 = inlined_call_operand.vmem [shape: bf16[2,16,16,32], index: 3, kind: output, shape index: {}]  }
   0x1   :  { %s9034_s14 = smov 0  }
   0x2 LB: > { %s25_s15 = sadd.s32 1, %s9003_s13  ;;  %p7454_p0 = scmp.ge.s32.totalorder %s9007_s14, 1  ;;  %s9007_s14 = sphi %s9034_s14, %s13_s14   ;;  %s9003_s13 = sphi %s9032_s13, %s10527_s13   ;;  %s8999_s12 = sphi %s9030_s12, %s10526_s12  }
   0x3   : > { %p27_p1 = scmp.ge.s32.totalorder %s25_s15, 2  ;;  %p168_p2 = scmp.lt.s32.totalorder %s9007_s14, 3 }
   0x5   : > { %s10529_s15 = smov (%p27_p1, %s25_s15), 0  ;;  %p169_p3 = pnand %p7454_p0, %p168_p2 }
   0x6   : > { %v9051_v0 = vld [vmem:[%s10517_s1] sm:$0xff] (!%p169_p3)   ;;  %p202_p4 = scmp.lt.s32.totalorder (!%p169_p3), %s8999_s12, 1  ;;  %vm227_vm0 = vcmask (!%p169_p3), 125952   ;;  %v9009_v1 = vmov (!%p169_p3), 0   ;;  %vm287_vm1 = vsmask.f32 (!%p169_p3), 256 }
   0x7   : > { %172 = sbr.rel (%p169_p3) target bundleno = 728 (0x2d8), region = 32  ;;  %8726 = vmatprep.subr.bf16.mxu1 (!%p169_p3), %v9051_v0  ;;  %252 = vst.msk [vmem:[#allocation2 + $0x60] sm:$0xf] (!%p169_p3), %vm227_vm0, %v9009_v1  ;;  %253 = vst.msk [vmem:[#allocation2 + $0x64] sm:$0xf] (!%p169_p3), %vm227_vm0, %v9009_v1  ;;  %v9114_v2 = vld [vmem:[%s10517_s1 + $0x8] sm:$0xff] (!%p169_p3)   ;;  %8276 = vmatprep.subr.bf16.mxu0 (!%p169_p3), %v9051_v0 }
   0x8   : > { %vm288_vm2 = vsmask.f32 (!%p169_p3), 4368  ;;  %228 = vst.msk [vmem:[#allocation2] sm:$0xf] (!%p169_p3), %vm227_vm0, %v9009_v1  ;;  %229 = vst.msk [vmem:[#allocation2 + $0x4] sm:$0xf] (!%p169_p3), %vm227_vm0, %v9009_v1  ;;  %8727 = vmatpush3.bf16.msra.mxu1 (!%p169_p3), %v9051_v0  ;;  %8277 = vmatpush3.bf16.msra.mxu0 (!%p169_p3), %v9051_v0 }
   0x9   : > { %230 = vst.msk [vmem:[#allocation2 + $0x8] sm:$0xf] (!%p169_p3), %vm227_vm0, %v9009_v1  ;;  %231 = vst.msk [vmem:[#allocation2 + $0xc] sm:$0xf] (!%p169_p3), %vm227_vm0, %v9009_v1  ;;  %vm311_vm3 = vsmask.f32 (!%p169_p3), 7938  ;;  %8326 = vmatprep.subr.bf16.mxu1 (!%p169_p3), %v9114_v2 }
   0xa   : > { %232 = vst.msk [vmem:[#allocation2 + $0x10] sm:$0xf] (!%p169_p3), %vm227_vm0, %v9009_v1  ;;  %233 = vst.msk [vmem:[#allocation2 + $0x14] sm:$0xf] (!%p169_p3), %vm227_vm0, %v9009_v1  ;;  %vm317_vm4 = vcmask (!%p169_p3), 122880   ;;  %vm948_vm5 = vcmask (!%p169_p3), 130048  }
   0xb   : > { %234 = vst.msk [vmem:[#allocation2 + $0x18] sm:$0xf] (!%p169_p3), %vm227_vm0, %v9009_v1  ;;  %235 = vst.msk [vmem:[#allocation2 + $0x1c] sm:$0xf] (!%p169_p3), %vm227_vm0, %v9009_v1  ;;  %v9131_v3 = vld [vmem:[%s10517_s1 + $0x10] sm:$0xff] (!%p169_p3)   ;;  %vm2289_vm10 = vcmask (!%p169_p3), 1046528  }
   0xc   : > { %236 = vst.msk [vmem:[#allocation2 + $0x20] sm:$0xf] (!%p169_p3), %vm227_vm0, %v9009_v1  ;;  %237 = vst.msk [vmem:[#allocation2 + $0x24] sm:$0xf] (!%p169_p3), %vm227_vm0, %v9009_v1  ;;  %8376 = vmatprep.subr.bf16.mxu0 (!%p169_p3), %v9131_v3  ;;  %vm1470_vm9 = vsmask.f32 (!%p169_p3), 7424 }
   0xd   : > { %238 = vst.msk [vmem:[#allocation2 + $0x28] sm:$0xf] (!%p169_p3), %vm227_vm0, %v9009_v1  ;;  %239 = vst.msk [vmem:[#allocation2 + $0x2c] sm:$0xf] (!%p169_p3), %vm227_vm0, %v9009_v1  ;;  %vm1246_vm11 = vcmask (!%p169_p3), 261120   ;;  %vm7025_vm13 = vcmask (!%p169_p3), 257024  }
   0xe   : > { %s10531_s12 = smov (!%p202_p4, %s8999_s12), 1  ;;  %240 = vst.msk [vmem:[#allocation2 + $0x30] sm:$0xf] %vm227_vm0, %v9009_v1  ;;  %241 = vst.msk [vmem:[#allocation2 + $0x34] sm:$0xf] %vm227_vm0, %v9009_v1 }
   0xf   : > { %242 = vst.msk [vmem:[#allocation2 + $0x38] sm:$0xf] %vm227_vm0, %v9009_v1  ;;  %243 = vst.msk [vmem:[#allocation2 + $0x3c] sm:$0xf] %vm227_vm0, %v9009_v1  ;;  %s8017_s20 = sshll.u32 %s10531_s12, 7  ;;  %v8757_v25 = vld [vmem:[#allocation2] sm:$0xff]  }
  0x10   : > { %244 = vst.msk [vmem:[#allocation2 + $0x40] sm:$0xf] %vm227_vm0, %v9009_v1  ;;  %245 = vst.msk [vmem:[#allocation2 + $0x44] sm:$0xf] %vm227_vm0, %v9009_v1  ;;  %s9126_s23 = scalar_lea.vmem %s10516_s0, %s8017_s20  ;;  %v525_v21 = vld [vmem:[#allocation2 + $0x60] sm:$0xf]  ;;  %8278 = vmatprep.mubr.msk.bf16.mxu0 %vm948_vm5, %v8757_v25  ;;  %s10337_s19 = scalar_lea.vmem %s10519_s3, %s8017_s20 }
  0x11   : > { %246 = vst.msk [vmem:[#allocation2 + $0x48] sm:$0xf] %vm227_vm0, %v9009_v1  ;;  %247 = vst.msk [vmem:[#allocation2 + $0x4c] sm:$0xf] %vm227_vm0, %v9009_v1  ;;  %v7471_v4 = vld [vmem:[%s9126_s23 + $0x38] sm:$0xf] }
  0x12   : > { %248 = vst.msk [vmem:[#allocation2 + $0x50] sm:$0xf] %vm227_vm0, %v9009_v1  ;;  %249 = vst.msk [vmem:[#allocation2 + $0x54] sm:$0xf] %vm227_vm0, %v9009_v1  ;;  %v7472_v5 = vld [vmem:[%s9126_s23 + $0x3c] sm:$0xf] }
  0x13   : > { %250 = vst.msk [vmem:[#allocation2 + $0x58] sm:$0xf] %vm227_vm0, %v9009_v1  ;;  %251 = vst.msk [vmem:[#allocation2 + $0x5c] sm:$0xf] %vm227_vm0, %v9009_v1  ;;  %v7473_v6 = vld [vmem:[%s9126_s23 + $0x40] sm:$0xf] }
  0x14   : > { %254 = vst.msk [vmem:[#allocation2 + $0x68] sm:$0xf] %vm227_vm0, %v9009_v1  ;;  %255 = vst.msk [vmem:[#allocation2 + $0x6c] sm:$0xf] %vm227_vm0, %v9009_v1  ;;  %v506_v8 = vshrl.u32 %v7471_v4, 16  ;;  %v509_v9 = vshll.u32 %v7471_v4, 16 }
  0x15   : > { %256 = vst.msk [vmem:[#allocation2 + $0x70] sm:$0xf] %vm227_vm0, %v9009_v1  ;;  %257 = vst.msk [vmem:[#allocation2 + $0x74] sm:$0xf] %vm227_vm0, %v9009_v1  ;;  %v514_v10 = vshrl.u32 %v7472_v5, 16  ;;  %v517_v11 = vshll.u32 %v7472_v5, 16 }
  0x16   : > { %258 = vst.msk [vmem:[#allocation2 + $0x78] sm:$0xf] %vm227_vm0, %v9009_v1  ;;  %259 = vst.msk [vmem:[#allocation2 + $0x7c] sm:$0xf] %vm227_vm0, %v9009_v1  ;;  %v285_v12 = vld [vmem:[%s9126_s23] sm:$0xf] }
  0x17   : > { %260 = vst.msk [vmem:[#allocation2 + $0x80] sm:$0xf] %vm227_vm0, %v9009_v1  ;;  %261 = vst.msk [vmem:[#allocation2 + $0x84] sm:$0xf] %vm227_vm0, %v9009_v1  ;;  %v536_v14 = vshrl.u32 %v7473_v6, 16  ;;  %v539_v15 = vshll.u32 %v7473_v6, 16 }
  0x18   : > { %262 = vst.msk [vmem:[#allocation2 + $0x88] sm:$0xf] %vm227_vm0, %v9009_v1  ;;  %263 = vst.msk [vmem:[#allocation2 + $0x8c] sm:$0xf] %vm227_vm0, %v9009_v1  ;;  %v291_v16 = vshrl.u32 %v285_v12, 16  ;;  %v294_v17 = vshll.u32 %v285_v12, 16 }
  0x19   : > { %264 = vst.msk [vmem:[#allocation2 + $0x90] sm:$0xf] %vm227_vm0, %v9009_v1  ;;  %265 = vst.msk [vmem:[#allocation2 + $0x94] sm:$0xf] %vm227_vm0, %v9009_v1  ;;  %v508_v19 = vrot.slane %v506_v8, 7  ;;  %v516_v20 = vrot.slane %v514_v10, 7 }
  0x1a   : > { %266 = vst.msk [vmem:[#allocation2 + $0x98] sm:$0xf] %vm227_vm0, %v9009_v1  ;;  %267 = vst.msk [vmem:[#allocation2 + $0x9c] sm:$0xf] %vm227_vm0, %v9009_v1  ;;  %v7474_v22 = vld [vmem:[%s9126_s23 + $0x44] sm:$0xf] }
  0x1b   : > { %268 = vst.msk [vmem:[#allocation2 + $0xa0] sm:$0xf] %vm227_vm0, %v9009_v1  ;;  %269 = vst.msk [vmem:[#allocation2 + $0xa4] sm:$0xf] %vm227_vm0, %v9009_v1  ;;  %v529_v23 = vld [vmem:[#allocation2 + $0x68] sm:$0x1]  ;;  %v511_v26 = vor.u32 %v509_v9, %v508_v19  ;;  %v519_v28 = vor.u32 %v517_v11, %v516_v20 }
  0x1c   : > { %270 = vst.msk [vmem:[#allocation2 + $0xa8] sm:$0xf] %vm227_vm0, %v9009_v1  ;;  %271 = vst.msk [vmem:[#allocation2 + $0xac] sm:$0xf] %vm227_vm0, %v9009_v1  ;;  %v538_v24 = vrot.slane %v536_v14, 7  ;;  %v512_v27 = vrot.slane %v508_v19, 4 }
  0x1d   : > { %272 = vst.msk [vmem:[#allocation2 + $0xb0] sm:$0xf] %vm227_vm0, %v9009_v1  ;;  %273 = vst.msk [vmem:[#allocation2 + $0xb4] sm:$0xf] %vm227_vm0, %v9009_v1  ;;  %v521_v29 = vrot.slane %v516_v20, 4  ;;  %v9158_v32 = vrot.slane %v291_v16, 7 }
  0x1e   : > { %274 = vst.msk [vmem:[#allocation2 + $0xb8] sm:$0xf] %vm227_vm0, %v9009_v1  ;;  %275 = vst.msk [vmem:[#allocation2 + $0xbc] sm:$0xf] %vm227_vm0, %v9009_v1  ;;  %v555_v30 = vld [vmem:[#allocation2 + $0x6c] sm:$0xf]  ;;  %v541_v31 = vor.u32 %v539_v15, %v538_v24 }
  0x1f   : > { %276 = vst.msk [vmem:[#allocation2 + $0xc0] sm:$0xf] %vm227_vm0, %v9009_v1  ;;  %277 = vst.msk [vmem:[#allocation2 + $0xc4] sm:$0xf] %vm227_vm0, %v9009_v1  ;;  %v542_v33 = vrot.slane %v538_v24, 4  ;;  %v544_v34 = vshrl.u32 %v7474_v22, 16  ;;  %v296_v42 = vor.u32 %v294_v17, %v9158_v32 }
  0x20   : > { %278 = vst.msk [vmem:[#allocation2 + $0xc8] sm:$0xf] %vm227_vm0, %v9009_v1  ;;  %279 = vst.msk [vmem:[#allocation2 + $0xcc] sm:$0xf] %vm227_vm0, %v9009_v1  ;;  %v313_v38 = vld [vmem:[#allocation2 + $0xc] sm:$0xf] }
  0x21   : > { %280 = vst.msk [vmem:[#allocation2 + $0xd0] sm:$0xf] %vm227_vm0, %v9009_v1  ;;  %281 = vst.msk [vmem:[#allocation2 + $0xd4] sm:$0xf] %vm227_vm0, %v9009_v1  ;;  %v547_v39 = vshll.u32 %v7474_v22, 16  ;;  %v546_v43 = vrot.slane %v544_v34, 7 }
  0x22   : > { %282 = vst.msk [vmem:[#allocation2 + $0xd8] sm:$0xf] %vm227_vm0, %v9009_v1  ;;  %vm9138_vm6 = vmor %vm287_vm1, %vm288_vm2  ;;  %v7475_v40 = vld [vmem:[%s9126_s23 + $0x48] sm:$0xf]  ;;  %v559_v44 = vld [vmem:[#allocation2 + $0x74] sm:$0x1] }
  0x23   : > { %vm9146_vm7 = vmand %vm227_vm0, %vm311_vm3  ;;  %v520_v35 = vsel %vm9138_vm6, %v512_v27, %v519_v28  ;;  %v7476_v45 = vld [vmem:[%s9126_s23 + $0x4c] sm:$0xf]  ;;  %v566_v46 = vshrl.u32 %v7475_v40, 16  ;;  %v569_v47 = vshll.u32 %v7475_v40, 16  ;;  %v286_v50 = vld [vmem:[%s9126_s23 + $0x4] sm:$0xf]  ;;  %v549_v53 = vor.u32 %v547_v39, %v546_v43 }
  0x24   : > { %vm9152_vm8 = vmand %vm317_vm4, %vm287_vm1  ;;  %v526_v36 = vsel %vm9146_vm7, %v511_v26, %v525_v21  ;;  %528 = vst.msk [vmem:[#allocation2 + $0x64] sm:$0xf] %vm227_vm0, %v520_v35  ;;  %v556_v41 = vsel %vm9146_vm7, %v541_v31, %v555_v30  ;;  %v574_v48 = vshrl.u32 %v7476_v45, 16  ;;  %v577_v49 = vshll.u32 %v7476_v45, 16  ;;  %v585_v56 = vld [vmem:[#allocation2 + $0x78] sm:$0xf] }
  0x25   : > { %v530_v37 = vsel %vm9152_vm8, %v521_v29, %v529_v23  ;;  %527 = vst [vmem:[#allocation2 + $0x60] sm:$0xf] %v526_v36  ;;  %557 = vst [vmem:[#allocation2 + $0x6c] sm:$0xf] %v556_v41  ;;  %v297_v51 = vrot.slane %v9158_v32, 4  ;;  %v314_v52 = vsel %vm9146_vm7, %v296_v42, %v313_v38  ;;  %v551_v54 = vrot.slane %v546_v43, 4 }
  0x26   : > { %531 = vst [vmem:[#allocation2 + $0x68] sm:$0x1] %v530_v37  ;;  %v568_v55 = vrot.slane %v566_v46, 7  ;;  %v7459_v57 = vld [vmem:[%s9126_s23 + $0x8] sm:$0xf]  ;;  %v576_v58 = vrot.slane %v574_v48, 7  ;;  %v550_v63 = vsel %vm9138_vm6, %v542_v33, %v549_v53 }
  0x27   : > { %315 = vst [vmem:[#allocation2 + $0xc] sm:$0xf] %v314_v52  ;;  %v299_v59 = vshrl.u32 %v286_v50, 16  ;;  %v302_v60 = vshll.u32 %v286_v50, 16  ;;  %v7460_v61 = vld [vmem:[%s9126_s23 + $0xc] sm:$0xf]  ;;  %v560_v0 = vsel %vm9152_vm8, %v551_v54, %v559_v44 }
  0x28   : > { %v326_v62 = vshrl.u32 %v7459_v57, 16  ;;  %v571_v1 = vor.u32 %v569_v47, %v568_v55  ;;  %v572_v4 = vrot.slane %v568_v55, 4  ;;  %v319_v5 = vld [vmem:[#allocation2 + $0x14] sm:$0x1]  ;;  %v345_v6 = vld [vmem:[#allocation2 + $0x18] sm:$0xf]  ;;  %v579_v8 = vor.u32 %v577_v49, %v576_v58 }
  0x29   : > { %558 = vst.msk [vmem:[#allocation2 + $0x70] sm:$0xf] %vm227_vm0, %v550_v63  ;;  %561 = vst [vmem:[#allocation2 + $0x74] sm:$0x1] %v560_v0  ;;  %v301_v9 = vrot.slane %v299_v59, 7  ;;  %v329_v11 = vshll.u32 %v7459_v57, 16 }
  0x2a   : > { %v328_v10 = vrot.slane %v326_v62, 7  ;;  %v589_v12 = vld [vmem:[#allocation2 + $0x80] sm:$0x1]  ;;  %v586_v14 = vsel %vm9146_vm7, %v571_v1, %v585_v56  ;;  %v334_v15 = vshrl.u32 %v7460_v61, 16  ;;  %v337_v16 = vshll.u32 %v7460_v61, 16  ;;  %v9189_v20 = vld [vmem:[%s10517_s1 + $0x18] sm:$0xff]  }
  0x2b   : > { %v581_v17 = vrot.slane %v576_v58, 4  ;;  %v7477_v19 = vld [vmem:[%s9126_s23 + $0x50] sm:$0xf]  ;;  %v580_v22 = vsel %vm9138_vm6, %v572_v4, %v579_v8  ;;  %587 = vst [vmem:[#allocation2 + $0x78] sm:$0xf] %v586_v14  ;;  %v304_v23 = vor.u32 %v302_v60, %v301_v9  ;;  %v306_v24 = vrot.slane %v301_v9, 4 }
  0x2c   : > { %v8754_v21 = vld [vmem:[#allocation2 + $0x60] sm:$0xff]   ;;  %v331_v25 = vor.u32 %v329_v11, %v328_v10  ;;  %588 = vst.msk [vmem:[#allocation2 + $0x7c] sm:$0xf] %vm227_vm0, %v580_v22  ;;  %v332_v27 = vrot.slane %v328_v10, 4  ;;  %v336_v31 = vrot.slane %v334_v15, 7  ;;  %v596_v36 = vshrl.u32 %v7477_v19, 16 }
  0x2d   : > { %v8756_v26 = vld [vmem:[#allocation2 + $0x68] sm:$0xff]   ;;  %v590_v28 = vsel %vm9152_vm8, %v581_v17, %v589_v12  ;;  %8302 = vmatprep.mubr.msk.bf16.mxu1 %vm948_vm5, %v8754_v21  ;;  %v305_v29 = vsel %vm9138_vm6, %v297_v51, %v304_v23  ;;  %v320_v30 = vsel %vm9152_vm8, %v306_v24, %v319_v5  ;;  %v7478_v33 = vld [vmem:[%s9126_s23 + $0x54] sm:$0xf]  ;;  %v9207_v34 = vld [vmem:[%s10517_s1 + $0x20] sm:$0xff]   ;;  %v599_v37 = vshll.u32 %v7477_v19, 16 }
  0x2e   : > { %v346_v32 = vsel %vm9146_vm7, %v331_v25, %v345_v6  ;;  %591 = vst [vmem:[#allocation2 + $0x80] sm:$0x1] %v590_v28  ;;  %8303 = vmatmul.mubr.msk.bf16.vlgmr.msra.gmra.mrb[0].mxu1 %vm948_vm5, %v8756_v26  ;;  %v8758_v35 = vld [vmem:[#allocation2 + $0x8] sm:$0xff]   ;;  %316 = vst.msk [vmem:[#allocation2 + $0x10] sm:$0xf] %vm227_vm0, %v305_v29  ;;  %v604_v38 = vshrl.u32 %v7478_v33, 16  ;;  %v339_v39 = vor.u32 %v337_v16, %v336_v31 }
  0x2f   : > { %321 = vst [vmem:[#allocation2 + $0x14] sm:$0x1] %v320_v30  ;;  %347 = vst [vmem:[#allocation2 + $0x18] sm:$0xf] %v346_v32  ;;  %8327 = vmatpush3.bf16.msra.mxu1 %v9114_v2  ;;  %v615_v40 = vld [vmem:[#allocation2 + $0x84] sm:$0xf]  ;;  %8279 = vmatmul.mubr.msk.bf16.vlgmr.msra.gmra.mrb[0].mxu0 %vm948_vm5, %v8758_v35 }
  0x30   : > { %v607_v41 = vshll.u32 %v7478_v33, 16  ;;  %v341_v42 = vrot.slane %v336_v31, 4  ;;  %v349_v43 = vld [vmem:[#allocation2 + $0x20] sm:$0x1]  ;;  %v7461_v44 = vld [vmem:[%s9126_s23 + $0x10] sm:$0xf]  ;;  %8426 = vmatprep.subr.bf16.mxu1 %v9189_v20  ;;  %8377 = vmatpush3.bf16.msra.mxu0 %v9131_v3  ;;  %v340_v47 = vsel %vm9138_vm6, %v332_v27, %v339_v39 }
  0x31   : > { %v8759_v45 = vld [vmem:[#allocation2 + $0x70] sm:$0xff]   ;;  %v598_v46 = vrot.slane %v596_v36, 7  ;;  %v606_v48 = vrot.slane %v604_v38, 7  ;;  %v619_v2 = vld [vmem:[#allocation2 + $0x8c] sm:$0x1]  ;;  %v356_v50 = vshrl.u32 %v7461_v44, 16  ;;  %8476 = vmatprep.subr.bf16.mxu0 %v9207_v34 }
  0x32   : > { %v350_v49 = vsel %vm9152_vm8, %v341_v42, %v349_v43  ;;  %v7462_v51 = vld [vmem:[%s9126_s23 + $0x14] sm:$0xf]  ;;  %8306 = vmatprep.mubr.msk.bf16.mxu1 %vm948_vm5, %v8759_v45  ;;  %348 = vst.msk [vmem:[#allocation2 + $0x1c] sm:$0xf] %vm227_vm0, %v340_v47  ;;  %v359_v54 = vshll.u32 %v7461_v44, 16  ;;  %v9237_v16 = vld [vmem:[#allocation2] sm:$0xff]  }
  0x33   : > { %v601_v52 = vor.u32 %v599_v37, %v598_v46  ;;  %v602_v53 = vrot.slane %v598_v46, 4  ;;  %351 = vst [vmem:[#allocation2 + $0x20] sm:$0x1] %v350_v49  ;;  %v375_v55 = vld [vmem:[#allocation2 + $0x24] sm:$0xf]  ;;  %v364_v3 = vshrl.u32 %v7462_v51, 16  ;;  %v609_v57 = vor.u32 %v607_v41, %v606_v48 }
  0x34   : > { %v8760_v56 = vld [vmem:[#allocation2 + $0x78] sm:$0xff]   ;;  %v611_v58 = vrot.slane %v606_v48, 4  ;;  %v358_v59 = vrot.slane %v356_v50, 7  ;;  %v367_v60 = vshll.u32 %v7462_v51, 16  ;;  %v379_v63 = vld [vmem:[#allocation2 + $0x2c] sm:$0x1] }
  0x35   : > { %v616_v61 = vsel %vm9146_vm7, %v601_v52, %v615_v40  ;;  %v366_v62 = vrot.slane %v364_v3, 7  ;;  %v610_v1 = vsel %vm9138_vm6, %v602_v53, %v609_v57  ;;  %v7479_v10 = vld [vmem:[%s9126_s23 + $0x58] sm:$0xf]  ;;  %v7480_v12 = vld [vmem:[%s9126_s23 + $0x5c] sm:$0xf]  ;;  %v9248_v37 = vld [vmem:[#allocation2 + $0x8] sm:$0xff]  }
  0x36   : > { %v8762_v0 = vld [vmem:[#allocation2 + $0x10] sm:$0xff]   ;;  %617 = vst [vmem:[#allocation2 + $0x84] sm:$0xf] %v616_v61  ;;  %v620_v4 = vsel %vm9152_vm8, %v611_v58, %v619_v2  ;;  %v361_v5 = vor.u32 %v359_v54, %v358_v59  ;;  %v362_v6 = vrot.slane %v358_v59, 4  ;;  %8307 = vmatmul.mubr.msk.bf16.gmra.mrb[4].mxu1 %vm948_vm5, %v8760_v56  ;;  %618 = vst.msk [vmem:[#allocation2 + $0x88] sm:$0xf] %vm227_vm0, %v610_v1 }
  0x37   : > { %621 = vst [vmem:[#allocation2 + $0x8c] sm:$0x1] %v620_v4  ;;  %v369_v8 = vor.u32 %v367_v60, %v366_v62  ;;  %v371_v9 = vrot.slane %v366_v62, 4  ;;  %8282 = vmatprep.mubr.msk.bf16.mxu0 %vm948_vm5, %v8762_v0  ;;  %v626_v14 = vshrl.u32 %v7479_v10, 16  ;;  %v629_v15 = vshll.u32 %v7479_v10, 16 }
  0x38   : > { %v376_v11 = vsel %vm9146_vm7, %v361_v5, %v375_v55  ;;  %v634_v21 = vshrl.u32 %v7480_v12, 16  ;;  %v637_v22 = vshll.u32 %v7480_v12, 16  ;;  %v645_v23 = vld [vmem:[#allocation2 + $0x90] sm:$0xf]  ;;  %v7481_v24 = vld [vmem:[%s9126_s23 + $0x60] sm:$0xf] }
  0x39   : > { %377 = vst [vmem:[#allocation2 + $0x24] sm:$0xf] %v376_v11  ;;  %v370_v17 = vsel %vm9138_vm6, %v362_v6, %v369_v8  ;;  %v380_v19 = vsel %vm9152_vm8, %v371_v9, %v379_v63  ;;  %v8763_v25 = vld [vmem:[#allocation2 + $0x18] sm:$0xff]   ;;  %v628_v26 = vrot.slane %v626_v14, 7  ;;  %v656_v29 = vshrl.u32 %v7481_v24, 16 }
  0x3a   : > { %378 = vst.msk [vmem:[#allocation2 + $0x28] sm:$0xf] %vm227_vm0, %v370_v17  ;;  %381 = vst [vmem:[#allocation2 + $0x2c] sm:$0x1] %v380_v19  ;;  %v636_v27 = vrot.slane %v634_v21, 7  ;;  %v659_v30 = vshll.u32 %v7481_v24, 16  ;;  %8283 = vmatmul.mubr.msk.bf16.gmra.mrb[4].mxu0 %vm948_vm5, %v8763_v25 }
  0x3b   : > { %v649_v28 = vld [vmem:[#allocation2 + $0x98] sm:$0x1]  ;;  %v631_v31 = vor.u32 %v629_v15, %v628_v26  ;;  %v632_v32 = vrot.slane %v628_v26, 4  ;;  %v675_v33 = vld [vmem:[#allocation2 + $0x9c] sm:$0xf]  ;;  %v1474_v38 = vshll.u32 %v9237_v16, 16 }
  0x3c   : > { %v7463_v35 = vld [vmem:[%s9126_s23 + $0x18] sm:$0xf]  ;;  %v7464_v36 = vld [vmem:[%s9126_s23 + $0x1c] sm:$0xf]  ;;  %v639_v40 = vor.u32 %v637_v22, %v636_v27  ;;  %v641_v41 = vrot.slane %v636_v27, 4  ;;  %v9251_v42 = vrot.slane %v656_v29, 7 }
  0x3d   : > { %v8764_v39 = vld [vmem:[#allocation2 + $0x80] sm:$0xff]   ;;  %v386_v43 = vshrl.u32 %v7463_v35, 16  ;;  %v646_v45 = vsel %vm9146_vm7, %v631_v31, %v645_v23  ;;  %v389_v46 = vshll.u32 %v7463_v35, 16  ;;  %v405_v50 = vld [vmem:[#allocation2 + $0x30] sm:$0xf]  ;;  %v394_v52 = vshrl.u32 %v7464_v36, 16 }
  0x3e   : > { %v8765_v44 = vld [vmem:[#allocation2 + $0x88] sm:$0xff]   ;;  %8310 = vmatprep.mubr.msk.bf16.mxu1 %vm948_vm5, %v8764_v39  ;;  %v640_v47 = vsel %vm9138_vm6, %v632_v32, %v639_v40  ;;  %647 = vst [vmem:[#allocation2 + $0x90] sm:$0xf] %v646_v45  ;;  %v650_v48 = vsel %vm9152_vm8, %v641_v41, %v649_v28  ;;  %v661_v2 = vor.u32 %v659_v30, %v9251_v42  ;;  %v397_v53 = vshll.u32 %v7464_v36, 16  ;;  %v7465_v59 = vld [vmem:[%s9126_s23 + $0x20] sm:$0xf] }
  0x3f   : > { %v388_v49 = vrot.slane %v386_v43, 7  ;;  %8311 = vmatmul.mubr.msk.bf16.gmra.mrb[8].mxu1 %vm948_vm5, %v8765_v44  ;;  %648 = vst.msk [vmem:[#allocation2 + $0x94] sm:$0xf] %vm227_vm0, %v640_v47  ;;  %651 = vst [vmem:[#allocation2 + $0x98] sm:$0x1] %v650_v48  ;;  %v1472_v56 = vshrl.u32 %v9237_v16, 16 }
  0x40   : > { %v8766_v51 = vld [vmem:[#allocation2 + $0x20] sm:$0xff]   ;;  %v676_v55 = vsel %vm9146_vm7, %v661_v2, %v675_v33  ;;  %v396_v58 = vrot.slane %v394_v52, 7  ;;  %v9268_v60 = vrot.slane %v1474_v38, 1  ;;  %v1479_v61 = vshll.u32 %v9248_v37, 16  ;;  %v409_v63 = vld [vmem:[#allocation2 + $0x38] sm:$0x1] }
  0x41   : > { %v8767_v54 = vld [vmem:[#allocation2 + $0x28] sm:$0xff]   ;;  %v391_v3 = vor.u32 %v389_v46, %v388_v49  ;;  %8286 = vmatprep.mubr.msk.bf16.mxu0 %vm948_vm5, %v8766_v51  ;;  %677 = vst [vmem:[#allocation2 + $0x9c] sm:$0xf] %v676_v55  ;;  %v392_v57 = vrot.slane %v388_v49, 4  ;;  %v416_v0 = vshrl.u32 %v7465_v59, 16  ;;  %v419_v1 = vshll.u32 %v7465_v59, 16 }
  0x42   : > { %v7482_v4 = vld [vmem:[%s9126_s23 + $0x64] sm:$0xf]  ;;  %8287 = vmatmul.mubr.msk.bf16.gmra.mrb[8].mxu0 %vm948_vm5, %v8767_v54  ;;  %v399_v5 = vor.u32 %v397_v53, %v396_v58  ;;  %v401_v6 = vrot.slane %v396_v58, 4  ;;  %v435_v8 = vld [vmem:[#allocation2 + $0x3c] sm:$0xf]  ;;  %v662_v14 = vrot.slane %v9251_v42, 4 }
  0x43   : > { %v406_v62 = vsel %vm9146_vm7, %v391_v3, %v405_v50  ;;  %v664_v9 = vshrl.u32 %v7482_v4, 16  ;;  %v667_v10 = vshll.u32 %v7482_v4, 16  ;;  %v7483_v11 = vld [vmem:[%s9126_s23 + $0x68] sm:$0xf]  ;;  %v9276_v12 = vrot.slane %v416_v0, 7  ;;  %v8788_v16 = vld [vmem:[#allocation2 + $0x20] sm:$0xff]  }
  0x44   : > { %407 = vst [vmem:[#allocation2 + $0x30] sm:$0xf] %v406_v62  ;;  %v679_v15 = vld [vmem:[#allocation2 + $0xa4] sm:$0x1]  ;;  %v7484_v17 = vld [vmem:[%s9126_s23 + $0x6c] sm:$0xf]  ;;  %v400_v22 = vsel %vm9138_vm6, %v392_v57, %v399_v5  ;;  %v410_v23 = vsel %vm9152_vm8, %v401_v6, %v409_v63 }
  0x45   : > { %v686_v19 = vshrl.u32 %v7483_v11, 16  ;;  %v689_v21 = vshll.u32 %v7483_v11, 16  ;;  %v666_v24 = vrot.slane %v664_v9, 7  ;;  %v694_v25 = vshrl.u32 %v7484_v17, 16  ;;  %v705_v26 = vld [vmem:[#allocation2 + $0xa8] sm:$0xf] }
  0x46   : > { %v8768_v27 = vld [vmem:[#allocation2 + $0x90] sm:$0xff]   ;;  %408 = vst.msk [vmem:[#allocation2 + $0x34] sm:$0xf] %vm227_vm0, %v400_v22  ;;  %411 = vst [vmem:[#allocation2 + $0x38] sm:$0x1] %v410_v23  ;;  %v421_v28 = vor.u32 %v419_v1, %v9276_v12  ;;  %v697_v33 = vshll.u32 %v7484_v17, 16 }
  0x47   : > { %v688_v29 = vrot.slane %v686_v19, 7  ;;  %v669_v30 = vor.u32 %v667_v10, %v666_v24  ;;  %v671_v31 = vrot.slane %v666_v24, 4  ;;  %v696_v32 = vrot.slane %v694_v25, 7  ;;  %v7466_v35 = vld [vmem:[%s9126_s23 + $0x24] sm:$0xf]  ;;  %8314 = vmatprep.mubr.msk.bf16.mxu1 %vm948_vm5, %v8768_v27  ;;  %v9320_v24 = vld [vmem:[#allocation2 + $0x10] sm:$0xff]  }
  0x48   : > { %v8769_v36 = vld [vmem:[#allocation2 + $0x98] sm:$0xff]   ;;  %v436_v38 = vsel %vm9146_vm7, %v421_v28, %v435_v8  ;;  %v422_v41 = vrot.slane %v9276_v12, 4  ;;  %v424_v45 = vshrl.u32 %v7466_v35, 16  ;;  %v7467_v46 = vld [vmem:[%s9126_s23 + $0x28] sm:$0xf]  ;;  %v427_v48 = vshll.u32 %v7466_v35, 16 }
  0x49   : > { %v691_v39 = vor.u32 %v689_v21, %v688_v29  ;;  %v692_v40 = vrot.slane %v688_v29, 4  ;;  %437 = vst [vmem:[#allocation2 + $0x3c] sm:$0xf] %v436_v38  ;;  %v670_v42 = vsel %vm9138_vm6, %v662_v14, %v669_v30  ;;  %v680_v43 = vsel %vm9152_vm8, %v671_v31, %v679_v15  ;;  %8315 = vmatmul.mubr.msk.bf16.gmra.mrb[12].mxu1 %vm948_vm5, %v8769_v36  ;;  %v439_v2 = vld [vmem:[#allocation2 + $0x44] sm:$0x1] }
  0x4a   : > { %v699_v44 = vor.u32 %v697_v33, %v696_v32  ;;  %678 = vst.msk [vmem:[#allocation2 + $0xa0] sm:$0xf] %vm227_vm0, %v670_v42  ;;  %681 = vst [vmem:[#allocation2 + $0xa4] sm:$0x1] %v680_v43  ;;  %v7468_v49 = vld [vmem:[%s9126_s23 + $0x2c] sm:$0xf] }
  0x4b   : > { %v706_v47 = vsel %vm9146_vm7, %v691_v39, %v705_v26  ;;  %v446_v50 = vshrl.u32 %v7467_v46, 16  ;;  %v426_v52 = vrot.slane %v424_v45, 7  ;;  %v449_v53 = vshll.u32 %v7467_v46, 16  ;;  %v465_v55 = vld [vmem:[#allocation2 + $0x48] sm:$0xf] }
  0x4c   : > { %v700_v51 = vsel %vm9138_vm6, %v692_v40, %v699_v44  ;;  %707 = vst [vmem:[#allocation2 + $0xa8] sm:$0xf] %v706_v47  ;;  %v454_v54 = vshrl.u32 %v7468_v49, 16  ;;  %v457_v57 = vshll.u32 %v7468_v49, 16  ;;  %v701_v58 = vrot.slane %v696_v32, 4 }
  0x4d   : > { %708 = vst.msk [vmem:[#allocation2 + $0xac] sm:$0xf] %vm227_vm0, %v700_v51  ;;  %v448_v3 = vrot.slane %v446_v50, 7  ;;  %v709_v59 = vld [vmem:[#allocation2 + $0xb0] sm:$0x1]  ;;  %v9306_v62 = vrot.slane %v1479_v61, 1  ;;  %v429_v0 = vor.u32 %v427_v48, %v426_v52 }
  0x4e   : > { %v8770_v63 = vld [vmem:[#allocation2 + $0x30] sm:$0xff]   ;;  %v431_v1 = vrot.slane %v426_v52, 4  ;;  %v456_v6 = vrot.slane %v454_v54, 7  ;;  %v710_v8 = vsel %vm9152_vm8, %v701_v58, %v709_v59  ;;  %v739_v27 = vld [vmem:[#allocation2 + $0xbc] sm:$0x1]  ;;  %v1487_v51 = vshll.u32 %v9320_v24, 16 }
  0x4f   : > { %v451_v4 = vor.u32 %v449_v53, %v448_v3  ;;  %v452_v5 = vrot.slane %v448_v3, 4  ;;  %v7485_v9 = vld [vmem:[%s9126_s23 + $0x70] sm:$0xf]  ;;  %8290 = vmatprep.mubr.msk.bf16.mxu0 %vm948_vm5, %v8770_v63  ;;  %v430_v10 = vsel %vm9138_vm6, %v422_v41, %v429_v0  ;;  %711 = vst [vmem:[#allocation2 + $0xb0] sm:$0x1] %v710_v8  ;;  %v8786_v3 = vld [vmem:[#allocation2 + $0x18] sm:$0xff]  }
  0x50   : > { %v440_v11 = vsel %vm9152_vm8, %v431_v1, %v439_v2  ;;  %v716_v61 = vshrl.u32 %v7485_v9, 16  ;;  %v719_v12 = vshll.u32 %v7485_v9, 16  ;;  %v7486_v14 = vld [vmem:[%s9126_s23 + $0x74] sm:$0xf]  ;;  %v8771_v15 = vld [vmem:[#allocation2 + $0x38] sm:$0xff]   ;;  %v459_v17 = vor.u32 %v457_v57, %v456_v6  ;;  %v8785_v63 = vld [vmem:[#allocation2 + $0x8] sm:$0xff]  }
  0x51   : > { %438 = vst.msk [vmem:[#allocation2 + $0x40] sm:$0xf] %vm227_vm0, %v430_v10  ;;  %441 = vst [vmem:[#allocation2 + $0x44] sm:$0x1] %v440_v11  ;;  %v466_v19 = vsel %vm9146_vm7, %v451_v4, %v465_v55  ;;  %v735_v21 = vld [vmem:[#allocation2 + $0xb4] sm:$0xf]  ;;  %8291 = vmatmul.mubr.msk.bf16.gmra.mrb[12].mxu0 %vm948_vm5, %v8771_v15  ;;  %v1477_v4 = vor.u32 %v9268_v60, %v1472_v56 }
  0x52   : > { %v724_v22 = vshrl.u32 %v7486_v14, 16  ;;  %v727_v23 = vshll.u32 %v7486_v14, 16  ;;  %v8772_v25 = vld [vmem:[#allocation2 + $0xa0] sm:$0xff]   ;;  %467 = vst [vmem:[#allocation2 + $0x48] sm:$0xf] %v466_v19  ;;  %v718_v26 = vrot.slane %v716_v61, 7  ;;  %v460_v28 = vsel %vm9138_vm6, %v452_v5, %v459_v17 }
  0x53   : > { %v461_v30 = vrot.slane %v456_v6, 4  ;;  %v469_v31 = vld [vmem:[#allocation2 + $0x50] sm:$0x1]  ;;  %8318 = vmatprep.mubr.msk.bf16.mxu1 %vm948_vm5, %v8772_v25  ;;  %468 = vst.msk [vmem:[#allocation2 + $0x4c] sm:$0xf] %vm227_vm0, %v460_v28  ;;  %v1483_v59 = vshrl.u32 %v9248_v37, 16  ;;  %v1482_v56 = vsel %vm1470_vm9, %v1477_v4, %v9306_v62 }
  0x54   : > { %v726_v29 = vrot.slane %v724_v22, 7  ;;  %v8773_v32 = vld [vmem:[#allocation2 + $0xa8] sm:$0xff]   ;;  %v721_v33 = vor.u32 %v719_v12, %v718_v26  ;;  %v722_v35 = vrot.slane %v718_v26, 4  ;;  %v7469_v36 = vld [vmem:[%s9126_s23 + $0x30] sm:$0xf]  ;;  %v1489_v5 = vrot.slane %v1487_v51, 1 }
  0x55   : > { %v470_v40 = vsel %vm9152_vm8, %v461_v30, %v469_v31  ;;  %v476_v41 = vshrl.u32 %v7469_v36, 16  ;;  %v7470_v42 = vld [vmem:[%s9126_s23 + $0x34] sm:$0xf]  ;;  %8319 = vmatmul.mubr.msk.bf16.gmra.mrb[16].mxu1 %vm948_vm5, %v8773_v32  ;;  %v479_v44 = vshll.u32 %v7469_v36, 16  ;;  %v499_v50 = vld [vmem:[#allocation2 + $0x5c] sm:$0x1]  ;;  %v1485_v15 = vor.u32 %v1483_v59, %v9306_v62 }
  0x56   : > { %v729_v38 = vor.u32 %v727_v23, %v726_v29  ;;  %v731_v39 = vrot.slane %v726_v29, 4  ;;  %v736_v43 = vsel %vm9146_vm7, %v721_v33, %v735_v21  ;;  %471 = vst [vmem:[#allocation2 + $0x50] sm:$0x1] %v470_v40  ;;  %v495_v45 = vld [vmem:[#allocation2 + $0x54] sm:$0xf]  ;;  %v484_v46 = vshrl.u32 %v7470_v42, 16 }
  0x57   : > { %v487_v47 = vshll.u32 %v7470_v42, 16  ;;  %737 = vst [vmem:[#allocation2 + $0xb4] sm:$0xf] %v736_v43  ;;  %v478_v49 = vrot.slane %v476_v41, 7  ;;  %v8784_v9 = vld [vmem:[#allocation2] sm:$0xfe]  }
  0x58   : > { %v730_v48 = vsel %vm9138_vm6, %v722_v35, %v729_v38  ;;  %v740_v2 = vsel %vm9152_vm8, %v731_v39, %v739_v27  ;;  %v8774_v52 = vld [vmem:[#allocation2 + $0x40] sm:$0xff]   ;;  %v486_v53 = vrot.slane %v484_v46, 7  ;;  %v1491_v10 = vshrl.u32 %v9320_v24, 16  ;;  %v8787_v14 = vld [vmem:[#allocation2 + $0x10] sm:$0xff]   ;;  %v8790_v17 = vld [vmem:[#allocation2 + $0x18] sm:$0xff]  }
  0x59   : > { %738 = vst.msk [vmem:[#allocation2 + $0xb8] sm:$0xf] %vm227_vm0, %v730_v48  ;;  %741 = vst [vmem:[#allocation2 + $0xbc] sm:$0x1] %v740_v2  ;;  %v481_v54 = vor.u32 %v479_v44, %v478_v49  ;;  %v482_v55 = vrot.slane %v478_v49, 4  ;;  %8294 = vmatprep.mubr.msk.bf16.mxu0 %vm948_vm5, %v8774_v52  ;;  %v1495_v60 = vshll.u32 %v8786_v3, 16  ;;  %v1490_v27 = vsel %vm1470_vm9, %v1485_v15, %v1489_v5 }
  0x5a   : > { %v489_v57 = vor.u32 %v487_v47, %v486_v53  ;;  %v491_v58 = vrot.slane %v486_v53, 4  ;;  %v8775_v0 = vld [vmem:[#allocation2 + $0x48] sm:$0xff]   ;;  %v2290_v61 = vrot.slane %v8784_v9, 1  ;;  %v2291_v12 = vrot.slane %v8785_v63, 1  ;;  %v8793_v35 = vld [vmem:[#allocation2 + $0x30] sm:$0xff]   ;;  %v8792_v38 = vld [vmem:[#allocation2 + $0x20] sm:$0xff]  }
  0x5b   : > { %v496_v1 = vsel %vm9146_vm7, %v481_v54, %v495_v45  ;;  %8295 = vmatmul.mubr.msk.bf16.gmra.mrb[16].mxu0 %vm948_vm5, %v8775_v0  ;;  %v8791_v19 = vld [vmem:[#allocation2 + $0x28] sm:$0xff]   ;;  %v1493_v22 = vor.u32 %v1491_v10, %v1489_v5  ;;  %v1497_v23 = vrot.slane %v1495_v60, 1  ;;  %v1503_v26 = vshll.u32 %v8788_v16, 16  ;;  %v8795_v42 = vld [vmem:[#allocation2 + $0x38] sm:$0xff]   ;;  %v8797_v52 = vld [vmem:[#allocation2 + $0x40] sm:$0xff]  }
  0x5c   : > { %497 = vst [vmem:[#allocation2 + $0x54] sm:$0xf] %v496_v1  ;;  %v490_v6 = vsel %vm9138_vm6, %v482_v55, %v489_v57  ;;  %v500_v8 = vsel %vm9152_vm8, %v491_v58, %v499_v50  ;;  %v2292_v25 = vsel %vm2289_vm10, %v2290_v61, %v2291_v12  ;;  %v2293_v28 = vrot.slane %v8787_v14, 1  ;;  %v8794_v44 = vld [vmem:[#allocation2 + $0x28] sm:$0xff]   ;;  %v8796_v54 = vld [vmem:[#allocation2 + $0x30] sm:$0xff]   ;;  %v8798_v59 = vld [vmem:[#allocation2 + $0x38] sm:$0xff]  }
  0x5d   : > { %498 = vst.msk [vmem:[#allocation2 + $0x58] sm:$0xf] %vm227_vm0, %v490_v6  ;;  %501 = vst [vmem:[#allocation2 + $0x5c] sm:$0x1] %v500_v8  ;;  %v1499_v29 = vshrl.u32 %v8786_v3, 16  ;;  %v1498_v62 = vsel %vm1470_vm9, %v1493_v22, %v1497_v23  ;;  %v1507_v30 = vshrl.u32 %v8788_v16, 16 }
  0x5e   : > { %v8776_v37 = vld [vmem:[#allocation2 + $0xb0] sm:$0xff]   ;;  %v1511_v31 = vshll.u32 %v8791_v19, 16  ;;  %v2295_v32 = vrot.slane %v8790_v17, 1  ;;  %v1505_v33 = vrot.slane %v1503_v26, 1  ;;  %v2294_v39 = vsel %vm2289_vm10, %v2291_v12, %v2293_v28  ;;  %v8800_v61 = vld [vmem:[#allocation2 + $0x40] sm:$0xff]   ;;  %v8802_v15 = vld [vmem:[#allocation2 + $0x48] sm:$0xff]  }
  0x5f   : > { %8322 = vmatprep.mubr.msk.bf16.mxu1 %vm948_vm5, %v8776_v37  ;;  %v1501_v36 = vor.u32 %v1499_v29, %v1497_v23  ;;  %v1519_v45 = vshll.u32 %v8793_v35, 16  ;;  %v2297_v47 = vrot.slane %v8792_v38, 1  ;;  %v1515_v48 = vshrl.u32 %v8791_v19, 16  ;;  %v8851_v18 = vld [vmem:[#allocation2 + $0x4c] sm:$0xff]  }
  0x60   : > { %v8777_v11 = vld [vmem:[#allocation2 + $0xb8] sm:$0xff]   ;;  %v1509_v40 = vor.u32 %v1507_v30, %v1505_v33  ;;  %v1513_v41 = vrot.slane %v1511_v31, 1  ;;  %v2296_v43 = vsel %vm2289_vm10, %v2293_v28, %v2295_v32  ;;  %v1523_v2 = vshrl.u32 %v8793_v35, 16 }
  0x61   : > { %8323 = vmatmul.mubr.msk.bf16.gmra.mrb[20].mxu1 %vm948_vm5, %v8777_v11  ;;  %v1506_v46 = vsel %vm1470_vm9, %v1501_v36, %v1505_v33  ;;  %v1527_v49 = vshll.u32 %v8795_v42, 16  ;;  %v2299_v50 = vrot.slane %v8794_v44, 1  ;;  %v1521_v51 = vrot.slane %v1519_v45, 1  ;;  %v8807_v33 = vld [vmem:[#allocation2 + $0x68] sm:$0xff]  }
  0x62   : > { %8328 = vmatprep.mubr.msk.bf16.mxu1 %vm948_vm5, %v1482_v56  ;;  %v1517_v53 = vor.u32 %v1515_v48, %v1513_v41  ;;  %v2298_v55 = vsel %vm2289_vm10, %v2295_v32, %v2297_v47  ;;  %v1535_v63 = vshll.u32 %v8797_v52, 16  ;;  %v2301_v1 = vrot.slane %v8796_v54, 1  ;;  %v8811_v48 = vld [vmem:[#allocation2 + $0x78] sm:$0xff]  }
  0x63   : > { %v8778_v21 = vld [vmem:[#allocation2 + $0x50] sm:$0xff]   ;;  %v1525_v3 = vor.u32 %v1523_v2, %v1521_v51  ;;  %v1529_v57 = vrot.slane %v1527_v49, 1  ;;  %v2300_v58 = vsel %vm2289_vm10, %v2297_v47, %v2299_v50  ;;  %v1531_v4 = vshrl.u32 %v8795_v42, 16 }
  0x64   : > { %v8779_v24 = vld [vmem:[#allocation2 + $0x58] sm:$0xff]   ;;  %8298 = vmatprep.mubr.msk.bf16.mxu0 %vm948_vm5, %v8778_v21  ;;  %v1522_v0 = vsel %vm1470_vm9, %v1517_v53, %v1521_v51  ;;  %v1539_v6 = vshrl.u32 %v8797_v52, 16  ;;  %v2303_v37 = vrot.slane %v8798_v59, 1  ;;  %v1537_v9 = vrot.slane %v1535_v63, 1  ;;  %v8801_v10 = vld [vmem:[#allocation2 + $0x50] sm:$0xff]   ;;  %v8808_v51 = vld [vmem:[#allocation2 + $0x60] sm:$0xff]  }
  0x65   : > { %8299 = vmatmul.mubr.msk.bf16.gmra.mrb[20].mxu0 %vm948_vm5, %v8779_v24  ;;  %v1530_v5 = vsel %vm1470_vm9, %v1525_v3, %v1529_v57  ;;  %v1533_v16 = vor.u32 %v1531_v4, %v1529_v57  ;;  %v2302_v11 = vsel %vm2289_vm10, %v2299_v50, %v2301_v1  ;;  %v8803_v12 = vld [vmem:[#allocation2 + $0x58] sm:$0xff]   ;;  %v1551_v19 = vshll.u32 %v8801_v10, 16  ;;  %v8809_v47 = vld [vmem:[#allocation2 + $0x70] sm:$0xff]   ;;  %v8810_v52 = vld [vmem:[#allocation2 + $0x68] sm:$0xff]  }
  0x66   : > { %8378 = vmatprep.mubr.msk.bf16.mxu0 %vm948_vm5, %v2292_v25  ;;  %v1541_v56 = vor.u32 %v1539_v6, %v1537_v9  ;;  %v2304_v14 = vsel %vm2289_vm10, %v2301_v1, %v2303_v37  ;;  %v2305_v23 = vrot.slane %v8800_v61, 1  ;;  %v1555_v24 = vshrl.u32 %v8801_v10, 16  ;;  %v8806_v38 = vld [vmem:[#allocation2 + $0x58] sm:$0xff]   ;;  %v8815_v10 = vld [vmem:[#allocation2 + $0x88] sm:$0xff]   ;;  %v765_v61 = vld [vmem:[#allocation2 + $0xc0] sm:$0xf] }
  0x67   : > { %v1538_v21 = vsel %vm1470_vm9, %v1533_v16, %v1537_v9  ;;  %v1559_v25 = vshll.u32 %v8803_v12, 16  ;;  %v2307_v26 = vrot.slane %v8802_v15, 1  ;;  %v1553_v28 = vrot.slane %v1551_v19, 1  ;;  %v7487_v6 = vld [vmem:[%s9126_s23 + $0x78] sm:$0xf]  ;;  %v9418_v15 = vld [vmem:[%s10517_s1 + $0x28] sm:$0xff]  }
  0x68   : > { %v2306_v30 = vsel %vm2289_vm10, %v2303_v37, %v2305_v23  ;;  %v1575_v44 = vshll.u32 %v8807_v33, 16  ;;  %v2311_v45 = vrot.slane %v8806_v38, 1  ;;  %v1583_v54 = vshll.u32 %v8809_v47, 16  ;;  %v8814_v9 = vld [vmem:[#allocation2 + $0x78] sm:$0xff]   ;;  %v8818_v38 = vld [vmem:[#allocation2 + $0x88] sm:$0xff]  }
  0x69   : > { %8329 = vmatmul.mubr.msk.bf16.vlgmr.msra.gmra.mrb[24].mxu1 %vm948_vm5, %v1490_v27  ;;  %v8805_v27 = vld [vmem:[#allocation2 + $0x60] sm:$0xff]   ;;  %v1557_v31 = vor.u32 %v1555_v24, %v1553_v28  ;;  %v1561_v32 = vrot.slane %v1559_v25, 1  ;;  %v2308_v35 = vsel %vm2289_vm10, %v2305_v23, %v2307_v26  ;;  %v1579_v57 = vshrl.u32 %v8807_v33, 16 }
  0x6a   : > { %8427 = vmatpush3.bf16.msra.mxu1 %v9189_v20  ;;  %8332 = vmatprep.mubr.msk.bf16.mxu1 %vm948_vm5, %v1498_v62  ;;  %v1514_v20 = vsel %vm1470_vm9, %v1509_v40, %v1513_v41  ;;  %v8804_v62 = vld [vmem:[#allocation2 + $0x50] sm:$0xff]   ;;  %v1567_v36 = vshll.u32 %v8805_v27, 16  ;;  %v1563_v41 = vshrl.u32 %v8803_v12, 16  ;;  %v1577_v50 = vrot.slane %v1575_v44, 1 }
  0x6b   : > { %v2309_v40 = vrot.slane %v8804_v62, 1  ;;  %v1562_v42 = vsel %vm1470_vm9, %v1557_v31, %v1561_v32  ;;  %v2313_v59 = vrot.slane %v8808_v51, 1  ;;  %v1587_v63 = vshrl.u32 %v8809_v47, 16  ;;  %8526 = vmatprep.subr.bf16.mxu1 %v9418_v15  ;;  %v8821_v47 = vld [vmem:[#allocation2 + $0xa0] sm:$0xff]  }
  0x6c   : > { %v1585_v1 = vrot.slane %v1583_v54, 1  ;;  %v746_v16 = vshrl.u32 %v7487_v6, 16  ;;  %v1607_v25 = vshll.u32 %v8815_v10, 16  ;;  %v1631_v54 = vshll.u32 %v8821_v47, 16 }
  0x6d   : > { %8379 = vmatmul.mubr.msk.bf16.vlgmr.msra.gmra.mrb[24].mxu0 %vm948_vm5, %v2294_v39  ;;  %v2310_v2 = vsel %vm2289_vm10, %v2307_v26, %v2309_v40  ;;  %v2312_v53 = vsel %vm2289_vm10, %v2309_v40, %v2311_v45  ;;  %v2319_v26 = vrot.slane %v8814_v9, 1 }
  0x6e   : > { %8477 = vmatpush3.bf16.msra.mxu0 %v9207_v34  ;;  %8382 = vmatprep.mubr.msk.bf16.mxu0 %vm948_vm5, %v2296_v43  ;;  %v8799_v34 = vld [vmem:[#allocation2 + $0x48] sm:$0xff]   ;;  %v1571_v43 = vshrl.u32 %v8805_v27, 16  ;;  %v1609_v33 = vrot.slane %v1607_v25, 1 }
  0x6f   : > { %v1543_v8 = vshll.u32 %v8799_v34, 16  ;;  %v1547_v17 = vshrl.u32 %v8799_v34, 16  ;;  %v8813_v34 = vld [vmem:[#allocation2 + $0x80] sm:$0xff]  }
  0x70   : > { %v1599_v37 = vshll.u32 %v8813_v34, 16  ;;  %v1603_v24 = vshrl.u32 %v8813_v34, 16 }
  0x71   : > { %8333 = vmatmul.mubr.msk.bf16.gmra.mrb[28].mxu1 %vm948_vm5, %v1506_v46  ;;  %v1545_v60 = vrot.slane %v1543_v8, 1  ;;  %v1569_v46 = vrot.slane %v1567_v36, 1  ;;  %v1581_v8 = vor.u32 %v1579_v57, %v1577_v50  ;;  %v9434_v36 = vld [vmem:[%s10517_s1 + $0x30] sm:$0xff]  }
  0x72   : > { %8336 = vmatprep.mubr.msk.bf16.mxu1 %vm948_vm5, %v1514_v20  ;;  %v1565_v20 = vor.u32 %v1563_v41, %v1561_v32  ;;  %8576 = vmatprep.subr.bf16.mxu0 %v9434_v36 }
  0x73   : > { %v1546_v22 = vsel %vm1470_vm9, %v1541_v56, %v1545_v60  ;;  %v1549_v29 = vor.u32 %v1547_v17, %v1545_v60  ;;  %v1573_v49 = vor.u32 %v1571_v43, %v1569_v46  ;;  %v2314_v56 = vsel %vm2289_vm10, %v2311_v45, %v2313_v59 }
  0x74   : > { %v1570_v3 = vsel %vm1470_vm9, %v1565_v20, %v1569_v46  ;;  %v1589_v60 = vor.u32 %v1587_v63, %v1585_v1  ;;  %v1586_v17 = vsel %vm1470_vm9, %v1581_v8, %v1585_v1  ;;  %v2323_v46 = vrot.slane %v8818_v38, 1  ;;  %v8826_v8 = vld [vmem:[#allocation2 + $0xa8] sm:$0xff]  }
  0x75   : > { %8383 = vmatmul.mubr.msk.bf16.gmra.mrb[28].mxu0 %vm948_vm5, %v2298_v55  ;;  %v1554_v39 = vsel %vm1470_vm9, %v1549_v29, %v1553_v28  ;;  %v1591_v55 = vshll.u32 %v8811_v48, 16  ;;  %v1601_v28 = vrot.slane %v1599_v37, 1  ;;  %v8817_v29 = vld [vmem:[#allocation2 + $0x90] sm:$0xff]   ;;  %v1633_v1 = vrot.slane %v1631_v54, 1 }
  0x76   : > { %8386 = vmatprep.mubr.msk.bf16.mxu0 %vm948_vm5, %v2300_v58  ;;  %v1578_v58 = vsel %vm1470_vm9, %v1573_v49, %v1577_v50  ;;  %v1615_v40 = vshll.u32 %v8817_v29, 16  ;;  %v1619_v44 = vshrl.u32 %v8817_v29, 16  ;;  %v8823_v49 = vld [vmem:[#allocation2 + $0xa8] sm:$0xff]   ;;  %v8828_v29 = vld [vmem:[#allocation2 + $0xb0] sm:$0xff]  }
  0x77   : > { %v1593_v4 = vrot.slane %v1591_v55, 1  ;;  %v1605_v32 = vor.u32 %v1603_v24, %v1601_v28  ;;  %v8822_v55 = vld [vmem:[#allocation2 + $0x98] sm:$0xff]   ;;  %v2333_v38 = vrot.slane %v8828_v29, 1 }
  0x78   : > { %v1617_v20 = vrot.slane %v1615_v40, 1  ;;  %v8836_v40 = vld [vmem:[#allocation2 + $0x14] sm:$0xff]  }
  0x79   : > { %8337 = vmatmul.mubr.msk.bf16.gmra.mrb[32].mxu1 %vm948_vm5, %v1522_v0  ;;  %v2315_v0 = vrot.slane %v8810_v52, 1  ;;  %v1594_v23 = vsel %vm1470_vm9, %v1589_v60, %v1593_v4  ;;  %v1610_v43 = vsel %vm1470_vm9, %v1605_v32, %v1609_v33 }
  0x7a   : > { %8340 = vmatprep.mubr.msk.bf16.mxu1 %vm948_vm5, %v1530_v5  ;;  %v8812_v5 = vld [vmem:[#allocation2 + $0x70] sm:$0xff]   ;;  %v1621_v51 = vor.u32 %v1619_v44, %v1617_v20 }
  0x7b   : > { %v2316_v12 = vsel %vm2289_vm10, %v2313_v59, %v2315_v0  ;;  %v2317_v19 = vrot.slane %v8812_v5, 1  ;;  %v1639_v59 = vshll.u32 %v8823_v49, 16 }
  0x7d   : > { %8387 = vmatmul.mubr.msk.bf16.gmra.mrb[32].mxu0 %vm948_vm5, %v2302_v11  ;;  %v749_v11 = vshll.u32 %v7487_v6, 16  ;;  %v2318_v31 = vsel %vm2289_vm10, %v2315_v0, %v2317_v19  ;;  %v2320_v13 = vsel %vm2289_vm10, %v2317_v19, %v2319_v26  ;;  %v2327_v0 = vrot.slane %v8822_v55, 1  ;;  %v8824_v6 = vld [vmem:[#allocation2 + $0xa0] sm:$0xff]  }
  0x7e   : > { %8390 = vmatprep.mubr.msk.bf16.mxu0 %vm948_vm5, %v2304_v14  ;;  %v9413_v14 = vrot.slane %v746_v16, 7  ;;  %v8827_v16 = vld [vmem:[#allocation2 + $0xb8] sm:$0xff]   ;;  %v2331_v19 = vrot.slane %v8826_v8, 1 }
  0x7f   : > { %v8845_v8 = vld [vmem:[#allocation2 + $0x34] sm:$0xff]  }
  0x81   : > { %8341 = vmatmul.mubr.msk.bf16.gmra.mrb[36].mxu1 %vm948_vm5, %v1538_v21  ;;  %v1595_v21 = vshrl.u32 %v8811_v48, 16 }
  0x82   : > { %8344 = vmatprep.mubr.msk.bf16.mxu1 %vm948_vm5, %v1546_v22  ;;  %v751_v22 = vor.u32 %v749_v11, %v9413_v14 }
  0x83   : > { %v1597_v62 = vor.u32 %v1595_v21, %v1593_v4  ;;  %v8825_v4 = vld [vmem:[#allocation2 + $0xb0] sm:$0xff]  }
  0x84   : > { %v766_v27 = vsel %vm9146_vm7, %v751_v22, %v765_v61  ;;  %v2329_v61 = vrot.slane %v8824_v6, 1  ;;  %v1651_v21 = vshrl.u32 %v8825_v4, 16  ;;  %v1655_v22 = vshll.u32 %v8827_v16, 16 }
  0x85   : > { %8391 = vmatmul.mubr.msk.bf16.gmra.mrb[36].mxu0 %vm948_vm5, %v2306_v30  ;;  %767 = vst [vmem:[#allocation2 + $0xc0] sm:$0xf] %v766_v27  ;;  %v8816_v30 = vld [vmem:[#allocation2 + $0x80] sm:$0xff]   ;;  %v1602_v41 = vsel %vm1470_vm9, %v1597_v62, %v1601_v28  ;;  %v8830_v62 = vld [vmem:[#allocation2 + $0xb8] sm:$0xff]  }
  0x86   : > { %8394 = vmatprep.mubr.msk.bf16.mxu0 %vm948_vm5, %v2308_v35  ;;  %v8819_v35 = vld [vmem:[#allocation2 + $0x98] sm:$0xff]   ;;  %v1657_v28 = vrot.slane %v1655_v22, 1 }
  0x87   : > { %v1623_v45 = vshll.u32 %v8819_v35, 16  ;;  %v1627_v34 = vshrl.u32 %v8819_v35, 16 }
  0x89   : > { %8345 = vmatmul.mubr.msk.bf16.gmra.mrb[40].mxu1 %vm948_vm5, %v1554_v39  ;;  %v1611_v39 = vshrl.u32 %v8815_v10, 16  ;;  %v1625_v52 = vrot.slane %v1623_v45, 1  ;;  %v1641_v10 = vrot.slane %v1639_v59, 1  ;;  %v2334_v45 = vsel %vm2289_vm10, %v2331_v19, %v2333_v38 }
  0x8a   : > { %8348 = vmatprep.mubr.msk.bf16.mxu1 %vm948_vm5, %v1562_v42  ;;  %v2321_v42 = vrot.slane %v8816_v30, 1  ;;  %v2332_v30 = vsel %vm2289_vm10, %v2329_v61, %v2331_v19 }
  0x8b   : > { %v1613_v48 = vor.u32 %v1611_v39, %v1609_v33  ;;  %v1626_v63 = vsel %vm1470_vm9, %v1621_v51, %v1625_v52  ;;  %v1629_v5 = vor.u32 %v1627_v34, %v1625_v52  ;;  %v1659_v33 = vshrl.u32 %v8827_v16, 16  ;;  %v8841_v52 = vld [vmem:[#allocation2 + $0x24] sm:$0xff]  }
  0x8c   : > { %v2322_v50 = vsel %vm2289_vm10, %v2319_v26, %v2321_v42  ;;  %v8829_v24 = vld [vmem:[#allocation2 + $0xc0] ss:$0 sps:$4 sm:$0x11]   ;;  %v2330_v26 = vsel %vm2289_vm10, %v2327_v0, %v2329_v61  ;;  %v2335_v39 = vrot.slane %v8830_v62, 1  ;;  %v3603_v34 = vshll.u32 %v8841_v52, 16 }
  0x8d   : > { %8395 = vmatmul.mubr.msk.bf16.gmra.mrb[40].mxu0 %vm948_vm5, %v2310_v2  ;;  %v8820_v2 = vld [vmem:[#allocation2 + $0x90] sm:$0xff]   ;;  %v1634_v60 = vsel %vm1470_vm9, %v1629_v5, %v1633_v1  ;;  %v1663_v35 = vshll.u32 %v8829_v24, 16  ;;  %v8831_v44 = vld [vmem:[#allocation2 + $0xc0] ss:$0 sps:$4 sm:$0x11]   ;;  %v3607_v61 = vshrl.u32 %v8841_v52, 16 }
  0x8e   : > { %8398 = vmatprep.mubr.msk.bf16.mxu0 %vm948_vm5, %v2312_v53  ;;  %v2324_v53 = vsel %vm2289_vm10, %v2321_v42, %v2323_v46  ;;  %v2325_v57 = vrot.slane %v8820_v2, 1  ;;  %v1661_v42 = vor.u32 %v1659_v33, %v1657_v28  ;;  %v8838_v2 = vld [vmem:[#allocation2 + $0x1c] sm:$0xff]   ;;  %v2337_v51 = vrot.slane %v8831_v44, 1  ;;  %v8853_v44 = vld [vmem:[#allocation2 + $0x54] sm:$0xff]   ;;  %v8850_v52 = vld [vmem:[#allocation2 + $0x4c] sm:$0xff]  }
  0x8f   : > { %v3595_v55 = vshll.u32 %v8838_v2, 16  ;;  %v3605_v6 = vrot.slane %v3603_v34, 1  ;;  %v8857_v34 = vld [vmem:[#allocation2 + $0x64] sm:$0xff]  }
  0x90   : > { %v2326_v37 = vsel %vm2289_vm10, %v2323_v46, %v2325_v57  ;;  %v2328_v11 = vsel %vm2289_vm10, %v2325_v57, %v2327_v0  ;;  %v2336_v46 = vsel %vm2289_vm10, %v2333_v38, %v2335_v39  ;;  %v3591_v57 = vshrl.u32 %v8836_v40, 16  ;;  %v8837_v0 = vld [vmem:[#allocation2 + $0x1c] sm:$0xff]  }
  0x91   : > { %8349 = vmatmul.mubr.msk.bf16.gmra.mrb[44].mxu1 %vm948_vm5, %v1570_v3  ;;  %v1618_v3 = vsel %vm1470_vm9, %v1613_v48, %v1617_v20  ;;  %v3587_v20 = vshll.u32 %v8836_v40, 16  ;;  %v9507_v40 = vld [vmem:[%s10517_s1 + $0x40] sm:$0xff]  }
  0x92   : > { %8352 = vmatprep.mubr.msk.bf16.mxu1 %vm948_vm5, %v1578_v58  ;;  %v1635_v58 = vshrl.u32 %v8821_v47, 16 }
  0x93   : > { %v3589_v54 = vrot.slane %v3587_v20, 1  ;;  %v8848_v20 = vld [vmem:[#allocation2 + $0x44] sm:$0xff]  }
  0x94   : > { %v1637_v9 = vor.u32 %v1635_v58, %v1633_v1  ;;  %v8834_v58 = vld [vmem:[#allocation2 + $0x14] sm:$0xff]   ;;  %v3597_v1 = vrot.slane %v3595_v55, 1 }
  0x95   : > { %8399 = vmatmul.mubr.msk.bf16.gmra.mrb[44].mxu0 %vm948_vm5, %v2314_v56  ;;  %v1647_v56 = vshll.u32 %v8825_v4, 16  ;;  %v8843_v4 = vld [vmem:[#allocation2 + $0x2c] sm:$0xff]   ;;  %v3593_v5 = vor.u32 %v3591_v57, %v3589_v54 }
  0x96   : > { %8402 = vmatprep.mubr.msk.bf16.mxu0 %vm948_vm5, %v2316_v12  ;;  %v1643_v12 = vshrl.u32 %v8823_v49, 16 }
  0x98   : > { %v1645_v25 = vor.u32 %v1643_v12, %v1641_v10  ;;  %v3615_v12 = vshrl.u32 %v8843_v4, 16 }
  0x99   : > { %8353 = vmatmul.mubr.msk.bf16.gmra.mrb[48].mxu1 %vm948_vm5, %v1586_v17  ;;  %v1642_v17 = vsel %vm1470_vm9, %v1637_v9, %v1641_v10  ;;  %v7488_v9 = vld [vmem:[%s9126_s23 + $0x7c] sm:$0xf]  ;;  %v3611_v10 = vshll.u32 %v8843_v4, 16 }
  0x9a   : > { %8356 = vmatprep.mubr.msk.bf16.mxu1 %vm948_vm5, %v1594_v23  ;;  %v1649_v23 = vrot.slane %v1647_v56, 1  ;;  %v754_v16 = vshrl.u32 %v7488_v9, 16  ;;  %v3598_v56 = vsel %vm1470_vm9, %v3593_v5, %v3597_v1  ;;  %v3667_v5 = vshll.u32 %v8857_v34, 16 }
  0x9b   : > { %v3613_v24 = vrot.slane %v3611_v10, 1 }
  0x9c   : > { %v1653_v27 = vor.u32 %v1651_v21, %v1649_v23  ;;  %v1650_v32 = vsel %vm1470_vm9, %v1645_v25, %v1649_v23  ;;  %v3619_v21 = vshll.u32 %v8845_v8, 16  ;;  %v756_v22 = vrot.slane %v754_v16, 7  ;;  %v769_v23 = vld [vmem:[#allocation2 + $0xc8] sm:$0x1]  ;;  %v8847_v25 = vld [vmem:[#allocation2 + $0x3c] sm:$0xff]  }
  0x9d   : > { %8403 = vmatmul.mubr.msk.bf16.gmra.mrb[48].mxu0 %vm948_vm5, %v2318_v31  ;;  %v8835_v31 = vld [vmem:[#allocation2 + $0xc] sm:$0xff]   ;;  %v3617_v29 = vor.u32 %v3615_v12, %v3613_v24  ;;  %v3631_v38 = vshrl.u32 %v8847_v25, 16  ;;  %v3669_v16 = vrot.slane %v3667_v5, 1  ;;  %v3671_v12 = vshrl.u32 %v8857_v34, 16  ;;  %v8870_v5 = vld [vmem:[#allocation2 + $0x9c] sm:$0xff]  }
  0x9e   : > { %8406 = vmatprep.mubr.msk.bf16.mxu0 %vm948_vm5, %v2320_v13  ;;  %v1658_v13 = vsel %vm1470_vm9, %v1653_v27, %v1657_v28  ;;  %v3580_v47 = vshrl.u32 %v8835_v31, 16  ;;  %v761_v27 = vrot.slane %v756_v22, 4  ;;  %v3609_v28 = vor.u32 %v3607_v61, %v3605_v6  ;;  %v8856_v61 = vld [vmem:[#allocation2 + $0x64] sm:$0xff]  }
  0x9f   : > { %v3621_v62 = vrot.slane %v3619_v21, 1 }
  0xa0   : > { %v3614_v33 = vsel %vm1470_vm9, %v3609_v28, %v3613_v24  ;;  %v3673_v24 = vor.u32 %v3671_v12, %v3669_v16 }
  0xa1   : > { %8357 = vmatmul.mubr.msk.bf16.gmra.mrb[52].mxu1 %vm948_vm5, %v1602_v41  ;;  %v3582_v41 = vshll.u32 %v8835_v31, 16  ;;  %v3622_v7 = vsel %vm1470_vm9, %v3617_v29, %v3621_v62 }
  0xa2   : > { %8360 = vmatprep.mubr.msk.bf16.mxu1 %vm948_vm5, %v1610_v43  ;;  %v1665_v43 = vrot.slane %v1663_v35, 1  ;;  %v8844_v35 = vld [vmem:[#allocation2 + $0x34] sm:$0xff]  }
  0xa3   : > { %v3584_v48 = vrot.slane %v3582_v41, 1  ;;  %v8846_v41 = vld [vmem:[#allocation2 + $0x3c] sm:$0xff]  }
  0xa4   : > { %v1666_v49 = vsel %vm1470_vm9, %v1661_v42, %v1665_v43 }
  0xa5   : > { %8407 = vmatmul.mubr.msk.bf16.gmra.mrb[52].mxu0 %vm948_vm5, %v2322_v50  ;;  %v8832_v50 = vld [vmem:[#allocation2 + $0xc] sm:$0xff]  }
  0xa6   : > { %8410 = vmatprep.mubr.msk.bf16.mxu0 %vm948_vm5, %v2324_v53  ;;  %v3585_v53 = vor.u32 %v3584_v48, %v3580_v47  ;;  %v3643_v47 = vshll.u32 %v8851_v18, 16 }
  0xa8   : > { %v3590_v59 = vsel %vm1470_vm9, %v3585_v53, %v3589_v54  ;;  %v3645_v53 = vrot.slane %v3643_v47, 1  ;;  %v8855_v54 = vld [vmem:[#allocation2 + $0x5c] sm:$0xff]  }
  0xa9   : > { %8361 = vmatmul.mubr.msk.bf16.gmra.mrb[56].mxu1 %vm948_vm5, %v1618_v3  ;;  %v2338_v3 = vsel %vm2289_vm10, %v2335_v39, %v2337_v51  ;;  %v3663_v4 = vshrl.u32 %v8855_v54, 16 }
  0xaa   : > { %8364 = vmatprep.mubr.msk.bf16.mxu1 %vm948_vm5, %v1626_v63  ;;  %v3599_v63 = vshrl.u32 %v8838_v2, 16 }
  0xad   : > { %8411 = vmatmul.mubr.msk.bf16.gmra.mrb[56].mxu0 %vm948_vm5, %v2326_v37  ;;  %v3601_v37 = vor.u32 %v3599_v63, %v3597_v1  ;;  %v8852_v63 = vld [vmem:[#allocation2 + $0x54] sm:$0xff]  }
  0xae   : > { %8414 = vmatprep.mubr.msk.bf16.mxu0 %vm948_vm5, %v2328_v11  ;;  %v757_v11 = vshll.u32 %v7488_v9, 16 }
  0xaf   : > { %v3606_v19 = vsel %vm1470_vm9, %v3601_v37, %v3605_v6  ;;  %v8854_v6 = vld [vmem:[#allocation2 + $0x5c] sm:$0xff]   ;;  %v8859_v37 = vld [vmem:[#allocation2 + $0x6c] sm:$0xff]  }
  0xb1   : > { %8365 = vmatmul.mubr.msk.bf16.gmra.mrb[60].mxu1 %vm948_vm5, %v1634_v60  ;;  %v8839_v60 = vld [vmem:[#allocation2 + $0x24] sm:$0xff]  }
  0xb2   : > { %8368 = vmatprep.mubr.msk.bf16.mxu1 %vm948_vm5, %v1642_v17  ;;  %v752_v17 = vrot.slane %v9413_v14, 4  ;;  %v9492_v14 = vld [vmem:[%s10517_s1 + $0x38] sm:$0xff]  }
  0xb5   : > { %8415 = vmatmul.mubr.msk.bf16.gmra.mrb[60].mxu0 %vm948_vm5, %v2330_v26  ;;  %v759_v26 = vor.u32 %v757_v11, %v756_v22  ;;  %v8861_v11 = vld [vmem:[#allocation2 + $0x74] sm:$0xff]   ;;  %v8858_v22 = vld [vmem:[#allocation2 + $0x6c] sm:$0xff]  }
  0xb6   : > { %8418 = vmatprep.mubr.msk.bf16.mxu0 %vm948_vm5, %v2332_v30  ;;  %v8849_v30 = vld [vmem:[#allocation2 + $0x44] sm:$0xff]   ;;  %v3683_v21 = vshll.u32 %v8861_v11, 16 }
  0xb7   : > { %v760_v31 = vsel %vm9138_vm6, %v752_v17, %v759_v26  ;;  %v3635_v39 = vshll.u32 %v8849_v30, 16  ;;  %v3639_v2 = vshrl.u32 %v8849_v30, 16  ;;  %v3687_v30 = vshrl.u32 %v8861_v11, 16 }
  0xb8   : > { %768 = vst.msk [vmem:[#allocation2 + $0xc4] sm:$0xf] %vm227_vm0, %v760_v31  ;;  %v3685_v26 = vrot.slane %v3683_v21, 1 }
  0xb9   : > { %8369 = vmatmul.mubr.msk.bf16.gmra.mrb[64].mxu1 %vm948_vm5, %v1650_v32  ;;  %v770_v32 = vsel %vm9152_vm8, %v761_v27, %v769_v23  ;;  %v8865_v27 = vld [vmem:[#allocation2 + $0x84] sm:$0xff]  }
  0xba   : > { %8372 = vmatprep.mubr.msk.bf16.mxu1 %vm948_vm5, %v1658_v13  ;;  %771 = vst [vmem:[#allocation2 + $0xc8] sm:$0x1] %v770_v32  ;;  %v3623_v13 = vshrl.u32 %v8845_v8, 16 }
  0xbc   : > { %v3625_v43 = vor.u32 %v3623_v13, %v3621_v62  ;;  %v8860_v62 = vld [vmem:[#allocation2 + $0x74] sm:$0xff]   ;;  %v8867_v13 = vld [vmem:[#allocation2 + $0x8c] sm:$0xff]  }
  0xbd   : > { %8419 = vmatmul.mubr.msk.bf16.gmra.mrb[64].mxu0 %vm948_vm5, %v2334_v45 }
  0xbe   : > { %8422 = vmatprep.mubr.msk.bf16.mxu0 %vm948_vm5, %v2336_v46  ;;  %v3637_v46 = vrot.slane %v3635_v39, 1 }
  0xc0   : > { %v3641_v55 = vor.u32 %v3639_v2, %v3637_v46 }
  0xc1   : > { %8373 = vmatmul.mubr.msk.bf16.gmra.mrb[68].mxu1 %vm948_vm5, %v1666_v49  ;;  %v3647_v49 = vshrl.u32 %v8851_v18, 16 }
  0xc2   : > { %8428 = vmatprep.mubr.msk.bf16.mxu1 %vm948_vm5, %v8832_v50  ;;  %v3651_v50 = vshll.u32 %v8853_v44, 16 }
  0xc4   : > { %v3653_v57 = vrot.slane %v3651_v50, 1 }
  0xc5   : > { %8423 = vmatmul.mubr.msk.bf16.gmra.mrb[68].mxu0 %vm948_vm5, %v2338_v3  ;;  %v3649_v3 = vor.u32 %v3647_v49, %v3645_v53  ;;  %v9541_v49 = vld [vmem:[#allocation2 + $0xa4] sm:$0xff]  }
  0xc6   : > { %8478 = vmatprep.mubr.msk.bf16.mxu0 %vm948_vm5, %v3590_v59  ;;  %v3646_v59 = vsel %vm1470_vm9, %v3641_v55, %v3645_v53  ;;  %v3731_v55 = vshll.u32 %v9541_v49, 16  ;;  %v3735_v21 = vshrl.u32 %v9541_v49, 16 }
  0xc7   : > { %v3654_v1 = vsel %vm1470_vm9, %v3649_v3, %v3653_v57 }
  0xc9   : > { %8429 = vmatmul.mubr.msk.bf16.vlgmr.msra.gmra.mrb[72].mxu1 %vm948_vm5, %v8834_v58  ;;  %v3659_v58 = vshll.u32 %v8855_v54, 16 }
  0xca   : > { %8527 = vmatpush3.bf16.msra.mxu1 %v9418_v15  ;;  %8432 = vmatprep.mubr.msk.bf16.mxu1 %vm948_vm5, %v8837_v0  ;;  %v8842_v15 = vld [vmem:[#allocation2 + $0x2c] sm:$0xff]   ;;  %v3655_v0 = vshrl.u32 %v8853_v44, 16  ;;  %v8864_v44 = vld [vmem:[#allocation2 + $0x84] sm:$0xff]  }
  0xcb   : > { %8626 = vmatprep.subr.bf16.mxu1 %v9492_v14  ;;  %v3661_v8 = vrot.slane %v3659_v58, 1 }
  0xcc   : > { %v3657_v9 = vor.u32 %v3655_v0, %v3653_v57 }
  0xcd   : > { %8479 = vmatmul.mubr.msk.bf16.vlgmr.msra.gmra.mrb[72].mxu0 %vm948_vm5, %v3598_v56  ;;  %v3665_v10 = vor.u32 %v3663_v4, %v3661_v8  ;;  %v3675_v56 = vshll.u32 %v8859_v37, 16 }
  0xce   : > { %8577 = vmatpush3.bf16.msra.mxu0 %v9434_v36  ;;  %8482 = vmatprep.mubr.msk.bf16.mxu0 %vm948_vm5, %v3606_v19  ;;  %v3627_v36 = vshll.u32 %v8847_v25, 16  ;;  %v3679_v19 = vshrl.u32 %v8859_v37, 16 }
  0xcf   : > { %8676 = vmatprep.subr.bf16.mxu0 %v9507_v40  ;;  %v3670_v17 = vsel %vm1470_vm9, %v3665_v10, %v3669_v16  ;;  %v3677_v23 = vrot.slane %v3675_v56, 1  ;;  %v8875_v10 = vld [vmem:[#allocation2 + $0xac] sm:$0xff]   ;;  %v8877_v56 = vld [vmem:[#allocation2 + $0xb4] sm:$0xff]  }
  0xd0   : > { %v3629_v42 = vrot.slane %v3627_v36, 1  ;;  %v3699_v36 = vshll.u32 %v8865_v27, 16  ;;  %v3739_v12 = vshll.u32 %v8875_v10, 16 }
  0xd1   : > { %8433 = vmatmul.mubr.msk.bf16.gmra.mrb[76].mxu1 %vm948_vm5, %v8839_v60  ;;  %v3662_v60 = vsel %vm1470_vm9, %v3657_v9, %v3661_v8  ;;  %v3681_v25 = vor.u32 %v3679_v19, %v3677_v23  ;;  %v3678_v29 = vsel %vm1470_vm9, %v3673_v24, %v3677_v23  ;;  %v3733_v9 = vrot.slane %v3731_v55, 1 }
  0xd2   : > { %8436 = vmatprep.mubr.msk.bf16.mxu1 %vm948_vm5, %v8842_v15  ;;  %v3633_v45 = vor.u32 %v3631_v38, %v3629_v42  ;;  %v3630_v48 = vsel %vm1470_vm9, %v3625_v43, %v3629_v42  ;;  %v8863_v15 = vld [vmem:[#allocation2 + $0x7c] sm:$0xff]   ;;  %v3689_v38 = vor.u32 %v3687_v30, %v3685_v26  ;;  %v3701_v18 = vrot.slane %v3699_v36, 1 }
  0xd3   : > { %v3691_v28 = vshll.u32 %v8863_v15, 16  ;;  %v3686_v31 = vsel %vm1470_vm9, %v3681_v25, %v3685_v26  ;;  %v3695_v32 = vshrl.u32 %v8863_v15, 16  ;;  %v3707_v42 = vshll.u32 %v8867_v13, 16  ;;  %v8872_v25 = vld [vmem:[#allocation2 + $0xa4] sm:$0xff]  }
  0xd4   : > { %v3638_v51 = vsel %vm1470_vm9, %v3633_v45, %v3637_v46  ;;  %v3711_v45 = vshrl.u32 %v8867_v13, 16  ;;  %v3743_v24 = vshrl.u32 %v8875_v10, 16 }
  0xd5   : > { %8483 = vmatmul.mubr.msk.bf16.gmra.mrb[76].mxu0 %vm948_vm5, %v3614_v33  ;;  %v8862_v33 = vld [vmem:[#allocation2 + $0x7c] sm:$0xff]   ;;  %v3709_v2 = vrot.slane %v3707_v42, 1 }
  0xd6   : > { %8486 = vmatprep.mubr.msk.bf16.mxu0 %vm948_vm5, %v3622_v7  ;;  %v8869_v7 = vld [vmem:[#allocation2 + $0x94] sm:$0xff]  }
  0xd7   : > { %v3715_v46 = vshll.u32 %v8869_v7, 16  ;;  %v3719_v34 = vshrl.u32 %v8869_v7, 16 }
  0xd9   : > { %8437 = vmatmul.mubr.msk.bf16.gmra.mrb[80].mxu1 %vm948_vm5, %v8844_v35  ;;  %v3693_v35 = vrot.slane %v3691_v28, 1  ;;  %v3741_v28 = vrot.slane %v3739_v12, 1  ;;  %v8887_v12 = vld [vmem:[#allocation2 + $0x18] sm:$0xff]  }
  0xda   : > { %8440 = vmatprep.mubr.msk.bf16.mxu1 %vm948_vm5, %v8846_v41  ;;  %v3703_v41 = vshrl.u32 %v8865_v27, 16  ;;  %v8874_v27 = vld [vmem:[#allocation2 + $0xac] sm:$0xff]  }
  0xdb   : > { %v3697_v39 = vor.u32 %v3695_v32, %v3693_v35  ;;  %v3694_v43 = vsel %vm1470_vm9, %v3689_v38, %v3693_v35  ;;  %v3745_v36 = vor.u32 %v3743_v24, %v3741_v28  ;;  %v8893_v24 = vld [vmem:[#allocation2 + $0x34] sm:$0xff]  }
  0xdc   : > { %v3705_v50 = vor.u32 %v3703_v41, %v3701_v18 }
  0xdd   : > { %8487 = vmatmul.mubr.msk.bf16.gmra.mrb[80].mxu0 %vm948_vm5, %v3630_v48  ;;  %v3702_v47 = vsel %vm1470_vm9, %v3697_v39, %v3701_v18  ;;  %v8866_v48 = vld [vmem:[#allocation2 + $0x8c] sm:$0xff]   ;;  %v3751_v18 = vshrl.u32 %v8877_v56, 16 }
  0xde   : > { %8490 = vmatprep.mubr.msk.bf16.mxu0 %vm948_vm5, %v3638_v51  ;;  %v3717_v51 = vrot.slane %v3715_v46, 1  ;;  %v3710_v3 = vsel %vm1470_vm9, %v3705_v50, %v3709_v2 }
  0xe0   : > { %v3721_v16 = vor.u32 %v3719_v34, %v3717_v51 }
  0xe1   : > { %8441 = vmatmul.mubr.msk.bf16.gmra.mrb[84].mxu1 %vm948_vm5, %v8848_v20  ;;  %v8871_v20 = vld [vmem:[#allocation2 + $0x9c] sm:$0xff]  }
  0xe2   : > { %8444 = vmatprep.mubr.msk.bf16.mxu1 %vm948_vm5, %v8850_v52  ;;  %v3713_v52 = vor.u32 %v3711_v45, %v3709_v2  ;;  %v3723_v53 = vshll.u32 %v8871_v20, 16  ;;  %v3727_v0 = vshrl.u32 %v8871_v20, 16  ;;  %v8876_v45 = vld [vmem:[#allocation2 + $0xb4] sm:$0xff]  }
  0xe4   : > { %v3725_v8 = vrot.slane %v3723_v53, 1 }
  0xe5   : > { %8491 = vmatmul.mubr.msk.bf16.gmra.mrb[84].mxu0 %vm948_vm5, %v3646_v59  ;;  %v3718_v59 = vsel %vm1470_vm9, %v3713_v52, %v3717_v51  ;;  %v8883_v51 = vld [vmem:[#allocation2 + $0xc] sm:$0xfe]   ;;  %v8884_v52 = vld [vmem:[#allocation2 + $0x14] sm:$0xff]  }
  0xe6   : > { %8494 = vmatprep.mubr.msk.bf16.mxu0 %vm948_vm5, %v3654_v1  ;;  %v8868_v1 = vld [vmem:[#allocation2 + $0x94] sm:$0xff]  }
  0xe9   : > { %8445 = vmatmul.mubr.msk.bf16.gmra.mrb[88].mxu1 %vm948_vm5, %v8852_v63 }
  0xea   : > { %8448 = vmatprep.mubr.msk.bf16.mxu1 %vm948_vm5, %v8854_v6 }
  0xed   : > { %8495 = vmatmul.mubr.msk.bf16.gmra.mrb[88].mxu0 %vm948_vm5, %v3662_v60  ;;  %v3729_v60 = vor.u32 %v3727_v0, %v3725_v8  ;;  %v4398_v0 = vrot.slane %v8884_v52, 1  ;;  %v8898_v52 = vld [vmem:[#allocation2 + $0x40] sm:$0xff]  }
  0xee   : > { %8498 = vmatprep.mubr.msk.bf16.mxu0 %vm948_vm5, %v3670_v17  ;;  %v3726_v17 = vsel %vm1470_vm9, %v3721_v16, %v3725_v8  ;;  %v8886_v8 = vld [vmem:[#allocation2 + $0x1c] sm:$0xff]   ;;  %v8888_v16 = vld [vmem:[#allocation2 + $0x24] sm:$0xff]  }
  0xef   : > { %v3734_v15 = vsel %vm1470_vm9, %v3729_v60, %v3733_v9  ;;  %v4400_v60 = vrot.slane %v8886_v8, 1 }
  0xf1   : > { %8449 = vmatmul.mubr.msk.bf16.gmra.mrb[92].mxu1 %vm948_vm5, %v8856_v61 }
  0xf2   : > { %8452 = vmatprep.mubr.msk.bf16.mxu1 %vm948_vm5, %v8858_v22  ;;  %v3747_v22 = vshll.u32 %v8877_v56, 16 }
  0xf5   : > { %8499 = vmatmul.mubr.msk.bf16.gmra.mrb[92].mxu0 %vm948_vm5, %v3678_v29  ;;  %v8879_v29 = vld [vmem:[#allocation2 + $0xbc] sm:$0xff]  }
  0xf6   : > { %8502 = vmatprep.mubr.msk.bf16.mxu0 %vm948_vm5, %v3686_v31  ;;  %v3749_v31 = vrot.slane %v3747_v22, 1  ;;  %v3755_v38 = vshll.u32 %v8879_v29, 16  ;;  %v8890_v22 = vld [vmem:[#allocation2 + $0x2c] sm:$0xff]  }
  0xf8   : > { %v3750_v42 = vsel %vm1470_vm9, %v3745_v36, %v3749_v31  ;;  %v3757_v2 = vrot.slane %v3755_v38, 1  ;;  %v3753_v49 = vor.u32 %v3751_v18, %v3749_v31  ;;  %v8892_v31 = vld [vmem:[#allocation2 + $0x28] sm:$0xff]   ;;  %v8894_v18 = vld [vmem:[#allocation2 + $0x30] sm:$0xff]  }
  0xf9   : > { %8453 = vmatmul.mubr.msk.bf16.gmra.mrb[96].mxu1 %vm948_vm5, %v8860_v62  ;;  %v3737_v62 = vor.u32 %v3735_v21, %v3733_v9 }
  0xfa   : > { %8456 = vmatprep.mubr.msk.bf16.mxu1 %vm948_vm5, %v8862_v33  ;;  %v8881_v33 = vld [vmem:[#allocation2 + $0xc4] sm:$0xff]  }
  0xfb   : > { %v3742_v7 = vsel %vm1470_vm9, %v3737_v62, %v3741_v28  ;;  %v4404_v62 = vrot.slane %v8890_v22, 1 }
  0xfd   : > { %8503 = vmatmul.mubr.msk.bf16.gmra.mrb[96].mxu0 %vm948_vm5, %v3694_v43  ;;  %v3759_v43 = vshrl.u32 %v8879_v29, 16  ;;  %v8889_v29 = vld [vmem:[#allocation2 + $0x20] sm:$0xff]  }
  0xfe   : > { %8506 = vmatprep.mubr.msk.bf16.mxu0 %vm948_vm5, %v3702_v47  ;;  %v8878_v47 = vld [vmem:[#allocation2 + $0xbc] sm:$0xff]  }
 0x101   : > { %8457 = vmatmul.mubr.msk.bf16.gmra.mrb[100].mxu1 %vm948_vm5, %v8864_v44  ;;  %v8304_v54 = vpop.f32.mrb[0].mxu1  ;;  %v3763_v44 = vshll.u32 %v8881_v33, 16 }
 0x102   : > { %8460 = vmatprep.mubr.msk.bf16.mxu1 %vm948_vm5, %v8866_v48  ;;  %1273 = vst.msk [vmem:[#allocation3 + $0xd0] sm:$0xff] %vm1246_vm11, %v8304_v54  ;;  %v1151_v57 = vpop.f32.mrb[1].mxu1  ;;  %v8280_v63 = vpop.f32.mrb[0].mxu0  ;;  %v8882_v48 = vld [vmem:[#allocation2 + $0xcc] ss:$0 sps:$4 sm:$0x11]   ;;  %v3761_v54 = vor.u32 %v3759_v43, %v3757_v2 }
 0x103   : > { %1271 = vst.msk [vmem:[#allocation3 + $0xc0] sm:$0xff] %vm1246_vm11, %v1151_v57  ;;  %v8305_v58 = vpop.f32.mrb[2].mxu1  ;;  %1249 = vst.msk [vmem:[#allocation3 + $0x10] sm:$0xff] %vm1246_vm11, %v8280_v63  ;;  %v1055_v6 = vpop.f32.mrb[1].mxu0  ;;  %v3765_v55 = vrot.slane %v3763_v44, 1  ;;  %v3771_v34 = vshll.u32 %v8882_v48, 16 }
 0x104   : > { %1274 = vst.msk [vmem:[#allocation3 + $0xd8] sm:$0xff] %vm1246_vm11, %v8305_v58  ;;  %v1154_v4 = vpop.f32.mrb[3].mxu1  ;;  %1247 = vst.msk [vmem:[#allocation3] sm:$0xff] %vm1246_vm11, %v1055_v6  ;;  %v8281_v37 = vpop.f32.mrb[2].mxu0  ;;  %v3758_v58 = vsel %vm1470_vm9, %v3753_v49, %v3757_v2  ;;  %v4397_v63 = vrot.slane %v8883_v51, 1  ;;  %v8899_v48 = vld [vmem:[#allocation2 + $0x4c] sm:$0xff]  }
 0x105   : > { %8507 = vmatmul.mubr.msk.bf16.gmra.mrb[100].mxu0 %vm948_vm5, %v3710_v3  ;;  %1272 = vst.msk [vmem:[#allocation3 + $0xc8] sm:$0xff] %vm1246_vm11, %v1154_v4  ;;  %1250 = vst.msk [vmem:[#allocation3 + $0x18] sm:$0xff] %vm1246_vm11, %v8281_v37  ;;  %v1058_v11 = vpop.f32.mrb[3].mxu0  ;;  %v8880_v4 = vld [vmem:[#allocation2 + $0xc4] sm:$0xff]   ;;  %v3773_v6 = vrot.slane %v3771_v34, 1  ;;  %v9635_v49 = vld [vmem:[#allocation2 + $0x54] sm:$0xff]  }
 0x106   : > { %8510 = vmatprep.mubr.msk.bf16.mxu0 %vm948_vm5, %v3718_v59  ;;  %1248 = vst.msk [vmem:[#allocation3 + $0x8] sm:$0xff] %vm1246_vm11, %v1058_v11  ;;  %v3767_v59 = vshrl.u32 %v8881_v33, 16  ;;  %v4399_v10 = vsel %vm2289_vm10, %v4397_v63, %v4398_v0  ;;  %v8895_v33 = vld [vmem:[#allocation2 + $0x3c] sm:$0xff]  }
 0x108   : > { %v3769_v9 = vor.u32 %v3767_v59, %v3765_v55 }
 0x109   : > { %8461 = vmatmul.mubr.msk.bf16.gmra.mrb[104].mxu1 %vm948_vm5, %v8868_v1  ;;  %v8308_v61 = vpop.f32.mrb[4].mxu1  ;;  %v3766_v1 = vsel %vm1470_vm9, %v3761_v54, %v3765_v55  ;;  %v8900_v55 = vld [vmem:[#allocation2 + $0x48] sm:$0xff]  }
 0x10a   : > { %8464 = vmatprep.mubr.msk.bf16.mxu1 %vm948_vm5, %v8870_v5  ;;  %1277 = vst.msk [vmem:[#allocation3 + $0xf0] sm:$0xff] %vm1246_vm11, %v8308_v61  ;;  %v1167_v19 = vpop.f32.mrb[5].mxu1  ;;  %v3774_v61 = vsel %vm1470_vm9, %v3769_v9, %v3773_v6  ;;  %v1972_v34 = vld [vmem:[#allocation3 + $0x10] sm:$0xff] }
 0x10b   : > { %1275 = vst.msk [vmem:[#allocation3 + $0xe0] sm:$0xff] %vm1246_vm11, %v1167_v19  ;;  %v8309_v23 = vpop.f32.mrb[6].mxu1  ;;  %v4401_v19 = vsel %vm2289_vm10, %v4398_v0, %v4400_v60  ;;  %v1970_v0 = vld [vmem:[#allocation3] sm:$0xff] }
 0x10c   : > { %1278 = vst.msk [vmem:[#allocation3 + $0xf8] sm:$0xff] %vm1246_vm11, %v8309_v23  ;;  %v1170_v26 = vpop.f32.mrb[7].mxu1  ;;  %v1973_v6 = vld [vmem:[#allocation3 + $0x18] sm:$0xff] }
 0x10d   : > { %8511 = vmatmul.mubr.msk.bf16.gmra.mrb[104].mxu0 %vm948_vm5, %v3726_v17  ;;  %1276 = vst.msk [vmem:[#allocation3 + $0xe8] sm:$0xff] %vm1246_vm11, %v1170_v26  ;;  %v8284_v30 = vpop.f32.mrb[4].mxu0  ;;  %v4402_v17 = vrot.slane %v8888_v16, 1 }
 0x10e   : > { %8514 = vmatprep.mubr.msk.bf16.mxu0 %vm948_vm5, %v3734_v15  ;;  %1253 = vst.msk [vmem:[#allocation3 + $0x30] sm:$0xff] %vm1246_vm11, %v8284_v30  ;;  %v1071_v32 = vpop.f32.mrb[5].mxu0 }
 0x10f   : > { %1251 = vst.msk [vmem:[#allocation3 + $0x20] sm:$0xff] %vm1246_vm11, %v1071_v32  ;;  %v8285_v35 = vpop.f32.mrb[6].mxu0  ;;  %v4403_v15 = vsel %vm2289_vm10, %v4400_v60, %v4402_v17  ;;  %v4406_v32 = vrot.slane %v8893_v24, 1 }
 0x110   : > { %1254 = vst.msk [vmem:[#allocation3 + $0x38] sm:$0xff] %vm1246_vm11, %v8285_v35  ;;  %v1074_v13 = vpop.f32.mrb[7].mxu0 }
 0x111   : > { %8465 = vmatmul.mubr.msk.bf16.gmra.mrb[108].mxu1 %vm948_vm5, %v8872_v25  ;;  %1252 = vst.msk [vmem:[#allocation3 + $0x28] sm:$0xff] %vm1246_vm11, %v1074_v13  ;;  %v4407_v35 = vsel %vm2289_vm10, %v4404_v62, %v4406_v32  ;;  %v8897_v13 = vld [vmem:[#allocation2 + $0x44] sm:$0xff]  }
 0x112   : > { %8468 = vmatprep.mubr.msk.bf16.mxu1 %vm948_vm5, %v8874_v27  ;;  %v8312_v39 = vpop.f32.mrb[8].mxu1  ;;  %v4410_v43 = vrot.slane %v8897_v13, 1 }
 0x113   : > { %1281 = vst.msk [vmem:[#allocation3 + $0x110] sm:$0xff] %vm1246_vm11, %v8312_v39  ;;  %v1183_v41 = vpop.f32.mrb[9].mxu1 }
 0x114   : > { %1279 = vst.msk [vmem:[#allocation3 + $0x100] sm:$0xff] %vm1246_vm11, %v1183_v41  ;;  %v8313_v46 = vpop.f32.mrb[10].mxu1  ;;  %v4408_v41 = vrot.slane %v8895_v33, 1 }
 0x115   : > { %8515 = vmatmul.mubr.msk.bf16.gmra.mrb[108].mxu0 %vm948_vm5, %v3742_v7  ;;  %1282 = vst.msk [vmem:[#allocation3 + $0x118] sm:$0xff] %vm1246_vm11, %v8313_v46  ;;  %v1186_v20 = vpop.f32.mrb[11].mxu1  ;;  %v8288_v50 = vpop.f32.mrb[8].mxu0 }
 0x116   : > { %1280 = vst.msk [vmem:[#allocation3 + $0x108] sm:$0xff] %vm1246_vm11, %v1186_v20  ;;  %8518 = vmatprep.mubr.msk.bf16.mxu0 %vm948_vm5, %v3750_v42  ;;  %1257 = vst.msk [vmem:[#allocation3 + $0x50] sm:$0xff] %vm1246_vm11, %v8288_v50  ;;  %v1087_v53 = vpop.f32.mrb[9].mxu0  ;;  %v8896_v42 = vld [vmem:[#allocation2 + $0x38] sm:$0xff]   ;;  %v4411_v2 = vsel %vm2289_vm10, %v4408_v41, %v4410_v43  ;;  %v1974_v24 = vld [vmem:[#allocation3 + $0x20] sm:$0xff] }
 0x117   : > { %1255 = vst.msk [vmem:[#allocation3 + $0x40] sm:$0xff] %vm1246_vm11, %v1087_v53  ;;  %v8289_v3 = vpop.f32.mrb[10].mxu0  ;;  %v4412_v53 = vrot.slane %v8899_v48, 1 }
 0x118   : > { %1258 = vst.msk [vmem:[#allocation3 + $0x58] sm:$0xff] %vm1246_vm11, %v8289_v3  ;;  %v1090_v57 = vpop.f32.mrb[11].mxu0  ;;  %v4414_v3 = vrot.slane %v9635_v49, 1 }
 0x119   : > { %8469 = vmatmul.mubr.msk.bf16.gmra.mrb[112].mxu1 %vm948_vm5, %v8876_v45  ;;  %1256 = vst.msk [vmem:[#allocation3 + $0x48] sm:$0xff] %vm1246_vm11, %v1090_v57  ;;  %v4413_v8 = vsel %vm2289_vm10, %v4410_v43, %v4412_v53 }
 0x11a   : > { %8472 = vmatprep.mubr.msk.bf16.mxu1 %vm948_vm5, %v8878_v47  ;;  %v4409_v47 = vsel %vm2289_vm10, %v4406_v32, %v4408_v41  ;;  %v4415_v16 = vsel %vm2289_vm10, %v4412_v53, %v4414_v3  ;;  %v8911_v53 = vld [vmem:[#allocation2 + $0x7c] sm:$0xff]  }
 0x11c   : > { %v8316_v5 = vpop.f32.mrb[12].mxu1 }
 0x11d   : > { %8519 = vmatmul.mubr.msk.bf16.gmra.mrb[112].mxu0 %vm948_vm5, %v3758_v58  ;;  %1285 = vst.msk [vmem:[#allocation3 + $0x130] sm:$0xff] %vm1246_vm11, %v8316_v5  ;;  %v1199_v37 = vpop.f32.mrb[13].mxu1 }
 0x11e   : > { %8522 = vmatprep.mubr.msk.bf16.mxu0 %vm948_vm5, %v3766_v1  ;;  %1283 = vst.msk [vmem:[#allocation3 + $0x120] sm:$0xff] %vm1246_vm11, %v1199_v37  ;;  %v8317_v11 = vpop.f32.mrb[14].mxu1  ;;  %v8903_v1 = vld [vmem:[#allocation2 + $0x5c] sm:$0xff]  }
 0x11f   : > { %1286 = vst.msk [vmem:[#allocation3 + $0x138] sm:$0xff] %vm1246_vm11, %v8317_v11  ;;  %v1202_v56 = vpop.f32.mrb[15].mxu1  ;;  %v9650_v11 = vld [vmem:[#allocation2 + $0x64] sm:$0xff]  }
 0x120   : > { %1284 = vst.msk [vmem:[#allocation3 + $0x128] sm:$0xff] %vm1246_vm11, %v1202_v56  ;;  %v4418_v22 = vrot.slane %v9650_v11, 1 }
 0x121   : > { %8473 = vmatmul.mubr.msk.bf16.gmra.mrb[116].mxu1 %vm948_vm5, %v8880_v4 }
 0x122   : > { %8528 = vmatprep.mubr.msk.bf16.mxu1 %vm948_vm5, %v4399_v10  ;;  %v1971_v10 = vld [vmem:[#allocation3 + $0x8] sm:$0xff] }
 0x124   : > { %v8292_v21 = vpop.f32.mrb[12].mxu0 }
 0x125   : > { %8523 = vmatmul.mubr.msk.bf16.gmra.mrb[116].mxu0 %vm948_vm5, %v3774_v61  ;;  %1261 = vst.msk [vmem:[#allocation3 + $0x70] sm:$0xff] %vm1246_vm11, %v8292_v21  ;;  %v1103_v23 = vpop.f32.mrb[13].mxu0  ;;  %v8904_v21 = vld [vmem:[#allocation2 + $0x58] sm:$0xff]  }
 0x126   : > { %8578 = vmatprep.mubr.msk.bf16.mxu0 %vm948_vm5, %v8887_v12  ;;  %1259 = vst.msk [vmem:[#allocation3 + $0x60] sm:$0xff] %vm1246_vm11, %v1103_v23  ;;  %v8293_v25 = vpop.f32.mrb[14].mxu0  ;;  %v8902_v12 = vld [vmem:[#allocation2 + $0x50] sm:$0xff]  }
 0x127   : > { %1262 = vst.msk [vmem:[#allocation3 + $0x78] sm:$0xff] %vm1246_vm11, %v8293_v25  ;;  %v1106_v27 = vpop.f32.mrb[15].mxu0 }
 0x128   : > { %v8320_v26 = vpop.f32.mrb[16].mxu1  ;;  %1260 = vst.msk [vmem:[#allocation3 + $0x68] sm:$0xff] %vm1246_vm11, %v1106_v27 }
 0x129   : > { %8529 = vmatmul.mubr.msk.bf16.vlgmr.msra.gmra.mrb[120].mxu1 %vm948_vm5, %v4401_v19  ;;  %1289 = vst.msk [vmem:[#allocation3 + $0x150] sm:$0xff] %vm1246_vm11, %v8320_v26  ;;  %v1215_v28 = vpop.f32.mrb[17].mxu1  ;;  %v9658_v26 = vld [vmem:[#allocation2 + $0x6c] sm:$0xff]  }
 0x12a   : > { %8627 = vmatpush3.bf16.msra.mxu1 %v9492_v14  ;;  %8532 = vmatprep.mubr.msk.bf16.mxu1 %vm948_vm5, %v4403_v15  ;;  %1287 = vst.msk [vmem:[#allocation3 + $0x140] sm:$0xff] %vm1246_vm11, %v1215_v28  ;;  %v8321_v30 = vpop.f32.mrb[18].mxu1  ;;  %v4405_v14 = vsel %vm2289_vm10, %v4402_v17, %v4404_v62  ;;  %v4416_v17 = vrot.slane %v8903_v1, 1  ;;  %v1976_v15 = vld [vmem:[#allocation3 + $0x30] sm:$0xff]  ;;  %v1975_v62 = vld [vmem:[#allocation3 + $0x28] sm:$0xff] }
 0x12b   : > { %1290 = vst.msk [vmem:[#allocation3 + $0x158] sm:$0xff] %vm1246_vm11, %v8321_v30  ;;  %v1218_v36 = vpop.f32.mrb[19].mxu1  ;;  %v9660_v30 = vld [vmem:[#allocation2 + $0x74] sm:$0xff]  }
 0x12c   : > { %1288 = vst.msk [vmem:[#allocation3 + $0x148] sm:$0xff] %vm1246_vm11, %v1218_v36 }
 0x12d   : > { %8579 = vmatmul.mubr.msk.bf16.vlgmr.msra.gmra.mrb[120].mxu0 %vm948_vm5, %v8889_v29  ;;  %v1977_v29 = vld [vmem:[#allocation3 + $0x38] sm:$0xff] }
 0x12e   : > { %8677 = vmatpush3.bf16.msra.mxu0 %v9507_v40  ;;  %8582 = vmatprep.mubr.msk.bf16.mxu0 %vm948_vm5, %v8892_v31  ;;  %v8296_v38 = vpop.f32.mrb[16].mxu0 }
 0x12f   : > { %1265 = vst.msk [vmem:[#allocation3 + $0x90] sm:$0xff] %vm1246_vm11, %v8296_v38  ;;  %v1119_v7 = vpop.f32.mrb[17].mxu0 }
 0x130   : > { %1263 = vst.msk [vmem:[#allocation3 + $0x80] sm:$0xff] %vm1246_vm11, %v1119_v7  ;;  %v8297_v39 = vpop.f32.mrb[18].mxu0  ;;  %v4419_v7 = vsel %vm2289_vm10, %v4416_v17, %v4418_v22 }
 0x131   : > { %8533 = vmatmul.mubr.msk.bf16.gmra.mrb[124].mxu1 %vm948_vm5, %v4405_v14  ;;  %1266 = vst.msk [vmem:[#allocation3 + $0x98] sm:$0xff] %vm1246_vm11, %v8297_v39  ;;  %v1122_v40 = vpop.f32.mrb[19].mxu0  ;;  %v4417_v14 = vsel %vm2289_vm10, %v4414_v3, %v4416_v17  ;;  %v1981_v3 = vld [vmem:[#allocation3 + $0x58] sm:$0xff]  ;;  %v4424_v17 = vrot.slane %v8911_v53, 1 }
 0x132   : > { %8536 = vmatprep.mubr.msk.bf16.mxu1 %vm948_vm5, %v4407_v35  ;;  %1264 = vst.msk [vmem:[#allocation3 + $0x88] sm:$0xff] %vm1246_vm11, %v1122_v40 }
 0x134   : > { %v8324_v44 = vpop.f32.mrb[20].mxu1 }
 0x135   : > { %1293 = vst.msk [vmem:[#allocation3 + $0x170] sm:$0xff] %vm1246_vm11, %v8324_v44  ;;  %v1231_v45 = vpop.f32.mrb[21].mxu1  ;;  %8583 = vmatmul.mubr.msk.bf16.gmra.mrb[124].mxu0 %vm948_vm5, %v8894_v18 }
 0x136   : > { %1291 = vst.msk [vmem:[#allocation3 + $0x160] sm:$0xff] %vm1246_vm11, %v1231_v45  ;;  %v8325_v46 = vpop.f32.mrb[22].mxu1  ;;  %8586 = vmatprep.mubr.msk.bf16.mxu0 %vm948_vm5, %v8896_v42 }
 0x137   : > { %1294 = vst.msk [vmem:[#allocation3 + $0x178] sm:$0xff] %vm1246_vm11, %v8325_v46  ;;  %v1234_v20 = vpop.f32.mrb[23].mxu1  ;;  %v8906_v46 = vld [vmem:[#allocation2 + $0x60] sm:$0xff]  }
 0x138   : > { %1292 = vst.msk [vmem:[#allocation3 + $0x168] sm:$0xff] %vm1246_vm11, %v1234_v20  ;;  %v8300_v50 = vpop.f32.mrb[20].mxu0  ;;  %v8908_v20 = vld [vmem:[#allocation2 + $0x68] sm:$0xff]  }
 0x139   : > { %8537 = vmatmul.mubr.msk.bf16.gmra.mrb[128].mxu1 %vm948_vm5, %v4409_v47  ;;  %1269 = vst.msk [vmem:[#allocation3 + $0xb0] sm:$0xff] %vm1246_vm11, %v8300_v50  ;;  %v1135_v51 = vpop.f32.mrb[21].mxu0  ;;  %v4420_v47 = vrot.slane %v9658_v26, 1  ;;  %v1980_v50 = vld [vmem:[#allocation3 + $0x50] sm:$0xff] }
 0x13a   : > { %8540 = vmatprep.mubr.msk.bf16.mxu1 %vm948_vm5, %v4411_v2  ;;  %1267 = vst.msk [vmem:[#allocation3 + $0xa0] sm:$0xff] %vm1246_vm11, %v1135_v51  ;;  %v8301_v54 = vpop.f32.mrb[22].mxu0  ;;  %v4422_v2 = vrot.slane %v9660_v30, 1  ;;  %v1978_v51 = vld [vmem:[#allocation3 + $0x40] sm:$0xff]  ;;  %v1985_v30 = vld [vmem:[#allocation3 + $0x78] sm:$0xff] }
 0x13b   : > { %1270 = vst.msk [vmem:[#allocation3 + $0xb8] sm:$0xff] %vm1246_vm11, %v8301_v54  ;;  %v1138_v58 = vpop.f32.mrb[23].mxu0 }
 0x13c   : > { %v8330_v57 = vpop.f32.mrb[24].mxu1  ;;  %1268 = vst.msk [vmem:[#allocation3 + $0xa8] sm:$0xff] %vm1246_vm11, %v1138_v58 }
 0x13d   : > { %v2020_v59 = vadd.f32 %v8330_v57, %v1972_v34  ;;  %v1779_v63 = vpop.f32.mrb[25].mxu1  ;;  %8587 = vmatmul.mubr.msk.bf16.gmra.mrb[128].mxu0 %vm948_vm5, %v8898_v52  ;;  %v9678_v57 = vld [vmem:[#allocation2 + $0x84] sm:$0xff]  }
 0x13e   : > { %v2018_v4 = vadd.f32 %v1970_v0, %v1779_v63  ;;  %v8331_v5 = vpop.f32.mrb[26].mxu1  ;;  %8590 = vmatprep.mubr.msk.bf16.mxu0 %vm948_vm5, %v8900_v55  ;;  %v1979_v63 = vld [vmem:[#allocation3 + $0x48] sm:$0xff]  ;;  %v4421_v0 = vsel %vm2289_vm10, %v4418_v22, %v4420_v47  ;;  %v4426_v22 = vrot.slane %v9678_v57, 1 }
 0x13f   : > { %2068 = vst.msk [vmem:[#allocation3 + $0x10] sm:$0xff] %vm1246_vm11, %v2020_v59  ;;  %v2021_v37 = vadd.f32 %v8331_v5, %v1973_v6  ;;  %v1782_v9 = vpop.f32.mrb[27].mxu1 }
 0x140   : > { %2066 = vst.msk [vmem:[#allocation3] sm:$0xff] %vm1246_vm11, %v2018_v4  ;;  %v2019_v56 = vadd.f32 %v1971_v10, %v1782_v9  ;;  %v8380_v60 = vpop.f32.mrb[24].mxu0 }
 0x141   : > { %2069 = vst.msk [vmem:[#allocation3 + $0x18] sm:$0xff] %vm1246_vm11, %v2021_v37  ;;  %8541 = vmatmul.mubr.msk.bf16.gmra.mrb[132].mxu1 %vm948_vm5, %v4413_v8  ;;  %v2451_v61 = vpop.f32.mrb[25].mxu0  ;;  %v4423_v8 = vsel %vm2289_vm10, %v4420_v47, %v4422_v2 }
 0x142   : > { %2067 = vst.msk [vmem:[#allocation3 + $0x8] sm:$0xff] %vm1246_vm11, %v2019_v56  ;;  %8544 = vmatprep.mubr.msk.bf16.mxu1 %vm948_vm5, %v4415_v16  ;;  %v8381_v19 = vpop.f32.mrb[26].mxu0 }
 0x143   : > { %v2454_v25 = vpop.f32.mrb[27].mxu0 }
 0x144   : > { %v8334_v23 = vpop.f32.mrb[28].mxu1 }
 0x145   : > { %v2024_v27 = vadd.f32 %v8334_v23, %v1976_v15  ;;  %v1795_v28 = vpop.f32.mrb[29].mxu1  ;;  %8591 = vmatmul.mubr.msk.bf16.gmra.mrb[132].mxu0 %vm948_vm5, %v8902_v12  ;;  %v8910_v12 = vld [vmem:[#allocation2 + $0x70] sm:$0xff]  }
 0x146   : > { %v2644_v31 = vld [vmem:[#allocation3 + $0x10] sm:$0xff]  ;;  %v2022_v32 = vadd.f32 %v1974_v24, %v1795_v28  ;;  %v8335_v36 = vpop.f32.mrb[30].mxu1  ;;  %8594 = vmatprep.mubr.msk.bf16.mxu0 %vm948_vm5, %v8904_v21 }
 0x147   : > { %v2692_v33 = vadd.f32 %v8380_v60, %v2644_v31  ;;  %2072 = vst.msk [vmem:[#allocation3 + $0x30] sm:$0xff] %vm1246_vm11, %v2024_v27  ;;  %v2642_v35 = vld [vmem:[#allocation3] sm:$0xff]  ;;  %v2025_v13 = vadd.f32 %v8335_v36, %v1977_v29  ;;  %v1798_v38 = vpop.f32.mrb[31].mxu1  ;;  %v8912_v21 = vld [vmem:[#allocation2 + $0x78] sm:$0xff]   ;;  %v4425_v31 = vsel %vm2289_vm10, %v4422_v2, %v4424_v17 }
 0x148   : > { %v2690_v39 = vadd.f32 %v2642_v35, %v2451_v61  ;;  %2070 = vst.msk [vmem:[#allocation3 + $0x20] sm:$0xff] %vm1246_vm11, %v2022_v32  ;;  %v2645_v18 = vld [vmem:[#allocation3 + $0x18] sm:$0xff]  ;;  %v2023_v41 = vadd.f32 %v1975_v62, %v1798_v38  ;;  %v8384_v43 = vpop.f32.mrb[28].mxu0  ;;  %v1984_v15 = vld [vmem:[#allocation3 + $0x70] sm:$0xff]  ;;  %v1982_v27 = vld [vmem:[#allocation3 + $0x60] sm:$0xff]  ;;  %v4427_v38 = vsel %vm2289_vm10, %v4424_v17, %v4426_v22 }
 0x149   : > { %2740 = vst.msk [vmem:[#allocation3 + $0x10] sm:$0xff] %vm1246_vm11, %v2692_v33  ;;  %v2693_v40 = vadd.f32 %v8381_v19, %v2645_v18  ;;  %2073 = vst.msk [vmem:[#allocation3 + $0x38] sm:$0xff] %vm1246_vm11, %v2025_v13  ;;  %v2643_v42 = vld [vmem:[#allocation3 + $0x8] sm:$0xff]  ;;  %8545 = vmatmul.mubr.msk.bf16.gmra.mrb[136].mxu1 %vm948_vm5, %v4417_v14  ;;  %v2467_v45 = vpop.f32.mrb[29].mxu0 }
 0x14a   : > { %2738 = vst.msk [vmem:[#allocation3] sm:$0xff] %vm1246_vm11, %v2690_v39  ;;  %v2691_v44 = vadd.f32 %v2643_v42, %v2454_v25  ;;  %2071 = vst.msk [vmem:[#allocation3 + $0x28] sm:$0xff] %vm1246_vm11, %v2023_v41  ;;  %8548 = vmatprep.mubr.msk.bf16.mxu1 %vm948_vm5, %v4419_v7  ;;  %v8385_v48 = vpop.f32.mrb[30].mxu0  ;;  %v8915_v32 = vld [vmem:[#allocation2 + $0x8c] sm:$0xff]   ;;  %v9700_v7 = vld [vmem:[#allocation2 + $0x94] sm:$0xff]  }
 0x14b   : > { %2741 = vst.msk [vmem:[#allocation3 + $0x18] sm:$0xff] %vm1246_vm11, %v2693_v40  ;;  %v2470_v52 = vpop.f32.mrb[31].mxu0  ;;  %v1983_v13 = vld [vmem:[#allocation3 + $0x68] sm:$0xff]  ;;  %v4428_v47 = vrot.slane %v8915_v32, 1  ;;  %v4430_v2 = vrot.slane %v9700_v7, 1  ;;  %v9734_v7 = vld [vmem:[#allocation2 + $0xb4] sm:$0xff]  }
 0x14c   : > { %2739 = vst.msk [vmem:[#allocation3 + $0x8] sm:$0xff] %vm1246_vm11, %v2691_v44  ;;  %v8338_v49 = vpop.f32.mrb[32].mxu1  ;;  %v8923_v32 = vld [vmem:[#allocation2 + $0xac] sm:$0xff]  }
 0x14d   : > { %v2028_v54 = vadd.f32 %v8338_v49, %v1980_v50  ;;  %v1811_v55 = vpop.f32.mrb[33].mxu1  ;;  %8595 = vmatmul.mubr.msk.bf16.gmra.mrb[136].mxu0 %vm948_vm5, %v8906_v46  ;;  %v8914_v46 = vld [vmem:[#allocation2 + $0x80] sm:$0xff]   ;;  %v1988_v50 = vld [vmem:[#allocation3 + $0x90] sm:$0xff] }
 0x14e   : > { %v2648_v34 = vld [vmem:[#allocation3 + $0x30] sm:$0xff]  ;;  %v2026_v58 = vadd.f32 %v1978_v51, %v1811_v55  ;;  %v8339_v59 = vpop.f32.mrb[34].mxu1  ;;  %8598 = vmatprep.mubr.msk.bf16.mxu0 %vm948_vm5, %v8908_v20  ;;  %v8916_v20 = vld [vmem:[#allocation2 + $0x88] sm:$0xff]  }
 0x14f   : > { %v2696_v1 = vadd.f32 %v8384_v43, %v2648_v34  ;;  %2076 = vst.msk [vmem:[#allocation3 + $0x50] sm:$0xff] %vm1246_vm11, %v2028_v54  ;;  %v2646_v4 = vld [vmem:[#allocation3 + $0x20] sm:$0xff]  ;;  %v2029_v5 = vadd.f32 %v8339_v59, %v1981_v3  ;;  %v1814_v6 = vpop.f32.mrb[35].mxu1  ;;  %v1989_v34 = vld [vmem:[#allocation3 + $0x98] sm:$0xff] }
 0x150   : > { %v2694_v37 = vadd.f32 %v2646_v4, %v2467_v45  ;;  %2074 = vst.msk [vmem:[#allocation3 + $0x40] sm:$0xff] %vm1246_vm11, %v2026_v58  ;;  %v2649_v9 = vld [vmem:[#allocation3 + $0x38] sm:$0xff]  ;;  %v2027_v10 = vadd.f32 %v1979_v63, %v1814_v6  ;;  %v8388_v56 = vpop.f32.mrb[32].mxu0  ;;  %v1986_v54 = vld [vmem:[#allocation3 + $0x80] sm:$0xff]  ;;  %v4429_v58 = vsel %vm2289_vm10, %v4426_v22, %v4428_v47  ;;  %v4431_v6 = vsel %vm2289_vm10, %v4428_v47, %v4430_v2 }
 0x151   : > { %2744 = vst.msk [vmem:[#allocation3 + $0x30] sm:$0xff] %vm1246_vm11, %v2696_v1  ;;  %v2697_v16 = vadd.f32 %v8385_v48, %v2649_v9  ;;  %2077 = vst.msk [vmem:[#allocation3 + $0x58] sm:$0xff] %vm1246_vm11, %v2029_v5  ;;  %v2647_v11 = vld [vmem:[#allocation3 + $0x28] sm:$0xff]  ;;  %8549 = vmatmul.mubr.msk.bf16.gmra.mrb[140].mxu1 %vm948_vm5, %v4421_v0  ;;  %v2483_v61 = vpop.f32.mrb[33].mxu0  ;;  %v8919_v59 = vld [vmem:[#allocation2 + $0x9c] sm:$0xff]   ;;  %v4436_v47 = vrot.slane %v8923_v32, 1 }
 0x152   : > { %2742 = vst.msk [vmem:[#allocation3 + $0x20] sm:$0xff] %vm1246_vm11, %v2694_v37  ;;  %v2695_v60 = vadd.f32 %v2647_v11, %v2470_v52  ;;  %2075 = vst.msk [vmem:[#allocation3 + $0x48] sm:$0xff] %vm1246_vm11, %v2027_v10  ;;  %8552 = vmatprep.mubr.msk.bf16.mxu1 %vm948_vm5, %v4423_v8  ;;  %v8389_v19 = vpop.f32.mrb[34].mxu0  ;;  %v1987_v5 = vld [vmem:[#allocation3 + $0x88] sm:$0xff]  ;;  %v9717_v8 = vld [vmem:[#allocation2 + $0xa4] sm:$0xff]   ;;  %v4432_v17 = vrot.slane %v8919_v59, 1 }
 0x153   : > { %2745 = vst.msk [vmem:[#allocation3 + $0x38] sm:$0xff] %vm1246_vm11, %v2697_v16  ;;  %v2486_v24 = vpop.f32.mrb[35].mxu0  ;;  %v4434_v22 = vrot.slane %v9717_v8, 1 }
 0x154   : > { %2743 = vst.msk [vmem:[#allocation3 + $0x28] sm:$0xff] %vm1246_vm11, %v2695_v60  ;;  %v8342_v23 = vpop.f32.mrb[36].mxu1 }
 0x155   : > { %v2032_v25 = vadd.f32 %v8342_v23, %v1984_v15  ;;  %v1827_v26 = vpop.f32.mrb[37].mxu1  ;;  %8599 = vmatmul.mubr.msk.bf16.gmra.mrb[140].mxu0 %vm948_vm5, %v8910_v12  ;;  %v8918_v12 = vld [vmem:[#allocation2 + $0x90] sm:$0xff]   ;;  %v4437_v59 = vsel %vm2289_vm10, %v4434_v22, %v4436_v47 }
 0x156   : > { %v2652_v28 = vld [vmem:[#allocation3 + $0x50] sm:$0xff]  ;;  %v2030_v29 = vadd.f32 %v1982_v27, %v1827_v26  ;;  %v8343_v62 = vpop.f32.mrb[38].mxu1  ;;  %8602 = vmatprep.mubr.msk.bf16.mxu0 %vm948_vm5, %v8912_v21  ;;  %v1990_v27 = vld [vmem:[#allocation3 + $0xa0] sm:$0xff] }
 0x157   : > { %v2700_v36 = vadd.f32 %v8388_v56, %v2652_v28  ;;  %2080 = vst.msk [vmem:[#allocation3 + $0x70] sm:$0xff] %vm1246_vm11, %v2032_v25  ;;  %v2650_v14 = vld [vmem:[#allocation3 + $0x40] sm:$0xff]  ;;  %v2033_v33 = vadd.f32 %v8343_v62, %v1985_v30  ;;  %v1830_v35 = vpop.f32.mrb[39].mxu1  ;;  %v8920_v21 = vld [vmem:[#allocation2 + $0x98] sm:$0xff]  }
 0x158   : > { %v2698_v39 = vadd.f32 %v2650_v14, %v2483_v61  ;;  %2078 = vst.msk [vmem:[#allocation3 + $0x60] sm:$0xff] %vm1246_vm11, %v2030_v29  ;;  %v2653_v18 = vld [vmem:[#allocation3 + $0x58] sm:$0xff]  ;;  %v2031_v41 = vadd.f32 %v1983_v13, %v1830_v35  ;;  %v8392_v43 = vpop.f32.mrb[36].mxu0  ;;  %v1992_v15 = vld [vmem:[#allocation3 + $0xb0] sm:$0xff]  ;;  %v1991_v13 = vld [vmem:[#allocation3 + $0xa8] sm:$0xff] }
 0x159   : > { %2748 = vst.msk [vmem:[#allocation3 + $0x50] sm:$0xff] %vm1246_vm11, %v2700_v36  ;;  %v2701_v40 = vadd.f32 %v8389_v19, %v2653_v18  ;;  %2081 = vst.msk [vmem:[#allocation3 + $0x78] sm:$0xff] %vm1246_vm11, %v2033_v33  ;;  %v2651_v42 = vld [vmem:[#allocation3 + $0x48] sm:$0xff]  ;;  %8553 = vmatmul.mubr.msk.bf16.gmra.mrb[144].mxu1 %vm948_vm5, %v4425_v31  ;;  %v2499_v45 = vpop.f32.mrb[37].mxu0  ;;  %v1993_v30 = vld [vmem:[#allocation3 + $0xb8] sm:$0xff]  ;;  %v4433_v31 = vsel %vm2289_vm10, %v4430_v2, %v4432_v17  ;;  %v4438_v2 = vrot.slane %v9734_v7, 1 }
 0x15a   : > { %2746 = vst.msk [vmem:[#allocation3 + $0x40] sm:$0xff] %vm1246_vm11, %v2698_v39  ;;  %v2699_v44 = vadd.f32 %v2651_v42, %v2486_v24  ;;  %2079 = vst.msk [vmem:[#allocation3 + $0x68] sm:$0xff] %vm1246_vm11, %v2031_v41  ;;  %8556 = vmatprep.mubr.msk.bf16.mxu1 %vm948_vm5, %v4427_v38  ;;  %v8393_v48 = vpop.f32.mrb[38].mxu0  ;;  %v4435_v38 = vsel %vm2289_vm10, %v4432_v17, %v4434_v22 }
 0x15b   : > { %2749 = vst.msk [vmem:[#allocation3 + $0x58] sm:$0xff] %vm1246_vm11, %v2701_v40  ;;  %v2502_v51 = vpop.f32.mrb[39].mxu0  ;;  %v4439_v8 = vsel %vm2289_vm10, %v4436_v47, %v4438_v2 }
 0x15c   : > { %2747 = vst.msk [vmem:[#allocation3 + $0x48] sm:$0xff] %vm1246_vm11, %v2699_v44  ;;  %v8346_v49 = vpop.f32.mrb[40].mxu1 }
 0x15d   : > { %v2036_v52 = vadd.f32 %v8346_v49, %v1988_v50  ;;  %v1843_v53 = vpop.f32.mrb[41].mxu1  ;;  %8603 = vmatmul.mubr.msk.bf16.gmra.mrb[144].mxu0 %vm948_vm5, %v8914_v46  ;;  %v8922_v46 = vld [vmem:[#allocation2 + $0xa0] sm:$0xff]   ;;  %v1996_v50 = vld [vmem:[#allocation3 + $0xd0] sm:$0xff] }
 0x15e   : > { %v2656_v55 = vld [vmem:[#allocation3 + $0x70] sm:$0xff]  ;;  %v2034_v3 = vadd.f32 %v1986_v54, %v1843_v53  ;;  %v8347_v57 = vpop.f32.mrb[42].mxu1  ;;  %8606 = vmatprep.mubr.msk.bf16.mxu0 %vm948_vm5, %v8916_v20  ;;  %v8924_v20 = vld [vmem:[#allocation2 + $0xa8] sm:$0xff]  }
 0x15f   : > { %v2704_v63 = vadd.f32 %v8392_v43, %v2656_v55  ;;  %2084 = vst.msk [vmem:[#allocation3 + $0x90] sm:$0xff] %vm1246_vm11, %v2036_v52  ;;  %v2654_v0 = vld [vmem:[#allocation3 + $0x60] sm:$0xff]  ;;  %v2037_v1 = vadd.f32 %v8347_v57, %v1989_v34  ;;  %v1846_v4 = vpop.f32.mrb[43].mxu1  ;;  %v9746_v55 = vld [vmem:[#allocation2 + $0xbc] sm:$0xff]  }
 0x160   : > { %v2702_v37 = vadd.f32 %v2654_v0, %v2499_v45  ;;  %2082 = vst.msk [vmem:[#allocation3 + $0x80] sm:$0xff] %vm1246_vm11, %v2034_v3  ;;  %v2657_v9 = vld [vmem:[#allocation3 + $0x78] sm:$0xff]  ;;  %v2035_v10 = vadd.f32 %v1987_v5, %v1846_v4  ;;  %v8396_v56 = vpop.f32.mrb[40].mxu0  ;;  %v1994_v54 = vld [vmem:[#allocation3 + $0xc0] sm:$0xff] }
 0x161   : > { %2752 = vst.msk [vmem:[#allocation3 + $0x70] sm:$0xff] %vm1246_vm11, %v2704_v63  ;;  %v2705_v16 = vadd.f32 %v8393_v48, %v2657_v9  ;;  %2085 = vst.msk [vmem:[#allocation3 + $0x98] sm:$0xff] %vm1246_vm11, %v2037_v1  ;;  %v2655_v11 = vld [vmem:[#allocation3 + $0x68] sm:$0xff]  ;;  %8557 = vmatmul.mubr.msk.bf16.gmra.mrb[148].mxu1 %vm948_vm5, %v4429_v58  ;;  %v2515_v61 = vpop.f32.mrb[41].mxu0  ;;  %v1997_v58 = vld [vmem:[#allocation3 + $0xd8] sm:$0xff] }
 0x162   : > { %2750 = vst.msk [vmem:[#allocation3 + $0x60] sm:$0xff] %vm1246_vm11, %v2702_v37  ;;  %v2703_v60 = vadd.f32 %v2655_v11, %v2502_v51  ;;  %2083 = vst.msk [vmem:[#allocation3 + $0x88] sm:$0xff] %vm1246_vm11, %v2035_v10  ;;  %8560 = vmatprep.mubr.msk.bf16.mxu1 %vm948_vm5, %v4431_v6  ;;  %v8397_v19 = vpop.f32.mrb[42].mxu0  ;;  %v9750_v63 = vld [vmem:[#allocation2 + $0x18] sm:$0xff]   ;;  %v1995_v6 = vld [vmem:[#allocation3 + $0xc8] sm:$0xff] }
 0x163   : > { %2753 = vst.msk [vmem:[#allocation3 + $0x78] sm:$0xff] %vm1246_vm11, %v2705_v16  ;;  %v2518_v24 = vpop.f32.mrb[43].mxu0  ;;  %v9755_v37 = vld [vmem:[#allocation2 + $0xc4] sm:$0xff]   ;;  %v5689_v22 = vshll.u32 %v9750_v63, 16 }
 0x164   : > { %2751 = vst.msk [vmem:[#allocation3 + $0x68] sm:$0xff] %vm1246_vm11, %v2703_v60  ;;  %v8350_v23 = vpop.f32.mrb[44].mxu1 }
 0x165   : > { %v2040_v25 = vadd.f32 %v8350_v23, %v1992_v15  ;;  %v1859_v26 = vpop.f32.mrb[45].mxu1  ;;  %8607 = vmatmul.mubr.msk.bf16.gmra.mrb[148].mxu0 %vm948_vm5, %v8918_v12  ;;  %v8928_v15 = vld [vmem:[#allocation2 + $0xb8] sm:$0xff]  }
 0x166   : > { %v2660_v28 = vld [vmem:[#allocation3 + $0x90] sm:$0xff]  ;;  %v2038_v29 = vadd.f32 %v1990_v27, %v1859_v26  ;;  %v8351_v62 = vpop.f32.mrb[46].mxu1  ;;  %8610 = vmatprep.mubr.msk.bf16.mxu0 %vm948_vm5, %v8920_v21  ;;  %v9765_v21 = vld [vmem:[#allocation2 + $0x20] sm:$0xff]  }
 0x167   : > { %v2708_v36 = vadd.f32 %v8396_v56, %v2660_v28  ;;  %2088 = vst.msk [vmem:[#allocation3 + $0xb0] sm:$0xff] %vm1246_vm11, %v2040_v25  ;;  %v2658_v14 = vld [vmem:[#allocation3 + $0x80] sm:$0xff]  ;;  %v2041_v33 = vadd.f32 %v8351_v62, %v1993_v30  ;;  %v1862_v35 = vpop.f32.mrb[47].mxu1  ;;  %v2000_v26 = vld [vmem:[#allocation3 + $0xf0] sm:$0xff] }
 0x168   : > { %v2706_v39 = vadd.f32 %v2658_v14, %v2515_v61  ;;  %2086 = vst.msk [vmem:[#allocation3 + $0xa0] sm:$0xff] %vm1246_vm11, %v2038_v29  ;;  %v2661_v18 = vld [vmem:[#allocation3 + $0x98] sm:$0xff]  ;;  %v2039_v41 = vadd.f32 %v1991_v13, %v1862_v35  ;;  %v8400_v43 = vpop.f32.mrb[44].mxu0  ;;  %v4440_v61 = vrot.slane %v9746_v55, 1  ;;  %v1998_v62 = vld [vmem:[#allocation3 + $0xe0] sm:$0xff]  ;;  %v5687_v35 = vshrl.u32 %v9750_v63, 16 }
 0x169   : > { %2756 = vst.msk [vmem:[#allocation3 + $0x90] sm:$0xff] %vm1246_vm11, %v2708_v36  ;;  %v2709_v40 = vadd.f32 %v8397_v19, %v2661_v18  ;;  %2089 = vst.msk [vmem:[#allocation3 + $0xb8] sm:$0xff] %vm1246_vm11, %v2041_v33  ;;  %v2659_v42 = vld [vmem:[#allocation3 + $0x88] sm:$0xff]  ;;  %8561 = vmatmul.mubr.msk.bf16.gmra.mrb[152].mxu1 %vm948_vm5, %v4433_v31  ;;  %v2531_v45 = vpop.f32.mrb[45].mxu0  ;;  %v2001_v33 = vld [vmem:[#allocation3 + $0xf8] sm:$0xff]  ;;  %v5691_v13 = vrot.slane %v5689_v22, 1 }
 0x16a   : > { %2754 = vst.msk [vmem:[#allocation3 + $0x80] sm:$0xff] %vm1246_vm11, %v2706_v39  ;;  %v2707_v44 = vadd.f32 %v2659_v42, %v2518_v24  ;;  %2087 = vst.msk [vmem:[#allocation3 + $0xa8] sm:$0xff] %vm1246_vm11, %v2039_v41  ;;  %8564 = vmatprep.mubr.msk.bf16.mxu1 %vm948_vm5, %v4435_v38  ;;  %v8401_v48 = vpop.f32.mrb[46].mxu0  ;;  %v8926_v19 = vld [vmem:[#allocation2 + $0xb0] sm:$0xff]   ;;  %v4442_v24 = vrot.slane %v9755_v37, 1  ;;  %v4441_v30 = vsel %vm2289_vm10, %v4438_v2, %v4440_v61  ;;  %v5694_v38 = vshll.u32 %v9765_v21, 16 }
 0x16b   : > { %2757 = vst.msk [vmem:[#allocation3 + $0x98] sm:$0xff] %vm1246_vm11, %v2709_v40  ;;  %v2534_v51 = vpop.f32.mrb[47].mxu0  ;;  %v8931_v31 = vld [vmem:[#allocation2 + $0xcc] ss:$0 sps:$4 sm:$0x11]   ;;  %v9793_v63 = vld [vmem:[#allocation2 + $0x20] sm:$0xff]  }
 0x16c   : > { %2755 = vst.msk [vmem:[#allocation3 + $0x88] sm:$0xff] %vm1246_vm11, %v2707_v44  ;;  %v8354_v49 = vpop.f32.mrb[48].mxu1  ;;  %v1999_v40 = vld [vmem:[#allocation3 + $0xe8] sm:$0xff]  ;;  %v4443_v42 = vsel %vm2289_vm10, %v4440_v61, %v4442_v24 }
 0x16d   : > { %v2044_v52 = vadd.f32 %v8354_v49, %v1996_v50  ;;  %v1875_v53 = vpop.f32.mrb[49].mxu1  ;;  %8611 = vmatmul.mubr.msk.bf16.gmra.mrb[152].mxu0 %vm948_vm5, %v8922_v46  ;;  %v8930_v50 = vld [vmem:[#allocation2 + $0xc0] sm:$0xff]   ;;  %v8932_v55 = vld [vmem:[#allocation2 + $0xc8] sm:$0xff]  }
 0x16e   : > { %v2664_v3 = vld [vmem:[#allocation3 + $0xb0] sm:$0xff]  ;;  %v2042_v57 = vadd.f32 %v1994_v54, %v1875_v53  ;;  %v8355_v34 = vpop.f32.mrb[50].mxu1  ;;  %8614 = vmatprep.mubr.msk.bf16.mxu0 %vm948_vm5, %v8924_v20  ;;  %v9784_v20 = vld [vmem:[#allocation2 + $0x28] sm:$0xff]   ;;  %v5696_v53 = vrot.slane %v5694_v38, 1 }
 0x16f   : > { %v2712_v0 = vadd.f32 %v8400_v43, %v2664_v3  ;;  %2092 = vst.msk [vmem:[#allocation3 + $0xd0] sm:$0xff] %vm1246_vm11, %v2044_v52  ;;  %v2662_v1 = vld [vmem:[#allocation3 + $0xa0] sm:$0xff]  ;;  %v2045_v4 = vadd.f32 %v8355_v34, %v1997_v58  ;;  %v1878_v5 = vpop.f32.mrb[51].mxu1  ;;  %v5692_v52 = vor.u32 %v5691_v13, %v5687_v35  ;;  %v9790_v3 = vld [vmem:[#allocation2 + $0x30] sm:$0xff]   ;;  %v5706_v22 = vshrl.u32 %v9784_v20, 16 }
 0x170   : > { %v2710_v9 = vadd.f32 %v2662_v1, %v2531_v45  ;;  %2090 = vst.msk [vmem:[#allocation3 + $0xc0] sm:$0xff] %vm1246_vm11, %v2042_v57  ;;  %v2665_v10 = vld [vmem:[#allocation3 + $0xb8] sm:$0xff]  ;;  %v2043_v16 = vadd.f32 %v1995_v6, %v1878_v5  ;;  %v8404_v60 = vpop.f32.mrb[48].mxu0  ;;  %v2004_v34 = vld [vmem:[#allocation3 + $0x110] sm:$0xff]  ;;  %v5702_v5 = vshll.u32 %v9784_v20, 16  ;;  %v8940_v38 = vld [vmem:[#allocation2 + $0x28] sm:$0xff]  }
 0x171   : > { %2760 = vst.msk [vmem:[#allocation3 + $0xb0] sm:$0xff] %vm1246_vm11, %v2712_v0  ;;  %v2713_v11 = vadd.f32 %v8401_v48, %v2665_v10  ;;  %2093 = vst.msk [vmem:[#allocation3 + $0xd8] sm:$0xff] %vm1246_vm11, %v2045_v4  ;;  %v2663_v56 = vld [vmem:[#allocation3 + $0xa8] sm:$0xff]  ;;  %8565 = vmatmul.mubr.msk.bf16.gmra.mrb[156].mxu1 %vm948_vm5, %v4437_v59  ;;  %v2547_v17 = vpop.f32.mrb[49].mxu0  ;;  %v8937_v59 = vld [vmem:[#allocation2 + $0x18] sm:$0xfe]  }
 0x172   : > { %2758 = vst.msk [vmem:[#allocation3 + $0xa0] sm:$0xff] %vm1246_vm11, %v2710_v9  ;;  %v2711_v12 = vadd.f32 %v2663_v56, %v2534_v51  ;;  %2091 = vst.msk [vmem:[#allocation3 + $0xc8] sm:$0xff] %vm1246_vm11, %v2043_v16  ;;  %8568 = vmatprep.mubr.msk.bf16.mxu1 %vm948_vm5, %v4439_v8  ;;  %v8405_v23 = vpop.f32.mrb[50].mxu0  ;;  %v4444_v51 = vrot.slane %v8931_v31, 1  ;;  %v2002_v4 = vld [vmem:[#allocation3 + $0x100] sm:$0xff]  ;;  %v2005_v10 = vld [vmem:[#allocation3 + $0x118] sm:$0xff] }
 0x173   : > { %2761 = vst.msk [vmem:[#allocation3 + $0xb8] sm:$0xff] %vm1246_vm11, %v2713_v11  ;;  %v2550_v27 = vpop.f32.mrb[51].mxu0  ;;  %v5697_v11 = vsel %vm1470_vm9, %v5692_v52, %v5696_v53  ;;  %v5698_v56 = vshrl.u32 %v9765_v21, 16  ;;  %v6505_v21 = vrot.slane %v9793_v63, 1 }
 0x174   : > { %2759 = vst.msk [vmem:[#allocation3 + $0xa8] sm:$0xff] %vm1246_vm11, %v2711_v12  ;;  %v8358_v25 = vpop.f32.mrb[52].mxu1  ;;  %v4445_v16 = vsel %vm2289_vm10, %v4442_v24, %v4444_v51 }
 0x175   : > { %v2048_v28 = vadd.f32 %v8358_v25, %v2000_v26  ;;  %v1891_v29 = vpop.f32.mrb[53].mxu1  ;;  %8615 = vmatmul.mubr.msk.bf16.gmra.mrb[156].mxu0 %vm948_vm5, %v8926_v19  ;;  %v2003_v19 = vld [vmem:[#allocation3 + $0x108] sm:$0xff]  ;;  %v6504_v25 = vrot.slane %v8937_v59, 1  ;;  %v9808_v26 = vld [vmem:[#allocation2 + $0x38] sm:$0xff]  }
 0x176   : > { %v2668_v32 = vld [vmem:[#allocation3 + $0xd0] sm:$0xff]  ;;  %v2046_v36 = vadd.f32 %v1998_v62, %v1891_v29  ;;  %v8359_v14 = vpop.f32.mrb[54].mxu1  ;;  %8618 = vmatprep.mubr.msk.bf16.mxu0 %vm948_vm5, %v8928_v15  ;;  %v5704_v62 = vrot.slane %v5702_v5, 1 }
 0x177   : > { %v2716_v7 = vadd.f32 %v8404_v60, %v2668_v32  ;;  %2096 = vst.msk [vmem:[#allocation3 + $0xf0] sm:$0xff] %vm1246_vm11, %v2048_v28  ;;  %v2666_v39 = vld [vmem:[#allocation3 + $0xc0] sm:$0xff]  ;;  %v2049_v18 = vadd.f32 %v8359_v14, %v2001_v33  ;;  %v1894_v41 = vpop.f32.mrb[55].mxu1  ;;  %v8933_v32 = vld [vmem:[#allocation2 + $0xd0] sm:$0xff]  }
 0x178   : > { %v2714_v43 = vadd.f32 %v2666_v39, %v2547_v17  ;;  %2094 = vst.msk [vmem:[#allocation3 + $0xe0] sm:$0xff] %vm1246_vm11, %v2046_v36  ;;  %v2669_v44 = vld [vmem:[#allocation3 + $0xd8] sm:$0xff]  ;;  %v2047_v45 = vadd.f32 %v1999_v40, %v1894_v41  ;;  %v8408_v48 = vpop.f32.mrb[52].mxu0  ;;  %v5700_v36 = vor.u32 %v5698_v56, %v5696_v53  ;;  %v5708_v35 = vor.u32 %v5706_v22, %v5704_v62  ;;  %v2008_v39 = vld [vmem:[#allocation3 + $0x130] sm:$0xff] }
 0x179   : > { %2764 = vst.msk [vmem:[#allocation3 + $0xd0] sm:$0xff] %vm1246_vm11, %v2716_v7  ;;  %v2717_v46 = vadd.f32 %v8405_v23, %v2669_v44  ;;  %2097 = vst.msk [vmem:[#allocation3 + $0xf8] sm:$0xff] %vm1246_vm11, %v2049_v18  ;;  %v2667_v47 = vld [vmem:[#allocation3 + $0xc8] sm:$0xff]  ;;  %8569 = vmatmul.mubr.msk.bf16.gmra.mrb[160].mxu1 %vm948_vm5, %v4441_v30  ;;  %v2563_v49 = vpop.f32.mrb[53].mxu0  ;;  %v5710_v23 = vshll.u32 %v9790_v3, 16  ;;  %v9816_v14 = vld [vmem:[#allocation2 + $0x40] sm:$0xff]   ;;  %v6506_v41 = vsel %vm2289_vm10, %v6504_v25, %v6505_v21 }
 0x17a   : > { %2762 = vst.msk [vmem:[#allocation3 + $0xc0] sm:$0xff] %vm1246_vm11, %v2714_v43  ;;  %v2715_v2 = vadd.f32 %v2667_v47, %v2550_v27  ;;  %2095 = vst.msk [vmem:[#allocation3 + $0xe8] sm:$0xff] %vm1246_vm11, %v2047_v45  ;;  %8572 = vmatprep.mubr.msk.bf16.mxu1 %vm948_vm5, %v4443_v42  ;;  %v8409_v54 = vpop.f32.mrb[54].mxu0  ;;  %v5718_v40 = vshll.u32 %v9808_v26, 16  ;;  %v9824_v42 = vld [vmem:[#allocation2 + $0x30] sm:$0xff]   ;;  %v2006_v45 = vld [vmem:[#allocation3 + $0x120] sm:$0xff] }
 0x17b   : > { %2765 = vst.msk [vmem:[#allocation3 + $0xd8] sm:$0xff] %vm1246_vm11, %v2717_v46  ;;  %v2566_v58 = vpop.f32.mrb[55].mxu0  ;;  %v5712_v13 = vrot.slane %v5710_v23, 1  ;;  %v5714_v46 = vshrl.u32 %v9790_v3, 16  ;;  %v5726_v51 = vshll.u32 %v9816_v14, 16  ;;  %v2012_v23 = vld [vmem:[#allocation3 + $0x150] sm:$0xff] }
 0x17c   : > { %2763 = vst.msk [vmem:[#allocation3 + $0xc8] sm:$0xff] %vm1246_vm11, %v2715_v2  ;;  %v8362_v57 = vpop.f32.mrb[56].mxu1  ;;  %v2009_v2 = vld [vmem:[#allocation3 + $0x138] sm:$0xff] }
 0x17d   : > { %v2052_v0 = vadd.f32 %v8362_v57, %v2004_v34  ;;  %v1907_v1 = vpop.f32.mrb[57].mxu1  ;;  %8619 = vmatmul.mubr.msk.bf16.gmra.mrb[160].mxu0 %vm948_vm5, %v8930_v50  ;;  %v5722_v50 = vshrl.u32 %v9808_v26, 16  ;;  %v2007_v57 = vld [vmem:[#allocation3 + $0x128] sm:$0xff]  ;;  %v5713_v3 = vsel %vm1470_vm9, %v5708_v35, %v5712_v13  ;;  %v6507_v34 = vrot.slane %v8940_v38, 1 }
 0x17e   : > { %v2672_v6 = vld [vmem:[#allocation3 + $0xf0] sm:$0xff]  ;;  %v2050_v8 = vadd.f32 %v2002_v4, %v1907_v1  ;;  %v8363_v9 = vpop.f32.mrb[58].mxu1  ;;  %8622 = vmatprep.mubr.msk.bf16.mxu0 %vm948_vm5, %v8932_v55  ;;  %v5720_v1 = vrot.slane %v5718_v40, 1  ;;  %v6509_v4 = vrot.slane %v9824_v42, 1 }
 0x17f   : > { %v2720_v60 = vadd.f32 %v8408_v48, %v2672_v6  ;;  %2100 = vst.msk [vmem:[#allocation3 + $0x110] sm:$0xff] %vm1246_vm11, %v2052_v0  ;;  %v2670_v61 = vld [vmem:[#allocation3 + $0xe0] sm:$0xff]  ;;  %v2053_v12 = vadd.f32 %v8363_v9, %v2005_v10  ;;  %v1910_v17 = vpop.f32.mrb[59].mxu1  ;;  %v5716_v9 = vor.u32 %v5714_v46, %v5712_v13 }
 0x180   : > { %v2718_v37 = vadd.f32 %v2670_v61, %v2563_v49  ;;  %2098 = vst.msk [vmem:[#allocation3 + $0x100] sm:$0xff] %vm1246_vm11, %v2050_v8  ;;  %v2673_v15 = vld [vmem:[#allocation3 + $0xf8] sm:$0xff]  ;;  %v2051_v24 = vadd.f32 %v2003_v19, %v1910_v17  ;;  %v8412_v29 = vpop.f32.mrb[56].mxu0  ;;  %v5705_v49 = vsel %vm1470_vm9, %v5700_v36, %v5704_v62  ;;  %v9839_v10 = vld [vmem:[#allocation2 + $0x48] sm:$0xff]   ;;  %v5724_v56 = vor.u32 %v5722_v50, %v5720_v1  ;;  %v9850_v19 = vld [vmem:[#allocation2 + $0x50] sm:$0xff]  }
 0x181   : > { %2768 = vst.msk [vmem:[#allocation3 + $0xf0] sm:$0xff] %vm1246_vm11, %v2720_v60  ;;  %v2721_v27 = vadd.f32 %v8409_v54, %v2673_v15  ;;  %2101 = vst.msk [vmem:[#allocation3 + $0x118] sm:$0xff] %vm1246_vm11, %v2053_v12  ;;  %v2671_v28 = vld [vmem:[#allocation3 + $0xe8] sm:$0xff]  ;;  %8573 = vmatmul.mubr.msk.bf16.gmra.mrb[164].mxu1 %vm948_vm5, %v4445_v16  ;;  %v2579_v31 = vpop.f32.mrb[57].mxu0  ;;  %v5728_v60 = vrot.slane %v5726_v51, 1  ;;  %v9844_v61 = vld [vmem:[#allocation2 + $0x38] sm:$0xff]   ;;  %v6508_v17 = vsel %vm2289_vm10, %v6505_v21, %v6507_v34 }
 0x182   : > { %2766 = vst.msk [vmem:[#allocation3 + $0xe0] sm:$0xff] %vm1246_vm11, %v2718_v37  ;;  %v2719_v30 = vadd.f32 %v2671_v28, %v2566_v58  ;;  %2099 = vst.msk [vmem:[#allocation3 + $0x108] sm:$0xff] %vm1246_vm11, %v2051_v24  ;;  %8628 = vmatprep.mubr.msk.bf16.mxu1 %vm948_vm5, %v5697_v11  ;;  %v8413_v33 = vpop.f32.mrb[58].mxu0  ;;  %v6510_v15 = vsel %vm2289_vm10, %v6507_v34, %v6509_v4  ;;  %v9856_v24 = vld [vmem:[#allocation2 + $0x40] sm:$0xff]   ;;  %v5721_v63 = vsel %vm1470_vm9, %v5716_v9, %v5720_v1 }
 0x183   : > { %2769 = vst.msk [vmem:[#allocation3 + $0xf8] sm:$0xff] %vm1246_vm11, %v2721_v27  ;;  %v2582_v18 = vpop.f32.mrb[59].mxu0  ;;  %v2010_v27 = vld [vmem:[#allocation3 + $0x140] sm:$0xff]  ;;  %v5734_v21 = vshll.u32 %v9839_v10, 16  ;;  %v5730_v36 = vshrl.u32 %v9816_v14, 16  ;;  %v6513_v14 = vrot.slane %v9856_v24, 1 }
 0x184   : > { %2767 = vst.msk [vmem:[#allocation3 + $0xe8] sm:$0xff] %vm1246_vm11, %v2719_v30  ;;  %v8366_v7 = vpop.f32.mrb[60].mxu1  ;;  %v2013_v30 = vld [vmem:[#allocation3 + $0x158] sm:$0xff] }
 0x185   : > { %v2056_v43 = vadd.f32 %v8366_v7, %v2008_v39  ;;  %v1923_v44 = vpop.f32.mrb[61].mxu1  ;;  %8623 = vmatmul.mubr.msk.bf16.gmra.mrb[164].mxu0 %vm948_vm5, %v8933_v32  ;;  %v6511_v32 = vrot.slane %v9844_v61, 1  ;;  %v2011_v7 = vld [vmem:[#allocation3 + $0x148] sm:$0xff]  ;;  %v5738_v39 = vshrl.u32 %v9839_v10, 16  ;;  %v9878_v50 = vld [vmem:[#allocation2 + $0x60] sm:$0xff]  }
 0x186   : > { %v2676_v47 = vld [vmem:[#allocation3 + $0x110] sm:$0xff]  ;;  %v2054_v48 = vadd.f32 %v2006_v45, %v1923_v44  ;;  %v8367_v20 = vpop.f32.mrb[62].mxu1  ;;  %8678 = vmatprep.mubr.msk.bf16.mxu0 %vm948_vm5, %v6506_v41  ;;  %v2017_v10 = vld [vmem:[#allocation3 + $0x178] sm:$0xff] }
 0x187   : > { %v2724_v52 = vadd.f32 %v8412_v29, %v2676_v47  ;;  %2104 = vst.msk [vmem:[#allocation3 + $0x130] sm:$0xff] %vm1246_vm11, %v2056_v43  ;;  %v2674_v53 = vld [vmem:[#allocation3 + $0x100] sm:$0xff]  ;;  %v2057_v54 = vadd.f32 %v8367_v20, %v2009_v2  ;;  %v1926_v55 = vpop.f32.mrb[63].mxu1  ;;  %v9870_v44 = vld [vmem:[#allocation2 + $0x58] sm:$0xff]  }
 0x188   : > { %v2722_v58 = vadd.f32 %v2674_v53, %v2579_v31  ;;  %2102 = vst.msk [vmem:[#allocation3 + $0x120] sm:$0xff] %vm1246_vm11, %v2054_v48  ;;  %v2677_v59 = vld [vmem:[#allocation3 + $0x118] sm:$0xff]  ;;  %v2055_v0 = vadd.f32 %v2007_v57, %v1926_v55  ;;  %v8416_v8 = vpop.f32.mrb[60].mxu0  ;;  %v5729_v31 = vsel %vm1470_vm9, %v5724_v56, %v5728_v60  ;;  %v5736_v48 = vrot.slane %v5734_v21, 1  ;;  %v8948_v55 = vld [vmem:[#allocation2 + $0x48] sm:$0xff]  }
 0x189   : > { %2772 = vst.msk [vmem:[#allocation3 + $0x110] sm:$0xff] %vm1246_vm11, %v2724_v52  ;;  %v2725_v5 = vadd.f32 %v8413_v33, %v2677_v59  ;;  %2105 = vst.msk [vmem:[#allocation3 + $0x138] sm:$0xff] %vm1246_vm11, %v2057_v54  ;;  %v2675_v6 = vld [vmem:[#allocation3 + $0x108] sm:$0xff]  ;;  %8629 = vmatmul.mubr.msk.bf16.vlgmr.msra.gmra.mrb[168].mxu1 %vm948_vm5, %v5705_v49  ;;  %v2595_v11 = vpop.f32.mrb[61].mxu0  ;;  %v5732_v49 = vor.u32 %v5730_v36, %v5728_v60  ;;  %v6512_v52 = vsel %vm2289_vm10, %v6509_v4, %v6511_v32 }
 0x18a   : > { %2770 = vst.msk [vmem:[#allocation3 + $0x100] sm:$0xff] %vm1246_vm11, %v2722_v58  ;;  %v2723_v16 = vadd.f32 %v2675_v6, %v2582_v18  ;;  %2103 = vst.msk [vmem:[#allocation3 + $0x128] sm:$0xff] %vm1246_vm11, %v2055_v0  ;;  %8632 = vmatprep.mubr.msk.bf16.mxu1 %vm948_vm5, %v5713_v3  ;;  %v8417_v12 = vpop.f32.mrb[62].mxu0  ;;  %v5742_v18 = vshll.u32 %v9850_v19, 16  ;;  %v5740_v53 = vor.u32 %v5738_v39, %v5736_v48  ;;  %v2016_v3 = vld [vmem:[#allocation3 + $0x170] sm:$0xff]  ;;  %v5750_v59 = vshll.u32 %v9870_v44, 16 }
 0x18b   : > { %2773 = vst.msk [vmem:[#allocation3 + $0x118] sm:$0xff] %vm1246_vm11, %v2725_v5  ;;  %v2598_v37 = vpop.f32.mrb[63].mxu0  ;;  %v6514_v58 = vsel %vm2289_vm10, %v6511_v32, %v6513_v14  ;;  %v9889_v0 = vld [vmem:[#allocation2 + $0x50] sm:$0xff]   ;;  %v2014_v5 = vld [vmem:[#allocation3 + $0x160] sm:$0xff]  ;;  %v5746_v4 = vshrl.u32 %v9850_v19, 16  ;;  %v5758_v56 = vshll.u32 %v9878_v50, 16 }
 0x18c   : > { %2771 = vst.msk [vmem:[#allocation3 + $0x108] sm:$0xff] %vm1246_vm11, %v2723_v16  ;;  %v8370_v22 = vpop.f32.mrb[64].mxu1  ;;  %v5744_v54 = vrot.slane %v5742_v18, 1  ;;  %v5737_v16 = vsel %vm1470_vm9, %v5732_v49, %v5736_v48  ;;  %v3262_v39 = vld [vmem:[#allocation3 + $0x10] sm:$0xff] }
 0x18d   : > { %v2060_v25 = vadd.f32 %v8370_v22, %v2012_v23  ;;  %v1939_v26 = vpop.f32.mrb[65].mxu1  ;;  %8679 = vmatmul.mubr.msk.bf16.vlgmr.msra.gmra.mrb[168].mxu0 %vm948_vm5, %v6508_v17  ;;  %v2015_v22 = vld [vmem:[#allocation3 + $0x168] sm:$0xff]  ;;  %v6515_v23 = vrot.slane %v8948_v55, 1  ;;  %v5760_v36 = vrot.slane %v5758_v56, 1 }
 0x18e   : > { %v2680_v28 = vld [vmem:[#allocation3 + $0x130] sm:$0xff]  ;;  %v2058_v29 = vadd.f32 %v2010_v27, %v1939_v26  ;;  %v8371_v62 = vpop.f32.mrb[66].mxu1  ;;  %8682 = vmatprep.mubr.msk.bf16.mxu0 %vm948_vm5, %v6510_v15  ;;  %v5745_v19 = vsel %vm1470_vm9, %v5740_v53, %v5744_v54  ;;  %v5752_v26 = vrot.slane %v5750_v59, 1  ;;  %v6517_v27 = vrot.slane %v9889_v0, 1 }
 0x18f   : > { %v2728_v33 = vadd.f32 %v8416_v8, %v2680_v28  ;;  %2108 = vst.msk [vmem:[#allocation3 + $0x150] sm:$0xff] %vm1246_vm11, %v2060_v25  ;;  %v2678_v35 = vld [vmem:[#allocation3 + $0x120] sm:$0xff]  ;;  %v2061_v13 = vadd.f32 %v8371_v62, %v2013_v30  ;;  %v1942_v38 = vpop.f32.mrb[67].mxu1 }
 0x190   : > { %v2726_v41 = vadd.f32 %v2678_v35, %v2595_v11  ;;  %2106 = vst.msk [vmem:[#allocation3 + $0x140] sm:$0xff] %vm1246_vm11, %v2058_v29  ;;  %v2681_v40 = vld [vmem:[#allocation3 + $0x138] sm:$0xff]  ;;  %v2059_v43 = vadd.f32 %v2011_v7, %v1942_v38  ;;  %v8420_v47 = vpop.f32.mrb[64].mxu0  ;;  %v5754_v11 = vshrl.u32 %v9870_v44, 16  ;;  %v5748_v29 = vor.u32 %v5746_v4, %v5744_v54  ;;  %v9904_v62 = vld [vmem:[#allocation2 + $0x68] sm:$0xff]   ;;  %v9915_v38 = vld [vmem:[#allocation2 + $0x70] sm:$0xff]  }
 0x191   : > { %2776 = vst.msk [vmem:[#allocation3 + $0x130] sm:$0xff] %vm1246_vm11, %v2728_v33  ;;  %v2729_v45 = vadd.f32 %v8417_v12, %v2681_v40  ;;  %2109 = vst.msk [vmem:[#allocation3 + $0x158] sm:$0xff] %vm1246_vm11, %v2061_v13  ;;  %v2679_v46 = vld [vmem:[#allocation3 + $0x128] sm:$0xff]  ;;  %8633 = vmatmul.mubr.msk.bf16.gmra.mrb[172].mxu1 %vm948_vm5, %v5721_v63  ;;  %v2611_v2 = vpop.f32.mrb[65].mxu0  ;;  %v9909_v33 = vld [vmem:[#allocation2 + $0x58] sm:$0xff]   ;;  %v6516_v13 = vsel %vm2289_vm10, %v6513_v14, %v6515_v23  ;;  %v5766_v14 = vshll.u32 %v9904_v62, 16 }
 0x192   : > { %2774 = vst.msk [vmem:[#allocation3 + $0x120] sm:$0xff] %vm1246_vm11, %v2726_v41  ;;  %v2727_v20 = vadd.f32 %v2679_v46, %v2598_v37  ;;  %2107 = vst.msk [vmem:[#allocation3 + $0x148] sm:$0xff] %vm1246_vm11, %v2059_v43  ;;  %8636 = vmatprep.mubr.msk.bf16.mxu1 %vm948_vm5, %v5729_v31  ;;  %v8421_v51 = vpop.f32.mrb[66].mxu0  ;;  %v5756_v32 = vor.u32 %v5754_v11, %v5752_v26  ;;  %v6518_v41 = vsel %vm2289_vm10, %v6515_v23, %v6517_v27  ;;  %v9921_v40 = vld [vmem:[#allocation2 + $0x60] sm:$0xff]  }
 0x193   : > { %2777 = vst.msk [vmem:[#allocation3 + $0x138] sm:$0xff] %vm1246_vm11, %v2729_v45  ;;  %v2614_v34 = vpop.f32.mrb[67].mxu0  ;;  %v3260_v45 = vld [vmem:[#allocation3] sm:$0xff]  ;;  %v5753_v24 = vsel %vm1470_vm9, %v5748_v29, %v5752_v26  ;;  %v6519_v49 = vrot.slane %v9909_v33, 1 }
 0x194   : > { %2775 = vst.msk [vmem:[#allocation3 + $0x128] sm:$0xff] %vm1246_vm11, %v2727_v20  ;;  %v8374_v57 = vpop.f32.mrb[68].mxu1  ;;  %v3263_v20 = vld [vmem:[#allocation3 + $0x18] sm:$0xff] }
 0x195   : > { %v2064_v1 = vadd.f32 %v8374_v57, %v2016_v3  ;;  %v1955_v42 = vpop.f32.mrb[69].mxu1  ;;  %8683 = vmatmul.mubr.msk.bf16.gmra.mrb[172].mxu0 %vm948_vm5, %v6512_v52  ;;  %v3261_v57 = vld [vmem:[#allocation3 + $0x8] sm:$0xff]  ;;  %v5770_v3 = vshrl.u32 %v9904_v62, 16  ;;  %v9943_v11 = vld [vmem:[#allocation2 + $0x80] sm:$0xff]  }
 0x196   : > { %v2684_v6 = vld [vmem:[#allocation3 + $0x150] sm:$0xff]  ;;  %v2062_v8 = vadd.f32 %v2014_v5, %v1955_v42  ;;  %v8375_v9 = vpop.f32.mrb[70].mxu1  ;;  %8686 = vmatprep.mubr.msk.bf16.mxu0 %vm948_vm5, %v6514_v58  ;;  %v3267_v62 = vld [vmem:[#allocation3 + $0x38] sm:$0xff] }
 0x197   : > { %v2732_v60 = vadd.f32 %v8420_v47, %v2684_v6  ;;  %2112 = vst.msk [vmem:[#allocation3 + $0x170] sm:$0xff] %vm1246_vm11, %v2064_v1  ;;  %v2682_v61 = vld [vmem:[#allocation3 + $0x140] sm:$0xff]  ;;  %v2065_v12 = vadd.f32 %v8375_v9, %v2017_v10  ;;  %v1958_v17 = vpop.f32.mrb[71].mxu1  ;;  %v9935_v42 = vld [vmem:[#allocation2 + $0x78] sm:$0xff]  }
 0x198   : > { %v2730_v37 = vadd.f32 %v2682_v61, %v2611_v2  ;;  %2110 = vst.msk [vmem:[#allocation3 + $0x160] sm:$0xff] %vm1246_vm11, %v2062_v8  ;;  %v2685_v15 = vld [vmem:[#allocation3 + $0x158] sm:$0xff]  ;;  %v2063_v25 = vadd.f32 %v2015_v22, %v1958_v17  ;;  %v8424_v28 = vpop.f32.mrb[68].mxu0  ;;  %v5761_v2 = vsel %vm1470_vm9, %v5756_v32, %v5760_v36  ;;  %v5768_v8 = vrot.slane %v5766_v14, 1  ;;  %v8956_v17 = vld [vmem:[#allocation2 + $0x68] sm:$0xff]  }
 0x199   : > { %2780 = vst.msk [vmem:[#allocation3 + $0x150] sm:$0xff] %vm1246_vm11, %v2732_v60  ;;  %v2733_v63 = vadd.f32 %v8421_v51, %v2685_v15  ;;  %2113 = vst.msk [vmem:[#allocation3 + $0x178] sm:$0xff] %vm1246_vm11, %v2065_v12  ;;  %v2683_v21 = vld [vmem:[#allocation3 + $0x148] sm:$0xff]  ;;  %8637 = vmatmul.mubr.msk.bf16.gmra.mrb[176].mxu1 %vm948_vm5, %v5737_v16  ;;  %v2627_v31 = vpop.f32.mrb[69].mxu0  ;;  %v5762_v51 = vshrl.u32 %v9878_v50, 16  ;;  %v6521_v50 = vrot.slane %v9921_v40, 1  ;;  %v6520_v60 = vsel %vm2289_vm10, %v6517_v27, %v6519_v49 }
 0x19a   : > { %2778 = vst.msk [vmem:[#allocation3 + $0x140] sm:$0xff] %vm1246_vm11, %v2730_v37  ;;  %v2731_v30 = vadd.f32 %v2683_v21, %v2614_v34  ;;  %2111 = vst.msk [vmem:[#allocation3 + $0x168] sm:$0xff] %vm1246_vm11, %v2063_v25  ;;  %8640 = vmatprep.mubr.msk.bf16.mxu1 %vm948_vm5, %v5745_v19  ;;  %v8425_v35 = vpop.f32.mrb[70].mxu0  ;;  %v5774_v34 = vshll.u32 %v9915_v38, 16  ;;  %v5772_v61 = vor.u32 %v5770_v3, %v5768_v8  ;;  %v3266_v19 = vld [vmem:[#allocation3 + $0x30] sm:$0xff]  ;;  %v5782_v15 = vshll.u32 %v9935_v42, 16 }
 0x19b   : > { %2781 = vst.msk [vmem:[#allocation3 + $0x158] sm:$0xff] %vm1246_vm11, %v2733_v63  ;;  %v2630_v18 = vpop.f32.mrb[71].mxu0  ;;  %v5764_v16 = vor.u32 %v5762_v51, %v5760_v36  ;;  %v6522_v37 = vsel %vm2289_vm10, %v6519_v49, %v6521_v50  ;;  %v9954_v25 = vld [vmem:[#allocation2 + $0x70] sm:$0xff]   ;;  %v3264_v63 = vld [vmem:[#allocation3 + $0x20] sm:$0xff]  ;;  %v5778_v27 = vshrl.u32 %v9915_v38, 16  ;;  %v5790_v32 = vshll.u32 %v9943_v11, 16 }
 0x19c   : > { %2779 = vst.msk [vmem:[#allocation3 + $0x148] sm:$0xff] %vm1246_vm11, %v2731_v30  ;;  %v8430_v7 = vpop.f32.mrb[72].mxu1  ;;  %v5776_v12 = vrot.slane %v5774_v34, 1  ;;  %v3270_v3 = vld [vmem:[#allocation3 + $0x50] sm:$0xff] }
 0x19d   : > { %v3310_v43 = vadd.f32 %v8430_v7, %v3262_v39  ;;  %v3069_v44 = vpop.f32.mrb[73].mxu1  ;;  %8687 = vmatmul.mubr.msk.bf16.gmra.mrb[176].mxu0 %vm948_vm5, %v6516_v13  ;;  %v5769_v30 = vsel %vm1470_vm9, %v5764_v16, %v5768_v8  ;;  %v3265_v7 = vld [vmem:[#allocation3 + $0x28] sm:$0xff]  ;;  %v6523_v39 = vrot.slane %v8956_v17, 1  ;;  %v5792_v51 = vrot.slane %v5790_v32, 1 }
 0x19e   : > { %v2688_v46 = vld [vmem:[#allocation3 + $0x170] sm:$0xff]  ;;  %v3308_v47 = vadd.f32 %v3260_v45, %v3069_v44  ;;  %v8431_v48 = vpop.f32.mrb[74].mxu1  ;;  %8690 = vmatprep.mubr.msk.bf16.mxu0 %vm948_vm5, %v6518_v41  ;;  %v5777_v38 = vsel %vm1470_vm9, %v5772_v61, %v5776_v12  ;;  %v5784_v44 = vrot.slane %v5782_v15, 1  ;;  %v6525_v45 = vrot.slane %v9954_v25, 1 }
 0x19f   : > { %v2736_v52 = vadd.f32 %v8424_v28, %v2688_v46  ;;  %v2686_v53 = vld [vmem:[#allocation3 + $0x160] sm:$0xff]  ;;  %3358 = vst.msk [vmem:[#allocation3 + $0x10] sm:$0xff] %vm1246_vm11, %v3310_v43  ;;  %v3311_v54 = vadd.f32 %v8431_v48, %v3263_v20  ;;  %v3072_v55 = vpop.f32.mrb[75].mxu1 }
 0x1a0   : > { %v2734_v58 = vadd.f32 %v2686_v53, %v2627_v31  ;;  %v2689_v59 = vld [vmem:[#allocation3 + $0x178] sm:$0xff]  ;;  %3356 = vst.msk [vmem:[#allocation3] sm:$0xff] %vm1246_vm11, %v3308_v47  ;;  %v3309_v1 = vadd.f32 %v3261_v57, %v3072_v55  ;;  %v8480_v6 = vpop.f32.mrb[72].mxu0  ;;  %v5786_v31 = vshrl.u32 %v9935_v42, 16  ;;  %v5780_v47 = vor.u32 %v5778_v27, %v5776_v12  ;;  %v9969_v48 = vld [vmem:[#allocation2 + $0x88] sm:$0xff]   ;;  %v9980_v55 = vld [vmem:[#allocation2 + $0x90] sm:$0xff]  }
 0x1a1   : > { %2784 = vst.msk [vmem:[#allocation3 + $0x170] sm:$0xff] %vm1246_vm11, %v2736_v52  ;;  %v2737_v5 = vadd.f32 %v8425_v35, %v2689_v59  ;;  %v2687_v4 = vld [vmem:[#allocation3 + $0x168] sm:$0xff]  ;;  %3359 = vst.msk [vmem:[#allocation3 + $0x18] sm:$0xff] %vm1246_vm11, %v3311_v54  ;;  %8641 = vmatmul.mubr.msk.bf16.gmra.mrb[180].mxu1 %vm948_vm5, %v5753_v24  ;;  %v3887_v10 = vpop.f32.mrb[73].mxu0  ;;  %v9974_v52 = vld [vmem:[#allocation2 + $0x78] sm:$0xff]   ;;  %v6524_v54 = vsel %vm2289_vm10, %v6521_v50, %v6523_v39  ;;  %v5798_v50 = vshll.u32 %v9969_v48, 16 }
 0x1a2   : > { %2782 = vst.msk [vmem:[#allocation3 + $0x160] sm:$0xff] %vm1246_vm11, %v2734_v58  ;;  %v2735_v9 = vadd.f32 %v2687_v4, %v2630_v18  ;;  %3357 = vst.msk [vmem:[#allocation3 + $0x8] sm:$0xff] %vm1246_vm11, %v3309_v1  ;;  %8644 = vmatprep.mubr.msk.bf16.mxu1 %vm948_vm5, %v5761_v2  ;;  %v8481_v56 = vpop.f32.mrb[74].mxu0  ;;  %v5788_v49 = vor.u32 %v5786_v31, %v5784_v44  ;;  %v6526_v58 = vsel %vm2289_vm10, %v6523_v39, %v6525_v45  ;;  %v9986_v59 = vld [vmem:[#allocation2 + $0x80] sm:$0xff]  }
 0x1a3   : > { %2785 = vst.msk [vmem:[#allocation3 + $0x178] sm:$0xff] %vm1246_vm11, %v2737_v5  ;;  %v3890_v23 = vpop.f32.mrb[75].mxu0  ;;  %v3268_v5 = vld [vmem:[#allocation3 + $0x40] sm:$0xff]  ;;  %v5785_v40 = vsel %vm1470_vm9, %v5780_v47, %v5784_v44  ;;  %v6527_v16 = vrot.slane %v9974_v52, 1 }
 0x1a4   : > { %2783 = vst.msk [vmem:[#allocation3 + $0x168] sm:$0xff] %vm1246_vm11, %v2735_v9  ;;  %v8434_v22 = vpop.f32.mrb[76].mxu1  ;;  %v3271_v9 = vld [vmem:[#allocation3 + $0x58] sm:$0xff] }
 0x1a5   : > { %v3314_v26 = vadd.f32 %v8434_v22, %v3266_v19  ;;  %v3085_v0 = vpop.f32.mrb[77].mxu1  ;;  %8691 = vmatmul.mubr.msk.bf16.gmra.mrb[180].mxu0 %vm948_vm5, %v6520_v60  ;;  %v3269_v22 = vld [vmem:[#allocation3 + $0x48] sm:$0xff]  ;;  %v5802_v19 = vshrl.u32 %v9969_v48, 16  ;;  %v10008_v31 = vld [vmem:[#allocation2 + $0xa0] sm:$0xff]  }
 0x1a6   : > { %v4080_v21 = vld [vmem:[#allocation3 + $0x10] sm:$0xff]  ;;  %v3312_v28 = vadd.f32 %v3264_v63, %v3085_v0  ;;  %v8435_v29 = vpop.f32.mrb[78].mxu1  ;;  %8694 = vmatprep.mubr.msk.bf16.mxu0 %vm948_vm5, %v6522_v37  ;;  %v3275_v48 = vld [vmem:[#allocation3 + $0x78] sm:$0xff] }
 0x1a7   : > { %v4128_v36 = vadd.f32 %v8480_v6, %v4080_v21  ;;  %3362 = vst.msk [vmem:[#allocation3 + $0x30] sm:$0xff] %vm1246_vm11, %v3314_v26  ;;  %v4078_v33 = vld [vmem:[#allocation3] sm:$0xff]  ;;  %v3315_v35 = vadd.f32 %v8435_v29, %v3267_v62  ;;  %v3088_v13 = vpop.f32.mrb[79].mxu1  ;;  %v10000_v0 = vld [vmem:[#allocation2 + $0x98] sm:$0xff]  }
 0x1a8   : > { %v4126_v18 = vadd.f32 %v4078_v33, %v3887_v10  ;;  %3360 = vst.msk [vmem:[#allocation3 + $0x20] sm:$0xff] %vm1246_vm11, %v3312_v28  ;;  %v4081_v41 = vld [vmem:[#allocation3 + $0x18] sm:$0xff]  ;;  %v3313_v43 = vadd.f32 %v3265_v7, %v3088_v13  ;;  %v8484_v46 = vpop.f32.mrb[76].mxu0  ;;  %v5793_v10 = vsel %vm1470_vm9, %v5788_v49, %v5792_v51  ;;  %v5800_v28 = vrot.slane %v5798_v50, 1  ;;  %v8964_v13 = vld [vmem:[#allocation2 + $0x88] sm:$0xff]  }
 0x1a9   : > { %4176 = vst.msk [vmem:[#allocation3 + $0x10] sm:$0xff] %vm1246_vm11, %v4128_v36  ;;  %v4129_v24 = vadd.f32 %v8481_v56, %v4081_v41  ;;  %3363 = vst.msk [vmem:[#allocation3 + $0x38] sm:$0xff] %vm1246_vm11, %v3315_v35  ;;  %v4079_v14 = vld [vmem:[#allocation3 + $0x8] sm:$0xff]  ;;  %8645 = vmatmul.mubr.msk.bf16.gmra.mrb[184].mxu1 %vm948_vm5, %v5769_v30  ;;  %v3903_v2 = vpop.f32.mrb[77].mxu0  ;;  %v5794_v56 = vshrl.u32 %v9943_v11, 16  ;;  %v6529_v11 = vrot.slane %v9986_v59, 1  ;;  %v6528_v36 = vsel %vm2289_vm10, %v6525_v45, %v6527_v16 }
 0x1aa   : > { %4174 = vst.msk [vmem:[#allocation3] sm:$0xff] %vm1246_vm11, %v4126_v18  ;;  %v4127_v20 = vadd.f32 %v4079_v14, %v3890_v23  ;;  %3361 = vst.msk [vmem:[#allocation3 + $0x28] sm:$0xff] %vm1246_vm11, %v3313_v43  ;;  %8648 = vmatprep.mubr.msk.bf16.mxu1 %vm948_vm5, %v5777_v38  ;;  %v8485_v53 = vpop.f32.mrb[78].mxu0  ;;  %v5806_v23 = vshll.u32 %v9980_v55, 16  ;;  %v5804_v33 = vor.u32 %v5802_v19, %v5800_v28  ;;  %v3274_v38 = vld [vmem:[#allocation3 + $0x70] sm:$0xff]  ;;  %v5814_v41 = vshll.u32 %v10000_v0, 16 }
 0x1ab   : > { %4177 = vst.msk [vmem:[#allocation3 + $0x18] sm:$0xff] %vm1246_vm11, %v4129_v24  ;;  %v3906_v34 = vpop.f32.mrb[79].mxu0  ;;  %v5796_v30 = vor.u32 %v5794_v56, %v5792_v51  ;;  %v6530_v18 = vsel %vm2289_vm10, %v6527_v16, %v6529_v11  ;;  %v10019_v43 = vld [vmem:[#allocation2 + $0x90] sm:$0xff]   ;;  %v3272_v24 = vld [vmem:[#allocation3 + $0x60] sm:$0xff]  ;;  %v5810_v45 = vshrl.u32 %v9980_v55, 16  ;;  %v5822_v49 = vshll.u32 %v10008_v31, 16 }
 0x1ac   : > { %4175 = vst.msk [vmem:[#allocation3 + $0x8] sm:$0xff] %vm1246_vm11, %v4127_v20  ;;  %v8438_v57 = vpop.f32.mrb[80].mxu1  ;;  %v5808_v35 = vrot.slane %v5806_v23, 1  ;;  %v3278_v19 = vld [vmem:[#allocation3 + $0x90] sm:$0xff] }
 0x1ad   : > { %v3318_v1 = vadd.f32 %v8438_v57, %v3270_v3  ;;  %v3101_v42 = vpop.f32.mrb[81].mxu1  ;;  %8695 = vmatmul.mubr.msk.bf16.gmra.mrb[184].mxu0 %vm948_vm5, %v6524_v54  ;;  %v5801_v20 = vsel %vm1470_vm9, %v5796_v30, %v5800_v28  ;;  %v3273_v57 = vld [vmem:[#allocation3 + $0x68] sm:$0xff]  ;;  %v6531_v3 = vrot.slane %v8964_v13, 1  ;;  %v5824_v56 = vrot.slane %v5822_v49, 1 }
 0x1ae   : > { %v4084_v4 = vld [vmem:[#allocation3 + $0x30] sm:$0xff]  ;;  %v3316_v6 = vadd.f32 %v3268_v5, %v3101_v42  ;;  %v8439_v8 = vpop.f32.mrb[82].mxu1  ;;  %8698 = vmatprep.mubr.msk.bf16.mxu0 %vm948_vm5, %v6526_v58  ;;  %v5809_v55 = vsel %vm1470_vm9, %v5804_v33, %v5808_v35  ;;  %v5816_v42 = vrot.slane %v5814_v41, 1  ;;  %v6533_v5 = vrot.slane %v10019_v43, 1 }
 0x1af   : > { %v4132_v60 = vadd.f32 %v8484_v46, %v4084_v4  ;;  %3366 = vst.msk [vmem:[#allocation3 + $0x50] sm:$0xff] %vm1246_vm11, %v3318_v1  ;;  %v4082_v61 = vld [vmem:[#allocation3 + $0x20] sm:$0xff]  ;;  %v3319_v12 = vadd.f32 %v8439_v8, %v3271_v9  ;;  %v3104_v17 = vpop.f32.mrb[83].mxu1 }
 0x1b0   : > { %v4130_v37 = vadd.f32 %v4082_v61, %v3903_v2  ;;  %3364 = vst.msk [vmem:[#allocation3 + $0x40] sm:$0xff] %vm1246_vm11, %v3316_v6  ;;  %v4085_v15 = vld [vmem:[#allocation3 + $0x38] sm:$0xff]  ;;  %v3317_v26 = vadd.f32 %v3269_v22, %v3104_v17  ;;  %v8488_v21 = vpop.f32.mrb[80].mxu0  ;;  %v5818_v2 = vshrl.u32 %v10000_v0, 16  ;;  %v5812_v6 = vor.u32 %v5810_v45, %v5808_v35  ;;  %v10034_v8 = vld [vmem:[#allocation2 + $0xa8] sm:$0xff]   ;;  %v10045_v17 = vld [vmem:[#allocation2 + $0xb0] sm:$0xff]  }
 0x1b1   : > { %4180 = vst.msk [vmem:[#allocation3 + $0x30] sm:$0xff] %vm1246_vm11, %v4132_v60  ;;  %v4133_v63 = vadd.f32 %v8485_v53, %v4085_v15  ;;  %3367 = vst.msk [vmem:[#allocation3 + $0x58] sm:$0xff] %vm1246_vm11, %v3319_v12  ;;  %v4083_v27 = vld [vmem:[#allocation3 + $0x28] sm:$0xff]  ;;  %8649 = vmatmul.mubr.msk.bf16.gmra.mrb[188].mxu1 %vm948_vm5, %v5785_v40  ;;  %v3919_v62 = vpop.f32.mrb[81].mxu0  ;;  %v10039_v60 = vld [vmem:[#allocation2 + $0x98] sm:$0xff]   ;;  %v6532_v12 = vsel %vm2289_vm10, %v6529_v11, %v6531_v3  ;;  %v5830_v11 = vshll.u32 %v10034_v8, 16 }
 0x1b2   : > { %4178 = vst.msk [vmem:[#allocation3 + $0x20] sm:$0xff] %vm1246_vm11, %v4130_v37  ;;  %v4131_v29 = vadd.f32 %v4083_v27, %v3906_v34  ;;  %3365 = vst.msk [vmem:[#allocation3 + $0x48] sm:$0xff] %vm1246_vm11, %v3317_v26  ;;  %8652 = vmatprep.mubr.msk.bf16.mxu1 %vm948_vm5, %v5793_v10  ;;  %v8489_v32 = vpop.f32.mrb[82].mxu0  ;;  %v5820_v16 = vor.u32 %v5818_v2, %v5816_v42  ;;  %v6534_v37 = vsel %vm2289_vm10, %v6531_v3, %v6533_v5  ;;  %v10051_v15 = vld [vmem:[#allocation2 + $0xa0] sm:$0xff]  }
 0x1b3   : > { %4181 = vst.msk [vmem:[#allocation3 + $0x38] sm:$0xff] %vm1246_vm11, %v4133_v63  ;;  %v3922_v39 = vpop.f32.mrb[83].mxu0  ;;  %v3276_v63 = vld [vmem:[#allocation3 + $0x80] sm:$0xff]  ;;  %v5817_v59 = vsel %vm1470_vm9, %v5812_v6, %v5816_v42  ;;  %v6535_v30 = vrot.slane %v10039_v60, 1 }
 0x1b4   : > { %4179 = vst.msk [vmem:[#allocation3 + $0x28] sm:$0xff] %vm1246_vm11, %v4131_v29  ;;  %v8442_v7 = vpop.f32.mrb[84].mxu1  ;;  %v3279_v29 = vld [vmem:[#allocation3 + $0x98] sm:$0xff] }
 0x1b5   : > { %v3322_v44 = vadd.f32 %v8442_v7, %v3274_v38  ;;  %v3117_v25 = vpop.f32.mrb[85].mxu1  ;;  %8699 = vmatmul.mubr.msk.bf16.gmra.mrb[188].mxu0 %vm948_vm5, %v6528_v36  ;;  %v3277_v7 = vld [vmem:[#allocation3 + $0x88] sm:$0xff]  ;;  %v5834_v38 = vshrl.u32 %v10034_v8, 16  ;;  %v10073_v2 = vld [vmem:[#allocation2 + $0xc0] sm:$0xff]  }
 0x1b6   : > { %v4088_v14 = vld [vmem:[#allocation3 + $0x50] sm:$0xff]  ;;  %v3320_v46 = vadd.f32 %v3272_v24, %v3117_v25  ;;  %v8443_v47 = vpop.f32.mrb[86].mxu1  ;;  %8702 = vmatprep.mubr.msk.bf16.mxu0 %vm948_vm5, %v6530_v18  ;;  %v3283_v8 = vld [vmem:[#allocation3 + $0xb8] sm:$0xff] }
 0x1b7   : > { %v4136_v51 = vadd.f32 %v8488_v21, %v4088_v14  ;;  %3370 = vst.msk [vmem:[#allocation3 + $0x70] sm:$0xff] %vm1246_vm11, %v3322_v44  ;;  %v4086_v52 = vld [vmem:[#allocation3 + $0x40] sm:$0xff]  ;;  %v3323_v53 = vadd.f32 %v8443_v47, %v3275_v48  ;;  %v3120_v54 = vpop.f32.mrb[87].mxu1  ;;  %v10065_v25 = vld [vmem:[#allocation2 + $0xb8] sm:$0xff]  }
 0x1b8   : > { %v4134_v34 = vadd.f32 %v4086_v52, %v3919_v62  ;;  %3368 = vst.msk [vmem:[#allocation3 + $0x60] sm:$0xff] %vm1246_vm11, %v3320_v46  ;;  %v4089_v58 = vld [vmem:[#allocation3 + $0x58] sm:$0xff]  ;;  %v3321_v1 = vadd.f32 %v3273_v57, %v3120_v54  ;;  %v8492_v4 = vpop.f32.mrb[84].mxu0  ;;  %v5825_v62 = vsel %vm1470_vm9, %v5820_v16, %v5824_v56  ;;  %v5832_v46 = vrot.slane %v5830_v11, 1  ;;  %v8972_v54 = vld [vmem:[#allocation2 + $0xa8] sm:$0xff]  }
 0x1b9   : > { %4184 = vst.msk [vmem:[#allocation3 + $0x50] sm:$0xff] %vm1246_vm11, %v4136_v51  ;;  %v4137_v40 = vadd.f32 %v8489_v32, %v4089_v58  ;;  %3371 = vst.msk [vmem:[#allocation3 + $0x78] sm:$0xff] %vm1246_vm11, %v3323_v53  ;;  %v4087_v50 = vld [vmem:[#allocation3 + $0x48] sm:$0xff]  ;;  %8653 = vmatmul.mubr.msk.bf16.gmra.mrb[192].mxu1 %vm948_vm5, %v5801_v20  ;;  %v3935_v10 = vpop.f32.mrb[85].mxu0  ;;  %v5826_v32 = vshrl.u32 %v10008_v31, 16  ;;  %v6537_v31 = vrot.slane %v10051_v15, 1  ;;  %v6536_v51 = vsel %vm2289_vm10, %v6533_v5, %v6535_v30 }
 0x1ba   : > { %4182 = vst.msk [vmem:[#allocation3 + $0x40] sm:$0xff] %vm1246_vm11, %v4134_v34  ;;  %v4135_v9 = vadd.f32 %v4087_v50, %v3922_v39  ;;  %3369 = vst.msk [vmem:[#allocation3 + $0x68] sm:$0xff] %vm1246_vm11, %v3321_v1  ;;  %8656 = vmatprep.mubr.msk.bf16.mxu1 %vm948_vm5, %v5809_v55  ;;  %v8493_v61 = vpop.f32.mrb[86].mxu0  ;;  %v5838_v39 = vshll.u32 %v10045_v17, 16  ;;  %v5836_v52 = vor.u32 %v5834_v38, %v5832_v46  ;;  %v3282_v55 = vld [vmem:[#allocation3 + $0xb0] sm:$0xff]  ;;  %v5846_v58 = vshll.u32 %v10065_v25, 16 }
 0x1bb   : > { %4185 = vst.msk [vmem:[#allocation3 + $0x58] sm:$0xff] %vm1246_vm11, %v4137_v40  ;;  %v3938_v23 = vpop.f32.mrb[87].mxu0  ;;  %v5828_v20 = vor.u32 %v5826_v32, %v5824_v56  ;;  %v6538_v34 = vsel %vm2289_vm10, %v6535_v30, %v6537_v31  ;;  %v10084_v1 = vld [vmem:[#allocation2 + $0xb0] sm:$0xff]   ;;  %v3280_v40 = vld [vmem:[#allocation3 + $0xa0] sm:$0xff]  ;;  %v5842_v5 = vshrl.u32 %v10045_v17, 16  ;;  %v5854_v16 = vshll.u32 %v10073_v2, 16 }
 0x1bc   : > { %4183 = vst.msk [vmem:[#allocation3 + $0x48] sm:$0xff] %vm1246_vm11, %v4135_v9  ;;  %v8446_v22 = vpop.f32.mrb[88].mxu1  ;;  %v5840_v53 = vrot.slane %v5838_v39, 1  ;;  %v3286_v38 = vld [vmem:[#allocation3 + $0xd0] sm:$0xff] }
 0x1bd   : > { %v3326_v26 = vadd.f32 %v8446_v22, %v3278_v19  ;;  %v3133_v0 = vpop.f32.mrb[89].mxu1  ;;  %8703 = vmatmul.mubr.msk.bf16.gmra.mrb[192].mxu0 %vm948_vm5, %v6532_v12  ;;  %v5833_v9 = vsel %vm1470_vm9, %v5828_v20, %v5832_v46  ;;  %v3281_v22 = vld [vmem:[#allocation3 + $0xa8] sm:$0xff]  ;;  %v6539_v19 = vrot.slane %v8972_v54, 1  ;;  %v5856_v32 = vrot.slane %v5854_v16, 1 }
 0x1be   : > { %v4092_v27 = vld [vmem:[#allocation3 + $0x70] sm:$0xff]  ;;  %v3324_v21 = vadd.f32 %v3276_v63, %v3133_v0  ;;  %v8447_v28 = vpop.f32.mrb[90].mxu1  ;;  %8706 = vmatprep.mubr.msk.bf16.mxu0 %vm948_vm5, %v6534_v37  ;;  %v5841_v17 = vsel %vm1470_vm9, %v5836_v52, %v5840_v53  ;;  %v5848_v0 = vrot.slane %v5846_v58, 1  ;;  %v6541_v63 = vrot.slane %v10084_v1, 1 }
 0x1bf   : > { %v4140_v36 = vadd.f32 %v8492_v4, %v4092_v27  ;;  %3374 = vst.msk [vmem:[#allocation3 + $0x90] sm:$0xff] %vm1246_vm11, %v3326_v26  ;;  %v4090_v33 = vld [vmem:[#allocation3 + $0x60] sm:$0xff]  ;;  %v3327_v35 = vadd.f32 %v8447_v28, %v3279_v29  ;;  %v3136_v13 = vpop.f32.mrb[91].mxu1 }
 0x1c0   : > { %v4138_v18 = vadd.f32 %v4090_v33, %v3935_v10  ;;  %3372 = vst.msk [vmem:[#allocation3 + $0x80] sm:$0xff] %vm1246_vm11, %v3324_v21  ;;  %v4093_v41 = vld [vmem:[#allocation3 + $0x78] sm:$0xff]  ;;  %v3325_v44 = vadd.f32 %v3277_v7, %v3136_v13  ;;  %v8496_v14 = vpop.f32.mrb[88].mxu0  ;;  %v5850_v10 = vshrl.u32 %v10065_v25, 16  ;;  %v5844_v21 = vor.u32 %v5842_v5, %v5840_v53  ;;  %v10099_v28 = vld [vmem:[#allocation2 + $0xc8] sm:$0xff]   ;;  %v10110_v13 = vld [vmem:[#allocation2 + $0xd0] sm:$0xff]  }
 0x1c1   : > { %4188 = vst.msk [vmem:[#allocation3 + $0x70] sm:$0xff] %vm1246_vm11, %v4140_v36  ;;  %v4141_v24 = vadd.f32 %v8493_v61, %v4093_v41  ;;  %3375 = vst.msk [vmem:[#allocation3 + $0x98] sm:$0xff] %vm1246_vm11, %v3327_v35  ;;  %v4091_v45 = vld [vmem:[#allocation3 + $0x68] sm:$0xff]  ;;  %8657 = vmatmul.mubr.msk.bf16.gmra.mrb[196].mxu1 %vm948_vm5, %v5817_v59  ;;  %v3951_v48 = vpop.f32.mrb[89].mxu0  ;;  %v10104_v36 = vld [vmem:[#allocation2 + $0xb8] sm:$0xff]   ;;  %v6540_v35 = vsel %vm2289_vm10, %v6537_v31, %v6539_v19  ;;  %v5862_v31 = vshll.u32 %v10099_v28, 16 }
 0x1c2   : > { %4186 = vst.msk [vmem:[#allocation3 + $0x60] sm:$0xff] %vm1246_vm11, %v4138_v18  ;;  %v4139_v47 = vadd.f32 %v4091_v45, %v3938_v23  ;;  %3373 = vst.msk [vmem:[#allocation3 + $0x88] sm:$0xff] %vm1246_vm11, %v3325_v44  ;;  %8660 = vmatprep.mubr.msk.bf16.mxu1 %vm948_vm5, %v5825_v62  ;;  %v8497_v49 = vpop.f32.mrb[90].mxu0  ;;  %v5852_v30 = vor.u32 %v5850_v10, %v5848_v0  ;;  %v6542_v18 = vsel %vm2289_vm10, %v6539_v19, %v6541_v63  ;;  %v10116_v41 = vld [vmem:[#allocation2 + $0xc0] sm:$0xff]  }
 0x1c3   : > { %4189 = vst.msk [vmem:[#allocation3 + $0x78] sm:$0xff] %vm1246_vm11, %v4141_v24  ;;  %v3954_v3 = vpop.f32.mrb[91].mxu0  ;;  %v3284_v24 = vld [vmem:[#allocation3 + $0xc0] sm:$0xff]  ;;  %v5849_v15 = vsel %vm1470_vm9, %v5844_v21, %v5848_v0  ;;  %v6543_v20 = vrot.slane %v10104_v36, 1  ;;  %v5874_v21 = vshrl.u32 %v10110_v13, 16  ;;  %v3289_v36 = vld [vmem:[#allocation3 + $0xe8] sm:$0xff] }
 0x1c4   : > { %4187 = vst.msk [vmem:[#allocation3 + $0x68] sm:$0xff] %vm1246_vm11, %v4139_v47  ;;  %v8450_v57 = vpop.f32.mrb[92].mxu1  ;;  %v3287_v47 = vld [vmem:[#allocation3 + $0xd8] sm:$0xff]  ;;  %v3288_v0 = vld [vmem:[#allocation3 + $0xe0] sm:$0xff] }
 0x1c5   : > { %v3330_v42 = vadd.f32 %v8450_v57, %v3282_v55  ;;  %v3149_v43 = vpop.f32.mrb[93].mxu1  ;;  %8707 = vmatmul.mubr.msk.bf16.gmra.mrb[196].mxu0 %vm948_vm5, %v6536_v51  ;;  %v3285_v57 = vld [vmem:[#allocation3 + $0xc8] sm:$0xff]  ;;  %v5866_v55 = vshrl.u32 %v10099_v28, 16  ;;  %v6544_v16 = vsel %vm2289_vm10, %v6541_v63, %v6543_v20 }
 0x1c6   : > { %v4096_v50 = vld [vmem:[#allocation3 + $0x90] sm:$0xff]  ;;  %v3328_v4 = vadd.f32 %v3280_v40, %v3149_v43  ;;  %v8451_v6 = vpop.f32.mrb[94].mxu1  ;;  %8710 = vmatprep.mubr.msk.bf16.mxu0 %vm948_vm5, %v6538_v34 }
 0x1c7   : > { %v4144_v56 = vadd.f32 %v8496_v14, %v4096_v50  ;;  %3378 = vst.msk [vmem:[#allocation3 + $0xb0] sm:$0xff] %vm1246_vm11, %v3330_v42  ;;  %v4094_v60 = vld [vmem:[#allocation3 + $0x80] sm:$0xff]  ;;  %v3331_v61 = vadd.f32 %v8451_v6, %v3283_v8  ;;  %v3152_v12 = vpop.f32.mrb[95].mxu1  ;;  %v5864_v50 = vrot.slane %v5862_v31, 1 }
 0x1c8   : > { %v4142_v23 = vadd.f32 %v4094_v60, %v3951_v48  ;;  %3376 = vst.msk [vmem:[#allocation3 + $0xa0] sm:$0xff] %vm1246_vm11, %v3328_v4  ;;  %v4097_v37 = vld [vmem:[#allocation3 + $0x98] sm:$0xff]  ;;  %v3329_v26 = vadd.f32 %v3281_v22, %v3152_v12  ;;  %v8500_v27 = vpop.f32.mrb[92].mxu0  ;;  %v5857_v48 = vsel %vm1470_vm9, %v5852_v30, %v5856_v32  ;;  %v3290_v22 = vld [vmem:[#allocation3 + $0xf0] sm:$0xff] }
 0x1c9   : > { %4192 = vst.msk [vmem:[#allocation3 + $0x90] sm:$0xff] %vm1246_vm11, %v4144_v56  ;;  %v4145_v59 = vadd.f32 %v8497_v49, %v4097_v37  ;;  %3379 = vst.msk [vmem:[#allocation3 + $0xb8] sm:$0xff] %vm1246_vm11, %v3331_v61  ;;  %v4095_v11 = vld [vmem:[#allocation3 + $0x88] sm:$0xff]  ;;  %8661 = vmatmul.mubr.msk.bf16.gmra.mrb[200].mxu1 %vm948_vm5, %v5833_v9  ;;  %v3967_v62 = vpop.f32.mrb[93].mxu0  ;;  %v5858_v49 = vshrl.u32 %v10073_v2, 16  ;;  %v6545_v2 = vrot.slane %v10116_v41, 1  ;;  %v5868_v56 = vor.u32 %v5866_v55, %v5864_v50 }
 0x1ca   : > { %4190 = vst.msk [vmem:[#allocation3 + $0x80] sm:$0xff] %vm1246_vm11, %v4142_v23  ;;  %v4143_v29 = vadd.f32 %v4095_v11, %v3954_v3  ;;  %3377 = vst.msk [vmem:[#allocation3 + $0xa8] sm:$0xff] %vm1246_vm11, %v3329_v26  ;;  %8664 = vmatprep.mubr.msk.bf16.mxu1 %vm948_vm5, %v5841_v17  ;;  %v8501_v33 = vpop.f32.mrb[94].mxu0  ;;  %v5870_v3 = vshll.u32 %v10110_v13, 16  ;;  %v8980_v61 = vld [vmem:[#allocation2 + $0xc8] sm:$0xff]   ;;  %v10144_v23 = vld [vmem:[#allocation2 + $0xd0] sm:$0xff]  }
 0x1cb   : > { %4193 = vst.msk [vmem:[#allocation3 + $0x98] sm:$0xff] %vm1246_vm11, %v4145_v59  ;;  %v3970_v39 = vpop.f32.mrb[95].mxu0  ;;  %v5860_v8 = vor.u32 %v5858_v49, %v5856_v32  ;;  %v8981_v9 = vld [vmem:[#allocation2 + $0xd8] ss:$0 sps:$4 sm:$0x11]   ;;  %v6546_v19 = vsel %vm2289_vm10, %v6543_v20, %v6545_v2  ;;  %v3291_v11 = vld [vmem:[#allocation3 + $0xf8] sm:$0xff] }
 0x1cc   : > { %4191 = vst.msk [vmem:[#allocation3 + $0x88] sm:$0xff] %vm1246_vm11, %v4143_v29  ;;  %v8454_v7 = vpop.f32.mrb[96].mxu1  ;;  %v5872_v60 = vrot.slane %v5870_v3, 1  ;;  %v5878_v28 = vshll.u32 %v8981_v9, 16  ;;  %v6549_v13 = vrot.slane %v10144_v23, 1  ;;  %v3294_v20 = vld [vmem:[#allocation3 + $0x110] sm:$0xff] }
 0x1cd   : > { %v3334_v44 = vadd.f32 %v8454_v7, %v3286_v38  ;;  %v3165_v25 = vpop.f32.mrb[97].mxu1  ;;  %8711 = vmatmul.mubr.msk.bf16.gmra.mrb[200].mxu0 %vm948_vm5, %v6540_v35  ;;  %v6547_v35 = vrot.slane %v8980_v61, 1 }
 0x1ce   : > { %v4100_v45 = vld [vmem:[#allocation3 + $0xb0] sm:$0xff]  ;;  %v3332_v14 = vadd.f32 %v3284_v24, %v3165_v25  ;;  %v8455_v46 = vpop.f32.mrb[98].mxu1  ;;  %8714 = vmatprep.mubr.msk.bf16.mxu0 %vm948_vm5, %v6542_v18  ;;  %v5876_v31 = vor.u32 %v5874_v21, %v5872_v60 }
 0x1cf   : > { %v4148_v51 = vadd.f32 %v8500_v27, %v4100_v45  ;;  %3382 = vst.msk [vmem:[#allocation3 + $0xd0] sm:$0xff] %vm1246_vm11, %v3334_v44  ;;  %v4098_v52 = vld [vmem:[#allocation3 + $0xa0] sm:$0xff]  ;;  %v3335_v53 = vadd.f32 %v8455_v46, %v3287_v47  ;;  %v3168_v54 = vpop.f32.mrb[99].mxu1  ;;  %v5865_v27 = vsel %vm1470_vm9, %v5860_v8, %v5864_v50  ;;  %v5880_v45 = vrot.slane %v5878_v28, 1  ;;  %v3297_v28 = vld [vmem:[#allocation3 + $0x128] sm:$0xff] }
 0x1d0   : > { %v4146_v34 = vadd.f32 %v4098_v52, %v3967_v62  ;;  %3380 = vst.msk [vmem:[#allocation3 + $0xc0] sm:$0xff] %vm1246_vm11, %v3332_v14  ;;  %v4101_v58 = vld [vmem:[#allocation3 + $0xb8] sm:$0xff]  ;;  %v3333_v42 = vadd.f32 %v3285_v57, %v3168_v54  ;;  %v8504_v5 = vpop.f32.mrb[96].mxu0  ;;  %v6548_v46 = vsel %vm2289_vm10, %v6545_v2, %v6547_v35  ;;  %v8983_v47 = vld [vmem:[#allocation2 + $0xd8] ss:$0 sps:$4 sm:$0x11]  }
 0x1d1   : > { %4196 = vst.msk [vmem:[#allocation3 + $0xb0] sm:$0xff] %vm1246_vm11, %v4148_v51  ;;  %v4149_v43 = vadd.f32 %v8501_v33, %v4101_v58  ;;  %3383 = vst.msk [vmem:[#allocation3 + $0xd8] sm:$0xff] %vm1246_vm11, %v3335_v53  ;;  %v4099_v40 = vld [vmem:[#allocation3 + $0xa8] sm:$0xff]  ;;  %8665 = vmatmul.mubr.msk.bf16.gmra.mrb[204].mxu1 %vm948_vm5, %v5849_v15  ;;  %v3983_v6 = vpop.f32.mrb[97].mxu0  ;;  %v5873_v33 = vsel %vm1470_vm9, %v5868_v56, %v5872_v60  ;;  %v6550_v51 = vsel %vm2289_vm10, %v6547_v35, %v6549_v13  ;;  %v3292_v54 = vld [vmem:[#allocation3 + $0x100] sm:$0xff] }
 0x1d2   : > { %4194 = vst.msk [vmem:[#allocation3 + $0xa0] sm:$0xff] %vm1246_vm11, %v4146_v34  ;;  %v4147_v4 = vadd.f32 %v4099_v40, %v3970_v39  ;;  %3381 = vst.msk [vmem:[#allocation3 + $0xc8] sm:$0xff] %vm1246_vm11, %v3333_v42  ;;  %8668 = vmatprep.mubr.msk.bf16.mxu1 %vm948_vm5, %v5857_v48  ;;  %v8505_v10 = vpop.f32.mrb[98].mxu0  ;;  %v3295_v34 = vld [vmem:[#allocation3 + $0x118] sm:$0xff]  ;;  %v5881_v41 = vsel %vm1470_vm9, %v5876_v31, %v5880_v45  ;;  %v3293_v40 = vld [vmem:[#allocation3 + $0x108] sm:$0xff] }
 0x1d3   : > { %4197 = vst.msk [vmem:[#allocation3 + $0xb8] sm:$0xff] %vm1246_vm11, %v4149_v43  ;;  %v3986_v17 = vpop.f32.mrb[99].mxu0 }
 0x1d4   : > { %4195 = vst.msk [vmem:[#allocation3 + $0xa8] sm:$0xff] %vm1246_vm11, %v4147_v4  ;;  %v8458_v12 = vpop.f32.mrb[100].mxu1 }
 0x1d5   : > { %v3338_v37 = vadd.f32 %v8458_v12, %v3290_v22  ;;  %v3181_v26 = vpop.f32.mrb[101].mxu1  ;;  %8715 = vmatmul.mubr.msk.bf16.gmra.mrb[204].mxu0 %vm948_vm5, %v6544_v16  ;;  %v3298_v22 = vld [vmem:[#allocation3 + $0x130] sm:$0xff] }
 0x1d6   : > { %v4104_v1 = vld [vmem:[#allocation3 + $0xd0] sm:$0xff]  ;;  %v3336_v59 = vadd.f32 %v3288_v0, %v3181_v26  ;;  %v8459_v63 = vpop.f32.mrb[102].mxu1  ;;  %8718 = vmatprep.mubr.msk.bf16.mxu0 %vm948_vm5, %v6546_v19 }
 0x1d7   : > { %v4152_v29 = vadd.f32 %v8504_v5, %v4104_v1  ;;  %3386 = vst.msk [vmem:[#allocation3 + $0xf0] sm:$0xff] %vm1246_vm11, %v3338_v37  ;;  %v4102_v62 = vld [vmem:[#allocation3 + $0xc0] sm:$0xff]  ;;  %v3339_v30 = vadd.f32 %v8459_v63, %v3291_v11  ;;  %v3184_v32 = vpop.f32.mrb[103].mxu1  ;;  %v6551_v5 = vrot.slane %v8983_v47, 1 }
 0x1d8   : > { %v4150_v7 = vadd.f32 %v4102_v62, %v3983_v6  ;;  %3384 = vst.msk [vmem:[#allocation3 + $0xe0] sm:$0xff] %vm1246_vm11, %v3336_v59  ;;  %v4105_v38 = vld [vmem:[#allocation3 + $0xd8] sm:$0xff]  ;;  %v3337_v39 = vadd.f32 %v3289_v36, %v3184_v32  ;;  %v8508_v25 = vpop.f32.mrb[100].mxu0  ;;  %v3296_v37 = vld [vmem:[#allocation3 + $0x120] sm:$0xff] }
 0x1d9   : > { %4200 = vst.msk [vmem:[#allocation3 + $0xd0] sm:$0xff] %vm1246_vm11, %v4152_v29  ;;  %v4153_v18 = vadd.f32 %v8505_v10, %v4105_v38  ;;  %3387 = vst.msk [vmem:[#allocation3 + $0xf8] sm:$0xff] %vm1246_vm11, %v3339_v30  ;;  %v4103_v44 = vld [vmem:[#allocation3 + $0xc8] sm:$0xff]  ;;  %8669 = vmatmul.mubr.msk.bf16.gmra.mrb[208].mxu1 %vm948_vm5, %v5865_v27  ;;  %v3999_v15 = vpop.f32.mrb[101].mxu0  ;;  %v6552_v61 = vsel %vm2289_vm10, %v6549_v13, %v6551_v5  ;;  %v3299_v59 = vld [vmem:[#allocation3 + $0x138] sm:$0xff] }
 0x1da   : > { %4198 = vst.msk [vmem:[#allocation3 + $0xc0] sm:$0xff] %vm1246_vm11, %v4150_v7  ;;  %v4151_v24 = vadd.f32 %v4103_v44, %v3986_v17  ;;  %3385 = vst.msk [vmem:[#allocation3 + $0xe8] sm:$0xff] %vm1246_vm11, %v3337_v39  ;;  %8672 = vmatprep.mubr.msk.bf16.mxu1 %vm948_vm5, %v5873_v33  ;;  %v8509_v14 = vpop.f32.mrb[102].mxu0  ;;  %v3302_v13 = vld [vmem:[#allocation3 + $0x150] sm:$0xff]  ;;  %v3304_v5 = vld [vmem:[#allocation3 + $0x160] sm:$0xff] }
 0x1db   : > { %4201 = vst.msk [vmem:[#allocation3 + $0xd8] sm:$0xff] %vm1246_vm11, %v4153_v18  ;;  %v4002_v49 = vpop.f32.mrb[103].mxu0 }
 0x1dc   : > { %4199 = vst.msk [vmem:[#allocation3 + $0xc8] sm:$0xff] %vm1246_vm11, %v4151_v24  ;;  %v8462_v48 = vpop.f32.mrb[104].mxu1  ;;  %v3300_v24 = vld [vmem:[#allocation3 + $0x140] sm:$0xff] }
 0x1dd   : > { %v3342_v52 = vadd.f32 %v8462_v48, %v3294_v20  ;;  %v3197_v53 = vpop.f32.mrb[105].mxu1  ;;  %8719 = vmatmul.mubr.msk.bf16.gmra.mrb[208].mxu0 %vm948_vm5, %v6548_v46 }
 0x1de   : > { %v4108_v57 = vld [vmem:[#allocation3 + $0xf0] sm:$0xff]  ;;  %v3340_v55 = vadd.f32 %v3292_v54, %v3197_v53  ;;  %v8463_v3 = vpop.f32.mrb[106].mxu1  ;;  %8722 = vmatprep.mubr.msk.bf16.mxu0 %vm948_vm5, %v6550_v51 }
 0x1df   : > { %v4156_v58 = vadd.f32 %v8508_v25, %v4108_v57  ;;  %3390 = vst.msk [vmem:[#allocation3 + $0x110] sm:$0xff] %vm1246_vm11, %v3342_v52  ;;  %v4106_v42 = vld [vmem:[#allocation3 + $0xe0] sm:$0xff]  ;;  %v3343_v2 = vadd.f32 %v8463_v3, %v3295_v34  ;;  %v3200_v43 = vpop.f32.mrb[107].mxu1 }
 0x1e0   : > { %v4154_v50 = vadd.f32 %v4106_v42, %v3999_v15  ;;  %3388 = vst.msk [vmem:[#allocation3 + $0x100] sm:$0xff] %vm1246_vm11, %v3340_v55  ;;  %v4109_v4 = vld [vmem:[#allocation3 + $0xf8] sm:$0xff]  ;;  %v3341_v6 = vadd.f32 %v3293_v40, %v3200_v43  ;;  %v8512_v10 = vpop.f32.mrb[104].mxu0  ;;  %v3306_v42 = vld [vmem:[#allocation3 + $0x170] sm:$0xff] }
 0x1e1   : > { %4204 = vst.msk [vmem:[#allocation3 + $0xf0] sm:$0xff] %vm1246_vm11, %v4156_v58  ;;  %v4157_v8 = vadd.f32 %v8509_v14, %v4109_v4  ;;  %3391 = vst.msk [vmem:[#allocation3 + $0x118] sm:$0xff] %vm1246_vm11, %v3343_v2  ;;  %v4107_v9 = vld [vmem:[#allocation3 + $0xe8] sm:$0xff]  ;;  %8673 = vmatmul.mubr.msk.bf16.gmra.mrb[212].mxu1 %vm948_vm5, %v5881_v41  ;;  %v4015_v56 = vpop.f32.mrb[105].mxu0  ;;  %v3303_v14 = vld [vmem:[#allocation3 + $0x158] sm:$0xff] }
 0x1e2   : > { %4202 = vst.msk [vmem:[#allocation3 + $0xe0] sm:$0xff] %vm1246_vm11, %v4154_v50  ;;  %v4155_v16 = vadd.f32 %v4107_v9, %v4002_v49  ;;  %3389 = vst.msk [vmem:[#allocation3 + $0x108] sm:$0xff] %vm1246_vm11, %v3341_v6  ;;  %v8513_v60 = vpop.f32.mrb[106].mxu0  ;;  %v3301_v49 = vld [vmem:[#allocation3 + $0x148] sm:$0xff] }
 0x1e3   : > { %4205 = vst.msk [vmem:[#allocation3 + $0xf8] sm:$0xff] %vm1246_vm11, %v4157_v8  ;;  %v4018_v17 = vpop.f32.mrb[107].mxu0  ;;  %v3307_v8 = vld [vmem:[#allocation3 + $0x178] sm:$0xff] }
 0x1e4   : > { %4203 = vst.msk [vmem:[#allocation3 + $0xe8] sm:$0xff] %vm1246_vm11, %v4155_v16  ;;  %v8466_v12 = vpop.f32.mrb[108].mxu1 }
 0x1e5   : > { %v3346_v19 = vadd.f32 %v8466_v12, %v3298_v22  ;;  %v3213_v23 = vpop.f32.mrb[109].mxu1  ;;  %8723 = vmatmul.mubr.msk.bf16.gmra.mrb[212].mxu0 %vm948_vm5, %v6552_v61 }
 0x1e6   : > { %v4112_v26 = vld [vmem:[#allocation3 + $0x110] sm:$0xff]  ;;  %v3344_v0 = vadd.f32 %v3296_v37, %v3213_v23  ;;  %v8467_v1 = vpop.f32.mrb[110].mxu1 }
 0x1e7   : > { %v4160_v63 = vadd.f32 %v8512_v10, %v4112_v26  ;;  %3394 = vst.msk [vmem:[#allocation3 + $0x130] sm:$0xff] %vm1246_vm11, %v3346_v19  ;;  %v4110_v11 = vld [vmem:[#allocation3 + $0x100] sm:$0xff]  ;;  %v3347_v27 = vadd.f32 %v8467_v1, %v3299_v59  ;;  %v3216_v21 = vpop.f32.mrb[111].mxu1  ;;  %v4751_v59 = vld [vmem:[#allocation3 + $0x10] sm:$0xff] }
 0x1e8   : > { %v4158_v29 = vadd.f32 %v4110_v11, %v4015_v56  ;;  %3392 = vst.msk [vmem:[#allocation3 + $0x120] sm:$0xff] %vm1246_vm11, %v3344_v0  ;;  %v4113_v62 = vld [vmem:[#allocation3 + $0x118] sm:$0xff]  ;;  %v3345_v30 = vadd.f32 %v3297_v28, %v3216_v21  ;;  %v8516_v33 = vpop.f32.mrb[108].mxu0  ;;  %v4749_v21 = vld [vmem:[#allocation3] sm:$0xff] }
 0x1e9   : > { %4208 = vst.msk [vmem:[#allocation3 + $0x110] sm:$0xff] %vm1246_vm11, %v4160_v63  ;;  %v4161_v32 = vadd.f32 %v8513_v60, %v4113_v62  ;;  %3395 = vst.msk [vmem:[#allocation3 + $0x138] sm:$0xff] %vm1246_vm11, %v3347_v27  ;;  %v4111_v36 = vld [vmem:[#allocation3 + $0x108] sm:$0xff]  ;;  %v4031_v7 = vpop.f32.mrb[109].mxu0 }
 0x1ea   : > { %4206 = vst.msk [vmem:[#allocation3 + $0x100] sm:$0xff] %vm1246_vm11, %v4158_v29  ;;  %v4159_v35 = vadd.f32 %v4111_v36, %v4018_v17  ;;  %3393 = vst.msk [vmem:[#allocation3 + $0x128] sm:$0xff] %vm1246_vm11, %v3345_v30  ;;  %v8517_v38 = vpop.f32.mrb[110].mxu0  ;;  %v3305_v60 = vld [vmem:[#allocation3 + $0x168] sm:$0xff]  ;;  %v4752_v30 = vld [vmem:[#allocation3 + $0x18] sm:$0xff] }
 0x1eb   : > { %4209 = vst.msk [vmem:[#allocation3 + $0x118] sm:$0xff] %vm1246_vm11, %v4161_v32  ;;  %v4034_v18 = vpop.f32.mrb[111].mxu0 }
 0x1ec   : > { %4207 = vst.msk [vmem:[#allocation3 + $0x108] sm:$0xff] %vm1246_vm11, %v4159_v35  ;;  %v8470_v39 = vpop.f32.mrb[112].mxu1 }
 0x1ed   : > { %v3350_v44 = vadd.f32 %v8470_v39, %v3302_v13  ;;  %v3229_v25 = vpop.f32.mrb[113].mxu1 }
 0x1ee   : > { %v4116_v15 = vld [vmem:[#allocation3 + $0x130] sm:$0xff]  ;;  %v3348_v31 = vadd.f32 %v3300_v24, %v3229_v25  ;;  %v8471_v45 = vpop.f32.mrb[114].mxu1 }
 0x1ef   : > { %v4164_v46 = vadd.f32 %v8516_v33, %v4116_v15  ;;  %3398 = vst.msk [vmem:[#allocation3 + $0x150] sm:$0xff] %vm1246_vm11, %v3350_v44  ;;  %v4114_v47 = vld [vmem:[#allocation3 + $0x120] sm:$0xff]  ;;  %v3351_v48 = vadd.f32 %v8471_v45, %v3303_v14  ;;  %v3232_v20 = vpop.f32.mrb[115].mxu1  ;;  %v4755_v14 = vld [vmem:[#allocation3 + $0x30] sm:$0xff] }
 0x1f0   : > { %v4162_v51 = vadd.f32 %v4114_v47, %v4031_v7  ;;  %3396 = vst.msk [vmem:[#allocation3 + $0x140] sm:$0xff] %vm1246_vm11, %v3348_v31  ;;  %v4117_v52 = vld [vmem:[#allocation3 + $0x138] sm:$0xff]  ;;  %v3349_v53 = vadd.f32 %v3301_v49, %v3232_v20  ;;  %v8520_v55 = vpop.f32.mrb[112].mxu0  ;;  %v4750_v7 = vld [vmem:[#allocation3 + $0x8] sm:$0xff]  ;;  %v4753_v20 = vld [vmem:[#allocation3 + $0x20] sm:$0xff] }
 0x1f1   : > { %4212 = vst.msk [vmem:[#allocation3 + $0x130] sm:$0xff] %vm1246_vm11, %v4164_v46  ;;  %v4165_v54 = vadd.f32 %v8517_v38, %v4117_v52  ;;  %3399 = vst.msk [vmem:[#allocation3 + $0x158] sm:$0xff] %vm1246_vm11, %v3351_v48  ;;  %v4115_v57 = vld [vmem:[#allocation3 + $0x128] sm:$0xff]  ;;  %v4047_v34 = vpop.f32.mrb[113].mxu0 }
 0x1f2   : > { %4210 = vst.msk [vmem:[#allocation3 + $0x120] sm:$0xff] %vm1246_vm11, %v4162_v51  ;;  %v4163_v3 = vadd.f32 %v4115_v57, %v4034_v18  ;;  %3397 = vst.msk [vmem:[#allocation3 + $0x148] sm:$0xff] %vm1246_vm11, %v3349_v53  ;;  %v8521_v41 = vpop.f32.mrb[114].mxu0  ;;  %v4756_v53 = vld [vmem:[#allocation3 + $0x38] sm:$0xff] }
 0x1f3   : > { %4213 = vst.msk [vmem:[#allocation3 + $0x138] sm:$0xff] %vm1246_vm11, %v4165_v54  ;;  %v4050_v2 = vpop.f32.mrb[115].mxu0 }
 0x1f4   : > { %4211 = vst.msk [vmem:[#allocation3 + $0x128] sm:$0xff] %vm1246_vm11, %v4163_v3  ;;  %v8474_v58 = vpop.f32.mrb[116].mxu1 }
 0x1f5   : > { %v3354_v43 = vadd.f32 %v8474_v58, %v3306_v42  ;;  %v3245_v40 = vpop.f32.mrb[117].mxu1 }
 0x1f6   : > { %v4120_v50 = vld [vmem:[#allocation3 + $0x150] sm:$0xff]  ;;  %v3352_v4 = vadd.f32 %v3304_v5, %v3245_v40  ;;  %v8475_v6 = vpop.f32.mrb[118].mxu1 }
 0x1f7   : > { %v4168_v9 = vadd.f32 %v8520_v55, %v4120_v50  ;;  %3402 = vst.msk [vmem:[#allocation3 + $0x170] sm:$0xff] %vm1246_vm11, %v3354_v43  ;;  %v4118_v10 = vld [vmem:[#allocation3 + $0x140] sm:$0xff]  ;;  %v3355_v16 = vadd.f32 %v8475_v6, %v3307_v8  ;;  %v3248_v56 = vpop.f32.mrb[119].mxu1  ;;  %v4759_v8 = vld [vmem:[#allocation3 + $0x50] sm:$0xff] }
 0x1f8   : > { %v4166_v61 = vadd.f32 %v4118_v10, %v4047_v34  ;;  %3400 = vst.msk [vmem:[#allocation3 + $0x160] sm:$0xff] %vm1246_vm11, %v3352_v4  ;;  %v4121_v12 = vld [vmem:[#allocation3 + $0x158] sm:$0xff]  ;;  %v3353_v22 = vadd.f32 %v3305_v60, %v3248_v56  ;;  %v8524_v23 = vpop.f32.mrb[116].mxu0  ;;  %v4754_v34 = vld [vmem:[#allocation3 + $0x28] sm:$0xff]  ;;  %v4757_v56 = vld [vmem:[#allocation3 + $0x40] sm:$0xff] }
 0x1f9   : > { %4216 = vst.msk [vmem:[#allocation3 + $0x150] sm:$0xff] %vm1246_vm11, %v4168_v9  ;;  %v4169_v17 = vadd.f32 %v8521_v41, %v4121_v12  ;;  %3403 = vst.msk [vmem:[#allocation3 + $0x178] sm:$0xff] %vm1246_vm11, %v3355_v16  ;;  %v4119_v19 = vld [vmem:[#allocation3 + $0x148] sm:$0xff]  ;;  %v4063_v26 = vpop.f32.mrb[117].mxu0 }
 0x1fa   : > { %4214 = vst.msk [vmem:[#allocation3 + $0x140] sm:$0xff] %vm1246_vm11, %v4166_v61  ;;  %v4167_v37 = vadd.f32 %v4119_v19, %v4050_v2  ;;  %3401 = vst.msk [vmem:[#allocation3 + $0x168] sm:$0xff] %vm1246_vm11, %v3353_v22  ;;  %v8525_v0 = vpop.f32.mrb[118].mxu0  ;;  %v4760_v22 = vld [vmem:[#allocation3 + $0x58] sm:$0xff] }
 0x1fb   : > { %4217 = vst.msk [vmem:[#allocation3 + $0x158] sm:$0xff] %vm1246_vm11, %v4169_v17  ;;  %v4066_v63 = vpop.f32.mrb[119].mxu0 }
 0x1fc   : > { %4215 = vst.msk [vmem:[#allocation3 + $0x148] sm:$0xff] %vm1246_vm11, %v4167_v37  ;;  %v8530_v1 = vpop.f32.mrb[120].mxu1 }
 0x1fd   : > { %v4799_v11 = vadd.f32 %v8530_v1, %v4751_v59  ;;  %v4558_v27 = vpop.f32.mrb[121].mxu1 }
 0x1fe   : > { %v4124_v28 = vld [vmem:[#allocation3 + $0x170] sm:$0xff]  ;;  %v4797_v29 = vadd.f32 %v4749_v21, %v4558_v27  ;;  %v8531_v62 = vpop.f32.mrb[122].mxu1 }
 0x1ff   : > { %v4172_v32 = vadd.f32 %v8524_v23, %v4124_v28  ;;  %v4122_v36 = vld [vmem:[#allocation3 + $0x160] sm:$0xff]  ;;  %4847 = vst.msk [vmem:[#allocation3 + $0x10] sm:$0xff] %vm1246_vm11, %v4799_v11  ;;  %v4800_v33 = vadd.f32 %v8531_v62, %v4752_v30  ;;  %v4561_v35 = vpop.f32.mrb[123].mxu1  ;;  %v4763_v30 = vld [vmem:[#allocation3 + $0x70] sm:$0xff] }
 0x200   : > { %v4170_v38 = vadd.f32 %v4122_v36, %v4063_v26  ;;  %v4125_v39 = vld [vmem:[#allocation3 + $0x178] sm:$0xff]  ;;  %4845 = vst.msk [vmem:[#allocation3] sm:$0xff] %vm1246_vm11, %v4797_v29  ;;  %v4798_v13 = vadd.f32 %v4750_v7, %v4561_v35  ;;  %v8580_v25 = vpop.f32.mrb[120].mxu0  ;;  %v4758_v26 = vld [vmem:[#allocation3 + $0x48] sm:$0xff]  ;;  %v4761_v35 = vld [vmem:[#allocation3 + $0x60] sm:$0xff] }
 0x201   : > { %4220 = vst.msk [vmem:[#allocation3 + $0x170] sm:$0xff] %vm1246_vm11, %v4172_v32  ;;  %v4173_v18 = vadd.f32 %v8525_v0, %v4125_v39  ;;  %v4123_v44 = vld [vmem:[#allocation3 + $0x168] sm:$0xff]  ;;  %4848 = vst.msk [vmem:[#allocation3 + $0x18] sm:$0xff] %vm1246_vm11, %v4800_v33  ;;  %v5176_v15 = vpop.f32.mrb[121].mxu0 }
 0x202   : > { %4218 = vst.msk [vmem:[#allocation3 + $0x160] sm:$0xff] %vm1246_vm11, %v4170_v38  ;;  %v4171_v24 = vadd.f32 %v4123_v44, %v4066_v63  ;;  %4846 = vst.msk [vmem:[#allocation3 + $0x8] sm:$0xff] %vm1246_vm11, %v4798_v13  ;;  %v8581_v31 = vpop.f32.mrb[122].mxu0  ;;  %v4764_v13 = vld [vmem:[#allocation3 + $0x78] sm:$0xff] }
 0x203   : > { %4221 = vst.msk [vmem:[#allocation3 + $0x178] sm:$0xff] %vm1246_vm11, %v4173_v18  ;;  %v5179_v46 = vpop.f32.mrb[123].mxu0 }
 0x204   : > { %4219 = vst.msk [vmem:[#allocation3 + $0x168] sm:$0xff] %vm1246_vm11, %v4171_v24  ;;  %v8534_v45 = vpop.f32.mrb[124].mxu1 }
 0x205   : > { %v4803_v47 = vadd.f32 %v8534_v45, %v4755_v14  ;;  %v4574_v48 = vpop.f32.mrb[125].mxu1 }
 0x206   : > { %v5369_v49 = vld [vmem:[#allocation3 + $0x10] sm:$0xff]  ;;  %v4801_v51 = vadd.f32 %v4753_v20, %v4574_v48  ;;  %v8535_v52 = vpop.f32.mrb[126].mxu1 }
 0x207   : > { %v5417_v54 = vadd.f32 %v8580_v25, %v5369_v49  ;;  %4851 = vst.msk [vmem:[#allocation3 + $0x30] sm:$0xff] %vm1246_vm11, %v4803_v47  ;;  %v5367_v57 = vld [vmem:[#allocation3] sm:$0xff]  ;;  %v4804_v55 = vadd.f32 %v8535_v52, %v4756_v53  ;;  %v4577_v3 = vpop.f32.mrb[127].mxu1  ;;  %v4767_v53 = vld [vmem:[#allocation3 + $0x90] sm:$0xff] }
 0x208   : > { %v5415_v41 = vadd.f32 %v5367_v57, %v5176_v15  ;;  %4849 = vst.msk [vmem:[#allocation3 + $0x20] sm:$0xff] %vm1246_vm11, %v4801_v51  ;;  %v5370_v58 = vld [vmem:[#allocation3 + $0x18] sm:$0xff]  ;;  %v4802_v42 = vadd.f32 %v4754_v34, %v4577_v3  ;;  %v8584_v40 = vpop.f32.mrb[124].mxu0  ;;  %v4762_v15 = vld [vmem:[#allocation3 + $0x68] sm:$0xff]  ;;  %v4765_v3 = vld [vmem:[#allocation3 + $0x80] sm:$0xff] }
 0x209   : > { %5465 = vst.msk [vmem:[#allocation3 + $0x10] sm:$0xff] %vm1246_vm11, %v5417_v54  ;;  %v5418_v2 = vadd.f32 %v8581_v31, %v5370_v58  ;;  %4852 = vst.msk [vmem:[#allocation3 + $0x38] sm:$0xff] %vm1246_vm11, %v4804_v55  ;;  %v5368_v43 = vld [vmem:[#allocation3 + $0x8] sm:$0xff]  ;;  %v5192_v50 = vpop.f32.mrb[125].mxu0 }
 0x20a   : > { %5463 = vst.msk [vmem:[#allocation3] sm:$0xff] %vm1246_vm11, %v5415_v41  ;;  %v5416_v5 = vadd.f32 %v5368_v43, %v5179_v46  ;;  %4850 = vst.msk [vmem:[#allocation3 + $0x28] sm:$0xff] %vm1246_vm11, %v4802_v42  ;;  %v8585_v4 = vpop.f32.mrb[126].mxu0  ;;  %v4768_v42 = vld [vmem:[#allocation3 + $0x98] sm:$0xff] }
 0x20b   : > { %5466 = vst.msk [vmem:[#allocation3 + $0x18] sm:$0xff] %vm1246_vm11, %v5418_v2  ;;  %v5195_v9 = vpop.f32.mrb[127].mxu0 }
 0x20c   : > { %5464 = vst.msk [vmem:[#allocation3 + $0x8] sm:$0xff] %vm1246_vm11, %v5416_v5  ;;  %v8538_v6 = vpop.f32.mrb[128].mxu1 }
 0x20d   : > { %v4807_v10 = vadd.f32 %v8538_v6, %v4759_v8  ;;  %v4590_v16 = vpop.f32.mrb[129].mxu1 }
 0x20e   : > { %v5373_v60 = vld [vmem:[#allocation3 + $0x30] sm:$0xff]  ;;  %v4805_v61 = vadd.f32 %v4757_v56, %v4590_v16  ;;  %v8539_v12 = vpop.f32.mrb[130].mxu1 }
 0x20f   : > { %v5421_v17 = vadd.f32 %v8584_v40, %v5373_v60  ;;  %4855 = vst.msk [vmem:[#allocation3 + $0x50] sm:$0xff] %vm1246_vm11, %v4807_v10  ;;  %v5371_v19 = vld [vmem:[#allocation3 + $0x20] sm:$0xff]  ;;  %v4808_v23 = vadd.f32 %v8539_v12, %v4760_v22  ;;  %v4593_v37 = vpop.f32.mrb[131].mxu1  ;;  %v4771_v22 = vld [vmem:[#allocation3 + $0xb0] sm:$0xff] }
 0x210   : > { %v5419_v0 = vadd.f32 %v5371_v19, %v5192_v50  ;;  %4853 = vst.msk [vmem:[#allocation3 + $0x40] sm:$0xff] %vm1246_vm11, %v4805_v61  ;;  %v5374_v1 = vld [vmem:[#allocation3 + $0x38] sm:$0xff]  ;;  %v4806_v59 = vadd.f32 %v4758_v26, %v4593_v37  ;;  %v8588_v27 = vpop.f32.mrb[128].mxu0  ;;  %v4766_v50 = vld [vmem:[#allocation3 + $0x88] sm:$0xff]  ;;  %v4769_v37 = vld [vmem:[#allocation3 + $0xa0] sm:$0xff] }
 0x211   : > { %5469 = vst.msk [vmem:[#allocation3 + $0x30] sm:$0xff] %vm1246_vm11, %v5421_v17  ;;  %v5422_v63 = vadd.f32 %v8585_v4, %v5374_v1  ;;  %4856 = vst.msk [vmem:[#allocation3 + $0x58] sm:$0xff] %vm1246_vm11, %v4808_v23  ;;  %v5372_v11 = vld [vmem:[#allocation3 + $0x28] sm:$0xff]  ;;  %v5208_v28 = vpop.f32.mrb[129].mxu0 }
 0x212   : > { %5467 = vst.msk [vmem:[#allocation3 + $0x20] sm:$0xff] %vm1246_vm11, %v5419_v0  ;;  %v5420_v21 = vadd.f32 %v5372_v11, %v5195_v9  ;;  %4854 = vst.msk [vmem:[#allocation3 + $0x48] sm:$0xff] %vm1246_vm11, %v4806_v59  ;;  %v8589_v29 = vpop.f32.mrb[130].mxu0  ;;  %v4772_v59 = vld [vmem:[#allocation3 + $0xb8] sm:$0xff] }
 0x213   : > { %5470 = vst.msk [vmem:[#allocation3 + $0x38] sm:$0xff] %vm1246_vm11, %v5422_v63  ;;  %v5211_v32 = vpop.f32.mrb[131].mxu0 }
 0x214   : > { %5468 = vst.msk [vmem:[#allocation3 + $0x28] sm:$0xff] %vm1246_vm11, %v5420_v21  ;;  %v8542_v62 = vpop.f32.mrb[132].mxu1 }
 0x215   : > { %v4811_v36 = vadd.f32 %v8542_v62, %v4763_v30  ;;  %v4606_v33 = vpop.f32.mrb[133].mxu1 }
 0x216   : > { %v5377_v7 = vld [vmem:[#allocation3 + $0x50] sm:$0xff]  ;;  %v4809_v38 = vadd.f32 %v4761_v35, %v4606_v33  ;;  %v8543_v39 = vpop.f32.mrb[134].mxu1 }
 0x217   : > { %v5425_v18 = vadd.f32 %v8588_v27, %v5377_v7  ;;  %4859 = vst.msk [vmem:[#allocation3 + $0x70] sm:$0xff] %vm1246_vm11, %v4811_v36  ;;  %v5375_v44 = vld [vmem:[#allocation3 + $0x40] sm:$0xff]  ;;  %v4812_v25 = vadd.f32 %v8543_v39, %v4764_v13  ;;  %v4609_v24 = vpop.f32.mrb[135].mxu1  ;;  %v4775_v13 = vld [vmem:[#allocation3 + $0xd0] sm:$0xff] }
 0x218   : > { %v5423_v31 = vadd.f32 %v5375_v44, %v5208_v28  ;;  %4857 = vst.msk [vmem:[#allocation3 + $0x60] sm:$0xff] %vm1246_vm11, %v4809_v38  ;;  %v5378_v45 = vld [vmem:[#allocation3 + $0x58] sm:$0xff]  ;;  %v4810_v14 = vadd.f32 %v4762_v15, %v4609_v24  ;;  %v8592_v48 = vpop.f32.mrb[132].mxu0  ;;  %v4770_v28 = vld [vmem:[#allocation3 + $0xa8] sm:$0xff]  ;;  %v4773_v24 = vld [vmem:[#allocation3 + $0xc0] sm:$0xff] }
 0x219   : > { %5473 = vst.msk [vmem:[#allocation3 + $0x50] sm:$0xff] %vm1246_vm11, %v5425_v18  ;;  %v5426_v46 = vadd.f32 %v8589_v29, %v5378_v45  ;;  %4860 = vst.msk [vmem:[#allocation3 + $0x78] sm:$0xff] %vm1246_vm11, %v4812_v25  ;;  %v5376_v47 = vld [vmem:[#allocation3 + $0x48] sm:$0xff]  ;;  %v5224_v49 = vpop.f32.mrb[133].mxu0 }
 0x21a   : > { %5471 = vst.msk [vmem:[#allocation3 + $0x40] sm:$0xff] %vm1246_vm11, %v5423_v31  ;;  %v5424_v20 = vadd.f32 %v5376_v47, %v5211_v32  ;;  %4858 = vst.msk [vmem:[#allocation3 + $0x68] sm:$0xff] %vm1246_vm11, %v4810_v14  ;;  %v8593_v51 = vpop.f32.mrb[134].mxu0  ;;  %v4776_v14 = vld [vmem:[#allocation3 + $0xd8] sm:$0xff] }
 0x21b   : > { %5474 = vst.msk [vmem:[#allocation3 + $0x58] sm:$0xff] %vm1246_vm11, %v5426_v46  ;;  %v5227_v54 = vpop.f32.mrb[135].mxu0 }
 0x21c   : > { %5472 = vst.msk [vmem:[#allocation3 + $0x48] sm:$0xff] %vm1246_vm11, %v5424_v20  ;;  %v8546_v52 = vpop.f32.mrb[136].mxu1 }
 0x21d   : > { %v4815_v57 = vadd.f32 %v8546_v52, %v4767_v53  ;;  %v4622_v55 = vpop.f32.mrb[137].mxu1 }
 0x21e   : > { %v5381_v34 = vld [vmem:[#allocation3 + $0x70] sm:$0xff]  ;;  %v4813_v41 = vadd.f32 %v4765_v3, %v4622_v55  ;;  %v8547_v58 = vpop.f32.mrb[138].mxu1 }
 0x21f   : > { %v5429_v2 = vadd.f32 %v8592_v48, %v5381_v34  ;;  %4863 = vst.msk [vmem:[#allocation3 + $0x90] sm:$0xff] %vm1246_vm11, %v4815_v57  ;;  %v5379_v43 = vld [vmem:[#allocation3 + $0x60] sm:$0xff]  ;;  %v4816_v40 = vadd.f32 %v8547_v58, %v4768_v42  ;;  %v4625_v5 = vpop.f32.mrb[139].mxu1  ;;  %v4779_v42 = vld [vmem:[#allocation3 + $0xf0] sm:$0xff] }
 0x220   : > { %v5427_v4 = vadd.f32 %v5379_v43, %v5224_v49  ;;  %4861 = vst.msk [vmem:[#allocation3 + $0x80] sm:$0xff] %vm1246_vm11, %v4813_v41  ;;  %v5382_v6 = vld [vmem:[#allocation3 + $0x78] sm:$0xff]  ;;  %v4814_v8 = vadd.f32 %v4766_v50, %v4625_v5  ;;  %v8596_v16 = vpop.f32.mrb[136].mxu0  ;;  %v4774_v49 = vld [vmem:[#allocation3 + $0xc8] sm:$0xff]  ;;  %v4777_v5 = vld [vmem:[#allocation3 + $0xe0] sm:$0xff] }
 0x221   : > { %5477 = vst.msk [vmem:[#allocation3 + $0x70] sm:$0xff] %vm1246_vm11, %v5429_v2  ;;  %v5430_v9 = vadd.f32 %v8593_v51, %v5382_v6  ;;  %4864 = vst.msk [vmem:[#allocation3 + $0x98] sm:$0xff] %vm1246_vm11, %v4816_v40  ;;  %v5380_v10 = vld [vmem:[#allocation3 + $0x68] sm:$0xff]  ;;  %v5240_v60 = vpop.f32.mrb[137].mxu0 }
 0x222   : > { %5475 = vst.msk [vmem:[#allocation3 + $0x60] sm:$0xff] %vm1246_vm11, %v5427_v4  ;;  %v5428_v56 = vadd.f32 %v5380_v10, %v5227_v54  ;;  %4862 = vst.msk [vmem:[#allocation3 + $0x88] sm:$0xff] %vm1246_vm11, %v4814_v8  ;;  %v8597_v61 = vpop.f32.mrb[138].mxu0  ;;  %v4780_v8 = vld [vmem:[#allocation3 + $0xf8] sm:$0xff] }
 0x223   : > { %5478 = vst.msk [vmem:[#allocation3 + $0x78] sm:$0xff] %vm1246_vm11, %v5430_v9  ;;  %v5243_v17 = vpop.f32.mrb[139].mxu0 }
 0x224   : > { %5476 = vst.msk [vmem:[#allocation3 + $0x68] sm:$0xff] %vm1246_vm11, %v5428_v56  ;;  %v8550_v12 = vpop.f32.mrb[140].mxu1 }
 0x225   : > { %v4819_v19 = vadd.f32 %v8550_v12, %v4771_v22  ;;  %v4638_v23 = vpop.f32.mrb[141].mxu1 }
 0x226   : > { %v5385_v26 = vld [vmem:[#allocation3 + $0x90] sm:$0xff]  ;;  %v4817_v0 = vadd.f32 %v4769_v37, %v4638_v23  ;;  %v8551_v1 = vpop.f32.mrb[142].mxu1 }
 0x227   : > { %v5433_v63 = vadd.f32 %v8596_v16, %v5385_v26  ;;  %4867 = vst.msk [vmem:[#allocation3 + $0xb0] sm:$0xff] %vm1246_vm11, %v4819_v19  ;;  %v5383_v11 = vld [vmem:[#allocation3 + $0x80] sm:$0xff]  ;;  %v4820_v27 = vadd.f32 %v8551_v1, %v4772_v59  ;;  %v4641_v21 = vpop.f32.mrb[143].mxu1  ;;  %v4783_v59 = vld [vmem:[#allocation3 + $0x110] sm:$0xff] }
 0x228   : > { %v5431_v29 = vadd.f32 %v5383_v11, %v5240_v60  ;;  %4865 = vst.msk [vmem:[#allocation3 + $0xa0] sm:$0xff] %vm1246_vm11, %v4817_v0  ;;  %v5386_v62 = vld [vmem:[#allocation3 + $0x98] sm:$0xff]  ;;  %v4818_v30 = vadd.f32 %v4770_v28, %v4641_v21  ;;  %v8600_v33 = vpop.f32.mrb[140].mxu0  ;;  %v4778_v60 = vld [vmem:[#allocation3 + $0xe8] sm:$0xff]  ;;  %v4781_v21 = vld [vmem:[#allocation3 + $0x100] sm:$0xff] }
 0x229   : > { %5481 = vst.msk [vmem:[#allocation3 + $0x90] sm:$0xff] %vm1246_vm11, %v5433_v63  ;;  %v5434_v32 = vadd.f32 %v8597_v61, %v5386_v62  ;;  %4868 = vst.msk [vmem:[#allocation3 + $0xb8] sm:$0xff] %vm1246_vm11, %v4820_v27  ;;  %v5384_v36 = vld [vmem:[#allocation3 + $0x88] sm:$0xff]  ;;  %v5256_v7 = vpop.f32.mrb[141].mxu0 }
 0x22a   : > { %5479 = vst.msk [vmem:[#allocation3 + $0x80] sm:$0xff] %vm1246_vm11, %v5431_v29  ;;  %v5432_v35 = vadd.f32 %v5384_v36, %v5243_v17  ;;  %4866 = vst.msk [vmem:[#allocation3 + $0xa8] sm:$0xff] %vm1246_vm11, %v4818_v30  ;;  %v8601_v38 = vpop.f32.mrb[142].mxu0  ;;  %v4784_v30 = vld [vmem:[#allocation3 + $0x118] sm:$0xff] }
 0x22b   : > { %5482 = vst.msk [vmem:[#allocation3 + $0x98] sm:$0xff] %vm1246_vm11, %v5434_v32  ;;  %v5259_v18 = vpop.f32.mrb[143].mxu0 }
 0x22c   : > { %5480 = vst.msk [vmem:[#allocation3 + $0x88] sm:$0xff] %vm1246_vm11, %v5432_v35  ;;  %v8554_v39 = vpop.f32.mrb[144].mxu1 }
 0x22d   : > { %v4823_v44 = vadd.f32 %v8554_v39, %v4775_v13  ;;  %v4654_v25 = vpop.f32.mrb[145].mxu1 }
 0x22e   : > { %v5389_v15 = vld [vmem:[#allocation3 + $0xb0] sm:$0xff]  ;;  %v4821_v31 = vadd.f32 %v4773_v24, %v4654_v25  ;;  %v8555_v45 = vpop.f32.mrb[146].mxu1 }
 0x22f   : > { %v5437_v46 = vadd.f32 %v8600_v33, %v5389_v15  ;;  %4871 = vst.msk [vmem:[#allocation3 + $0xd0] sm:$0xff] %vm1246_vm11, %v4823_v44  ;;  %v5387_v47 = vld [vmem:[#allocation3 + $0xa0] sm:$0xff]  ;;  %v4824_v48 = vadd.f32 %v8555_v45, %v4776_v14  ;;  %v4657_v20 = vpop.f32.mrb[147].mxu1  ;;  %v4787_v14 = vld [vmem:[#allocation3 + $0x130] sm:$0xff] }
 0x230   : > { %v5435_v51 = vadd.f32 %v5387_v47, %v5256_v7  ;;  %4869 = vst.msk [vmem:[#allocation3 + $0xc0] sm:$0xff] %vm1246_vm11, %v4821_v31  ;;  %v5390_v52 = vld [vmem:[#allocation3 + $0xb8] sm:$0xff]  ;;  %v4822_v53 = vadd.f32 %v4774_v49, %v4657_v20  ;;  %v8604_v55 = vpop.f32.mrb[144].mxu0  ;;  %v4782_v7 = vld [vmem:[#allocation3 + $0x108] sm:$0xff]  ;;  %v4785_v20 = vld [vmem:[#allocation3 + $0x120] sm:$0xff] }
 0x231   : > { %5485 = vst.msk [vmem:[#allocation3 + $0xb0] sm:$0xff] %vm1246_vm11, %v5437_v46  ;;  %v5438_v54 = vadd.f32 %v8601_v38, %v5390_v52  ;;  %4872 = vst.msk [vmem:[#allocation3 + $0xd8] sm:$0xff] %vm1246_vm11, %v4824_v48  ;;  %v5388_v57 = vld [vmem:[#allocation3 + $0xa8] sm:$0xff]  ;;  %v5272_v34 = vpop.f32.mrb[145].mxu0 }
 0x232   : > { %5483 = vst.msk [vmem:[#allocation3 + $0xa0] sm:$0xff] %vm1246_vm11, %v5435_v51  ;;  %v5436_v3 = vadd.f32 %v5388_v57, %v5259_v18  ;;  %4870 = vst.msk [vmem:[#allocation3 + $0xc8] sm:$0xff] %vm1246_vm11, %v4822_v53  ;;  %v8605_v41 = vpop.f32.mrb[146].mxu0  ;;  %v4788_v53 = vld [vmem:[#allocation3 + $0x138] sm:$0xff] }
 0x233   : > { %5486 = vst.msk [vmem:[#allocation3 + $0xb8] sm:$0xff] %vm1246_vm11, %v5438_v54  ;;  %v5275_v2 = vpop.f32.mrb[147].mxu0 }
 0x234   : > { %5484 = vst.msk [vmem:[#allocation3 + $0xa8] sm:$0xff] %vm1246_vm11, %v5436_v3  ;;  %v8558_v58 = vpop.f32.mrb[148].mxu1 }
 0x235   : > { %v4827_v43 = vadd.f32 %v8558_v58, %v4779_v42  ;;  %v4670_v40 = vpop.f32.mrb[149].mxu1 }
 0x236   : > { %v5393_v50 = vld [vmem:[#allocation3 + $0xd0] sm:$0xff]  ;;  %v4825_v4 = vadd.f32 %v4777_v5, %v4670_v40  ;;  %v8559_v6 = vpop.f32.mrb[150].mxu1 }
 0x237   : > { %v5441_v9 = vadd.f32 %v8604_v55, %v5393_v50  ;;  %4875 = vst.msk [vmem:[#allocation3 + $0xf0] sm:$0xff] %vm1246_vm11, %v4827_v43  ;;  %v5391_v10 = vld [vmem:[#allocation3 + $0xc0] sm:$0xff]  ;;  %v4828_v16 = vadd.f32 %v8559_v6, %v4780_v8  ;;  %v4673_v56 = vpop.f32.mrb[151].mxu1  ;;  %v4791_v8 = vld [vmem:[#allocation3 + $0x150] sm:$0xff] }
 0x238   : > { %v5439_v61 = vadd.f32 %v5391_v10, %v5272_v34  ;;  %4873 = vst.msk [vmem:[#allocation3 + $0xe0] sm:$0xff] %vm1246_vm11, %v4825_v4  ;;  %v5394_v12 = vld [vmem:[#allocation3 + $0xd8] sm:$0xff]  ;;  %v4826_v22 = vadd.f32 %v4778_v60, %v4673_v56  ;;  %v8608_v23 = vpop.f32.mrb[148].mxu0  ;;  %v4786_v34 = vld [vmem:[#allocation3 + $0x128] sm:$0xff]  ;;  %v4789_v56 = vld [vmem:[#allocation3 + $0x140] sm:$0xff] }
 0x239   : > { %5489 = vst.msk [vmem:[#allocation3 + $0xd0] sm:$0xff] %vm1246_vm11, %v5441_v9  ;;  %v5442_v17 = vadd.f32 %v8605_v41, %v5394_v12  ;;  %4876 = vst.msk [vmem:[#allocation3 + $0xf8] sm:$0xff] %vm1246_vm11, %v4828_v16  ;;  %v5392_v19 = vld [vmem:[#allocation3 + $0xc8] sm:$0xff]  ;;  %v5288_v26 = vpop.f32.mrb[149].mxu0 }
 0x23a   : > { %5487 = vst.msk [vmem:[#allocation3 + $0xc0] sm:$0xff] %vm1246_vm11, %v5439_v61  ;;  %v5440_v37 = vadd.f32 %v5392_v19, %v5275_v2  ;;  %4874 = vst.msk [vmem:[#allocation3 + $0xe8] sm:$0xff] %vm1246_vm11, %v4826_v22  ;;  %v8609_v0 = vpop.f32.mrb[150].mxu0  ;;  %v4792_v22 = vld [vmem:[#allocation3 + $0x158] sm:$0xff] }
 0x23b   : > { %5490 = vst.msk [vmem:[#allocation3 + $0xd8] sm:$0xff] %vm1246_vm11, %v5442_v17  ;;  %v5291_v63 = vpop.f32.mrb[151].mxu0 }
 0x23c   : > { %5488 = vst.msk [vmem:[#allocation3 + $0xc8] sm:$0xff] %vm1246_vm11, %v5440_v37  ;;  %v8562_v1 = vpop.f32.mrb[152].mxu1 }
 0x23d   : > { %v4831_v11 = vadd.f32 %v8562_v1, %v4783_v59  ;;  %v4686_v27 = vpop.f32.mrb[153].mxu1 }
 0x23e   : > { %v5397_v28 = vld [vmem:[#allocation3 + $0xf0] sm:$0xff]  ;;  %v4829_v29 = vadd.f32 %v4781_v21, %v4686_v27  ;;  %v8563_v62 = vpop.f32.mrb[154].mxu1 }
 0x23f   : > { %v5445_v32 = vadd.f32 %v8608_v23, %v5397_v28  ;;  %4879 = vst.msk [vmem:[#allocation3 + $0x110] sm:$0xff] %vm1246_vm11, %v4831_v11  ;;  %v5395_v36 = vld [vmem:[#allocation3 + $0xe0] sm:$0xff]  ;;  %v4832_v33 = vadd.f32 %v8563_v62, %v4784_v30  ;;  %v4689_v35 = vpop.f32.mrb[155].mxu1  ;;  %v4795_v30 = vld [vmem:[#allocation3 + $0x170] sm:$0xff] }
 0x240   : > { %v5443_v38 = vadd.f32 %v5395_v36, %v5288_v26  ;;  %4877 = vst.msk [vmem:[#allocation3 + $0x100] sm:$0xff] %vm1246_vm11, %v4829_v29  ;;  %v5398_v39 = vld [vmem:[#allocation3 + $0xf8] sm:$0xff]  ;;  %v4830_v13 = vadd.f32 %v4782_v7, %v4689_v35  ;;  %v8612_v25 = vpop.f32.mrb[152].mxu0  ;;  %v4790_v26 = vld [vmem:[#allocation3 + $0x148] sm:$0xff]  ;;  %v4793_v35 = vld [vmem:[#allocation3 + $0x160] sm:$0xff] }
 0x241   : > { %5493 = vst.msk [vmem:[#allocation3 + $0xf0] sm:$0xff] %vm1246_vm11, %v5445_v32  ;;  %v5446_v18 = vadd.f32 %v8609_v0, %v5398_v39  ;;  %4880 = vst.msk [vmem:[#allocation3 + $0x118] sm:$0xff] %vm1246_vm11, %v4832_v33  ;;  %v5396_v44 = vld [vmem:[#allocation3 + $0xe8] sm:$0xff]  ;;  %v5304_v15 = vpop.f32.mrb[153].mxu0 }
 0x242   : > { %5491 = vst.msk [vmem:[#allocation3 + $0xe0] sm:$0xff] %vm1246_vm11, %v5443_v38  ;;  %v5444_v24 = vadd.f32 %v5396_v44, %v5291_v63  ;;  %4878 = vst.msk [vmem:[#allocation3 + $0x108] sm:$0xff] %vm1246_vm11, %v4830_v13  ;;  %v8613_v31 = vpop.f32.mrb[154].mxu0  ;;  %v4796_v13 = vld [vmem:[#allocation3 + $0x178] sm:$0xff] }
 0x243   : > { %5494 = vst.msk [vmem:[#allocation3 + $0xf8] sm:$0xff] %vm1246_vm11, %v5446_v18  ;;  %v5307_v46 = vpop.f32.mrb[155].mxu0 }
 0x244   : > { %5492 = vst.msk [vmem:[#allocation3 + $0xe8] sm:$0xff] %vm1246_vm11, %v5444_v24  ;;  %v8566_v45 = vpop.f32.mrb[156].mxu1 }
 0x245   : > { %v4835_v47 = vadd.f32 %v8566_v45, %v4787_v14  ;;  %v4702_v48 = vpop.f32.mrb[157].mxu1 }
 0x246   : > { %v5401_v49 = vld [vmem:[#allocation3 + $0x110] sm:$0xff]  ;;  %v4833_v51 = vadd.f32 %v4785_v20, %v4702_v48  ;;  %v8567_v52 = vpop.f32.mrb[158].mxu1 }
 0x247   : > { %v5449_v54 = vadd.f32 %v8612_v25, %v5401_v49  ;;  %4883 = vst.msk [vmem:[#allocation3 + $0x130] sm:$0xff] %vm1246_vm11, %v4835_v47  ;;  %v5399_v57 = vld [vmem:[#allocation3 + $0x100] sm:$0xff]  ;;  %v4836_v55 = vadd.f32 %v8567_v52, %v4788_v53  ;;  %v4705_v3 = vpop.f32.mrb[159].mxu1  ;;  %v6187_v53 = vld [vmem:[#allocation3 + $0x10] sm:$0xff] }
 0x248   : > { %v5447_v41 = vadd.f32 %v5399_v57, %v5304_v15  ;;  %4881 = vst.msk [vmem:[#allocation3 + $0x120] sm:$0xff] %vm1246_vm11, %v4833_v51  ;;  %v5402_v58 = vld [vmem:[#allocation3 + $0x118] sm:$0xff]  ;;  %v4834_v42 = vadd.f32 %v4786_v34, %v4705_v3  ;;  %v8616_v40 = vpop.f32.mrb[156].mxu0  ;;  %v4794_v15 = vld [vmem:[#allocation3 + $0x168] sm:$0xff]  ;;  %v6185_v3 = vld [vmem:[#allocation3] sm:$0xff] }
 0x249   : > { %5497 = vst.msk [vmem:[#allocation3 + $0x110] sm:$0xff] %vm1246_vm11, %v5449_v54  ;;  %v5450_v2 = vadd.f32 %v8613_v31, %v5402_v58  ;;  %4884 = vst.msk [vmem:[#allocation3 + $0x138] sm:$0xff] %vm1246_vm11, %v4836_v55  ;;  %v5400_v43 = vld [vmem:[#allocation3 + $0x108] sm:$0xff]  ;;  %v5320_v50 = vpop.f32.mrb[157].mxu0 }
 0x24a   : > { %5495 = vst.msk [vmem:[#allocation3 + $0x100] sm:$0xff] %vm1246_vm11, %v5447_v41  ;;  %v5448_v5 = vadd.f32 %v5400_v43, %v5307_v46  ;;  %4882 = vst.msk [vmem:[#allocation3 + $0x128] sm:$0xff] %vm1246_vm11, %v4834_v42  ;;  %v8617_v4 = vpop.f32.mrb[158].mxu0  ;;  %v6188_v42 = vld [vmem:[#allocation3 + $0x18] sm:$0xff] }
 0x24b   : > { %5498 = vst.msk [vmem:[#allocation3 + $0x118] sm:$0xff] %vm1246_vm11, %v5450_v2  ;;  %v5323_v9 = vpop.f32.mrb[159].mxu0 }
 0x24c   : > { %5496 = vst.msk [vmem:[#allocation3 + $0x108] sm:$0xff] %vm1246_vm11, %v5448_v5  ;;  %v8570_v6 = vpop.f32.mrb[160].mxu1 }
 0x24d   : > { %v4839_v10 = vadd.f32 %v8570_v6, %v4791_v8  ;;  %v4718_v16 = vpop.f32.mrb[161].mxu1 }
 0x24e   : > { %v5405_v60 = vld [vmem:[#allocation3 + $0x130] sm:$0xff]  ;;  %v4837_v61 = vadd.f32 %v4789_v56, %v4718_v16  ;;  %v8571_v12 = vpop.f32.mrb[162].mxu1 }
 0x24f   : > { %v5453_v17 = vadd.f32 %v8616_v40, %v5405_v60  ;;  %4887 = vst.msk [vmem:[#allocation3 + $0x150] sm:$0xff] %vm1246_vm11, %v4839_v10  ;;  %v5403_v19 = vld [vmem:[#allocation3 + $0x120] sm:$0xff]  ;;  %v4840_v23 = vadd.f32 %v8571_v12, %v4792_v22  ;;  %v4721_v37 = vpop.f32.mrb[163].mxu1  ;;  %v6191_v22 = vld [vmem:[#allocation3 + $0x30] sm:$0xff] }
 0x250   : > { %v5451_v0 = vadd.f32 %v5403_v19, %v5320_v50  ;;  %4885 = vst.msk [vmem:[#allocation3 + $0x140] sm:$0xff] %vm1246_vm11, %v4837_v61  ;;  %v5406_v1 = vld [vmem:[#allocation3 + $0x138] sm:$0xff]  ;;  %v4838_v59 = vadd.f32 %v4790_v26, %v4721_v37  ;;  %v8620_v27 = vpop.f32.mrb[160].mxu0  ;;  %v6186_v50 = vld [vmem:[#allocation3 + $0x8] sm:$0xff]  ;;  %v6189_v37 = vld [vmem:[#allocation3 + $0x20] sm:$0xff] }
 0x251   : > { %5501 = vst.msk [vmem:[#allocation3 + $0x130] sm:$0xff] %vm1246_vm11, %v5453_v17  ;;  %v5454_v63 = vadd.f32 %v8617_v4, %v5406_v1  ;;  %4888 = vst.msk [vmem:[#allocation3 + $0x158] sm:$0xff] %vm1246_vm11, %v4840_v23  ;;  %v5404_v11 = vld [vmem:[#allocation3 + $0x128] sm:$0xff]  ;;  %v5336_v28 = vpop.f32.mrb[161].mxu0 }
 0x252   : > { %5499 = vst.msk [vmem:[#allocation3 + $0x120] sm:$0xff] %vm1246_vm11, %v5451_v0  ;;  %v5452_v21 = vadd.f32 %v5404_v11, %v5323_v9  ;;  %4886 = vst.msk [vmem:[#allocation3 + $0x148] sm:$0xff] %vm1246_vm11, %v4838_v59  ;;  %v8621_v29 = vpop.f32.mrb[162].mxu0  ;;  %v6192_v59 = vld [vmem:[#allocation3 + $0x38] sm:$0xff] }
 0x253   : > { %5502 = vst.msk [vmem:[#allocation3 + $0x138] sm:$0xff] %vm1246_vm11, %v5454_v63  ;;  %v5339_v32 = vpop.f32.mrb[163].mxu0 }
 0x254   : > { %5500 = vst.msk [vmem:[#allocation3 + $0x128] sm:$0xff] %vm1246_vm11, %v5452_v21  ;;  %v8574_v62 = vpop.f32.mrb[164].mxu1 }
 0x255   : > { %v4843_v36 = vadd.f32 %v8574_v62, %v4795_v30  ;;  %v4734_v33 = vpop.f32.mrb[165].mxu1 }
 0x256   : > { %v5409_v7 = vld [vmem:[#allocation3 + $0x150] sm:$0xff]  ;;  %v4841_v38 = vadd.f32 %v4793_v35, %v4734_v33  ;;  %v8575_v39 = vpop.f32.mrb[166].mxu1 }
 0x257   : > { %v5457_v18 = vadd.f32 %v8620_v27, %v5409_v7  ;;  %4891 = vst.msk [vmem:[#allocation3 + $0x170] sm:$0xff] %vm1246_vm11, %v4843_v36  ;;  %v5407_v44 = vld [vmem:[#allocation3 + $0x140] sm:$0xff]  ;;  %v4844_v25 = vadd.f32 %v8575_v39, %v4796_v13  ;;  %v4737_v24 = vpop.f32.mrb[167].mxu1  ;;  %v6195_v13 = vld [vmem:[#allocation3 + $0x50] sm:$0xff] }
 0x258   : > { %v5455_v31 = vadd.f32 %v5407_v44, %v5336_v28  ;;  %4889 = vst.msk [vmem:[#allocation3 + $0x160] sm:$0xff] %vm1246_vm11, %v4841_v38  ;;  %v5410_v45 = vld [vmem:[#allocation3 + $0x158] sm:$0xff]  ;;  %v4842_v14 = vadd.f32 %v4794_v15, %v4737_v24  ;;  %v8624_v48 = vpop.f32.mrb[164].mxu0  ;;  %v6190_v28 = vld [vmem:[#allocation3 + $0x28] sm:$0xff]  ;;  %v6193_v24 = vld [vmem:[#allocation3 + $0x40] sm:$0xff] }
 0x259   : > { %5505 = vst.msk [vmem:[#allocation3 + $0x150] sm:$0xff] %vm1246_vm11, %v5457_v18  ;;  %v5458_v46 = vadd.f32 %v8621_v29, %v5410_v45  ;;  %4892 = vst.msk [vmem:[#allocation3 + $0x178] sm:$0xff] %vm1246_vm11, %v4844_v25  ;;  %v5408_v47 = vld [vmem:[#allocation3 + $0x148] sm:$0xff]  ;;  %v5352_v49 = vpop.f32.mrb[165].mxu0 }
 0x25a   : > { %5503 = vst.msk [vmem:[#allocation3 + $0x140] sm:$0xff] %vm1246_vm11, %v5455_v31  ;;  %v5456_v20 = vadd.f32 %v5408_v47, %v5339_v32  ;;  %4890 = vst.msk [vmem:[#allocation3 + $0x168] sm:$0xff] %vm1246_vm11, %v4842_v14  ;;  %v8625_v51 = vpop.f32.mrb[166].mxu0  ;;  %v6196_v14 = vld [vmem:[#allocation3 + $0x58] sm:$0xff] }
 0x25b   : > { %5506 = vst.msk [vmem:[#allocation3 + $0x158] sm:$0xff] %vm1246_vm11, %v5458_v46  ;;  %v5355_v54 = vpop.f32.mrb[167].mxu0  ;;  %v10319_v46 = vld [vmem:[%s10518_s2] ss:$0 sm:$0xff] }
 0x25c   : > { %5504 = vst.msk [vmem:[#allocation3 + $0x148] sm:$0xff] %vm1246_vm11, %v5456_v20  ;;  %v8630_v52 = vpop.f32.mrb[168].mxu1 }
 0x25d   : > { %v6235_v57 = vadd.f32 %v8630_v52, %v6187_v53  ;;  %v5994_v55 = vpop.f32.mrb[169].mxu1 }
 0x25e   : > { %v5413_v34 = vld [vmem:[#allocation3 + $0x170] sm:$0xff]  ;;  %v6233_v41 = vadd.f32 %v6185_v3, %v5994_v55  ;;  %v8631_v58 = vpop.f32.mrb[170].mxu1 }
 0x25f   : > { %v5461_v2 = vadd.f32 %v8624_v48, %v5413_v34  ;;  %v5411_v43 = vld [vmem:[#allocation3 + $0x160] sm:$0xff]  ;;  %6283 = vst.msk [vmem:[#allocation3 + $0x10] sm:$0xff] %vm1246_vm11, %v6235_v57  ;;  %v6236_v40 = vadd.f32 %v8631_v58, %v6188_v42  ;;  %v5997_v5 = vpop.f32.mrb[171].mxu1 }
 0x260   : > { %v5459_v4 = vadd.f32 %v5411_v43, %v5352_v49  ;;  %v5414_v6 = vld [vmem:[#allocation3 + $0x178] sm:$0xff]  ;;  %6281 = vst.msk [vmem:[#allocation3] sm:$0xff] %vm1246_vm11, %v6233_v41  ;;  %v6234_v8 = vadd.f32 %v6186_v50, %v5997_v5  ;;  %v8680_v16 = vpop.f32.mrb[168].mxu0 }
 0x261   : > { %5509 = vst.msk [vmem:[#allocation3 + $0x170] sm:$0xff] %vm1246_vm11, %v5461_v2  ;;  %v5462_v9 = vadd.f32 %v8625_v51, %v5414_v6  ;;  %v5412_v10 = vld [vmem:[#allocation3 + $0x168] sm:$0xff]  ;;  %6284 = vst.msk [vmem:[#allocation3 + $0x18] sm:$0xff] %vm1246_vm11, %v6236_v40  ;;  %v6665_v60 = vpop.f32.mrb[169].mxu0 }
 0x262   : > { %5507 = vst.msk [vmem:[#allocation3 + $0x160] sm:$0xff] %vm1246_vm11, %v5459_v4  ;;  %v5460_v56 = vadd.f32 %v5412_v10, %v5355_v54  ;;  %6282 = vst.msk [vmem:[#allocation3 + $0x8] sm:$0xff] %vm1246_vm11, %v6234_v8  ;;  %v8681_v61 = vpop.f32.mrb[170].mxu0  ;;  %v6194_v51 = vld [vmem:[#allocation3 + $0x48] sm:$0xff]  ;;  %v6199_v8 = vld [vmem:[#allocation3 + $0x70] sm:$0xff] }
 0x263   : > { %5510 = vst.msk [vmem:[#allocation3 + $0x178] sm:$0xff] %vm1246_vm11, %v5462_v9  ;;  %v6668_v17 = vpop.f32.mrb[171].mxu0 }
 0x264   : > { %5508 = vst.msk [vmem:[#allocation3 + $0x168] sm:$0xff] %vm1246_vm11, %v5460_v56  ;;  %v8634_v12 = vpop.f32.mrb[172].mxu1 }
 0x265   : > { %v6239_v19 = vadd.f32 %v8634_v12, %v6191_v22  ;;  %v6010_v23 = vpop.f32.mrb[173].mxu1 }
 0x266   : > { %v6858_v26 = vld [vmem:[#allocation3 + $0x10] sm:$0xff]  ;;  %v6237_v0 = vadd.f32 %v6189_v37, %v6010_v23  ;;  %v8635_v1 = vpop.f32.mrb[174].mxu1  ;;  %v6200_v23 = vld [vmem:[#allocation3 + $0x78] sm:$0xff] }
 0x267   : > { %v6906_v63 = vadd.f32 %v8680_v16, %v6858_v26  ;;  %6287 = vst.msk [vmem:[#allocation3 + $0x30] sm:$0xff] %vm1246_vm11, %v6239_v19  ;;  %v6856_v11 = vld [vmem:[#allocation3] sm:$0xff]  ;;  %v6240_v27 = vadd.f32 %v8635_v1, %v6192_v59  ;;  %v6013_v21 = vpop.f32.mrb[175].mxu1 }
 0x268   : > { %v6904_v29 = vadd.f32 %v6856_v11, %v6665_v60  ;;  %6285 = vst.msk [vmem:[#allocation3 + $0x20] sm:$0xff] %vm1246_vm11, %v6237_v0  ;;  %v6859_v62 = vld [vmem:[#allocation3 + $0x18] sm:$0xff]  ;;  %v6238_v30 = vadd.f32 %v6190_v28, %v6013_v21  ;;  %v8684_v33 = vpop.f32.mrb[172].mxu0  ;;  %v6197_v60 = vld [vmem:[#allocation3 + $0x60] sm:$0xff]  ;;  %v6198_v11 = vld [vmem:[#allocation3 + $0x68] sm:$0xff] }
 0x269   : > { %6954 = vst.msk [vmem:[#allocation3 + $0x10] sm:$0xff] %vm1246_vm11, %v6906_v63  ;;  %v6907_v32 = vadd.f32 %v8681_v61, %v6859_v62  ;;  %6288 = vst.msk [vmem:[#allocation3 + $0x38] sm:$0xff] %vm1246_vm11, %v6240_v27  ;;  %v6857_v36 = vld [vmem:[#allocation3 + $0x8] sm:$0xff]  ;;  %v6681_v7 = vpop.f32.mrb[173].mxu0 }
 0x26a   : > { %6952 = vst.msk [vmem:[#allocation3] sm:$0xff] %vm1246_vm11, %v6904_v29  ;;  %v6905_v35 = vadd.f32 %v6857_v36, %v6668_v17  ;;  %6286 = vst.msk [vmem:[#allocation3 + $0x28] sm:$0xff] %vm1246_vm11, %v6238_v30  ;;  %v8685_v38 = vpop.f32.mrb[174].mxu0 }
 0x26b   : > { %6955 = vst.msk [vmem:[#allocation3 + $0x18] sm:$0xff] %vm1246_vm11, %v6907_v32  ;;  %v6684_v18 = vpop.f32.mrb[175].mxu0 }
 0x26c   : > { %6953 = vst.msk [vmem:[#allocation3 + $0x8] sm:$0xff] %vm1246_vm11, %v6905_v35  ;;  %v8638_v39 = vpop.f32.mrb[176].mxu1 }
 0x26d   : > { %v6243_v44 = vadd.f32 %v8638_v39, %v6195_v13  ;;  %v6026_v25 = vpop.f32.mrb[177].mxu1 }
 0x26e   : > { %v6862_v15 = vld [vmem:[#allocation3 + $0x30] sm:$0xff]  ;;  %v6241_v31 = vadd.f32 %v6193_v24, %v6026_v25  ;;  %v8639_v45 = vpop.f32.mrb[178].mxu1 }
 0x26f   : > { %v6910_v47 = vadd.f32 %v8684_v33, %v6862_v15  ;;  %6291 = vst.msk [vmem:[#allocation3 + $0x50] sm:$0xff] %vm1246_vm11, %v6243_v44  ;;  %v6860_v48 = vld [vmem:[#allocation3 + $0x20] sm:$0xff]  ;;  %v6244_v20 = vadd.f32 %v8639_v45, %v6196_v14  ;;  %v6029_v49 = vpop.f32.mrb[179].mxu1  ;;  %v6203_v14 = vld [vmem:[#allocation3 + $0x90] sm:$0xff] }
 0x270   : > { %v6908_v52 = vadd.f32 %v6860_v48, %v6681_v7  ;;  %6289 = vst.msk [vmem:[#allocation3 + $0x40] sm:$0xff] %vm1246_vm11, %v6241_v31  ;;  %v6863_v53 = vld [vmem:[#allocation3 + $0x38] sm:$0xff]  ;;  %v6242_v54 = vadd.f32 %v6194_v51, %v6029_v49  ;;  %v8688_v34 = vpop.f32.mrb[176].mxu0 }
 0x271   : > { %v7001_v57 = vld [vmem:[#allocation3] sm:$0xff]  ;;  %6958 = vst.msk [vmem:[#allocation3 + $0x30] sm:$0xff] %vm1246_vm11, %v6910_v47  ;;  %v6911_v55 = vadd.f32 %v8685_v38, %v6863_v53  ;;  %6292 = vst.msk [vmem:[#allocation3 + $0x58] sm:$0xff] %vm1246_vm11, %v6244_v20  ;;  %v6861_v3 = vld [vmem:[#allocation3 + $0x28] sm:$0xff]  ;;  %v6697_v2 = vpop.f32.mrb[177].mxu0 }
 0x272   : > { %v7009_v41 = vadd.f32 %v10319_v46, %v7001_v57  ;;  %v7028_v58 = vld [vmem:[#allocation3 + $0x18] sm:$0xff]  ;;  %6956 = vst.msk [vmem:[#allocation3 + $0x20] sm:$0xff] %vm1246_vm11, %v6908_v52  ;;  %v6909_v42 = vadd.f32 %v6861_v3, %v6684_v18  ;;  %6290 = vst.msk [vmem:[#allocation3 + $0x48] sm:$0xff] %vm1246_vm11, %v6242_v54  ;;  %v8689_v5 = vpop.f32.mrb[178].mxu0  ;;  %v6201_v52 = vld [vmem:[#allocation3 + $0x80] sm:$0xff] }
 0x273   : > { %v7030_v43 = vadd.f32 %v10319_v46, %v7028_v58  ;;  %v7002_v40 = vld [vmem:[#allocation3 + $0x8] sm:$0xff]  ;;  %6959 = vst.msk [vmem:[#allocation3 + $0x38] sm:$0xff] %vm1246_vm11, %v6911_v55  ;;  %v6700_v9 = vpop.f32.mrb[179].mxu0 }
 0x274   : > { %vm7011_vm12 = vcmp.gt.f32.partialorder %v7009_v41, 0.0  ;;  %v7013_v50 = vmul.f32 0.01, %v7009_v41  ;;  %v7010_v4 = vadd.f32 %v10319_v46, %v7002_v40  ;;  %6957 = vst.msk [vmem:[#allocation3 + $0x28] sm:$0xff] %vm1246_vm11, %v6909_v42  ;;  %v8642_v6 = vpop.f32.mrb[180].mxu1 }
 0x275   : > { %vm7032_vm14 = vcmp.gt.f32.partialorder %v7030_v43, 0.0  ;;  %v7034_v10 = vmul.f32 0.01, %v7030_v43  ;;  %v6247_v16 = vadd.f32 %v8642_v6, %v6199_v8  ;;  %v6042_v56 = vpop.f32.mrb[181].mxu1 }
 0x276   : > { %v7015_v61 = vsel %vm7011_vm12, %v7009_v41, %v7013_v50  ;;  %vm7012_vm15 = vcmp.gt.f32.partialorder %v7010_v4, 0.0  ;;  %v7014_v12 = vmul.f32 0.01, %v7010_v4  ;;  %v6866_v22 = vld [vmem:[#allocation3 + $0x50] sm:$0xff]  ;;  %v6245_v17 = vadd.f32 %v6197_v60, %v6042_v56  ;;  %v8643_v19 = vpop.f32.mrb[182].mxu1 }
 0x277   : > { %v8019_v37 = vpack.c.bf16 %v7015_v61, %v7015_v61  ;;  %v7036_v26 = vsel %vm7032_vm14, %v7030_v43, %v7034_v10  ;;  %v6914_v0 = vadd.f32 %v8688_v34, %v6866_v22  ;;  %6295 = vst.msk [vmem:[#allocation3 + $0x70] sm:$0xff] %vm1246_vm11, %v6247_v16  ;;  %v6864_v1 = vld [vmem:[#allocation3 + $0x40] sm:$0xff]  ;;  %v6248_v59 = vadd.f32 %v8643_v19, %v6200_v23  ;;  %v6045_v63 = vpop.f32.mrb[183].mxu1  ;;  %v6204_v34 = vld [vmem:[#allocation3 + $0x98] sm:$0xff] }
 0x278   : > { %v8021_v27 = vpack.c.bf16 %v7036_v26, %v7036_v26  ;;  %v7016_v21 = vsel %vm7012_vm15, %v7010_v4, %v7014_v12  ;;  %v7049_v28 = vld [vmem:[#allocation3 + $0x30] sm:$0xff]  ;;  %v6912_v29 = vadd.f32 %v6864_v1, %v6697_v2  ;;  %6293 = vst.msk [vmem:[#allocation3 + $0x60] sm:$0xff] %vm1246_vm11, %v6245_v17  ;;  %v6867_v62 = vld [vmem:[#allocation3 + $0x58] sm:$0xff]  ;;  %v6246_v30 = vadd.f32 %v6198_v11, %v6045_v63  ;;  %v8692_v38 = vpop.f32.mrb[180].mxu0  ;;  %v6205_v11 = vld [vmem:[#allocation3 + $0xa0] sm:$0xff] }
 0x279   : > { %7026 = vst.msk [vmem:[%s10337_s19] sm:$0xf] %vm7025_vm13, %v8019_v37  ;;  %v8020_v32 = vpack.c.bf16 %v7016_v21, %v7016_v21  ;;  %v7051_v36 = vadd.f32 %v10319_v46, %v7049_v28  ;;  %v7029_v33 = vld [vmem:[#allocation3 + $0x20] sm:$0xff]  ;;  %v6915_v35 = vadd.f32 %v8689_v5, %v6867_v62  ;;  %v6865_v7 = vld [vmem:[#allocation3 + $0x48] sm:$0xff]  ;;  %v6713_v44 = vpop.f32.mrb[181].mxu0  ;;  %v6207_v26 = vld [vmem:[#allocation3 + $0xb0] sm:$0xff] }
 0x27a   : > { %6962 = vst.msk [vmem:[#allocation3 + $0x50] sm:$0xff] %vm1246_vm11, %v6914_v0  ;;  %6296 = vst.msk [vmem:[#allocation3 + $0x78] sm:$0xff] %vm1246_vm11, %v6248_v59  ;;  %v7031_v39 = vadd.f32 %v10319_v46, %v7029_v33  ;;  %v7050_v13 = vld [vmem:[#allocation3 + $0x38] sm:$0xff]  ;;  %v6913_v18 = vadd.f32 %v6865_v7, %v6700_v9  ;;  %v8693_v15 = vpop.f32.mrb[182].mxu0  ;;  %v6202_v5 = vld [vmem:[#allocation3 + $0x88] sm:$0xff] }
 0x27b   : > { %7957 = vst.msk [vmem:[%s10337_s19 + $0x8] sm:$0xf] %vm7025_vm13, %v8021_v27  ;;  %7027 = vst.msk [vmem:[%s10337_s19 + $0x4] sm:$0xf] %vm7025_vm13, %v8020_v32  ;;  %vm7053_vm0 = vcmp.gt.f32.partialorder %v7051_v36, 0.0  ;;  %v7052_v24 = vadd.f32 %v10319_v46, %v7050_v13  ;;  %v6716_v47 = vpop.f32.mrb[183].mxu0 }
 0x27c   : > { %6960 = vst.msk [vmem:[#allocation3 + $0x40] sm:$0xff] %vm1246_vm11, %v6912_v29  ;;  %6294 = vst.msk [vmem:[#allocation3 + $0x68] sm:$0xff] %vm1246_vm11, %v6246_v30  ;;  %v7055_v25 = vmul.f32 0.01, %v7051_v36  ;;  %vm7033_vm1 = vcmp.gt.f32.partialorder %v7031_v39, 0.0  ;;  %v8646_v45 = vpop.f32.mrb[184].mxu1 }
 0x27d   : > { %6963 = vst.msk [vmem:[#allocation3 + $0x58] sm:$0xff] %vm1246_vm11, %v6915_v35  ;;  %v7035_v31 = vmul.f32 0.01, %v7031_v39  ;;  %6961 = vst.msk [vmem:[#allocation3 + $0x48] sm:$0xff] %vm1246_vm11, %v6913_v18  ;;  %vm7054_vm2 = vcmp.gt.f32.partialorder %v7052_v24, 0.0  ;;  %v6251_v49 = vadd.f32 %v8646_v45, %v6203_v14  ;;  %v6058_v51 = vpop.f32.mrb[185].mxu1 }
 0x27e   : > { %v7057_v48 = vsel %vm7053_vm0, %v7051_v36, %v7055_v25  ;;  %v7056_v20 = vmul.f32 0.01, %v7052_v24  ;;  %v6870_v57 = vld [vmem:[#allocation3 + $0x70] sm:$0xff]  ;;  %v6249_v55 = vadd.f32 %v6201_v52, %v6058_v51  ;;  %v8647_v3 = vpop.f32.mrb[186].mxu1  ;;  %v6208_v30 = vld [vmem:[#allocation3 + $0xb8] sm:$0xff]  ;;  %v6206_v7 = vld [vmem:[#allocation3 + $0xa8] sm:$0xff] }
 0x27f   : > { %v8023_v53 = vpack.c.bf16 %v7057_v48, %v7057_v48  ;;  %v7037_v54 = vsel %vm7033_vm1, %v7031_v39, %v7035_v31  ;;  %v6918_v42 = vadd.f32 %v8692_v38, %v6870_v57  ;;  %6299 = vst.msk [vmem:[#allocation3 + $0x90] sm:$0xff] %vm1246_vm11, %v6251_v49  ;;  %v6868_v2 = vld [vmem:[#allocation3 + $0x60] sm:$0xff]  ;;  %v6252_v43 = vadd.f32 %v8647_v3, %v6204_v34  ;;  %v6061_v40 = vpop.f32.mrb[187].mxu1  ;;  %v6211_v57 = vld [vmem:[#allocation3 + $0xd0] sm:$0xff] }
 0x280   : > { %v8022_v41 = vpack.c.bf16 %v7037_v54, %v7037_v54  ;;  %v7058_v58 = vsel %vm7054_vm2, %v7052_v24, %v7056_v20  ;;  %v6916_v6 = vadd.f32 %v6868_v2, %v6713_v44  ;;  %6297 = vst.msk [vmem:[#allocation3 + $0x80] sm:$0xff] %vm1246_vm11, %v6249_v55  ;;  %v6250_v9 = vadd.f32 %v6202_v5, %v6061_v40  ;;  %v8696_v60 = vpop.f32.mrb[184].mxu0 }
 0x281   : > { %7961 = vst.msk [vmem:[%s10337_s19 + $0x10] sm:$0xf] %vm7025_vm13, %v8023_v53  ;;  %v8024_v50 = vpack.c.bf16 %v7058_v58, %v7058_v58  ;;  %v7071_v4 = vld [vmem:[#allocation3 + $0x50] sm:$0xff]  ;;  %v6871_v8 = vld [vmem:[#allocation3 + $0x78] sm:$0xff]  ;;  %v6729_v12 = vpop.f32.mrb[185].mxu0  ;;  %v6209_v58 = vld [vmem:[#allocation3 + $0xc0] sm:$0xff] }
 0x282   : > { %7958 = vst.msk [vmem:[%s10337_s19 + $0xc] sm:$0xf] %vm7025_vm13, %v8022_v41  ;;  %v7073_v10 = vadd.f32 %v10319_v46, %v7071_v4  ;;  %v6919_v16 = vadd.f32 %v8693_v15, %v6871_v8  ;;  %v8697_v19 = vpop.f32.mrb[186].mxu0 }
 0x283   : > { %6966 = vst.msk [vmem:[#allocation3 + $0x70] sm:$0xff] %vm1246_vm11, %v6918_v42  ;;  %6300 = vst.msk [vmem:[#allocation3 + $0x98] sm:$0xff] %vm1246_vm11, %v6252_v43  ;;  %v6869_v56 = vld [vmem:[#allocation3 + $0x68] sm:$0xff]  ;;  %v6732_v0 = vpop.f32.mrb[187].mxu0 }
 0x284   : > { %7962 = vst.msk [vmem:[%s10337_s19 + $0x14] sm:$0xf] %vm7025_vm13, %v8024_v50  ;;  %v6917_v61 = vadd.f32 %v6869_v56, %v6716_v47  ;;  %vm7075_vm3 = vcmp.gt.f32.partialorder %v7073_v10, 0.0  ;;  %v7077_v22 = vmul.f32 0.01, %v7073_v10  ;;  %v7070_v17 = vld [vmem:[#allocation3 + $0x48] sm:$0xff] }
 0x285   : > { %6964 = vst.msk [vmem:[#allocation3 + $0x60] sm:$0xff] %vm1246_vm11, %v6916_v6  ;;  %6298 = vst.msk [vmem:[#allocation3 + $0x88] sm:$0xff] %vm1246_vm11, %v6250_v9  ;;  %v7072_v23 = vadd.f32 %v10319_v46, %v7070_v17  ;;  %v8650_v37 = vpop.f32.mrb[188].mxu1  ;;  %v6212_v50 = vld [vmem:[#allocation3 + $0xd8] sm:$0xff]  ;;  %v6210_v56 = vld [vmem:[#allocation3 + $0xc8] sm:$0xff] }
 0x286   : > { %6967 = vst.msk [vmem:[#allocation3 + $0x78] sm:$0xff] %vm1246_vm11, %v6919_v16  ;;  %6965 = vst.msk [vmem:[#allocation3 + $0x68] sm:$0xff] %vm1246_vm11, %v6917_v61  ;;  %v7079_v1 = vsel %vm7075_vm3, %v7073_v10, %v7077_v22  ;;  %v6255_v59 = vadd.f32 %v8650_v37, %v6207_v26  ;;  %v6074_v63 = vpop.f32.mrb[189].mxu1  ;;  %v6874_v28 = vld [vmem:[#allocation3 + $0x90] sm:$0xff] }
 0x287   : > { %v8026_v27 = vpack.c.bf16 %v7079_v1, %v7079_v1  ;;  %vm7074_vm4 = vcmp.gt.f32.partialorder %v7072_v23, 0.0  ;;  %v7076_v21 = vmul.f32 0.01, %v7072_v23  ;;  %v6253_v29 = vadd.f32 %v6205_v11, %v6074_v63  ;;  %v8651_v62 = vpop.f32.mrb[190].mxu1  ;;  %v6872_v36 = vld [vmem:[#allocation3 + $0x80] sm:$0xff] }
 0x288   : > { %v6922_v32 = vadd.f32 %v8696_v60, %v6874_v28  ;;  %6303 = vst.msk [vmem:[#allocation3 + $0xb0] sm:$0xff] %vm1246_vm11, %v6255_v59  ;;  %v6256_v33 = vadd.f32 %v8651_v62, %v6208_v30  ;;  %v6077_v35 = vpop.f32.mrb[191].mxu1  ;;  %v6920_v39 = vadd.f32 %v6872_v36, %v6729_v12  ;;  %v8700_v31 = vpop.f32.mrb[188].mxu0  ;;  %v6215_v36 = vld [vmem:[#allocation3 + $0xf0] sm:$0xff] }
 0x289   : > { %7966 = vst.msk [vmem:[%s10337_s19 + $0x1c] sm:$0xf] %vm7025_vm13, %v8026_v27  ;;  %v7078_v38 = vsel %vm7074_vm4, %v7072_v23, %v7076_v21  ;;  %v6254_v18 = vadd.f32 %v6206_v7, %v6077_v35  ;;  %v6745_v48 = vpop.f32.mrb[189].mxu0 }
 0x28a   : > { %6301 = vst.msk [vmem:[#allocation3 + $0xa0] sm:$0xff] %vm1246_vm11, %v6253_v29  ;;  %v6875_v13 = vld [vmem:[#allocation3 + $0x98] sm:$0xff]  ;;  %v8025_v44 = vpack.c.bf16 %v7078_v38, %v7078_v38  ;;  %6970 = vst.msk [vmem:[#allocation3 + $0x90] sm:$0xff] %vm1246_vm11, %v6922_v32  ;;  %v8701_v51 = vpop.f32.mrb[190].mxu0 }
 0x28b   : > { %v6923_v24 = vadd.f32 %v8697_v19, %v6875_v13  ;;  %6304 = vst.msk [vmem:[#allocation3 + $0xb8] sm:$0xff] %vm1246_vm11, %v6256_v33  ;;  %6968 = vst.msk [vmem:[#allocation3 + $0x80] sm:$0xff] %vm1246_vm11, %v6920_v39  ;;  %v6748_v55 = vpop.f32.mrb[191].mxu0  ;;  %v6213_v13 = vld [vmem:[#allocation3 + $0xe0] sm:$0xff] }
 0x28c   : > { %v7091_v25 = vld [vmem:[#allocation3 + $0x60] sm:$0xff]  ;;  %v6873_v15 = vld [vmem:[#allocation3 + $0x88] sm:$0xff]  ;;  %6302 = vst.msk [vmem:[#allocation3 + $0xa8] sm:$0xff] %vm1246_vm11, %v6254_v18  ;;  %v8654_v54 = vpop.f32.mrb[192].mxu1 }
 0x28d   : > { %v7093_v45 = vadd.f32 %v10319_v46, %v7091_v25  ;;  %v7112_v14 = vld [vmem:[#allocation3 + $0x78] sm:$0xff]  ;;  %v6921_v47 = vadd.f32 %v6873_v15, %v6732_v0  ;;  %7965 = vst.msk [vmem:[%s10337_s19 + $0x18] sm:$0xf] %vm7025_vm13, %v8025_v44  ;;  %v7092_v49 = vld [vmem:[#allocation3 + $0x68] sm:$0xff]  ;;  %v6259_v34 = vadd.f32 %v8654_v54, %v6211_v57  ;;  %v6090_v41 = vpop.f32.mrb[193].mxu1 }
 0x28e   : > { %v7114_v20 = vadd.f32 %v10319_v46, %v7112_v14  ;;  %6971 = vst.msk [vmem:[#allocation3 + $0x98] sm:$0xff] %vm1246_vm11, %v6923_v24  ;;  %v7094_v53 = vadd.f32 %v10319_v46, %v7092_v49  ;;  %v6257_v40 = vadd.f32 %v6209_v58, %v6090_v41  ;;  %v8655_v5 = vpop.f32.mrb[194].mxu1 }
 0x28f   : > { %vm7095_vm5 = vcmp.gt.f32.partialorder %v7093_v45, 0.0  ;;  %v7097_v52 = vmul.f32 0.01, %v7093_v45  ;;  %6969 = vst.msk [vmem:[#allocation3 + $0x88] sm:$0xff] %vm1246_vm11, %v6921_v47  ;;  %v6878_v43 = vld [vmem:[#allocation3 + $0xb0] sm:$0xff]  ;;  %6307 = vst.msk [vmem:[#allocation3 + $0xd0] sm:$0xff] %vm1246_vm11, %v6259_v34  ;;  %v6260_v10 = vadd.f32 %v8655_v5, %v6212_v50 }
 0x290   : > { %vm7116_vm6 = vcmp.gt.f32.partialorder %v7114_v20, 0.0  ;;  %v7118_v3 = vmul.f32 0.01, %v7114_v20  ;;  %vm7096_vm7 = vcmp.gt.f32.partialorder %v7094_v53, 0.0  ;;  %v7098_v2 = vmul.f32 0.01, %v7094_v53 }
 0x291   : > { %v7099_v42 = vsel %vm7095_vm5, %v7093_v45, %v7097_v52  ;;  %v6926_v8 = vadd.f32 %v8700_v31, %v6878_v43  ;;  %v6876_v9 = vld [vmem:[#allocation3 + $0xa0] sm:$0xff]  ;;  %v6093_v16 = vpop.f32.mrb[195].mxu1  ;;  %v7133_v12 = vld [vmem:[#allocation3 + $0x90] sm:$0xff]  ;;  %6305 = vst.msk [vmem:[#allocation3 + $0xc0] sm:$0xff] %vm1246_vm11, %v6257_v40  ;;  %6308 = vst.msk [vmem:[#allocation3 + $0xd8] sm:$0xff] %vm1246_vm11, %v6260_v10  ;;  %v8704_v59 = vpop.f32.mrb[192].mxu0 }
 0x292   : > { %v8027_v4 = vpack.c.bf16 %v7099_v42, %v7099_v42  ;;  %v7120_v6 = vsel %vm7116_vm6, %v7114_v20, %v7118_v3  ;;  %v7100_v61 = vsel %vm7096_vm7, %v7094_v53, %v7098_v2  ;;  %v6924_v22 = vadd.f32 %v6876_v9, %v6745_v48  ;;  %v6879_v17 = vld [vmem:[#allocation3 + $0xb8] sm:$0xff]  ;;  %v7113_v26 = vld [vmem:[#allocation3 + $0x80] sm:$0xff]  ;;  %v6761_v21 = vpop.f32.mrb[193].mxu0 }
 0x293   : > { %v8029_v60 = vpack.c.bf16 %v7120_v6, %v7120_v6  ;;  %v6258_v19 = vadd.f32 %v6210_v56, %v6093_v16  ;;  %v8028_v23 = vpack.c.bf16 %v7100_v61, %v7100_v61  ;;  %v7135_v37 = vadd.f32 %v10319_v46, %v7133_v12  ;;  %6974 = vst.msk [vmem:[#allocation3 + $0xb0] sm:$0xff] %vm1246_vm11, %v6926_v8  ;;  %v6877_v1 = vld [vmem:[#allocation3 + $0xa8] sm:$0xff]  ;;  %v8705_v62 = vpop.f32.mrb[194].mxu0  ;;  %v6216_v31 = vld [vmem:[#allocation3 + $0xf8] sm:$0xff]  ;;  %v6219_v6 = vld [vmem:[#allocation3 + $0x110] sm:$0xff] }
 0x294   : > { %7969 = vst.msk [vmem:[%s10337_s19 + $0x20] sm:$0xf] %vm7025_vm13, %v8027_v4  ;;  %v6927_v0 = vadd.f32 %v8701_v51, %v6879_v17  ;;  %v7115_v63 = vadd.f32 %v10319_v46, %v7113_v26  ;;  %v6925_v27 = vadd.f32 %v6877_v1, %v6748_v55  ;;  %v8658_v32 = vpop.f32.mrb[196].mxu1  ;;  %v6764_v33 = vpop.f32.mrb[195].mxu0  ;;  %v6214_v51 = vld [vmem:[#allocation3 + $0xe8] sm:$0xff]  ;;  %v6217_v56 = vld [vmem:[#allocation3 + $0x100] sm:$0xff] }
 0x295   : > { %7973 = vst.msk [vmem:[%s10337_s19 + $0x28] sm:$0xf] %vm7025_vm13, %v8029_v60  ;;  %v7134_v11 = vld [vmem:[#allocation3 + $0x98] sm:$0xff]  ;;  %7970 = vst.msk [vmem:[%s10337_s19 + $0x24] sm:$0xf] %vm7025_vm13, %v8028_v23  ;;  %vm7137_vm8 = vcmp.gt.f32.partialorder %v7135_v37, 0.0  ;;  %v6263_v38 = vadd.f32 %v8658_v32, %v6215_v36 }
 0x296   : > { %6972 = vst.msk [vmem:[#allocation3 + $0xa0] sm:$0xff] %vm1246_vm11, %v6924_v22  ;;  %6306 = vst.msk [vmem:[#allocation3 + $0xc8] sm:$0xff] %vm1246_vm11, %v6258_v19  ;;  %v7139_v28 = vmul.f32 0.01, %v7135_v37  ;;  %v7136_v29 = vadd.f32 %v10319_v46, %v7134_v11  ;;  %vm7117_vm9 = vcmp.gt.f32.partialorder %v7115_v63, 0.0  ;;  %v6106_v39 = vpop.f32.mrb[197].mxu1 }
 0x297   : > { %6975 = vst.msk [vmem:[#allocation3 + $0xb8] sm:$0xff] %vm1246_vm11, %v6927_v0  ;;  %v7119_v30 = vmul.f32 0.01, %v7115_v63  ;;  %6973 = vst.msk [vmem:[#allocation3 + $0xa8] sm:$0xff] %vm1246_vm11, %v6925_v27  ;;  %v6882_v25 = vld [vmem:[#allocation3 + $0xd0] sm:$0xff]  ;;  %v6261_v24 = vadd.f32 %v6213_v13, %v6106_v39  ;;  %v8659_v15 = vpop.f32.mrb[198].mxu1 }
 0x298   : > { %v7141_v35 = vsel %vm7137_vm8, %v7135_v37, %v7139_v28  ;;  %vm7138_vm10 = vcmp.gt.f32.partialorder %v7136_v29, 0.0  ;;  %v7140_v7 = vmul.f32 0.01, %v7136_v29  ;;  %v6930_v47 = vadd.f32 %v8704_v59, %v6882_v25  ;;  %6311 = vst.msk [vmem:[#allocation3 + $0xf0] sm:$0xff] %vm1246_vm11, %v6263_v38  ;;  %v6880_v48 = vld [vmem:[#allocation3 + $0xc0] sm:$0xff]  ;;  %v6109_v49 = vpop.f32.mrb[199].mxu1 }
 0x299   : > { %v8031_v18 = vpack.c.bf16 %v7141_v35, %v7141_v35  ;;  %v7121_v44 = vsel %vm7117_vm9, %v7115_v63, %v7119_v30  ;;  %v6264_v20 = vadd.f32 %v8659_v15, %v6216_v31  ;;  %v6928_v54 = vadd.f32 %v6880_v48, %v6761_v21  ;;  %6309 = vst.msk [vmem:[#allocation3 + $0xe0] sm:$0xff] %vm1246_vm11, %v6261_v24  ;;  %v6883_v57 = vld [vmem:[#allocation3 + $0xd8] sm:$0xff]  ;;  %v8708_v58 = vpop.f32.mrb[196].mxu0  ;;  %v6218_v1 = vld [vmem:[#allocation3 + $0x108] sm:$0xff]  ;;  %v6223_v25 = vld [vmem:[#allocation3 + $0x130] sm:$0xff] }
 0x29a   : > { %v8030_v45 = vpack.c.bf16 %v7121_v44, %v7121_v44  ;;  %v7142_v14 = vsel %vm7138_vm10, %v7136_v29, %v7140_v7  ;;  %v7155_v53 = vld [vmem:[#allocation3 + $0xb0] sm:$0xff]  ;;  %v6262_v55 = vadd.f32 %v6214_v51, %v6109_v49  ;;  %6978 = vst.msk [vmem:[#allocation3 + $0xd0] sm:$0xff] %vm1246_vm11, %v6930_v47  ;;  %v6931_v34 = vadd.f32 %v8705_v62, %v6883_v57  ;;  %v6777_v2 = vpop.f32.mrb[197].mxu0  ;;  %v6220_v19 = vld [vmem:[#allocation3 + $0x118] sm:$0xff] }
 0x29b   : > { %7977 = vst.msk [vmem:[%s10337_s19 + $0x30] sm:$0xf] %vm7025_vm13, %v8031_v18  ;;  %v8032_v52 = vpack.c.bf16 %v7142_v14, %v7142_v14  ;;  %v7157_v3 = vadd.f32 %v10319_v46, %v7155_v53  ;;  %v8709_v5 = vpop.f32.mrb[198].mxu0  ;;  %v6221_v14 = vld [vmem:[#allocation3 + $0x120] sm:$0xff] }
 0x29c   : > { %7974 = vst.msk [vmem:[%s10337_s19 + $0x2c] sm:$0xf] %vm7025_vm13, %v8030_v45  ;;  %v8662_v4 = vpop.f32.mrb[200].mxu1  ;;  %v6780_v8 = vpop.f32.mrb[199].mxu0 }
 0x29d   : > { %6312 = vst.msk [vmem:[#allocation3 + $0xf8] sm:$0xff] %vm1246_vm11, %v6264_v20  ;;  %v6881_v41 = vld [vmem:[#allocation3 + $0xc8] sm:$0xff]  ;;  %6976 = vst.msk [vmem:[#allocation3 + $0xc0] sm:$0xff] %vm1246_vm11, %v6928_v54  ;;  %vm7159_vm12 = vcmp.gt.f32.partialorder %v7157_v3, 0.0  ;;  %v7161_v43 = vmul.f32 0.01, %v7157_v3  ;;  %v6267_v10 = vadd.f32 %v8662_v4, %v6219_v6 }
 0x29e   : > { %7978 = vst.msk [vmem:[%s10337_s19 + $0x34] sm:$0xf] %vm7025_vm13, %v8032_v52  ;;  %v6929_v42 = vadd.f32 %v6881_v41, %v6764_v33  ;;  %v7154_v40 = vld [vmem:[#allocation3 + $0xa8] sm:$0xff]  ;;  %v6122_v16 = vpop.f32.mrb[201].mxu1  ;;  %v6224_v52 = vld [vmem:[#allocation3 + $0x138] sm:$0xff] }
 0x29f   : > { %6310 = vst.msk [vmem:[#allocation3 + $0xe8] sm:$0xff] %vm1246_vm11, %v6262_v55  ;;  %6979 = vst.msk [vmem:[#allocation3 + $0xd8] sm:$0xff] %vm1246_vm11, %v6931_v34  ;;  %v7156_v50 = vadd.f32 %v10319_v46, %v7154_v40  ;;  %v7163_v9 = vsel %vm7159_vm12, %v7157_v3, %v7161_v43  ;;  %v6886_v12 = vld [vmem:[#allocation3 + $0xf0] sm:$0xff]  ;;  %v6265_v22 = vadd.f32 %v6217_v56, %v6122_v16  ;;  %v8663_v17 = vpop.f32.mrb[202].mxu1  ;;  %v6222_v41 = vld [vmem:[#allocation3 + $0x128] sm:$0xff] }
 0x2a0   : > { %6977 = vst.msk [vmem:[#allocation3 + $0xc8] sm:$0xff] %vm1246_vm11, %v6929_v42  ;;  %v8034_v60 = vpack.c.bf16 %v7163_v9, %v7163_v9  ;;  %v6934_v23 = vadd.f32 %v8708_v58, %v6886_v12  ;;  %6315 = vst.msk [vmem:[#allocation3 + $0x110] sm:$0xff] %vm1246_vm11, %v6267_v10  ;;  %v6884_v37 = vld [vmem:[#allocation3 + $0xe0] sm:$0xff]  ;;  %v6268_v26 = vadd.f32 %v8663_v17, %v6220_v19  ;;  %v6125_v0 = vpop.f32.mrb[203].mxu1  ;;  %v8712_v30 = vpop.f32.mrb[200].mxu0 }
 0x2a1   : > { %vm7158_vm14 = vcmp.gt.f32.partialorder %v7156_v50, 0.0  ;;  %v7160_v61 = vmul.f32 0.01, %v7156_v50  ;;  %v6932_v63 = vadd.f32 %v6884_v37, %v6777_v2  ;;  %6313 = vst.msk [vmem:[#allocation3 + $0x100] sm:$0xff] %vm1246_vm11, %v6265_v22  ;;  %v6266_v27 = vadd.f32 %v6218_v1, %v6125_v0  ;;  %v6793_v35 = vpop.f32.mrb[201].mxu0  ;;  %v6227_v37 = vld [vmem:[#allocation3 + $0x150] sm:$0xff] }
 0x2a2   : > { %7982 = vst.msk [vmem:[%s10337_s19 + $0x3c] sm:$0xf] %vm7025_vm13, %v8034_v60  ;;  %v8713_v39 = vpop.f32.mrb[202].mxu0 }
 0x2a3   : > { %v7162_v59 = vsel %vm7158_vm14, %v7156_v50, %v7160_v61  ;;  %6982 = vst.msk [vmem:[#allocation3 + $0xf0] sm:$0xff] %vm1246_vm11, %v6934_v23  ;;  %6316 = vst.msk [vmem:[#allocation3 + $0x118] sm:$0xff] %vm1246_vm11, %v6268_v26  ;;  %v6796_v24 = vpop.f32.mrb[203].mxu0 }
 0x2a4   : > { %v6887_v11 = vld [vmem:[#allocation3 + $0xf8] sm:$0xff]  ;;  %v8033_v21 = vpack.c.bf16 %v7162_v59, %v7162_v59  ;;  %v7175_v28 = vld [vmem:[#allocation3 + $0xc0] sm:$0xff]  ;;  %6980 = vst.msk [vmem:[#allocation3 + $0xe0] sm:$0xff] %vm1246_vm11, %v6932_v63  ;;  %6314 = vst.msk [vmem:[#allocation3 + $0x108] sm:$0xff] %vm1246_vm11, %v6266_v27  ;;  %v8666_v44 = vpop.f32.mrb[204].mxu1 }
 0x2a5   : > { %v6935_v29 = vadd.f32 %v8709_v5, %v6887_v11  ;;  %v7177_v32 = vadd.f32 %v10319_v46, %v7175_v28  ;;  %v6271_v31 = vadd.f32 %v8666_v44, %v6223_v25  ;;  %v6138_v45 = vpop.f32.mrb[205].mxu1  ;;  %v6225_v11 = vld [vmem:[#allocation3 + $0x140] sm:$0xff] }
 0x2a6   : > { %v6885_v62 = vld [vmem:[#allocation3 + $0xe8] sm:$0xff]  ;;  %v7196_v36 = vld [vmem:[#allocation3 + $0xd8] sm:$0xff]  ;;  %7981 = vst.msk [vmem:[%s10337_s19 + $0x38] sm:$0xf] %vm7025_vm13, %v8033_v21  ;;  %v6269_v49 = vadd.f32 %v6221_v14, %v6138_v45  ;;  %v8667_v51 = vpop.f32.mrb[206].mxu1 }
 0x2a7   : > { %v6933_v33 = vadd.f32 %v6885_v62, %v6780_v8  ;;  %v7198_v7 = vadd.f32 %v10319_v46, %v7196_v36  ;;  %v7176_v38 = vld [vmem:[#allocation3 + $0xc8] sm:$0xff]  ;;  %6983 = vst.msk [vmem:[#allocation3 + $0xf8] sm:$0xff] %vm1246_vm11, %v6935_v29  ;;  %vm7179_vm15 = vcmp.gt.f32.partialorder %v7177_v32, 0.0  ;;  %v7181_v13 = vmul.f32 0.01, %v7177_v32  ;;  %v6890_v20 = vld [vmem:[#allocation3 + $0x110] sm:$0xff] }
 0x2a8   : > { %v7178_v18 = vadd.f32 %v10319_v46, %v7176_v38  ;;  %v6938_v57 = vadd.f32 %v8712_v30, %v6890_v20  ;;  %6319 = vst.msk [vmem:[#allocation3 + $0x130] sm:$0xff] %vm1246_vm11, %v6271_v31  ;;  %v6888_v55 = vld [vmem:[#allocation3 + $0x100] sm:$0xff]  ;;  %v6272_v3 = vadd.f32 %v8667_v51, %v6224_v52  ;;  %v6141_v34 = vpop.f32.mrb[207].mxu1  ;;  %6317 = vst.msk [vmem:[#allocation3 + $0x120] sm:$0xff] %vm1246_vm11, %v6269_v49  ;;  %v8716_v10 = vpop.f32.mrb[204].mxu0  ;;  %v6228_v30 = vld [vmem:[#allocation3 + $0x158] sm:$0xff] }
 0x2a9   : > { %6981 = vst.msk [vmem:[#allocation3 + $0xe8] sm:$0xff] %vm1246_vm11, %v6933_v33  ;;  %vm7200_vm0 = vcmp.gt.f32.partialorder %v7198_v7, 0.0  ;;  %v7202_v15 = vmul.f32 0.01, %v7198_v7  ;;  %v7183_v47 = vsel %vm7179_vm15, %v7177_v32, %v7181_v13  ;;  %v6936_v43 = vadd.f32 %v6888_v55, %v6793_v35  ;;  %v6809_v61 = vpop.f32.mrb[205].mxu0 }
 0x2aa   : > { %vm7180_vm1 = vcmp.gt.f32.partialorder %v7178_v18, 0.0  ;;  %v7182_v48 = vmul.f32 0.01, %v7178_v18  ;;  %v8035_v53 = vpack.c.bf16 %v7183_v47, %v7183_v47  ;;  %v7217_v2 = vld [vmem:[#allocation3 + $0xf0] sm:$0xff]  ;;  %v6891_v40 = vld [vmem:[#allocation3 + $0x118] sm:$0xff]  ;;  %v6270_v5 = vadd.f32 %v6222_v41, %v6141_v34  ;;  %6986 = vst.msk [vmem:[#allocation3 + $0x110] sm:$0xff] %vm1246_vm11, %v6938_v57 }
 0x2ab   : > { %v7204_v54 = vsel %vm7200_vm0, %v7198_v7, %v7202_v15  ;;  %v7219_v4 = vadd.f32 %v10319_v46, %v7217_v2  ;;  %v7197_v6 = vld [vmem:[#allocation3 + $0xe0] sm:$0xff]  ;;  %v6939_v8 = vadd.f32 %v8713_v39, %v6891_v40  ;;  %6320 = vst.msk [vmem:[#allocation3 + $0x138] sm:$0xff] %vm1246_vm11, %v6272_v3  ;;  %v6889_v9 = vld [vmem:[#allocation3 + $0x108] sm:$0xff]  ;;  %6984 = vst.msk [vmem:[#allocation3 + $0x100] sm:$0xff] %vm1246_vm11, %v6936_v43  ;;  %v8717_v17 = vpop.f32.mrb[206].mxu0 }
 0x2ac   : > { %v8037_v58 = vpack.c.bf16 %v7204_v54, %v7204_v54  ;;  %v7184_v42 = vsel %vm7180_vm1, %v7178_v18, %v7182_v48  ;;  %7985 = vst.msk [vmem:[%s10337_s19 + $0x40] sm:$0xf] %vm7025_vm13, %v8035_v53  ;;  %v7199_v16 = vadd.f32 %v10319_v46, %v7197_v6  ;;  %v6937_v60 = vadd.f32 %v6889_v9, %v6796_v24  ;;  %v8670_v23 = vpop.f32.mrb[208].mxu1  ;;  %v6812_v26 = vpop.f32.mrb[207].mxu0  ;;  %v6226_v39 = vld [vmem:[#allocation3 + $0x148] sm:$0xff]  ;;  %v6231_v54 = vld [vmem:[#allocation3 + $0x170] sm:$0xff] }
 0x2ad   : > { %v8036_v50 = vpack.c.bf16 %v7184_v42, %v7184_v42  ;;  %6318 = vst.msk [vmem:[#allocation3 + $0x128] sm:$0xff] %vm1246_vm11, %v6270_v5  ;;  %vm7221_vm2 = vcmp.gt.f32.partialorder %v7219_v4, 0.0  ;;  %v7223_v12 = vmul.f32 0.01, %v7219_v4  ;;  %6987 = vst.msk [vmem:[#allocation3 + $0x118] sm:$0xff] %vm1246_vm11, %v6939_v8  ;;  %v6275_v59 = vadd.f32 %v8670_v23, %v6227_v37  ;;  %v6154_v63 = vpop.f32.mrb[209].mxu1 }
 0x2ae   : > { %7989 = vst.msk [vmem:[%s10337_s19 + $0x48] sm:$0xf] %vm7025_vm13, %v8037_v58  ;;  %v7218_v56 = vld [vmem:[#allocation3 + $0xf8] sm:$0xff]  ;;  %vm7201_vm3 = vcmp.gt.f32.partialorder %v7199_v16, 0.0  ;;  %v7203_v19 = vmul.f32 0.01, %v7199_v16  ;;  %v6273_v29 = vadd.f32 %v6225_v11, %v6154_v63 }
 0x2af   : > { %7986 = vst.msk [vmem:[%s10337_s19 + $0x44] sm:$0xf] %vm7025_vm13, %v8036_v50  ;;  %v7220_v22 = vadd.f32 %v10319_v46, %v7218_v56  ;;  %v7225_v0 = vsel %vm7221_vm2, %v7219_v4, %v7223_v12  ;;  %v6894_v28 = vld [vmem:[#allocation3 + $0x130] sm:$0xff]  ;;  %v8671_v62 = vpop.f32.mrb[210].mxu1  ;;  %v6892_v35 = vld [vmem:[#allocation3 + $0x120] sm:$0xff]  ;;  %v6232_v5 = vld [vmem:[#allocation3 + $0x178] sm:$0xff] }
 0x2b0   : > { %6985 = vst.msk [vmem:[#allocation3 + $0x108] sm:$0xff] %vm1246_vm11, %v6937_v60  ;;  %v8039_v27 = vpack.c.bf16 %v7225_v0, %v7225_v0  ;;  %v7205_v21 = vsel %vm7201_vm3, %v7199_v16, %v7203_v19  ;;  %v6942_v33 = vadd.f32 %v8716_v10, %v6894_v28  ;;  %6323 = vst.msk [vmem:[#allocation3 + $0x150] sm:$0xff] %vm1246_vm11, %v6275_v59  ;;  %v6157_v38 = vpop.f32.mrb[211].mxu1  ;;  %v8720_v14 = vpop.f32.mrb[208].mxu0  ;;  %v6229_v41 = vld [vmem:[#allocation3 + $0x160] sm:$0xff]  ;;  %v6230_v9 = vld [vmem:[#allocation3 + $0x168] sm:$0xff] }
 0x2b1   : > { %vm7222_vm4 = vcmp.gt.f32.partialorder %v7220_v22, 0.0  ;;  %v7224_v1 = vmul.f32 0.01, %v7220_v22  ;;  %v8038_v32 = vpack.c.bf16 %v7205_v21, %v7205_v21  ;;  %v6276_v7 = vadd.f32 %v8671_v62, %v6228_v30  ;;  %v7239_v18 = vld [vmem:[#allocation3 + $0x110] sm:$0xff]  ;;  %6321 = vst.msk [vmem:[#allocation3 + $0x140] sm:$0xff] %vm1246_vm11, %v6273_v29  ;;  %v6825_v48 = vpop.f32.mrb[209].mxu0 }
 0x2b2   : > { %7993 = vst.msk [vmem:[%s10337_s19 + $0x50] sm:$0xf] %vm7025_vm13, %v8039_v27  ;;  %v6940_v44 = vadd.f32 %v6892_v35, %v6809_v61  ;;  %v6895_v25 = vld [vmem:[#allocation3 + $0x138] sm:$0xff]  ;;  %v6274_v24 = vadd.f32 %v6226_v39, %v6157_v38  ;;  %v7241_v15 = vadd.f32 %v10319_v46, %v7239_v18  ;;  %v8721_v51 = vpop.f32.mrb[210].mxu0 }
 0x2b3   : > { %v7226_v36 = vsel %vm7222_vm4, %v7220_v22, %v7224_v1  ;;  %7990 = vst.msk [vmem:[%s10337_s19 + $0x4c] sm:$0xf] %vm7025_vm13, %v8038_v32  ;;  %v6943_v31 = vadd.f32 %v8717_v17, %v6895_v25  ;;  %v6828_v57 = vpop.f32.mrb[211].mxu0 }
 0x2b4   : > { %v8040_v13 = vpack.c.bf16 %v7226_v36, %v7226_v36  ;;  %6990 = vst.msk [vmem:[#allocation3 + $0x130] sm:$0xff] %vm1246_vm11, %v6942_v33  ;;  %6324 = vst.msk [vmem:[#allocation3 + $0x158] sm:$0xff] %vm1246_vm11, %v6276_v7  ;;  %v6893_v45 = vld [vmem:[#allocation3 + $0x128] sm:$0xff]  ;;  %vm7243_vm5 = vcmp.gt.f32.partialorder %v7241_v15, 0.0  ;;  %v7245_v20 = vmul.f32 0.01, %v7241_v15 }
 0x2b5   : > { %6988 = vst.msk [vmem:[#allocation3 + $0x120] sm:$0xff] %vm1246_vm11, %v6940_v44  ;;  %v6941_v47 = vadd.f32 %v6893_v45, %v6812_v26  ;;  %6322 = vst.msk [vmem:[#allocation3 + $0x148] sm:$0xff] %vm1246_vm11, %v6274_v24  ;;  %v8674_v53 = vpop.f32.mrb[212].mxu1  ;;  %v8984_v45 = vld [vmem:[%s10518_s2] ss:$0 sm:$0xff] }
 0x2b6   : > { %7994 = vst.msk [vmem:[%s10337_s19 + $0x54] sm:$0xf] %vm7025_vm13, %v8040_v13  ;;  %v7247_v55 = vsel %vm7243_vm5, %v7241_v15, %v7245_v20  ;;  %v6279_v3 = vadd.f32 %v8674_v53, %v6231_v54  ;;  %v6170_v34 = vpop.f32.mrb[213].mxu1 }
 0x2b7   : > { %v7238_v49 = vld [vmem:[#allocation3 + $0x108] sm:$0xff]  ;;  %6991 = vst.msk [vmem:[#allocation3 + $0x138] sm:$0xff] %vm1246_vm11, %v6943_v31  ;;  %6989 = vst.msk [vmem:[#allocation3 + $0x128] sm:$0xff] %vm1246_vm11, %v6941_v47  ;;  %v8042_v58 = vpack.c.bf16 %v7247_v55, %v7247_v55  ;;  %v6898_v2 = vld [vmem:[#allocation3 + $0x150] sm:$0xff]  ;;  %v6277_v43 = vadd.f32 %v6229_v41, %v6170_v34  ;;  %v8675_v40 = vpop.f32.mrb[214].mxu1 }
 0x2b8   : > { %v7240_v52 = vadd.f32 %v10319_v46, %v7238_v49  ;;  %v6946_v50 = vadd.f32 %v8720_v14, %v6898_v2  ;;  %6327 = vst.msk [vmem:[#allocation3 + $0x170] sm:$0xff] %vm1246_vm11, %v6279_v3  ;;  %v6896_v4 = vld [vmem:[#allocation3 + $0x140] sm:$0xff]  ;;  %v6280_v6 = vadd.f32 %v8675_v40, %v6232_v5  ;;  %v6173_v8 = vpop.f32.mrb[215].mxu1  ;;  %v8724_v19 = vpop.f32.mrb[212].mxu0 }
 0x2b9   : > { %7998 = vst.msk [vmem:[%s10337_s19 + $0x5c] sm:$0xf] %vm7025_vm13, %v8042_v58  ;;  %v6944_v16 = vadd.f32 %v6896_v4, %v6825_v48  ;;  %v6278_v60 = vadd.f32 %v6230_v9, %v6173_v8  ;;  %v6841_v0 = vpop.f32.mrb[213].mxu0 }
 0x2ba   : > { %vm7242_vm6 = vcmp.gt.f32.partialorder %v7240_v52, 0.0  ;;  %v7244_v42 = vmul.f32 0.01, %v7240_v52  ;;  %6325 = vst.msk [vmem:[#allocation3 + $0x160] sm:$0xff] %vm1246_vm11, %v6277_v43  ;;  %6994 = vst.msk [vmem:[#allocation3 + $0x150] sm:$0xff] %vm1246_vm11, %v6946_v50  ;;  %v8725_v63 = vpop.f32.mrb[214].mxu0 }
 0x2bb   : > { %v6899_v56 = vld [vmem:[#allocation3 + $0x158] sm:$0xff]  ;;  %6328 = vst.msk [vmem:[#allocation3 + $0x178] sm:$0xff] %vm1246_vm11, %v6280_v6  ;;  %6992 = vst.msk [vmem:[#allocation3 + $0x140] sm:$0xff] %vm1246_vm11, %v6944_v16  ;;  %v6844_v21 = vpop.f32.mrb[215].mxu0 }
 0x2bc   : > { %v7246_v10 = vsel %vm7242_vm6, %v7240_v52, %v7244_v42  ;;  %v7259_v12 = vld [vmem:[#allocation3 + $0x120] sm:$0xff]  ;;  %v6947_v22 = vadd.f32 %v8721_v51, %v6899_v56  ;;  %v6897_v17 = vld [vmem:[#allocation3 + $0x148] sm:$0xff]  ;;  %6326 = vst.msk [vmem:[#allocation3 + $0x168] sm:$0xff] %vm1246_vm11, %v6278_v60 }
 0x2bd   : > { %v8041_v61 = vpack.c.bf16 %v7246_v10, %v7246_v10  ;;  %v7261_v23 = vadd.f32 %v10319_v46, %v7259_v12  ;;  %v6945_v26 = vadd.f32 %v6897_v17, %v6828_v57 }
 0x2be   : > { %v7280_v37 = vld [vmem:[#allocation3 + $0x138] sm:$0xff]  ;;  %v7260_v59 = vld [vmem:[#allocation3 + $0x128] sm:$0xff]  ;;  %6995 = vst.msk [vmem:[#allocation3 + $0x158] sm:$0xff] %vm1246_vm11, %v6947_v22 }
 0x2bf   : > { %7997 = vst.msk [vmem:[%s10337_s19 + $0x58] sm:$0xf] %vm7025_vm13, %v8041_v61  ;;  %v7282_v1 = vadd.f32 %v10319_v46, %v7280_v37  ;;  %vm7263_vm7 = vcmp.gt.f32.partialorder %v7261_v23, 0.0  ;;  %v7265_v11 = vmul.f32 0.01, %v7261_v23  ;;  %v7262_v27 = vadd.f32 %v10319_v46, %v7260_v59  ;;  %v6902_v30 = vld [vmem:[#allocation3 + $0x170] sm:$0xff] }
 0x2c0   : > { %6993 = vst.msk [vmem:[#allocation3 + $0x148] sm:$0xff] %vm1246_vm11, %v6945_v26  ;;  %v6950_v33 = vadd.f32 %v8724_v19, %v6902_v30 }
 0x2c1   : > { %vm7284_vm8 = vcmp.gt.f32.partialorder %v7282_v1, 0.0  ;;  %v7286_v28 = vmul.f32 0.01, %v7282_v1  ;;  %v7267_v29 = vsel %vm7263_vm7, %v7261_v23, %v7265_v11  ;;  %vm7264_vm9 = vcmp.gt.f32.partialorder %v7262_v27, 0.0  ;;  %v6900_v35 = vld [vmem:[#allocation3 + $0x160] sm:$0xff]  ;;  %v7301_v39 = vld [vmem:[#allocation3 + $0x150] sm:$0xff] }
 0x2c2   : > { %v7266_v62 = vmul.f32 0.01, %v7262_v27  ;;  %v8043_v32 = vpack.c.bf16 %v7267_v29, %v7267_v29  ;;  %v6948_v13 = vadd.f32 %v6900_v35, %v6841_v0  ;;  %v6903_v18 = vld [vmem:[#allocation3 + $0x178] sm:$0xff]  ;;  %v7303_v25 = vadd.f32 %v10319_v46, %v7301_v39  ;;  %v7281_v24 = vld [vmem:[#allocation3 + $0x140] sm:$0xff]  ;;  %6998 = vst.msk [vmem:[#allocation3 + $0x170] sm:$0xff] %vm1246_vm11, %v6950_v33 }
 0x2c3   : > { %v7288_v36 = vsel %vm7284_vm8, %v7282_v1, %v7286_v28  ;;  %v6951_v15 = vadd.f32 %v8725_v63, %v6903_v18  ;;  %v6901_v31 = vld [vmem:[#allocation3 + $0x168] sm:$0xff]  ;;  %v7283_v14 = vadd.f32 %v8984_v45, %v7281_v24 }
 0x2c4   : > { %v8045_v7 = vpack.c.bf16 %v7288_v36, %v7288_v36  ;;  %v7268_v38 = vsel %vm7264_vm9, %v7262_v27, %v7266_v62  ;;  %8001 = vst.msk [vmem:[%s10337_s19 + $0x60] sm:$0xf] %vm7025_vm13, %v8043_v32  ;;  %v6949_v48 = vadd.f32 %v6901_v31, %v6844_v21  ;;  %vm7305_vm10 = vcmp.gt.f32.partialorder %v7303_v25, 0.0 }
 0x2c5   : > { %v8044_v44 = vpack.c.bf16 %v7268_v38, %v7268_v38  ;;  %v7302_v47 = vld [vmem:[#allocation3 + $0x158] sm:$0xff]  ;;  %6996 = vst.msk [vmem:[#allocation3 + $0x160] sm:$0xff] %vm1246_vm11, %v6948_v13  ;;  %v7307_v46 = vmul.f32 0.01, %v7303_v25  ;;  %6999 = vst.msk [vmem:[#allocation3 + $0x178] sm:$0xff] %vm1246_vm11, %v6951_v15  ;;  %vm7285_vm12 = vcmp.gt.f32.partialorder %v7283_v14, 0.0 }
 0x2c6   : > { %8005 = vst.msk [vmem:[%s10337_s19 + $0x68] sm:$0xf] %vm7025_vm13, %v8045_v7  ;;  %v7304_v20 = vadd.f32 %v8984_v45, %v7302_v47  ;;  %v7287_v49 = vmul.f32 0.01, %v7283_v14 }
 0x2c7   : > { %8002 = vst.msk [vmem:[%s10337_s19 + $0x64] sm:$0xf] %vm7025_vm13, %v8044_v44  ;;  %v7309_v51 = vsel %vm7305_vm10, %v7303_v25, %v7307_v46 }
 0x2c8   : > { %6997 = vst.msk [vmem:[#allocation3 + $0x168] sm:$0xff] %vm1246_vm11, %v6949_v48  ;;  %vm7306_vm14 = vcmp.gt.f32.partialorder %v7304_v20, 0.0  ;;  %v7308_v52 = vmul.f32 0.01, %v7304_v20  ;;  %v8047_v53 = vpack.c.bf16 %v7309_v51, %v7309_v51  ;;  %v7289_v54 = vsel %vm7285_vm12, %v7283_v14, %v7287_v49 }
 0x2c9   : > { %v8046_v57 = vpack.c.bf16 %v7289_v54, %v7289_v54  ;;  %v7323_v34 = vld [vmem:[#allocation3 + $0x170] sm:$0xff] }
 0x2ca   : > { %v7310_v55 = vsel %vm7306_vm14, %v7304_v20, %v7308_v52  ;;  %8009 = vst.msk [vmem:[%s10337_s19 + $0x70] sm:$0xf] %vm7025_vm13, %v8047_v53  ;;  %v7325_v41 = vadd.f32 %v8984_v45, %v7323_v34 }
 0x2cb   : > { %v8048_v3 = vpack.c.bf16 %v7310_v55, %v7310_v55  ;;  %8006 = vst.msk [vmem:[%s10337_s19 + $0x6c] sm:$0xf] %vm7025_vm13, %v8046_v57 }
 0x2cc   : > { %vm7327_vm15 = vcmp.gt.f32.partialorder %v7325_v41, 0.0  ;;  %v7329_v58 = vmul.f32 0.01, %v7325_v41 }
 0x2cd   : > { %8010 = vst.msk [vmem:[%s10337_s19 + $0x74] sm:$0xf] %vm7025_vm13, %v8048_v3 }
 0x2ce   : > { %v7331_v43 = vsel %vm7327_vm15, %v7325_v41, %v7329_v58 }
 0x2cf   : > { %v7322_v42 = vld [vmem:[#allocation3 + $0x168] sm:$0xff]  ;;  %v8050_v40 = vpack.c.bf16 %v7331_v43, %v7331_v43 }
 0x2d0   : > { %v7324_v2 = vadd.f32 %v8984_v45, %v7322_v42 }
 0x2d1   : > { %8014 = vst.msk [vmem:[%s10337_s19 + $0x7c] sm:$0xf] %vm7025_vm13, %v8050_v40 }
 0x2d2   : > { %vm7326_vm11 = vcmp.gt.f32.partialorder %v7324_v2, 0.0  ;;  %v7328_v5 = vmul.f32 0.01, %v7324_v2 }
 0x2d4   : > { %v7330_v50 = vsel %vm7326_vm11, %v7324_v2, %v7328_v5 }
 0x2d5   : > { %v8049_v4 = vpack.c.bf16 %v7330_v50, %v7330_v50 }
 0x2d7   : > { %8013 = vst.msk [vmem:[%s10337_s19 + $0x78] sm:$0xf] %vm7025_vm13, %v8049_v4 }
 0x2d8 PF: > { %s13_s14 = sadd.s32 1, %s9007_s14   ;;  %s10526_s12 = smov %s9003_s13 }
 0x2d9   : > { %p10_p5 = scmp.ge.s32.totalorder %s13_s14, 4   ;;  %s10527_s13 = smov %s10529_s15 }
 0x2db   :  { %12 = sbr.rel (!%p10_p5) target bundleno = 2 (0x2), region = 110 }

</bundles_post_ra>
